<compile_context>
chip_gen: v7x
topology: tpu7x:2x2x1
jax: 0.10.0
libtpu: 0.0.40
codegen_flags: <defaults>
</compile_context>

<pallas_src>
import jax
import jax.numpy as jnp
from jax.experimental import pallas as pl
from jax.experimental.pallas import tpu as pltpu

RMS_EPS = 1e-5
C_BETA = 1e-5


def _round_up(x, m):
    return ((x + m - 1) // m) * m


def _vmem_limit_bytes():
    """Generation-aware scoped-VMEM budget: ~5/8 of physical, capped at 64 MiB."""
    cap = 128 * 1024 * 1024
    try:
        cap = int(pltpu.get_tpu_info().vmem_capacity_bytes)
    except Exception:
        pass
    return min((cap * 5) // 8, 64 * 1024 * 1024)


def _choose_token_tile(n):
    """Return (tn, n_pad): fat token tiles, but keep >= 2 tiles when N allows
    so the 'parallel' token axis can shard across v7x's two TensorCores."""
    if n >= 2048:
        n_pad = _round_up(n, 512)
        return 512, n_pad
    if n >= 512:
        n_pad = _round_up(n, 16)
        return n_pad // 2, n_pad
    n_pad = _round_up(n, 8)
    return n_pad, n_pad


def _pick_unembed_tn(tn, n_pad, d, v, budget):
    """Shrink the unembed token tile only if the (tn, V) f32 slab would not fit."""
    t = tn
    while t > 8:
        need = (2 * t * v * 4      # double-buffered log_prob output tile
                + 2 * t * v * 4    # f32 logits working set
                + 2 * t * d * 4    # double-buffered x tile
                + 2 * d * v * 2)   # bf16 unembed weight (worst case 2 buffers)
        if need <= budget:
            break
        nt = t // 2
        if nt % 8 != 0 or n_pad % nt != 0:
            break
        t = nt
    return t


def _rmsnorm_f32(x, w):
    # x: [rows, D] f32, w: [1, D] f32.  Keep square/mean/rsqrt in f32.
    ms = jnp.mean(x * x, axis=-1, keepdims=True)
    return x * jax.lax.rsqrt(ms + RMS_EPS) * w


# ---------------------------------------------------------------------------
# Pallas kernels
# ---------------------------------------------------------------------------
def _stack_kernel(x_ref, nw_ref, w1_ref, b1_ref, w2_ref, b2_ref, o_ref, acc_ref):
    """Fused residual MLP stack.  Grid = (token_tiles, layers); the residual
    token tile is carried across the layer axis in a VMEM scratch accumulator:
        acc <- acc + W2 @ gelu(W1 @ rmsnorm(acc) + b1) + b2
    and only written to HBM after the last layer."""
    l = pl.program_id(1)

    @pl.when(l == 0)
    def _():
        acc_ref[...] = x_ref[...]

    x = acc_ref[...]                                           # f32 [TN, D]
    xn = _rmsnorm_f32(x, nw_ref[...]).astype(w1_ref.dtype)     # bf16 for the MXU
    h = jnp.dot(xn, w1_ref[...], preferred_element_type=jnp.float32) + b1_ref[...]
    h = jax.nn.gelu(h, approximate=True)                       # tanh form -> EUP
    y = jnp.dot(h.astype(w2_ref.dtype), w2_ref[...],
                preferred_element_type=jnp.float32) + b2_ref[...]
    acc_ref[...] = x + y

    @pl.when(l == pl.num_programs(1) - 1)
    def _():
        o_ref[...] = acc_ref[...].astype(o_ref.dtype)


def _unembed_logsoftmax_kernel(x_ref, nw_ref, wu_ref, bu_ref, lp_ref):
    """Fully fused unembed: rmsnorm -> logits -> log_softmax.  The full
    (lane-padded) vocab is one tile, so the [N, V] slab is written exactly once."""
    xn = _rmsnorm_f32(x_ref[...], nw_ref[...]).astype(wu_ref.dtype)
    logits = jnp.dot(xn, wu_ref[...],
                     preferred_element_type=jnp.float32) + bu_ref[...]
    m = jnp.max(logits, axis=-1, keepdims=True)
    lse = m + jnp.log(jnp.sum(jnp.exp(logits - m), axis=-1, keepdims=True))
    lp_ref[...] = logits - lse


# ---------------------------------------------------------------------------
# pallas_call wrappers
# ---------------------------------------------------------------------------
def residual_stack(x, norm_w, w1, b1, w2, b2, *, tn, vmem_limit):
    n, d = x.shape
    n_layers, _, h = w1.shape
    return pl.pallas_call(
        _stack_kernel,
        out_shape=jax.ShapeDtypeStruct((n, d), x.dtype),
        grid_spec=pltpu.PrefetchScalarGridSpec(
            num_scalar_prefetch=0,
            grid=(n // tn, n_layers),
            in_specs=[
                pl.BlockSpec((tn, d), lambda i, l: (i, 0)),        # x (per-i tile)
                pl.BlockSpec((None, 1, d), lambda i, l: (l, 0, 0)),  # norm_w[l]
                pl.BlockSpec((None, d, h), lambda i, l: (l, 0, 0)),  # w1[l]
                pl.BlockSpec((None, 1, h), lambda i, l: (l, 0, 0)),  # b1[l]
                pl.BlockSpec((None, h, d), lambda i, l: (l, 0, 0)),  # w2[l]
                pl.BlockSpec((None, 1, d), lambda i, l: (l, 0, 0)),  # b2[l]
            ],
            out_specs=pl.BlockSpec((tn, d), lambda i, l: (i, 0)),
            scratch_shapes=[pltpu.VMEM((tn, d), jnp.float32)],       # residual carry
        ),
        input_output_aliases={0: 0},      # residual slab updated in place
        compiler_params=pltpu.CompilerParams(
            dimension_semantics=("parallel", "arbitrary"),
            vmem_limit_bytes=vmem_limit,
        ),
    )(x, norm_w, w1, b1, w2, b2)


def unembed_log_softmax(x, norm_w, wu, bu, *, tn, vmem_limit):
    n, d = x.shape
    v = wu.shape[1]
    return pl.pallas_call(
        _unembed_logsoftmax_kernel,
        out_shape=jax.ShapeDtypeStruct((n, v), jnp.float32),
        grid_spec=pltpu.PrefetchScalarGridSpec(
            num_scalar_prefetch=0,
            grid=(n // tn,),
            in_specs=[
                pl.BlockSpec((tn, d), lambda i: (i, 0)),   # x tile (streamed)
                pl.BlockSpec((1, d), lambda i: (0, 0)),    # norm_w (resident)
                pl.BlockSpec((d, v), lambda i: (0, 0)),    # wu (resident, bf16)
                pl.BlockSpec((1, v), lambda i: (0, 0)),    # bu (resident)
            ],
            out_specs=pl.BlockSpec((tn, v), lambda i: (i, 0)),
        ),
        compiler_params=pltpu.CompilerParams(
            dimension_semantics=("parallel",),
            vmem_limit_bytes=vmem_limit,
        ),
    )(x, norm_w, wu, bu)


# ---------------------------------------------------------------------------
# Model wrapper (plain-JAX glue + Pallas hot path)
# ---------------------------------------------------------------------------
def init_params(key, vocab_size, dim, hidden, n_layers):
    k_emb, k_wu, k_w1, k_w2 = jax.random.split(key, 4)
    return {
        # nn.Embedding init: normal(0, 0.02); activations kept f32
        "token_embeds": 0.02 * jax.random.normal(k_emb, (vocab_size, dim), jnp.float32),
        # per-layer params stacked along a leading layer axis for the fused stack kernel
        "norm_w": jnp.ones((n_layers, 1, dim), jnp.float32),
        "w1": (0.02 * jax.random.normal(k_w1, (n_layers, dim, hidden), jnp.float32)
               ).astype(jnp.bfloat16),
        "b1": jnp.zeros((n_layers, 1, hidden), jnp.float32),
        "w2": (0.02 * jax.random.normal(k_w2, (n_layers, hidden, dim), jnp.float32)
               ).astype(jnp.bfloat16),
        "b2": jnp.zeros((n_layers, 1, dim), jnp.float32),
        "unembed_norm_w": jnp.ones((1, dim), jnp.float32),
        "wu": (0.02 * jax.random.normal(k_wu, (dim, vocab_size), jnp.float32)
               ).astype(jnp.bfloat16),
        "bu": jnp.zeros((1, vocab_size), jnp.float32),
    }


def vq_transformer_forward(params, input_ids, loss_mask=None, targets=None):
    b, t = input_ids.shape
    d = params["token_embeds"].shape[1]
    v = params["wu"].shape[1]
    n = b * t

    vmem_limit = _vmem_limit_bytes()
    tn, n_pad = _choose_token_tile(n)

    # embed (gather glue; position_embeds=None, dropout rate 0 -> identity)
    x = jnp.take(params["token_embeds"], input_ids, axis=0).reshape(n, d)
    if n_pad != n:
        x = jnp.pad(x, ((0, n_pad - n), (0, 0)))

    # residual layer stack in one fused kernel (aux-loss-free layers
    # => l_commit = l_codebook = 0)
    x = residual_stack(x, params["norm_w"], params["w1"], params["b1"],
                       params["w2"], params["b2"], tn=tn, vmem_limit=vmem_limit)

    # unembed + log_softmax in one pass; vocab padded to a lane-dense multiple
    # of 128 (padded bias is a huge negative so softmax is unaffected)
    wu, bu = params["wu"], params["bu"]
    v_pad = _round_up(v, 128)
    if v_pad != v:
        wu = jnp.pad(wu, ((0, 0), (0, v_pad - v)))
        bu = jnp.pad(bu, ((0, 0), (0, v_pad - v)), constant_values=-1e30)

    tn_u = _pick_unembed_tn(tn, n_pad, d, v_pad, vmem_limit)
    lp_full = unembed_log_softmax(x, params["unembed_norm_w"], wu, bu,
                                  tn=tn_u, vmem_limit=vmem_limit)
    lp_flat = lp_full[:n, :v]
    log_probs = lp_flat.reshape(b, t, v)

    zero = jnp.float32(0.0)
    if targets is not None:
        assert loss_mask is not None, "loss_mask must be provided during training"
        tgt = targets.reshape(-1)
        safe_tgt = jnp.where(tgt == -100, 0, tgt)
        picked = jnp.take_along_axis(lp_flat, safe_tgt[:, None], axis=1)[:, 0]
        # F.nll_loss(..., ignore_index=-100, reduction='none') -> 0 at ignored positions
        l_premask = jnp.where(tgt == -100, 0.0, -picked).reshape(b, t)
        mask = loss_mask.astype(jnp.float32)
        l_lm_unscaled = (l_premask * mask).sum() / (mask.sum() + 1e-6)
    else:
        l_lm_unscaled = zero

    l_commit = zero
    l_codebook = zero
    return {
        "logprobs": log_probs,
        "l_commit": l_commit,
        "l_codebook": l_codebook,
        "l_lm_unscaled": l_lm_unscaled,
        "loss": l_lm_unscaled + C_BETA * l_commit + l_codebook,
        "metrics": {},
    }


def reference_logprobs(params, input_ids):
    """Pure-JAX reference for correctness checking."""
    b, t = input_ids.shape
    d = params["token_embeds"].shape[1]
    x = jnp.take(params["token_embeds"], input_ids, axis=0).reshape(b * t, d)
    n_layers = params["w1"].shape[0]
    for l in range(n_layers):
        xn = _rmsnorm_f32(x, params["norm_w"][l]).astype(params["w1"].dtype)
        h = jnp.dot(xn, params["w1"][l], preferred_element_type=jnp.float32) + params["b1"][l]
        h = jax.nn.gelu(h, approximate=True)
        y = jnp.dot(h.astype(params["w2"].dtype), params["w2"][l],
                    preferred_element_type=jnp.float32) + params["b2"][l]
        x = x + y
    xn = _rmsnorm_f32(x, params["unembed_norm_w"]).astype(params["wu"].dtype)
    logits = jnp.dot(xn, params["wu"], preferred_element_type=jnp.float32) + params["bu"]
    return jax.nn.log_softmax(logits, axis=-1).reshape(b, t, -1)


if __name__ == "__main__":
    # small but lane-dense shapes (dim matches the module default of 128)
    VOCAB = 1024
    DIM = 128
    HIDDEN = 512
    N_LAYERS = 2
    B, T = 2, 256

    key = jax.random.PRNGKey(0)
    k_params, k_ids, k_tgt = jax.random.split(key, 3)

    params = init_params(k_params, VOCAB, DIM, HIDDEN, N_LAYERS)
    input_ids = jax.random.randint(k_ids, (B, T), 0, VOCAB, dtype=jnp.int32)
    targets = jax.random.randint(k_tgt, (B, T), 0, VOCAB, dtype=jnp.int32)
    loss_mask = jnp.ones((B, T), jnp.float32)

    fwd = jax.jit(vq_transformer_forward)
    out = fwd(params, input_ids, loss_mask=loss_mask, targets=targets)
    jax.block_until_ready(out["logprobs"])
    jax.block_until_ready(out["loss"])

    # sanity: shapes, finiteness, normalized rows, agreement with pure-JAX ref
    assert out["logprobs"].shape == (B, T, VOCAB)
    assert bool(jnp.isfinite(out["loss"]))
    row_sums = jnp.sum(jnp.exp(out["logprobs"]), axis=-1)
    assert bool(jnp.all(jnp.abs(row_sums - 1.0) < 1e-3)), "log_softmax not normalized"
    ref_lp = reference_logprobs(params, input_ids)
    max_err = float(jnp.max(jnp.abs(out["logprobs"] - ref_lp)))
    assert max_err < 5e-2, f"kernel vs reference mismatch: {max_err}"
    print("KERNEL_OK")
</pallas_src>

<mosaic_0001>
module attributes {stable_mosaic.version = 11 : i64} {
  func.func @_unembed_logsoftmax_kernel(%arg0: i32, %arg1: memref<256x128xf32, #tpu.memory_space<vmem>>, %arg2: memref<1x128xf32, #tpu.memory_space<vmem>>, %arg3: memref<128x1024xbf16, #tpu.memory_space<vmem>>, %arg4: memref<1x1024xf32, #tpu.memory_space<vmem>>, %arg5: memref<256x1024xf32, #tpu.memory_space<vmem>>) attributes {dimension_semantics = [#tpu.dimension_semantics<parallel>], iteration_bounds = array<i64: 2>, scalar_prefetch = 0 : i64, scratch_operands = 0 : i64, tpu.core_type = #tpu.core_type<tc>, window_params = [{transform_indices = @transform_0, window_bounds = array<i64: 256, 128>}, {pipeline_mode = #tpu.pipeline_mode<synchronous>, transform_indices = @transform_1, window_bounds = array<i64: 1, 128>}, {pipeline_mode = #tpu.pipeline_mode<synchronous>, transform_indices = @transform_2, window_bounds = array<i64: 128, 1024>}, {pipeline_mode = #tpu.pipeline_mode<synchronous>, transform_indices = @transform_3, window_bounds = array<i64: 1, 1024>}, {transform_indices = @transform_4, window_bounds = array<i64: 256, 1024>}]} {
    %c0 = arith.constant 0 : index
    %c0_0 = arith.constant 0 : index
    %0 = vector.load %arg1[%c0, %c0_0] : memref<256x128xf32, #tpu.memory_space<vmem>>, vector<256x128xf32>
    %c0_1 = arith.constant 0 : index
    %c0_2 = arith.constant 0 : index
    %1 = vector.load %arg2[%c0_1, %c0_2] : memref<1x128xf32, #tpu.memory_space<vmem>>, vector<1x128xf32>
    %2 = arith.mulf %0, %0 : vector<256x128xf32>
    %cst = arith.constant dense<0.000000e+00> : vector<256xf32>
    %3 = vector.multi_reduction <add>, %2, %cst [1] : vector<256x128xf32> to vector<256xf32>
    %4 = vector.shape_cast %3 : vector<256xf32> to vector<256x1xf32>
    %cst_3 = arith.constant 1.280000e+02 : f32
    %5 = vector.broadcast %cst_3 : f32 to vector<256x1xf32>
    %6 = arith.divf %4, %5 : vector<256x1xf32>
    %cst_4 = arith.constant 9.99999974E-6 : f32
    %7 = vector.broadcast %cst_4 : f32 to vector<256x1xf32>
    %8 = arith.addf %6, %7 : vector<256x1xf32>
    %9 = math.rsqrt %8 : vector<256x1xf32>
    %10 = vector.broadcast %9 : vector<256x1xf32> to vector<256x128xf32>
    %11 = arith.mulf %0, %10 : vector<256x128xf32>
    %12 = vector.broadcast %1 : vector<1x128xf32> to vector<256x128xf32>
    %13 = arith.mulf %11, %12 : vector<256x128xf32>
    %14 = arith.truncf %13 : vector<256x128xf32> to vector<256x128xbf16>
    %c0_5 = arith.constant 0 : index
    %c0_6 = arith.constant 0 : index
    %15 = vector.load %arg3[%c0_5, %c0_6] : memref<128x1024xbf16, #tpu.memory_space<vmem>>, vector<128x1024xbf16>
    %cst_7 = arith.constant dense<0.000000e+00> : vector<256x1024xf32>
    %16 = tpu.matmul %14, %15, %cst_7 {dimension_numbers = #tpu.dot_dimension_numbers<[1], [0], [0], [1], [0, 0, 1, 1], [], []>} : vector<256x128xbf16>, vector<128x1024xbf16>, vector<256x1024xf32> -> vector<256x1024xf32>
    %c0_8 = arith.constant 0 : index
    %c0_9 = arith.constant 0 : index
    %17 = vector.load %arg4[%c0_8, %c0_9] : memref<1x1024xf32, #tpu.memory_space<vmem>>, vector<1x1024xf32>
    %18 = vector.broadcast %17 : vector<1x1024xf32> to vector<256x1024xf32>
    %19 = arith.addf %16, %18 : vector<256x1024xf32>
    %cst_10 = arith.constant dense<0xFF800000> : vector<256xf32>
    %20 = vector.multi_reduction <maximumf>, %19, %cst_10 [1] : vector<256x1024xf32> to vector<256xf32>
    %21 = vector.shape_cast %20 : vector<256xf32> to vector<256x1xf32>
    %22 = vector.broadcast %21 : vector<256x1xf32> to vector<256x1024xf32>
    %23 = arith.subf %19, %22 : vector<256x1024xf32>
    %24 = math.exp %23 : vector<256x1024xf32>
    %cst_11 = arith.constant dense<0.000000e+00> : vector<256xf32>
    %25 = vector.multi_reduction <add>, %24, %cst_11 [1] : vector<256x1024xf32> to vector<256xf32>
    %26 = vector.shape_cast %25 : vector<256xf32> to vector<256x1xf32>
    %27 = math.log %26 : vector<256x1xf32>
    %28 = arith.addf %21, %27 : vector<256x1xf32>
    %29 = vector.broadcast %28 : vector<256x1xf32> to vector<256x1024xf32>
    %30 = arith.subf %19, %29 : vector<256x1024xf32>
    %c0_12 = arith.constant 0 : index
    %c0_13 = arith.constant 0 : index
    %31 = vector.load %arg5[%c0_12, %c0_13] : memref<256x1024xf32, #tpu.memory_space<vmem>>, vector<256x1024xf32>
    tpu.vector_store %arg5[%c0_12, %c0_13], %30 {strides = array<i32>} : memref<256x1024xf32, #tpu.memory_space<vmem>>, vector<256x1024xf32>,
    return
  }
  func.func @transform_0(%arg0: i32) -> (i32, i32) {
    %c0_i32 = arith.constant 0 : i32
    %c0_i32_0 = arith.constant 0 : i32
    return %arg0, %c0_i32 : i32, i32
  }
  func.func @transform_1(%arg0: i32) -> (i32, i32) {
    %c0_i32 = arith.constant 0 : i32
    %c0_i32_0 = arith.constant 0 : i32
    %c0_i32_1 = arith.constant 0 : i32
    return %c0_i32, %c0_i32_0 : i32, i32
  }
  func.func @transform_2(%arg0: i32) -> (i32, i32) {
    %c0_i32 = arith.constant 0 : i32
    %c0_i32_0 = arith.constant 0 : i32
    %c0_i32_1 = arith.constant 0 : i32
    return %c0_i32, %c0_i32_0 : i32, i32
  }
  func.func @transform_3(%arg0: i32) -> (i32, i32) {
    %c0_i32 = arith.constant 0 : i32
    %c0_i32_0 = arith.constant 0 : i32
    %c0_i32_1 = arith.constant 0 : i32
    return %c0_i32, %c0_i32_0 : i32, i32
  }
  func.func @transform_4(%arg0: i32) -> (i32, i32) {
    %c0_i32 = arith.constant 0 : i32
    %c0_i32_0 = arith.constant 0 : i32
    return %arg0, %c0_i32 : i32, i32
  }
}

module attributes {stable_mosaic.version = 11 : i64} {
  func.func @_stack_kernel(%arg0: i32, %arg1: i32, %arg2: memref<256x128xf32, #tpu.memory_space<vmem>>, %arg3: memref<1x1x128xf32, #tpu.memory_space<vmem>>, %arg4: memref<1x128x512xbf16, #tpu.memory_space<vmem>>, %arg5: memref<1x1x512xf32, #tpu.memory_space<vmem>>, %arg6: memref<1x512x128xbf16, #tpu.memory_space<vmem>>, %arg7: memref<1x1x128xf32, #tpu.memory_space<vmem>>, %arg8: memref<256x128xf32, #tpu.memory_space<vmem>>, %arg9: memref<256x128xf32, #tpu.memory_space<vmem>>) attributes {dimension_semantics = [#tpu.dimension_semantics<parallel>, #tpu.dimension_semantics<arbitrary>], iteration_bounds = array<i64: 2, 2>, scalar_prefetch = 0 : i64, scratch_operands = 1 : i64, tpu.core_type = #tpu.core_type<tc>, window_params = [{transform_indices = @transform_0, window_bounds = array<i64: 256, 128>}, {transform_indices = @transform_1, window_bounds = array<i64: 1, 1, 128>}, {transform_indices = @transform_2, window_bounds = array<i64: 1, 128, 512>}, {transform_indices = @transform_3, window_bounds = array<i64: 1, 1, 512>}, {transform_indices = @transform_4, window_bounds = array<i64: 1, 512, 128>}, {transform_indices = @transform_5, window_bounds = array<i64: 1, 1, 128>}, {transform_indices = @transform_6, window_bounds = array<i64: 256, 128>}]} {
    %c0_i32 = arith.constant 0 : i32
    %0 = arith.cmpi eq, %arg1, %c0_i32 : i32
    %1 = arith.extui %0 : i1 to i32
    %c0_i32_0 = arith.constant 0 : i32
    %2 = arith.cmpi ne, %1, %c0_i32_0 : i32
    scf.if %2 {
      %c0_28 = arith.constant 0 : index
      %c0_29 = arith.constant 0 : index
      %52 = vector.load %arg2[%c0_28, %c0_29] : memref<256x128xf32, #tpu.memory_space<vmem>>, vector<256x128xf32>
      %c0_30 = arith.constant 0 : index
      %c0_31 = arith.constant 0 : index
      %53 = vector.load %arg9[%c0_30, %c0_31] : memref<256x128xf32, #tpu.memory_space<vmem>>, vector<256x128xf32>
      tpu.vector_store %arg9[%c0_30, %c0_31], %52 {strides = array<i32>} : memref<256x128xf32, #tpu.memory_space<vmem>>, vector<256x128xf32>,
    } else {
    }
    %c0 = arith.constant 0 : index
    %c0_1 = arith.constant 0 : index
    %3 = vector.load %arg9[%c0, %c0_1] : memref<256x128xf32, #tpu.memory_space<vmem>>, vector<256x128xf32>
    %c0_2 = arith.constant 0 : index
    %c0_3 = arith.constant 0 : index
    %c0_4 = arith.constant 0 : index
    %4 = vector.load %arg3[%c0_2, %c0_3, %c0_4] : memref<1x1x128xf32, #tpu.memory_space<vmem>>, vector<1x1x128xf32>
    %5 = vector.shape_cast %4 : vector<1x1x128xf32> to vector<1x128xf32>
    %6 = arith.mulf %3, %3 : vector<256x128xf32>
    %cst = arith.constant dense<0.000000e+00> : vector<256xf32>
    %7 = vector.multi_reduction <add>, %6, %cst [1] : vector<256x128xf32> to vector<256xf32>
    %8 = vector.shape_cast %7 : vector<256xf32> to vector<256x1xf32>
    %cst_5 = arith.constant 1.280000e+02 : f32
    %9 = vector.broadcast %cst_5 : f32 to vector<256x1xf32>
    %10 = arith.divf %8, %9 : vector<256x1xf32>
    %cst_6 = arith.constant 9.99999974E-6 : f32
    %11 = vector.broadcast %cst_6 : f32 to vector<256x1xf32>
    %12 = arith.addf %10, %11 : vector<256x1xf32>
    %13 = math.rsqrt %12 : vector<256x1xf32>
    %14 = vector.broadcast %13 : vector<256x1xf32> to vector<256x128xf32>
    %15 = arith.mulf %3, %14 : vector<256x128xf32>
    %16 = vector.broadcast %5 : vector<1x128xf32> to vector<256x128xf32>
    %17 = arith.mulf %15, %16 : vector<256x128xf32>
    %18 = arith.truncf %17 : vector<256x128xf32> to vector<256x128xbf16>
    %c0_7 = arith.constant 0 : index
    %c0_8 = arith.constant 0 : index
    %c0_9 = arith.constant 0 : index
    %19 = vector.load %arg4[%c0_7, %c0_8, %c0_9] : memref<1x128x512xbf16, #tpu.memory_space<vmem>>, vector<1x128x512xbf16>
    %20 = vector.shape_cast %19 : vector<1x128x512xbf16> to vector<128x512xbf16>
    %cst_10 = arith.constant dense<0.000000e+00> : vector<256x512xf32>
    %21 = tpu.matmul %18, %20, %cst_10 {dimension_numbers = #tpu.dot_dimension_numbers<[1], [0], [0], [1], [0, 0, 1, 1], [], []>} : vector<256x128xbf16>, vector<128x512xbf16>, vector<256x512xf32> -> vector<256x512xf32>
    %c0_11 = arith.constant 0 : index
    %c0_12 = arith.constant 0 : index
    %c0_13 = arith.constant 0 : index
    %22 = vector.load %arg5[%c0_11, %c0_12, %c0_13] : memref<1x1x512xf32, #tpu.memory_space<vmem>>, vector<1x1x512xf32>
    %23 = vector.shape_cast %22 : vector<1x1x512xf32> to vector<1x512xf32>
    %24 = vector.broadcast %23 : vector<1x512xf32> to vector<256x512xf32>
    %25 = arith.addf %21, %24 : vector<256x512xf32>
    %26 = arith.mulf %25, %25 : vector<256x512xf32>
    %27 = arith.mulf %25, %26 : vector<256x512xf32>
    %cst_14 = arith.constant 4.471500e-02 : f32
    %28 = vector.broadcast %cst_14 : f32 to vector<256x512xf32>
    %29 = arith.mulf %28, %27 : vector<256x512xf32>
    %30 = arith.addf %25, %29 : vector<256x512xf32>
    %cst_15 = arith.constant 0.797884583 : f32
    %31 = vector.broadcast %cst_15 : f32 to vector<256x512xf32>
    %32 = arith.mulf %31, %30 : vector<256x512xf32>
    %33 = math.tanh %32 : vector<256x512xf32>
    %cst_16 = arith.constant 1.000000e+00 : f32
    %34 = vector.broadcast %cst_16 : f32 to vector<256x512xf32>
    %35 = arith.addf %34, %33 : vector<256x512xf32>
    %cst_17 = arith.constant 5.000000e-01 : f32
    %36 = vector.broadcast %cst_17 : f32 to vector<256x512xf32>
    %37 = arith.mulf %36, %35 : vector<256x512xf32>
    %38 = arith.mulf %25, %37 : vector<256x512xf32>
    %39 = arith.truncf %38 : vector<256x512xf32> to vector<256x512xbf16>
    %c0_18 = arith.constant 0 : index
    %c0_19 = arith.constant 0 : index
    %c0_20 = arith.constant 0 : index
    %40 = vector.load %arg6[%c0_18, %c0_19, %c0_20] : memref<1x512x128xbf16, #tpu.memory_space<vmem>>, vector<1x512x128xbf16>
    %41 = vector.shape_cast %40 : vector<1x512x128xbf16> to vector<512x128xbf16>
    %cst_21 = arith.constant dense<0.000000e+00> : vector<256x128xf32>
    %42 = tpu.matmul %39, %41, %cst_21 {dimension_numbers = #tpu.dot_dimension_numbers<[1], [0], [0], [1], [0, 0, 1, 1], [], []>} : vector<256x512xbf16>, vector<512x128xbf16>, vector<256x128xf32> -> vector<256x128xf32>
    %c0_22 = arith.constant 0 : index
    %c0_23 = arith.constant 0 : index
    %c0_24 = arith.constant 0 : index
    %43 = vector.load %arg7[%c0_22, %c0_23, %c0_24] : memref<1x1x128xf32, #tpu.memory_space<vmem>>, vector<1x1x128xf32>
    %44 = vector.shape_cast %43 : vector<1x1x128xf32> to vector<1x128xf32>
    %45 = vector.broadcast %44 : vector<1x128xf32> to vector<256x128xf32>
    %46 = arith.addf %42, %45 : vector<256x128xf32>
    %47 = arith.addf %3, %46 : vector<256x128xf32>
    %c0_25 = arith.constant 0 : index
    %c0_26 = arith.constant 0 : index
    %48 = vector.load %arg9[%c0_25, %c0_26] : memref<256x128xf32, #tpu.memory_space<vmem>>, vector<256x128xf32>
    tpu.vector_store %arg9[%c0_25, %c0_26], %47 {strides = array<i32>} : memref<256x128xf32, #tpu.memory_space<vmem>>, vector<256x128xf32>,
    %c1_i32 = arith.constant 1 : i32
    %49 = arith.cmpi eq, %arg1, %c1_i32 : i32
    %50 = arith.extui %49 : i1 to i32
    %c0_i32_27 = arith.constant 0 : i32
    %51 = arith.cmpi ne, %50, %c0_i32_27 : i32
    scf.if %51 {
      %c0_28 = arith.constant 0 : index
      %c0_29 = arith.constant 0 : index
      %52 = vector.load %arg9[%c0_28, %c0_29] : memref<256x128xf32, #tpu.memory_space<vmem>>, vector<256x128xf32>
      %c0_30 = arith.constant 0 : index
      %c0_31 = arith.constant 0 : index
      %53 = vector.load %arg8[%c0_30, %c0_31] : memref<256x128xf32, #tpu.memory_space<vmem>>, vector<256x128xf32>
      tpu.vector_store %arg8[%c0_30, %c0_31], %52 {strides = array<i32>} : memref<256x128xf32, #tpu.memory_space<vmem>>, vector<256x128xf32>,
    } else {
    }
    return
  }
  func.func @transform_0(%arg0: i32, %arg1: i32) -> (i32, i32) {
    %c0_i32 = arith.constant 0 : i32
    %c0_i32_0 = arith.constant 0 : i32
    return %arg0, %c0_i32 : i32, i32
  }
  func.func @transform_1(%arg0: i32, %arg1: i32) -> (i32, i32, i32) {
    %c0_i32 = arith.constant 0 : i32
    %c0_i32_0 = arith.constant 0 : i32
    %c0_i32_1 = arith.constant 0 : i32
    return %arg1, %c0_i32, %c0_i32_0 : i32, i32, i32
  }
  func.func @transform_2(%arg0: i32, %arg1: i32) -> (i32, i32, i32) {
    %c0_i32 = arith.constant 0 : i32
    %c0_i32_0 = arith.constant 0 : i32
    %c0_i32_1 = arith.constant 0 : i32
    return %arg1, %c0_i32, %c0_i32_0 : i32, i32, i32
  }
  func.func @transform_3(%arg0: i32, %arg1: i32) -> (i32, i32, i32) {
    %c0_i32 = arith.constant 0 : i32
    %c0_i32_0 = arith.constant 0 : i32
    %c0_i32_1 = arith.constant 0 : i32
    return %arg1, %c0_i32, %c0_i32_0 : i32, i32, i32
  }
  func.func @transform_4(%arg0: i32, %arg1: i32) -> (i32, i32, i32) {
    %c0_i32 = arith.constant 0 : i32
    %c0_i32_0 = arith.constant 0 : i32
    %c0_i32_1 = arith.constant 0 : i32
    return %arg1, %c0_i32, %c0_i32_0 : i32, i32, i32
  }
  func.func @transform_5(%arg0: i32, %arg1: i32) -> (i32, i32, i32) {
    %c0_i32 = arith.constant 0 : i32
    %c0_i32_0 = arith.constant 0 : i32
    %c0_i32_1 = arith.constant 0 : i32
    return %arg1, %c0_i32, %c0_i32_0 : i32, i32, i32
  }
  func.func @transform_6(%arg0: i32, %arg1: i32) -> (i32, i32) {
    %c0_i32 = arith.constant 0 : i32
    %c0_i32_0 = arith.constant 0 : i32
    return %arg0, %c0_i32 : i32, i32
  }
}

</mosaic_0001>

<bundles_post_ra>
// kernel: vq_transformer_forward.2
= control target key start
LH: loop header
LB: loop body
LE: loop exit
PB: predicated region body
PF: predicated region fallthrough
CT: control target
= control target key end

     0   :  { %s7509_s0 = inlined_call_operand.hbm [shape: f32[512,128], index: 0, kind: input, shape index: {}, may-alias: {0,6}]   ;;  %s7510_s1 = inlined_call_operand.hbm [shape: f32[2,1,128], index: 1, kind: input, shape index: {}]   ;;  %s7511_s2 = inlined_call_operand.hbm [shape: bf16[2,128,512], index: 2, kind: input, shape index: {}]   ;;  %s7512_s3 = inlined_call_operand.hbm [shape: f32[2,1,512], index: 3, kind: input, shape index: {}]   ;;  %s7513_s4 = inlined_call_operand.hbm [shape: bf16[2,512,128], index: 4, kind: input, shape index: {}]   ;;  %s7514_s5 = inlined_call_operand.hbm [shape: f32[2,1,128], index: 5, kind: input, shape index: {}]   ;;  %s7515_s6 = inlined_call_operand.hbm [shape: f32[512,128], index: 6, kind: output, shape index: {}, may-alias: {0,6}]  }
   0x1   :  { %7624 = sst [smem:[#allocation117_spill]] %s7509_s0 }
   0x2   :  { %7625 = sst [smem:[#allocation118_spill]] %s7510_s1 }
   0x3   :  { %7626 = sst [smem:[#allocation119_spill]] %s7512_s3 }
   0x4   :  { %7627 = sst [smem:[#allocation120_spill]] %s7515_s6 }
   0x5   :  { %11 = vsyncpa [#allocation4], 0 }
   0x6   :  { %13 = vsyncpa [#allocation4 + $0x1], 0 }
   0x7   :  { %14 = vsyncpa [#allocation7], 0 }
   0x8   :  { %16 = vsyncpa [#allocation7 + $0x1], 0 }
   0x9   :  { %17 = vsyncpa [#allocation10], 0 }
   0xa   :  { %19 = vsyncpa [#allocation10 + $0x1], 0 }
   0xb   :  { %20 = vsyncpa [#allocation13], 0 }
   0xc   :  { %22 = vsyncpa [#allocation13 + $0x1], 0 }
   0xd   :  { %23 = vsyncpa [#allocation5], 0 }
   0xe   :  { %25 = vsyncpa [#allocation5 + $0x1], 0  ;;  %s4840_s21 = smov 0   ;;  %s4842_s22 = smov 0  }
   0xf   :  { %s4844_s23 = smov 0   ;;  %s4846_s24 = smov 0  }
  0x10   :  { %s4848_s25 = smov 0   ;;  %s4850_s26 = smov 0  }
  0x11   :  { %s4852_s27 = smov 0   ;;  %s4854_s28 = smov 0  }
  0x12   :  { %s4856_s29 = smov 0   ;;  %s4858_s30 = smov 0  }
  0x13   :  { %s4860_s7 = smov 0  }
  0x14 LB: > { %7628 = sst [smem:[#allocation20_spill]] %s4751_s22  ;;  %s4894_s8 = sadd.s32 4294967295, %s4787_s7   ;;  %s4787_s7 = sphi %s4860_s7, %s31_s7   ;;  %s4783_s30 = sphi %s4858_s30, %s8072_s30   ;;  %s4779_s29 = sphi %s4856_s29, %s8077_s29   ;;  %s4775_s28 = sphi %s4854_s28, %s8070_s28   ;;  %s4771_s27 = sphi %s4852_s27, %s8076_s27   ;;  %s4767_s26 = sphi %s4850_s26, %s8075_s26   ;;  %s4763_s25 = sphi %s4848_s25, %s8074_s25   ;;  %s4759_s24 = sphi %s4846_s24, %s8073_s24   ;;  %s4755_s23 = sphi %s4844_s23, %s8068_s23   ;;  %s4751_s22 = sphi %s4842_s22, %s8067_s22   ;;  %s4747_s21 = sphi %s4840_s21, %s8066_s21  }
  0x15   : > { %7629 = sst [smem:[#allocation21_spill]] %s4755_s23  ;;  %s40_s9 = sadd.s32 1, %s4779_s29 }
  0x16   : > { %7630 = sst [smem:[#allocation22_spill]] %s4759_s24  ;;  %p4897_p0 = scmp.ge.s32.totalorder %s40_s9, 2 }
  0x17   : > { %7631 = sst [smem:[#allocation23_spill]] %s4771_s27  ;;  %p7522_p1 = scmp.eq.s32.totalorder %s4787_s7, 0 }
  0x18   : > { %7632 = sst [smem:[#allocation24_spill]] %s4775_s28  ;;  %p7521_p2 = scmp.eq.s32.totalorder %s4894_s8, 0 }
  0x19   : > { %7633 = sst [smem:[#allocation25_spill]] %s4783_s30  ;;  %s76_s11 = sadd.s32 1, %s4755_s23 }
  0x1a   : > { %s7634_s10 = scalar_select %p4897_p0, 1, 0 }
  0x1b   : > { %s8079_s9 = smov (%p4897_p0, %s40_s9), 0  ;;  %p83_p3 = scmp.ne.s32.totalorder %s4755_s23, %s4751_s22 }
  0x1c   : > { %7635 = sst [smem:[#allocation26_spill]] %s8079_s9  ;;  %p89_p4 = scmp.ne.s32.totalorder %s4751_s22, %s4747_s21 }
  0x1d   : > { %s73_s12 = ssub.s32 %s4779_s29, %s8079_s9  ;;  %p85_p6 = por %p83_p3, %p7522_p1 }
  0x1e   : > { %p74_p5 = scmp.eq.s32.totalorder %s73_s12, 0  ;;  %p4917_p7 = por %p89_p4, %p7521_p2 }
  0x1f   : > { %p7520_p8 = scmp.lt.s32.totalorder %s4787_s7, 4  ;;  %s7523_s15 = sand.u32 1, %s4787_s7  }
  0x20   : > { %s7636_s13 = scalar_select %p4917_p7, 1, 0 }
  0x21   : > { %s4923_s14 = scalar_select %p74_p5, %s4755_s23, %s76_s11  }
  0x22   : > { %7637 = sst [smem:[#allocation27_spill]] %s7636_s13  ;;  %s4927_s16 = sand.u32 1, %s4755_s23  }
  0x23   : > { %7638 = sst [smem:[#allocation28_spill]] %s4923_s14  ;;  %s7517_s17 = sshll.u32 %s4779_s29, 4 }
  0x24   : > { %s267_s18 = scalar_lea.vmem [#allocation6], %s4927_s16  ;;  %s7639_s1 = sld [smem:[#allocation118_spill]] }
  0x25   : > { %s274_s19 = sshll.u32 %s267_s18, 4  ;;  %p4942_p9 = pnand %p7520_p8, %p85_p6  ;;  %s4938_s19 = int_to_ptr.vmem [resolvable:$true] %s274_s19 }
  0x26   : > { %s4951_s9 = scalar_lea.sflag [#allocation7], %s7523_s15 }
  0x27   : > { %s7640_s11 = scalar_select %p4942_p9, 1, 0 }
  0x28   : > { %p4957_p13 = pneg %p4942_p9 }
  0x2a   : > { %s4936_s12 = scalar_lea.hbm %s7639_s1, %s7517_s17  ;;  %s4478_s23 = scalar_lea.hbm %s7639_s1, 32 }
  0x2b   : > { %s4473_s20 = scalar_lea.hbm %s4936_s12, 16  ;;  %p4479_p5 = scmp.lt.u32.totalorder %s4936_s12, %s7639_s1 }
  0x2c   : > { %p4474_p12 = scmp.ne.s32.totalorder %s4936_s12, %s4473_s20  ;;  %p4480_p6 = scmp.lt.u32.totalorder %s4478_s23, %s4473_s20 }
  0x2d   : > { %p4482_p2 = scmp.lt.u32.totalorder %s4473_s20, %s4936_s12 }
  0x2e   : > { %p4476_p3 = pnand %p4957_p13, %p4474_p12  ;;  %p4481_p8 = por %p4480_p6, %p4479_p5 }
  0x30   : > { %p4477_p4 = pneg %p4476_p3  ;;  %p4483_p1 = por %p4482_p2, %p4481_p8 }
  0x32   : > { %p4484_p10 = pnand %p4483_p1, %p4477_p4 }
  0x34   : > { %4487 = shalt.err (!%p4484_p10)
}
  0x35   : > { %s4488_s15 = scalar_lea.vmem %s4938_s19, 16  ;;  %s4789_s14 = smov [#allocation6]  }
  0x36   : > { %p4489_p12 = scmp.ne.s32.totalorder %s4938_s19, %s4488_s15  ;;  %s4493_s17 = sshll.u32 %s4789_s14, 4  ;;  %s4494_s17 = int_to_ptr.vmem [resolvable:$false] %s4493_s17 }
  0x37   : > { %s4495_s6 = scalar_lea.vmem %s4494_s17, 32  ;;  %p4496_p7 = scmp.lt.s32.totalorder %s4938_s19, %s4494_s17 }
  0x38   : > { %p4491_p3 = pnand %p4489_p12, %p4957_p13  ;;  %p4497_p0 = scmp.lt.s32.totalorder %s4495_s6, %s4488_s15 }
  0x3a   : > { %p4492_p11 = pneg %p4491_p3  ;;  %p4498_p5 = por %p4497_p0, %p4496_p7 }
  0x3c   : > { %p4499_p6 = pnand %p4498_p5, %p4492_p11 }
  0x3e   : > { %4502 = shalt.err (!%p4499_p6)
}
  0x3f   : > { %3925 = dma.hbm_to_vmem [thread:$0]  (!%p4942_p9), %s4936_s12, 16, %s4938_s19, %s4951_s9  }
  0x40   : > { %p7642_p1 = scmp.lt.s32.totalorder %s4787_s7, 5  ;;  %p7643_p2 = scmp.ge.s32.totalorder %s4787_s7, 1 }
  0x41   : > { %s3678_s15 = sshll.u32 %s4779_s29, 6  ;;  %s7645_s18 = sshll.u32 %s4927_s16, 2 }
  0x42   : > { %p4985_p8 = pnand %p7643_p2, %p7642_p1  ;;  %s306_s20 = scalar_lea.vmem [#allocation9], %s7645_s18 }
  0x43   : > { %s314_s14 = sshll.u32 %s306_s20, 4  ;;  %s7646_s3 = sld [smem:[#allocation119_spill]]  ;;  %s315_s14 = int_to_ptr.vmem [resolvable:$true] %s314_s14 }
  0x44   : > { %s7644_s23 = scalar_select %p4985_p8, 1, 0 }
  0x45   : > { %s7647_s19 = sand.u32 1, %s4787_s7  }
  0x46   : > { %s4999_s12 = scalar_lea.sflag [#allocation10], %s7647_s19 }
  0x49   : > { %s4995_s1 = scalar_lea.hbm %s7646_s3, %s3678_s15  ;;  %s4508_s27 = scalar_lea.hbm %s7646_s3, 128 }
  0x4a   : > { %s4503_s28 = scalar_lea.hbm %s4995_s1, 64  ;;  %p4509_p11 = scmp.lt.u32.totalorder %s4995_s1, %s7646_s3 }
  0x4b   : > { %p4504_p0 = scmp.ne.s32.totalorder %s4995_s1, %s4503_s28  ;;  %p4510_p4 = scmp.lt.u32.totalorder %s4508_s27, %s4503_s28 }
  0x4c   : > { %p4512_p3 = scmp.lt.u32.totalorder %s4503_s28, %s4995_s1 }
  0x4d   : > { %p4506_p7 = pnand %p4504_p0, %p4957_p13  ;;  %p4511_p12 = por %p4510_p4, %p4509_p11 }
  0x4f   : > { %p4507_p10 = pneg %p4506_p7  ;;  %p4513_p5 = por %p4512_p3, %p4511_p12 }
  0x51   : > { %p4514_p6 = pnand %p4513_p5, %p4507_p10 }
  0x53   : > { %4517 = shalt.err (!%p4514_p6)
}
  0x54   : > { %s4518_s6 = scalar_lea.vmem %s315_s14, 64  ;;  %s4790_s19 = smov [#allocation9]  }
  0x55   : > { %p4519_p1 = scmp.ne.s32.totalorder %s315_s14, %s4518_s6  ;;  %s4523_s13 = sshll.u32 %s4790_s19, 4  ;;  %s4524_s13 = int_to_ptr.vmem [resolvable:$false] %s4523_s13 }
  0x56   : > { %s4525_s18 = scalar_lea.vmem %s4524_s13, 128  ;;  %p4526_p7 = scmp.lt.s32.totalorder %s315_s14, %s4524_s13 }
  0x57   : > { %p4521_p2 = pnand %p4519_p1, %p4957_p13  ;;  %p4527_p8 = scmp.lt.s32.totalorder %s4525_s18, %s4518_s6 }
  0x59   : > { %p4522_p0 = pneg %p4521_p2  ;;  %p4528_p9 = por %p4527_p8, %p4526_p7 }
  0x5b   : > { %p4529_p4 = pnand %p4528_p9, %p4522_p0 }
  0x5d   : > { %4532 = shalt.err (!%p4529_p4)
}
  0x5e   : > { %p7648_p11 = scmp.ne.s32.totalorder %s7640_s11, 0  ;;  %s3580_s27 = sadd.s32 4294967294, %s4787_s7  }
  0x5f   : > { %s43_s28 = sadd.s32 1, %s4783_s30  ;;  %p7649_p9 = scmp.ne.s32.totalorder %s7634_s10, 0 }
  0x60   : > { %3931 = dma.hbm_to_vmem [thread:$0]  (!%p7648_p11), %s4995_s1, 64, %s315_s14, %s4999_s12  }
  0x61   : > { %s8081_s28 = smov (!%p7649_p9, %s43_s28), %s4783_s30  ;;  %s50_s13 = sadd.s32 1, %s4767_s26 }
  0x62   : > { %p57_p8 = scmp.ne.s32.totalorder %s4767_s26, %s4763_s25  ;;  %p45_p10 = scmp.ge.s32.totalorder %s8081_s28, 2 }
  0x63   : > { %p63_p12 = scmp.ne.s32.totalorder %s4763_s25, %s4759_s24  ;;  %p7650_p3 = scmp.eq.s32.totalorder %s4787_s7, 0 }
  0x64   : > { %p217_p6 = scmp.eq.s32.totalorder %s4894_s8, 3  ;;  %s8083_s28 = smov (%p45_p10, %s8081_s28), 0 }
  0x65   : > { %p5031_p5 = por %p7650_p3, %p57_p8  ;;  %7652 = sst [smem:[#allocation29_spill]] %s8083_s28 }
  0x66   : > { %p7653_p1 = scmp.eq.s32.totalorder %s4894_s8, 0  ;;  %p5044_p0 = por %p217_p6, %p57_p8 }
  0x67   : > { %s47_s14 = ssub.s32 %s4783_s30, %s8083_s28  ;;  %p223_p7 = scmp.eq.s32.totalorder %s3580_s27, 3 }
  0x68   : > { %p5040_p2 = por %p7653_p1, %p63_p12  ;;  %p48_p4 = scmp.eq.s32.totalorder %s47_s14, 0 }
  0x69   : > { %s7655_s10 = scalar_select %p5044_p0, 1, 0 }
  0x6a   : > { %s7654_s1 = scalar_select %p5040_p2, 1, 0 }
  0x6b   : > { %s243_s17 = sand.u32 1, %s4767_s26   ;;  %p5051_p9 = por %p223_p7, %p63_p12 }
  0x6c   : > { %s5056_s6 = scalar_select %p48_p4, %s4767_s26, %s50_s13  }
  0x6d   : > { %s7656_s15 = scalar_select %p5051_p9, 1, 0 }
  0x6e   : > { %7657 = sst [smem:[#allocation30_spill]] %s5056_s6  ;;  %s3583_s19 = sshll.u32 %s243_s17, 8 }
  0x6f   : > { %s3676_s18 = sshll.u32 %s4783_s30, 12  ;;  %s7658_s0 = sld [smem:[#allocation117_spill]] }
  0x70   : > { %s247_s27 = scalar_lea.vmem [#allocation3], %s3583_s19  ;;  %p7659_p8 = scmp.lt.s32.totalorder %s4787_s7, 4 }
  0x71   : > { %s254_s14 = sshll.u32 %s247_s27, 4  ;;  %s5074_s13 = scalar_lea.sflag [#allocation4], %s243_s17  ;;  %s5072_s14 = int_to_ptr.vmem [resolvable:$true] %s254_s14 }
  0x72   : > { %p5068_p10 = pnand %p7659_p8, %p5031_p5 }
  0x74   : > { %p4535_p3 = pneg %p5068_p10 }
  0x75   : > { %s5062_s22 = scalar_lea.hbm %s7658_s0, %s3676_s18  ;;  %s4538_s19 = scalar_lea.hbm %s7658_s0, 8192 }
  0x76   : > { %s4533_s3 = scalar_lea.hbm %s5062_s22, 4096  ;;  %p4539_p5 = scmp.lt.u32.totalorder %s5062_s22, %s7658_s0 }
  0x77   : > { %p4534_p12 = scmp.ne.s32.totalorder %s5062_s22, %s4533_s3  ;;  %p4540_p7 = scmp.lt.u32.totalorder %s4538_s19, %s4533_s3 }
  0x78   : > { %p4542_p8 = scmp.lt.u32.totalorder %s4533_s3, %s5062_s22 }
  0x79   : > { %p4536_p6 = pnand %p4535_p3, %p4534_p12  ;;  %p4541_p4 = por %p4540_p7, %p4539_p5 }
  0x7b   : > { %p4537_p1 = pneg %p4536_p6  ;;  %p4543_p9 = por %p4542_p8, %p4541_p4 }
  0x7d   : > { %p4544_p0 = pnand %p4543_p9, %p4537_p1 }
  0x7f   : > { %4547 = shalt.err (!%p4544_p0)
}
  0x80   : > { %s4548_s17 = scalar_lea.vmem %s5072_s14, 4096  ;;  %s4791_s24 = smov [#allocation3]  }
  0x81   : > { %p4549_p12 = scmp.ne.s32.totalorder %s5072_s14, %s4548_s17  ;;  %s4553_s20 = sshll.u32 %s4791_s24, 4  ;;  %s4554_s20 = int_to_ptr.vmem [resolvable:$false] %s4553_s20 }
  0x82   : > { %s4555_s18 = scalar_lea.vmem %s4554_s20, 8192  ;;  %p4556_p11 = scmp.lt.s32.totalorder %s5072_s14, %s4554_s20 }
  0x83   : > { %p4551_p6 = pnand %p4549_p12, %p4535_p3  ;;  %p4557_p5 = scmp.lt.s32.totalorder %s4555_s18, %s4548_s17 }
  0x85   : > { %p4552_p2 = pneg %p4551_p6  ;;  %p4558_p7 = por %p4557_p5, %p4556_p11 }
  0x87   : > { %p4559_p4 = pnand %p4558_p7, %p4552_p2 }
  0x89   : > { %4562 = shalt.err (!%p4559_p4)
}
  0x8a   : > { %s4792_s3 = smov 128   ;;  %s4793_s19 = smov 8  }
  0x8b   : > { %3922 = dma.hbm_to_vmem [thread:$0]  (!%p5068_p10), %s5062_s22, 4096, %s5072_s14, %s5074_s13, %s4792_s3, %s4792_s3, %s4793_s19  }
  0x8c   : > { %s3587_s27 = sshll.u32 %s4927_s16, 8  ;;  %s3677_s24 = sshll.u32 %s4779_s29, 12 }
  0x8d   : > { %s5109_s18 = scalar_lea.hbm %s7511_s2, %s3677_s24  ;;  %s285_s0 = scalar_lea.vmem [#allocation8], %s3587_s27 }
  0x8e   : > { %s292_s30 = sshll.u32 %s285_s0, 4  ;;  %s4563_s6 = scalar_lea.hbm %s5109_s18, 4096  ;;  %s5113_s30 = int_to_ptr.vmem [resolvable:$true] %s292_s30 }
  0x8f   : > { %p4564_p11 = scmp.ne.s32.totalorder %s5109_s18, %s4563_s6  ;;  %s4568_s14 = scalar_lea.hbm %s7511_s2, 8192 }
  0x90   : > { %p4569_p9 = scmp.lt.u32.totalorder %s5109_s18, %s7511_s2  ;;  %p4570_p10 = scmp.lt.u32.totalorder %s4568_s14, %s4563_s6 }
  0x91   : > { %p4566_p2 = pnand %p4564_p11, %p4957_p13  ;;  %p4572_p1 = scmp.lt.u32.totalorder %s4563_s6, %s5109_s18 }
  0x92   : > { %p4571_p3 = por %p4570_p10, %p4569_p9 }
  0x93   : > { %p4567_p0 = pneg %p4566_p2 }
  0x94   : > { %p4573_p8 = por %p4572_p1, %p4571_p3 }
  0x96   : > { %p4574_p12 = pnand %p4573_p8, %p4567_p0 }
  0x98   : > { %4577 = shalt.err (!%p4574_p12)
}
  0x99   : > { %s4578_s0 = scalar_lea.vmem %s5113_s30, 4096  ;;  %s4794_s19 = smov [#allocation8]  }
  0x9a   : > { %p4579_p6 = scmp.ne.s32.totalorder %s5113_s30, %s4578_s0  ;;  %s4583_s17 = sshll.u32 %s4794_s19, 4  ;;  %s4584_s17 = int_to_ptr.vmem [resolvable:$false] %s4583_s17 }
  0x9b   : > { %s4585_s20 = scalar_lea.vmem %s4584_s17, 8192  ;;  %p4586_p4 = scmp.lt.s32.totalorder %s5113_s30, %s4584_s17 }
  0x9c   : > { %p4581_p5 = pnand %p4579_p6, %p4957_p13  ;;  %p4587_p11 = scmp.lt.s32.totalorder %s4585_s20, %s4578_s0 }
  0x9e   : > { %p4582_p7 = pneg %p4581_p5  ;;  %p4588_p2 = por %p4587_p11, %p4586_p4 }
  0xa0   : > { %p4589_p9 = pnand %p4588_p2, %p4582_p7 }
  0xa2   : > { %4592 = shalt.err (!%p4589_p9)
}
  0xa3   : > { %s4795_s6 = smov 256   ;;  %s4796_s22 = smov 16  }
  0xa4   : > { %p7661_p0 = scmp.ne.s32.totalorder %s7640_s11, 0  ;;  %s5142_s13 = scalar_lea.hbm %s7513_s4, %s3677_s24 }
  0xa5   : > { %s325_s3 = scalar_lea.vmem [#allocation11], %s3587_s27  ;;  %s4593_s19 = scalar_lea.hbm %s5142_s13, 4096 }
  0xa6   : > { %3928 = dma.hbm_to_vmem [thread:$0]  (!%p7661_p0), %s5109_s18, 4096, %s5113_s30, %s4951_s9, %s4795_s6, %s4795_s6, %s4796_s22  }
  0xa7   : > { %s332_s0 = sshll.u32 %s325_s3, 4  ;;  %p4594_p10 = scmp.ne.s32.totalorder %s5142_s13, %s4593_s19  ;;  %s5146_s0 = int_to_ptr.vmem [resolvable:$true] %s332_s0 }
  0xa8   : > { %s4598_s18 = scalar_lea.hbm %s7513_s4, 8192  ;;  %p4599_p8 = scmp.lt.u32.totalorder %s5142_s13, %s7513_s4 }
  0xa9   : > { %p4596_p3 = pnand %p4594_p10, %p4957_p13  ;;  %p4600_p12 = scmp.lt.u32.totalorder %s4598_s18, %s4593_s19 }
  0xaa   : > { %p4602_p5 = scmp.lt.u32.totalorder %s4593_s19, %s5142_s13 }
  0xab   : > { %p4597_p1 = pneg %p4596_p3  ;;  %p4601_p6 = por %p4600_p12, %p4599_p8 }
  0xad   : > { %p4603_p7 = por %p4602_p5, %p4601_p6 }
  0xaf   : > { %p4604_p4 = pnand %p4603_p7, %p4597_p1 }
  0xb1   : > { %4607 = shalt.err (!%p4604_p4)
}
  0xb2   : > { %s4608_s27 = scalar_lea.vmem %s5146_s0, 4096  ;;  %s4797_s20 = smov [#allocation11]  }
  0xb3   : > { %p4609_p11 = scmp.ne.s32.totalorder %s5146_s0, %s4608_s27  ;;  %s4613_s6 = sshll.u32 %s4797_s20, 4  ;;  %s4614_s6 = int_to_ptr.vmem [resolvable:$false] %s4613_s6 }
  0xb4   : > { %s4615_s22 = scalar_lea.vmem %s4614_s6, 8192  ;;  %p4616_p10 = scmp.lt.s32.totalorder %s5146_s0, %s4614_s6 }
  0xb5   : > { %p4611_p2 = pnand %p4609_p11, %p4957_p13  ;;  %p4617_p3 = scmp.lt.s32.totalorder %s4615_s22, %s4608_s27 }
  0xb7   : > { %p4612_p9 = pneg %p4611_p2  ;;  %p4618_p8 = por %p4617_p3, %p4616_p10 }
  0xb9   : > { %p4619_p12 = pnand %p4618_p8, %p4612_p9 }
  0xbb   : > { %4622 = shalt.err (!%p4619_p12)
}
  0xbc   : > { %s4798_s28 = smov 64   ;;  %s4799_s14 = smov 4  }
  0xbd   : > { %3934 = dma.hbm_to_vmem [thread:$0]  (!%p7661_p0), %s5142_s13, 4096, %s5146_s0, %s4999_s12, %s4798_s28, %s4798_s28, %s4799_s14  }
  0xbe   : > { %s7662_s3 = sshll.u32 %s4779_s29, 4  ;;  %s345_s18 = scalar_lea.vmem [#allocation12], %s4927_s16 }
  0xbf   : > { %s5175_s9 = scalar_lea.hbm %s7514_s5, %s7662_s3  ;;  %s352_s24 = sshll.u32 %s345_s18, 4  ;;  %s353_s24 = int_to_ptr.vmem [resolvable:$true] %s352_s24 }
  0xc0   : > { %s343_s17 = scalar_lea.sflag [#allocation13], %s4927_s16  ;;  %s4623_s27 = scalar_lea.hbm %s5175_s9, 16 }
  0xc1   : > { %p4624_p1 = scmp.ne.s32.totalorder %s5175_s9, %s4623_s27  ;;  %s4628_s0 = scalar_lea.hbm %s7514_s5, 32 }
  0xc2   : > { %p4629_p7 = scmp.lt.u32.totalorder %s5175_s9, %s7514_s5  ;;  %p4630_p4 = scmp.lt.u32.totalorder %s4628_s0, %s4623_s27 }
  0xc3   : > { %p4626_p6 = pnand %p4624_p1, %p4957_p13  ;;  %p4632_p2 = scmp.lt.u32.totalorder %s4623_s27, %s5175_s9 }
  0xc4   : > { %p4631_p11 = por %p4630_p4, %p4629_p7 }
  0xc5   : > { %p4627_p5 = pneg %p4626_p6 }
  0xc6   : > { %p4633_p9 = por %p4632_p2, %p4631_p11 }
  0xc8   : > { %p4634_p10 = pnand %p4633_p9, %p4627_p5 }
  0xca   : > { %4637 = shalt.err (!%p4634_p10)
}
  0xcb   : > { %s4638_s16 = scalar_lea.vmem %s353_s24, 16  ;;  %s4800_s22 = smov [#allocation12]  }
  0xcc   : > { %p4639_p3 = scmp.ne.s32.totalorder %s353_s24, %s4638_s16  ;;  %s4643_s28 = sshll.u32 %s4800_s22, 4  ;;  %s4644_s28 = int_to_ptr.vmem [resolvable:$false] %s4643_s28 }
  0xcd   : > { %s4645_s14 = scalar_lea.vmem %s4644_s28, 32  ;;  %p4646_p1 = scmp.lt.s32.totalorder %s353_s24, %s4644_s28 }
  0xce   : > { %p4641_p8 = pnand %p4639_p3, %p4957_p13  ;;  %p4647_p6 = scmp.lt.s32.totalorder %s4645_s14, %s4638_s16 }
  0xd0   : > { %p4642_p12 = pneg %p4641_p8  ;;  %p4648_p0 = por %p4647_p6, %p4646_p1 }
  0xd2   : > { %p4649_p4 = pnand %p4648_p0, %p4642_p12 }
  0xd4   : > { %4652 = shalt.err (!%p4649_p4)
}
  0xd5   : > { %p7663_p7 = scmp.ne.s32.totalorder %s7640_s11, 0  ;;  %p7664_p5 = scmp.ne.s32.totalorder %s7644_s23, 0 }
  0xd7   : > { %3937 = dma.hbm_to_vmem [thread:$0]  (!%p7663_p7), %s5175_s9, 16, %s353_s24, %s343_s17  }
  0xd8   : > { %361 = sbr.rel (%p7664_p5) target bundleno = 1261 (0x4ed), region = 44 }
  0xdf   : > { %s5199_s21 = sand.u32 1, %s4763_s25   ;;  %p7665_p13 = scmp.ne.s32.totalorder %s7654_s1, 0 }
  0xe0   : > { %s3598_s3 = sshll.u32 %s5199_s21, 8  ;;  %s364_s19 = scalar_lea.sflag [#allocation4], %s5199_s21 }
  0xe1   : > { %s5203_s30 = scalar_lea.vmem [#allocation3], %s3598_s3 }
  0xe2   : > { %4726 = dma.done.wait (%p7665_p13), %s364_s19, 4096  }
  0xe3   : > { %4728 = vsyncadd (%p7665_p13), %s364_s19, 4294963200  ;;  %s7666_s11 = sld [smem:[#allocation20_spill]]  ;;  %s7667_s9 = sld [smem:[#allocation27_spill]] }
  0xe4   : > { %s372_s23 = sand.u32 1, %s4894_s8  }
  0xe5   : > { %s373_s24 = scalar_lea.sflag [#allocation7], %s372_s23 }
  0xe9   : > { %s5211_s18 = sand.u32 1, %s7666_s11   ;;  %p7668_p0 = scmp.ne.s32.totalorder %s7667_s9, 0 }
  0xea   : > { %s375_s17 = scalar_lea.vmem [#allocation6], %s5211_s18 }
  0xeb   : > { %4730 = dma.done.wait (%p7668_p0), %s373_s24, 4112  }
  0xec   : > { %4732 = vsyncadd (%p7668_p0), %s373_s24, 4294963184  ;;  %s3599_s27 = sshll.u32 %s5211_s18, 8  ;;  %s3600_s1 = sshll.u32 %s5211_s18, 2 }
  0xed   : > { %s5220_s12 = scalar_lea.vmem [#allocation8], %s3599_s27  ;;  %s390_s13 = scalar_lea.sflag [#allocation10], %s372_s23 }
  0xee   : > { %s5222_s0 = scalar_lea.vmem [#allocation9], %s3600_s1 }
  0xef   : > { %4734 = dma.done.wait (%p7668_p0), %s390_s13, 4160  }
  0xf0   : > { %4736 = vsyncadd (%p7668_p0), %s390_s13, 4294963136  ;;  %s5228_s8 = scalar_lea.vmem [#allocation11], %s3599_s27  ;;  %s408_s20 = scalar_lea.sflag [#allocation13], %s5211_s18 }
  0xf1   : > { %s410_s6 = scalar_lea.vmem [#allocation12], %s5211_s18 }
  0xf2   : > { %4738 = dma.done.wait (%p7668_p0), %s408_s20, 16  }
  0xf3   : > { %4740 = vsyncadd (%p7668_p0), %s408_s20, 4294967280  ;;  %s5236_s16 = scalar_lea.vmem [#allocation14], %s3598_s3  ;;  %s7669_s22 = sld [smem:[#allocation23_spill]] }
  0xf9   : > { %p3603_p11 = scmp.ne.s32.totalorder %s7669_s22, 0 }
  0xfa   : > { %v469_v0 = vld [vmem:[%s5203_s30] sm:$0xff] (!%p3603_p11)  ;;  %v470_v1 = vld [vmem:[%s5203_s30 + $0x8] sm:$0xff] (!%p3603_p11)  ;;  %v471_v2 = vld [vmem:[%s5203_s30 + $0x10] sm:$0xff] (!%p3603_p11) }
  0xfb   : > { %468 = sbr.rel (%p3603_p11) target bundleno = 267 (0x10b), region = 72  ;;  %501 = vst [vmem:[#allocation2] sm:$0xff] (!%p3603_p11), %v469_v0  ;;  %502 = vst [vmem:[#allocation2 + $0x8] sm:$0xff] (!%p3603_p11), %v470_v1  ;;  %v472_v3 = vld [vmem:[%s5203_s30 + $0x18] sm:$0xff] (!%p3603_p11)  ;;  %v473_v4 = vld [vmem:[%s5203_s30 + $0x20] sm:$0xff] (!%p3603_p11) }
  0xfc   : > { %503 = vst [vmem:[#allocation2 + $0x10] sm:$0xff] (!%p3603_p11), %v471_v2  ;;  %v474_v5 = vld [vmem:[%s5203_s30 + $0x28] sm:$0xff] (!%p3603_p11)  ;;  %504 = vst [vmem:[#allocation2 + $0x18] sm:$0xff] (!%p3603_p11), %v472_v3  ;;  %v475_v6 = vld [vmem:[%s5203_s30 + $0x30] sm:$0xff] (!%p3603_p11) }
  0xfd   : > { %505 = vst [vmem:[#allocation2 + $0x20] sm:$0xff] (!%p3603_p11), %v473_v4  ;;  %506 = vst [vmem:[#allocation2 + $0x28] sm:$0xff] (!%p3603_p11), %v474_v5  ;;  %v476_v7 = vld [vmem:[%s5203_s30 + $0x38] sm:$0xff] (!%p3603_p11)  ;;  %v477_v8 = vld [vmem:[%s5203_s30 + $0x40] sm:$0xff] (!%p3603_p11) }
  0xfe   : > { %507 = vst [vmem:[#allocation2 + $0x30] sm:$0xff] (!%p3603_p11), %v475_v6  ;;  %508 = vst [vmem:[#allocation2 + $0x38] sm:$0xff] (!%p3603_p11), %v476_v7  ;;  %v478_v9 = vld [vmem:[%s5203_s30 + $0x48] sm:$0xff] (!%p3603_p11)  ;;  %v479_v10 = vld [vmem:[%s5203_s30 + $0x50] sm:$0xff] (!%p3603_p11) }
  0xff   : > { %509 = vst [vmem:[#allocation2 + $0x40] sm:$0xff] (!%p3603_p11), %v477_v8  ;;  %v480_v11 = vld [vmem:[%s5203_s30 + $0x58] sm:$0xff] (!%p3603_p11)  ;;  %510 = vst [vmem:[#allocation2 + $0x48] sm:$0xff] (!%p3603_p11), %v478_v9  ;;  %v481_v12 = vld [vmem:[%s5203_s30 + $0x60] sm:$0xff] (!%p3603_p11) }
 0x100   : > { %511 = vst [vmem:[#allocation2 + $0x50] sm:$0xff] (!%p3603_p11), %v479_v10  ;;  %512 = vst [vmem:[#allocation2 + $0x58] sm:$0xff] (!%p3603_p11), %v480_v11  ;;  %v482_v13 = vld [vmem:[%s5203_s30 + $0x68] sm:$0xff] (!%p3603_p11)  ;;  %v483_v14 = vld [vmem:[%s5203_s30 + $0x70] sm:$0xff] (!%p3603_p11) }
 0x101   : > { %513 = vst [vmem:[#allocation2 + $0x60] sm:$0xff] (!%p3603_p11), %v481_v12  ;;  %514 = vst [vmem:[#allocation2 + $0x68] sm:$0xff] (!%p3603_p11), %v482_v13  ;;  %v484_v15 = vld [vmem:[%s5203_s30 + $0x78] sm:$0xff] (!%p3603_p11)  ;;  %v485_v16 = vld [vmem:[%s5203_s30 + $0x80] sm:$0xff] (!%p3603_p11) }
 0x102   : > { %515 = vst [vmem:[#allocation2 + $0x70] sm:$0xff] %v483_v14  ;;  %v486_v17 = vld [vmem:[%s5203_s30 + $0x88] sm:$0xff]  ;;  %516 = vst [vmem:[#allocation2 + $0x78] sm:$0xff] %v484_v15  ;;  %v487_v18 = vld [vmem:[%s5203_s30 + $0x90] sm:$0xff] }
 0x103   : > { %517 = vst [vmem:[#allocation2 + $0x80] sm:$0xff] %v485_v16  ;;  %518 = vst [vmem:[#allocation2 + $0x88] sm:$0xff] %v486_v17  ;;  %v488_v19 = vld [vmem:[%s5203_s30 + $0x98] sm:$0xff]  ;;  %v489_v20 = vld [vmem:[%s5203_s30 + $0xa0] sm:$0xff] }
 0x104   : > { %519 = vst [vmem:[#allocation2 + $0x90] sm:$0xff] %v487_v18  ;;  %520 = vst [vmem:[#allocation2 + $0x98] sm:$0xff] %v488_v19  ;;  %v490_v21 = vld [vmem:[%s5203_s30 + $0xa8] sm:$0xff]  ;;  %v491_v22 = vld [vmem:[%s5203_s30 + $0xb0] sm:$0xff] }
 0x105   : > { %521 = vst [vmem:[#allocation2 + $0xa0] sm:$0xff] %v489_v20  ;;  %v492_v23 = vld [vmem:[%s5203_s30 + $0xb8] sm:$0xff]  ;;  %522 = vst [vmem:[#allocation2 + $0xa8] sm:$0xff] %v490_v21  ;;  %v493_v24 = vld [vmem:[%s5203_s30 + $0xc0] sm:$0xff] }
 0x106   : > { %523 = vst [vmem:[#allocation2 + $0xb0] sm:$0xff] %v491_v22  ;;  %524 = vst [vmem:[#allocation2 + $0xb8] sm:$0xff] %v492_v23  ;;  %v494_v25 = vld [vmem:[%s5203_s30 + $0xc8] sm:$0xff]  ;;  %v495_v26 = vld [vmem:[%s5203_s30 + $0xd0] sm:$0xff] }
 0x107   : > { %525 = vst [vmem:[#allocation2 + $0xc0] sm:$0xff] %v493_v24  ;;  %526 = vst [vmem:[#allocation2 + $0xc8] sm:$0xff] %v494_v25  ;;  %v496_v27 = vld [vmem:[%s5203_s30 + $0xd8] sm:$0xff]  ;;  %v497_v28 = vld [vmem:[%s5203_s30 + $0xe0] sm:$0xff] }
 0x108   : > { %527 = vst [vmem:[#allocation2 + $0xd0] sm:$0xff] %v495_v26  ;;  %v498_v29 = vld [vmem:[%s5203_s30 + $0xe8] sm:$0xff]  ;;  %528 = vst [vmem:[#allocation2 + $0xd8] sm:$0xff] %v496_v27  ;;  %v499_v30 = vld [vmem:[%s5203_s30 + $0xf0] sm:$0xff] }
 0x109   : > { %529 = vst [vmem:[#allocation2 + $0xe0] sm:$0xff] %v497_v28  ;;  %530 = vst [vmem:[#allocation2 + $0xe8] sm:$0xff] %v498_v29  ;;  %v500_v31 = vld [vmem:[%s5203_s30 + $0xf8] sm:$0xff] }
 0x10a   : > { %531 = vst [vmem:[#allocation2 + $0xf0] sm:$0xff] %v499_v30  ;;  %532 = vst [vmem:[#allocation2 + $0xf8] sm:$0xff] %v500_v31 }
 0x10b PF: > { %v5271_v32 = vld [vmem:[#allocation2] sm:$0xff]  ;;  %v5275_v34 = vld [vmem:[#allocation2 + $0x8] sm:$0xff]  ;;  %v5361_v24 = vld [vmem:[#allocation2 + $0x98] sm:$0xff]  ;;  %s8060_s28 = sld [smem:[#allocation23_spill]] }
 0x10c   : > { %v5273_v33 = vld [vmem:[#allocation2 + $0x10] sm:$0xff]  ;;  %v566_v35 = vmul.f32 %v5271_v32, %v5271_v32  ;;  %v5281_v37 = vld [vmem:[#allocation2 + $0x18] sm:$0xff]  ;;  %v567_v38 = vmul.f32 %v5275_v34, %v5275_v34  ;;  %v5354_v19 = vld [vmem:[#allocation2 + $0x88] sm:$0xff] }
 0x10d   : > { %v568_v36 = vmul.f32 %v5273_v33, %v5273_v33  ;;  %v569_v39 = vmul.f32 %v5281_v37, %v5281_v37  ;;  %v5287_v40 = vld [vmem:[#allocation2 + $0x28] sm:$0xff]  ;;  %v5289_v41 = vld [vmem:[#allocation2 + $0x20] sm:$0xff]  ;;  %v5363_v25 = vld [vmem:[#allocation2 + $0x90] sm:$0xff]  ;;  %v583_v27 = vmul.f32 %v5354_v19, %v5354_v19 }
 0x10e   : > { %598 = vadd.xlane.f32.xlu0 %v566_v35  ;;  %v571_v42 = vmul.f32 %v5287_v40, %v5287_v40  ;;  %v570_v43 = vmul.f32 %v5289_v41, %v5289_v41  ;;  %v5295_v44 = vld [vmem:[#allocation2 + $0x38] sm:$0xff]  ;;  %v5297_v45 = vld [vmem:[#allocation2 + $0x30] sm:$0xff]  ;;  %v5356_v20 = vld [vmem:[#allocation2 + $0x80] sm:$0xff] }
 0x10f   : > { %602 = vadd.xlane.f32.xlu1 %v568_v36  ;;  %v5299_v46 = vld [vmem:[#allocation2 + $0x48] sm:$0xff]  ;;  %v5301_v47 = vld [vmem:[#allocation2 + $0x40] sm:$0xff]  ;;  %v573_v48 = vmul.f32 %v5295_v44, %v5295_v44  ;;  %v572_v49 = vmul.f32 %v5297_v45, %v5297_v45  ;;  %v582_v28 = vmul.f32 %v5356_v20, %v5356_v20  ;;  %v4801_v36 = vmov 0  }
 0x110   : > { %v4041_v50 = vld [vmem:[%s5220_s12 + $0x4] ss:$16 sps:$4 sm:$0xff]   ;;  %v4043_v51 = vld [vmem:[%s5220_s12 + $0xc] ss:$16 sps:$4 sm:$0xff]   ;;  %v4045_v52 = vld [vmem:[%s5220_s12] ss:$16 sps:$4 sm:$0xff]   ;;  %v575_v57 = vmul.f32 %v5299_v46, %v5299_v46  ;;  %v574_v58 = vmul.f32 %v5301_v47, %v5301_v47  ;;  %1091 = vmatprep.mubr.bf16.mxu0 %v4801_v36  ;;  %1284 = vmatprep.mubr.bf16.mxu1 %v4801_v36 }
 0x111   : > { %1059 = vmatprep.subr.bf16.mxu0 %v4041_v50  ;;  %v4046_v53 = vld [vmem:[%s5220_s12 + $0x8] ss:$16 sps:$4 sm:$0xff]   ;;  %v5313_v55 = vld [vmem:[#allocation2 + $0x50] sm:$0xff]  ;;  %1252 = vmatprep.subr.bf16.mxu1 %v4043_v51  ;;  %v5327_v1 = vld [vmem:[#allocation2 + $0x60] sm:$0xff]  ;;  %p3670_p2 = scmp.ne.s32.totalorder %s8060_s28, 1 }
 0x112   : > { %600 = vadd.xlane.f32.xlu0 %v567_v38  ;;  %v5311_v54 = vld [vmem:[#allocation2 + $0x58] sm:$0xff]  ;;  %1060 = vmatpush1.bf16.msra.mxu0 %v4045_v52  ;;  %v4051_v60 = vld [vmem:[%s5220_s12 + $0x20] ss:$16 sps:$4 sm:$0xff]   ;;  %v5325_v0 = vld [vmem:[#allocation2 + $0x68] sm:$0xff]  ;;  %v576_v4 = vmul.f32 %v5313_v55, %v5313_v55  ;;  %v578_v12 = vmul.f32 %v5327_v1, %v5327_v1 }
 0x113   : > { %604 = vadd.xlane.f32.xlu1 %v569_v39  ;;  %v4047_v56 = vld [vmem:[%s5220_s12 + $0x24] ss:$16 sps:$4 sm:$0xff]   ;;  %v4049_v59 = vld [vmem:[%s5220_s12 + $0x2c] ss:$16 sps:$4 sm:$0xff]   ;;  %v4052_v61 = vld [vmem:[%s5220_s12 + $0x28] ss:$16 sps:$4 sm:$0xff]   ;;  %1253 = vmatpush1.bf16.msra.mxu1 %v4046_v53  ;;  %v577_v3 = vmul.f32 %v5311_v54, %v5311_v54  ;;  %v579_v11 = vmul.f32 %v5325_v0, %v5325_v0 }
 0x114   : > { %1061 = vmatprep.subr.bf16.mxu0 %v4047_v56  ;;  %v4053_v62 = vld [vmem:[%s5220_s12 + $0x44] ss:$16 sps:$4 sm:$0xff]   ;;  %1254 = vmatprep.subr.bf16.mxu1 %v4049_v59  ;;  %v4055_v63 = vld [vmem:[%s5220_s12 + $0x4c] ss:$16 sps:$4 sm:$0xff]   ;;  %v4057_v2 = vld [vmem:[%s5220_s12 + $0x40] ss:$16 sps:$4 sm:$0xff]  }
 0x115   : > { %v4058_v5 = vld [vmem:[%s5220_s12 + $0x48] ss:$16 sps:$4 sm:$0xff]   ;;  %v4059_v6 = vld [vmem:[%s5220_s12 + $0x64] ss:$16 sps:$4 sm:$0xff]   ;;  %v4061_v7 = vld [vmem:[%s5220_s12 + $0x6c] ss:$16 sps:$4 sm:$0xff]  }
 0x116   : > { %606 = vadd.xlane.f32.xlu0 %v570_v43  ;;  %1062 = vmatpush1.bf16.msra.mxu0 %v4051_v60  ;;  %v4063_v8 = vld [vmem:[%s5220_s12 + $0x60] ss:$16 sps:$4 sm:$0xff]   ;;  %v5338_v9 = vld [vmem:[#allocation2 + $0x78] sm:$0xff]  ;;  %v5375_v38 = vld [vmem:[#allocation2 + $0xa8] sm:$0xff] }
 0x117   : > { %608 = vadd.xlane.f32.xlu1 %v571_v42  ;;  %1255 = vmatpush1.bf16.msra.mxu1 %v4052_v61  ;;  %v5340_v10 = vld [vmem:[#allocation2 + $0x70] sm:$0xff]  ;;  %v4064_v13 = vld [vmem:[%s5220_s12 + $0x68] ss:$16 sps:$4 sm:$0xff]   ;;  %v581_v17 = vmul.f32 %v5338_v9, %v5338_v9  ;;  %v5377_v39 = vld [vmem:[#allocation2 + $0xa0] sm:$0xff] }
 0x118   : > { %1063 = vmatprep.subr.bf16.mxu0 %v4053_v62  ;;  %1256 = vmatprep.subr.bf16.mxu1 %v4055_v63  ;;  %v4065_v14 = vld [vmem:[%s5220_s12 + $0x84] ss:$16 sps:$4 sm:$0xff]   ;;  %v4067_v15 = vld [vmem:[%s5220_s12 + $0x8c] ss:$16 sps:$4 sm:$0xff]   ;;  %v4069_v16 = vld [vmem:[%s5220_s12 + $0x80] ss:$16 sps:$4 sm:$0xff]   ;;  %v580_v18 = vmul.f32 %v5340_v10, %v5340_v10 }
 0x119   : > { %v4070_v21 = vld [vmem:[%s5220_s12 + $0x88] ss:$16 sps:$4 sm:$0xff]   ;;  %v4071_v22 = vld [vmem:[%s5220_s12 + $0xa4] ss:$16 sps:$4 sm:$0xff]   ;;  %v4073_v23 = vld [vmem:[%s5220_s12 + $0xac] ss:$16 sps:$4 sm:$0xff]  }
 0x11a   : > { %610 = vadd.xlane.f32.xlu0 %v572_v49  ;;  %1064 = vmatpush1.bf16.msra.mxu0 %v4057_v2  ;;  %v4075_v26 = vld [vmem:[%s5220_s12 + $0xa0] ss:$16 sps:$4 sm:$0xff]   ;;  %v4076_v29 = vld [vmem:[%s5220_s12 + $0xa8] ss:$16 sps:$4 sm:$0xff]   ;;  %v4077_v30 = vld [vmem:[%s5220_s12 + $0xc4] ss:$16 sps:$4 sm:$0xff]   ;;  %v584_v49 = vmul.f32 %v5363_v25, %v5363_v25 }
 0x11b   : > { %612 = vadd.xlane.f32.xlu1 %v573_v48  ;;  %1257 = vmatpush1.bf16.msra.mxu1 %v4058_v5  ;;  %v4079_v31 = vld [vmem:[%s5220_s12 + $0xcc] ss:$16 sps:$4 sm:$0xff]   ;;  %v4081_v35 = vld [vmem:[%s5220_s12 + $0xc0] ss:$16 sps:$4 sm:$0xff]   ;;  %v4082_v42 = vld [vmem:[%s5220_s12 + $0xc8] ss:$16 sps:$4 sm:$0xff]   ;;  %v585_v48 = vmul.f32 %v5361_v24, %v5361_v24 }
 0x11c   : > { %1065 = vmatprep.subr.bf16.mxu0 %v4059_v6  ;;  %1258 = vmatprep.subr.bf16.mxu1 %v4061_v7  ;;  %v4083_v43 = vld [vmem:[%s5220_s12 + $0xe4] ss:$16 sps:$4 sm:$0xff]   ;;  %v4085_v50 = vld [vmem:[%s5220_s12 + $0xec] ss:$16 sps:$4 sm:$0xff]   ;;  %v4087_v51 = vld [vmem:[%s5220_s12 + $0xe0] ss:$16 sps:$4 sm:$0xff]  }
 0x11d   : > { %v5388_v52 = vld [vmem:[#allocation2 + $0xb8] sm:$0xff]  ;;  %v5390_v53 = vld [vmem:[#allocation2 + $0xb0] sm:$0xff]  ;;  %v5397_v59 = vld [vmem:[#allocation2 + $0xc8] sm:$0xff] }
 0x11e   : > { %614 = vadd.xlane.f32.xlu0 %v574_v58  ;;  %1066 = vmatpush1.bf16.msra.mxu0 %v4063_v8  ;;  %v4088_v56 = vld [vmem:[%s5220_s12 + $0xe8] ss:$16 sps:$4 sm:$0xff]   ;;  %v586_v58 = vmul.f32 %v5377_v39, %v5377_v39  ;;  %v5399_v60 = vld [vmem:[#allocation2 + $0xc0] sm:$0xff]  ;;  %v589_v61 = vmul.f32 %v5388_v52, %v5388_v52  ;;  %v588_v62 = vmul.f32 %v5390_v53, %v5390_v53  ;;  %v5407_v2 = vld [vmem:[#allocation2 + $0xd0] sm:$0xff] }
 0x11f   : > { %616 = vadd.xlane.f32.xlu1 %v575_v57  ;;  %1259 = vmatpush1.bf16.msra.mxu1 %v4064_v13  ;;  %v587_v57 = vmul.f32 %v5375_v38, %v5375_v38  ;;  %v5405_v63 = vld [vmem:[#allocation2 + $0xd8] sm:$0xff]  ;;  %v5413_v5 = vld [vmem:[#allocation2 + $0xe8] sm:$0xff]  ;;  %v5415_v6 = vld [vmem:[#allocation2 + $0xe0] sm:$0xff]  ;;  %v592_v8 = vmul.f32 %v5407_v2, %v5407_v2 }
 0x120   : > { %1067 = vmatprep.subr.bf16.mxu0 %v4065_v14  ;;  %1260 = vmatprep.subr.bf16.mxu1 %v4067_v15  ;;  %v593_v7 = vmul.f32 %v5405_v63, %v5405_v63  ;;  %v5425_v13 = vld [vmem:[#allocation2 + $0xf8] sm:$0xff]  ;;  %v5427_v14 = vld [vmem:[#allocation2 + $0xf0] sm:$0xff] }
 0x121   : > { %v597_v15 = vmul.f32 %v5425_v13, %v5425_v13 }
 0x122   : > { %618 = vadd.xlane.f32.xlu0 %v576_v4  ;;  %1068 = vmatpush1.bf16.msra.mxu0 %v4069_v16  ;;  %v590_v4 = vmul.f32 %v5399_v60, %v5399_v60  ;;  %v596_v16 = vmul.f32 %v5427_v14, %v5427_v14 }
 0x123   : > { %620 = vadd.xlane.f32.xlu1 %v577_v3  ;;  %1261 = vmatpush1.bf16.msra.mxu1 %v4070_v21  ;;  %v591_v3 = vmul.f32 %v5397_v59, %v5397_v59 }
 0x124   : > { %1069 = vmatprep.subr.bf16.mxu0 %v4071_v22  ;;  %1262 = vmatprep.subr.bf16.mxu1 %v4073_v23 }
 0x126   : > { %622 = vadd.xlane.f32.xlu0 %v578_v12  ;;  %1070 = vmatpush1.bf16.msra.mxu0 %v4075_v26  ;;  %v594_v12 = vmul.f32 %v5415_v6, %v5415_v6 }
 0x127   : > { %624 = vadd.xlane.f32.xlu1 %v579_v11  ;;  %1263 = vmatpush1.bf16.msra.mxu1 %v4076_v29  ;;  %v595_v11 = vmul.f32 %v5413_v5, %v5413_v5 }
 0x128   : > { %1071 = vmatprep.subr.bf16.mxu0 %v4077_v30  ;;  %1264 = vmatprep.subr.bf16.mxu1 %v4079_v31 }
 0x12a   : > { %626 = vadd.xlane.f32.xlu0 %v580_v18  ;;  %1072 = vmatpush1.bf16.msra.mxu0 %v4081_v35 }
 0x12b   : > { %628 = vadd.xlane.f32.xlu1 %v581_v17  ;;  %1265 = vmatpush1.bf16.msra.mxu1 %v4082_v42 }
 0x12c   : > { %1073 = vmatprep.subr.bf16.mxu0 %v4083_v43  ;;  %1266 = vmatprep.subr.bf16.mxu1 %v4085_v50  ;;  %v4089_v50 = vld [vmem:[%s5228_s8 + $0x40] sm:$0xff]  }
 0x12e   : > { %630 = vadd.xlane.f32.xlu0 %v582_v28  ;;  %1074 = vmatpush1.bf16.msra.mxu0 %v4087_v51 }
 0x12f   : > { %632 = vadd.xlane.f32.xlu1 %v583_v27  ;;  %1267 = vmatpush1.bf16.msra.mxu1 %v4088_v56 }
 0x130   : > { %3681 = vmatprep.subr.bf16.mxu0 %v4089_v50  ;;  %v4094_v50 = vld [vmem:[%s5228_s8 + $0x8] sm:$0xff]  }
 0x132   : > { %634 = vadd.xlane.f32.xlu0 %v584_v49 }
 0x133   : > { %636 = vadd.xlane.f32.xlu1 %v585_v48 }
 0x136   : > { %638 = vadd.xlane.f32.xlu0 %v586_v58 }
 0x137   : > { %640 = vadd.xlane.f32.xlu1 %v587_v57 }
 0x13a   : > { %642 = vadd.xlane.f32.xlu0 %v588_v62 }
 0x13b   : > { %644 = vadd.xlane.f32.xlu1 %v589_v61 }
 0x13e   : > { %646 = vadd.xlane.f32.xlu0 %v590_v4 }
 0x13f   : > { %648 = vadd.xlane.f32.xlu1 %v591_v3 }
 0x142   : > { %650 = vadd.xlane.f32.xlu0 %v592_v8 }
 0x143   : > { %652 = vadd.xlane.f32.xlu1 %v593_v7  ;;  %v4091_v7 = vld [vmem:[%s5228_s8 + $0xc0] sm:$0xff]  }
 0x144   : > { %3793 = vmatprep.subr.bf16.mxu1 %v4091_v7 }
 0x146   : > { %654 = vadd.xlane.f32.xlu0 %v594_v12 }
 0x147   : > { %656 = vadd.xlane.f32.xlu1 %v595_v11  ;;  %v5438_v11 = vld [vmem:[%s375_s17] ss:$0 sm:$0xff] }
 0x14a   : > { %658 = vadd.xlane.f32.xlu0 %v596_v16 }
 0x14b   : > { %660 = vadd.xlane.f32.xlu1 %v597_v15 }
 0x19b   : > { %v599_v17 = vpop.xlane.xlu0 %598 }
 0x19c   : > { %v603_v18 = vpop.xlane.xlu1 %602  ;;  %v663_v21 = vmul.f32 0.0078125, %v599_v17 }
 0x19d   : > { %v665_v22 = vmul.f32 0.0078125, %v603_v18 }
 0x19e   : > { %v695_v23 = vadd.f32 1e-05, %v663_v21 }
 0x19f   : > { %v601_v26 = vpop.xlane.xlu0 %600  ;;  %v697_v30 = vadd.f32 1e-05, %v665_v22 }
 0x1a0   : > { %v605_v27 = vpop.xlane.xlu1 %604  ;;  %4121 = vrsqrt.f32 %v695_v23  ;;  %v664_v28 = vmul.f32 0.0078125, %v601_v26 }
 0x1a1   : > { %v666_v29 = vmul.f32 0.0078125, %v605_v27 }
 0x1a2   : > { %v696_v31 = vadd.f32 1e-05, %v664_v28 }
 0x1a3   : > { %v698_v35 = vadd.f32 1e-05, %v666_v29  ;;  %v607_v43 = vpop.xlane.xlu0 %606 }
 0x1a4   : > { %v609_v42 = vpop.xlane.xlu1 %608  ;;  %4123 = vrsqrt.f32 %v696_v31  ;;  %v667_v49 = vmul.f32 0.0078125, %v607_v43 }
 0x1a5   : > { %v668_v48 = vmul.f32 0.0078125, %v609_v42  ;;  %4125 = vrsqrt.f32 %v697_v30  ;;  %v4090_v30 = vld [vmem:[%s5228_s8] sm:$0xff]   ;;  %v4095_v42 = vld [vmem:[%s5228_s8 + $0xc8] sm:$0xff]  }
 0x1a6   : > { %4127 = vrsqrt.f32 %v698_v35  ;;  %v699_v57 = vadd.f32 1e-05, %v667_v49  ;;  %v4093_v35 = vld [vmem:[%s5228_s8 + $0x48] sm:$0xff]  }
 0x1a7   : > { %v700_v51 = vadd.f32 1e-05, %v668_v48  ;;  %v611_v58 = vpop.xlane.xlu0 %610 }
 0x1a8   : > { %v613_v56 = vpop.xlane.xlu1 %612  ;;  %v669_v3 = vmul.f32 0.0078125, %v611_v58  ;;  %v4097_v58 = vld [vmem:[%s5228_s8 + $0x50] sm:$0xff]  }
 0x1a9   : > { %v670_v62 = vmul.f32 0.0078125, %v613_v56  ;;  %4129 = vrsqrt.f32 %v700_v51  ;;  %v4096_v51 = vld [vmem:[%s5228_s8 + $0x88] sm:$0xff]  }
 0x1aa   : > { %v4122_v61 = vpop.eup %4121  ;;  %4131 = vrsqrt.f32 %v699_v57  ;;  %v701_v18 = vadd.f32 1e-05, %v669_v3 }
 0x1ab   : > { %v759_v4 = vmul.f32 %v4122_v61, %v5271_v32  ;;  %v702_v12 = vadd.f32 1e-05, %v670_v62  ;;  %v615_v23 = vpop.xlane.xlu0 %614  ;;  %v4099_v61 = vld [vmem:[%s5228_s8 + $0xd0] sm:$0xff]  }
 0x1ac   : > { %v617_v21 = vpop.xlane.xlu1 %616  ;;  %v671_v31 = vmul.f32 0.0078125, %v615_v23  ;;  %v4102_v23 = vld [vmem:[%s5228_s8 + $0x18] sm:$0xff]  }
 0x1ad   : > { %v797_v22 = vmul.f32 %v5438_v11, %v759_v4  ;;  %4133 = vrsqrt.f32 %v702_v12  ;;  %v672_v29 = vmul.f32 0.0078125, %v617_v21  ;;  %v4098_v12 = vld [vmem:[%s5228_s8 + $0x10] sm:$0xff]  }
 0x1ae   : > { %v4124_v8 = vpop.eup %4123  ;;  %4135 = vrsqrt.f32 %v701_v18  ;;  %v703_v56 = vadd.f32 1e-05, %v671_v31  ;;  %v4101_v18 = vld [vmem:[%s5228_s8 + $0x58] sm:$0xff]  }
 0x1af   : > { %v4126_v15 = vpop.eup %4125  ;;  %v760_v16 = vmul.f32 %v4124_v8, %v5275_v34  ;;  %v4092_v34 = vld [vmem:[%s5228_s8 + $0x80] sm:$0xff]   ;;  %v704_v49 = vadd.f32 1e-05, %v672_v29  ;;  %v619_v4 = vpop.xlane.xlu0 %618 }
 0x1b0   : > { %v4128_v17 = vpop.eup %4127  ;;  %v761_v27 = vmul.f32 %v4126_v15, %v5273_v33  ;;  %v621_v57 = vpop.xlane.xlu1 %620  ;;  %v4100_v15 = vld [vmem:[%s5228_s8 + $0x90] sm:$0xff]   ;;  %v4105_v29 = vld [vmem:[%s5228_s8 + $0x60] sm:$0xff]  }
 0x1b1   : > { %v798_v32 = vmul.f32 %v5438_v11, %v760_v16  ;;  %v762_v28 = vmul.f32 %v4128_v17, %v5281_v37  ;;  %4137 = vrsqrt.f32 %v704_v49  ;;  %v674_v8 = vmul.f32 0.0078125, %v621_v57  ;;  %v4109_v49 = vld [vmem:[%s5228_s8 + $0x68] sm:$0xff]  }
 0x1b2   : > { %v799_v33 = vmul.f32 %v5438_v11, %v761_v27  ;;  %4139 = vrsqrt.f32 %v703_v56  ;;  %v673_v17 = vmul.f32 0.0078125, %v619_v4 }
 0x1b3   : > { %v829_v26 = vpack.c.bf16 %v798_v32, %v797_v22  ;;  %v4130_v43 = vpop.eup %4129  ;;  %v800_v37 = vmul.f32 %v5438_v11, %v762_v28  ;;  %v706_v32 = vadd.f32 1e-05, %v674_v8 }
 0x1b4   : > { %v4132_v48 = vpop.eup %4131  ;;  %v764_v3 = vmul.f32 %v4130_v43, %v5287_v40  ;;  %v705_v27 = vadd.f32 1e-05, %v673_v17  ;;  %v625_v28 = vpop.xlane.xlu1 %624 }
 0x1b5   : > { %1092 = vmatmul.mubr.bf16.vlgmr.msra.gmra.mrb[0].mxu0 %v829_v26  ;;  %1285 = vmatmul.mubr.bf16.vlgmr.msra.gmra.mrb[0].mxu1 %v829_v26  ;;  %v763_v62 = vmul.f32 %v4132_v48, %v5289_v41  ;;  %v830_v7 = vpack.c.bf16 %v800_v37, %v799_v33  ;;  %v4103_v41 = vld [vmem:[%s5228_s8 + $0xd8] sm:$0xff]   ;;  %4141 = vrsqrt.f32 %v706_v32  ;;  %v676_v43 = vmul.f32 0.0078125, %v625_v28  ;;  %v4106_v48 = vld [vmem:[%s5228_s8 + $0x20] sm:$0xff]  }
 0x1b6   : > { %1101 = vmatprep.mubr.bf16.mxu0 %v4801_v36  ;;  %1294 = vmatprep.mubr.bf16.mxu1 %v4801_v36  ;;  %v802_v21 = vmul.f32 %v5438_v11, %v764_v3  ;;  %v4104_v26 = vld [vmem:[%s5228_s8 + $0x98] sm:$0xff]   ;;  %v4108_v33 = vld [vmem:[%s5228_s8 + $0xa0] sm:$0xff]   ;;  %4143 = vrsqrt.f32 %v705_v27 }
 0x1b7   : > { %3682 = vmatpush3.bf16.msra.mxu0 %v4090_v30  ;;  %3794 = vmatpush3.bf16.msra.mxu1 %v4092_v34  ;;  %v4134_v16 = vpop.eup %4133  ;;  %v801_v40 = vmul.f32 %v5438_v11, %v763_v62  ;;  %v4107_v30 = vld [vmem:[%s5228_s8 + $0xe0] sm:$0xff]   ;;  %v708_v57 = vadd.f32 1e-05, %v676_v43 }
 0x1b8   : > { %3683 = vmatprep.subr.bf16.mxu0 %v4093_v35  ;;  %3795 = vmatprep.subr.bf16.mxu1 %v4095_v42  ;;  %v4136_v22 = vpop.eup %4135  ;;  %v766_v35 = vmul.f32 %v4134_v16, %v5295_v44  ;;  %v623_v42 = vpop.xlane.xlu0 %622 }
 0x1b9   : > { %v831_v34 = vpack.c.bf16 %v802_v21, %v801_v40  ;;  %v765_v31 = vmul.f32 %v4136_v22, %v5297_v45  ;;  %v675_v37 = vmul.f32 0.0078125, %v623_v42  ;;  %v629_v3 = vpop.xlane.xlu1 %628  ;;  %4145 = vrsqrt.f32 %v708_v57 }
 0x1ba   : > { %v804_v45 = vmul.f32 %v5438_v11, %v766_v35 }
 0x1bb   : > { %3684 = vmatpush3.bf16.msra.mxu0 %v4094_v50  ;;  %3796 = vmatpush3.bf16.msra.mxu1 %v4096_v51  ;;  %v4111_v50 = vld [vmem:[%s5228_s8 + $0xe8] sm:$0xff]   ;;  %v4138_v51 = vpop.eup %4137  ;;  %v803_v44 = vmul.f32 %v5438_v11, %v765_v31  ;;  %v707_v62 = vadd.f32 1e-05, %v675_v37 }
 0x1bc   : > { %3685 = vmatprep.subr.bf16.mxu0 %v4097_v58  ;;  %3797 = vmatprep.subr.bf16.mxu1 %v4099_v61  ;;  %v4140_v56 = vpop.eup %4139  ;;  %v4110_v58 = vld [vmem:[%s5228_s8 + $0x28] sm:$0xff]   ;;  %v768_v8 = vmul.f32 %v4138_v51, %v5299_v46 }
 0x1bd   : > { %1102 = vmatmul.mubr.bf16.gmra.mrb[4].mxu0 %v830_v7  ;;  %1295 = vmatmul.mubr.bf16.gmra.mrb[4].mxu1 %v830_v7  ;;  %v4112_v61 = vld [vmem:[%s5228_s8 + $0xa8] sm:$0xff]   ;;  %v832_v4 = vpack.c.bf16 %v804_v45, %v803_v44  ;;  %v767_v7 = vmul.f32 %v4140_v56, %v5301_v47  ;;  %4147 = vrsqrt.f32 %v707_v62  ;;  %v633_v21 = vpop.xlane.xlu1 %632 }
 0x1be   : > { %1111 = vmatprep.mubr.bf16.mxu0 %v4801_v36  ;;  %1304 = vmatprep.mubr.bf16.mxu1 %v4801_v36  ;;  %v680_v27 = vmul.f32 0.0078125, %v633_v21 }
 0x1bf   : > { %3686 = vmatpush3.bf16.msra.mxu0 %v4098_v12  ;;  %3798 = vmatpush3.bf16.msra.mxu1 %v4100_v15  ;;  %v627_v12 = vpop.xlane.xlu0 %626  ;;  %v678_v15 = vmul.f32 0.0078125, %v629_v3  ;;  %v4142_v17 = vpop.eup %4141 }
 0x1c0   : > { %3687 = vmatprep.subr.bf16.mxu0 %v4101_v18  ;;  %3799 = vmatprep.subr.bf16.mxu1 %v4103_v41  ;;  %v677_v16 = vmul.f32 0.0078125, %v627_v12  ;;  %v805_v18 = vmul.f32 %v5438_v11, %v767_v7  ;;  %v806_v41 = vmul.f32 %v5438_v11, %v768_v8  ;;  %v4144_v40 = vpop.eup %4143 }
 0x1c1   : > { %v710_v46 = vadd.f32 1e-05, %v678_v15  ;;  %v769_v32 = vmul.f32 %v4144_v40, %v5313_v55  ;;  %v712_v55 = vadd.f32 1e-05, %v680_v27 }
 0x1c2   : > { %v709_v47 = vadd.f32 1e-05, %v677_v16  ;;  %v833_v22 = vpack.c.bf16 %v806_v41, %v805_v18 }
 0x1c3   : > { %3688 = vmatpush3.bf16.msra.mxu0 %v4102_v23  ;;  %3800 = vmatpush3.bf16.msra.mxu1 %v4104_v26  ;;  %v770_v23 = vmul.f32 %v4142_v17, %v5311_v54  ;;  %v631_v26 = vpop.xlane.xlu0 %630  ;;  %4149 = vrsqrt.f32 %v710_v46  ;;  %v637_v54 = vpop.xlane.xlu1 %636 }
 0x1c4   : > { %3689 = vmatprep.subr.bf16.mxu0 %v4105_v29  ;;  %3801 = vmatprep.subr.bf16.mxu1 %v4107_v30  ;;  %4151 = vrsqrt.f32 %v709_v47  ;;  %v679_v28 = vmul.f32 0.0078125, %v631_v26  ;;  %v4146_v29 = vpop.eup %4145  ;;  %v807_v30 = vmul.f32 %v5438_v11, %v769_v32  ;;  %v682_v37 = vmul.f32 0.0078125, %v637_v54 }
 0x1c5   : > { %1112 = vmatmul.mubr.bf16.gmra.mrb[8].mxu0 %v831_v34  ;;  %1305 = vmatmul.mubr.bf16.gmra.mrb[8].mxu1 %v831_v34  ;;  %v808_v34 = vmul.f32 %v5438_v11, %v770_v23  ;;  %4153 = vrsqrt.f32 %v712_v55 }
 0x1c6   : > { %1121 = vmatprep.mubr.bf16.mxu0 %v4801_v36  ;;  %1314 = vmatprep.mubr.bf16.mxu1 %v4801_v36  ;;  %v711_v35 = vadd.f32 1e-05, %v679_v28 }
 0x1c7   : > { %3690 = vmatpush3.bf16.msra.mxu0 %v4106_v48  ;;  %3802 = vmatpush3.bf16.msra.mxu1 %v4108_v33  ;;  %v4148_v31 = vpop.eup %4147  ;;  %v834_v42 = vpack.c.bf16 %v808_v34, %v807_v30  ;;  %v772_v48 = vmul.f32 %v4146_v29, %v5325_v0  ;;  %v635_v33 = vpop.xlane.xlu0 %634 }
 0x1c8   : > { %3691 = vmatprep.subr.bf16.mxu0 %v4109_v49  ;;  %3803 = vmatprep.subr.bf16.mxu1 %v4111_v50  ;;  %v771_v43 = vmul.f32 %v4148_v31, %v5327_v1  ;;  %4155 = vrsqrt.f32 %v711_v35  ;;  %v681_v49 = vmul.f32 0.0078125, %v635_v33  ;;  %v714_v1 = vadd.f32 1e-05, %v682_v37  ;;  %v641_v0 = vpop.xlane.xlu1 %640 }
 0x1c9   : > { %v810_v44 = vmul.f32 %v5438_v11, %v772_v48  ;;  %v684_v3 = vmul.f32 0.0078125, %v641_v0 }
 0x1ca   : > { %v809_v51 = vmul.f32 %v5438_v11, %v771_v43  ;;  %v713_v56 = vadd.f32 1e-05, %v681_v49  ;;  %4157 = vrsqrt.f32 %v714_v1 }
 0x1cb   : > { %3692 = vmatpush3.bf16.msra.mxu0 %v4110_v58  ;;  %3804 = vmatpush3.bf16.msra.mxu1 %v4112_v61  ;;  %v639_v62 = vpop.xlane.xlu0 %638 }
 0x1cc   : > { %v835_v57 = vpack.c.bf16 %v810_v44, %v809_v51  ;;  %4159 = vrsqrt.f32 %v713_v56 }
 0x1cd   : > { %1122 = vmatmul.mubr.bf16.gmra.mrb[12].mxu0 %v832_v4  ;;  %1315 = vmatmul.mubr.bf16.gmra.mrb[12].mxu1 %v832_v4  ;;  %v4150_v50 = vpop.eup %4149  ;;  %v683_v4 = vmul.f32 0.0078125, %v639_v62 }
 0x1ce   : > { %1131 = vmatprep.mubr.bf16.mxu0 %v4801_v36  ;;  %1324 = vmatprep.mubr.bf16.mxu1 %v4801_v36  ;;  %v4152_v45 = vpop.eup %4151  ;;  %v774_v61 = vmul.f32 %v4150_v50, %v5338_v9  ;;  %v645_v9 = vpop.xlane.xlu1 %644 }
 0x1cf   : > { %v773_v58 = vmul.f32 %v4152_v45, %v5340_v10  ;;  %v4154_v7 = vpop.eup %4153  ;;  %v716_v10 = vadd.f32 1e-05, %v684_v3  ;;  %v715_v16 = vadd.f32 1e-05, %v683_v4  ;;  %v643_v40 = vpop.xlane.xlu0 %642  ;;  %v686_v46 = vmul.f32 0.0078125, %v645_v9 }
 0x1d0   : > { %v812_v12 = vmul.f32 %v5438_v11, %v774_v61  ;;  %v776_v41 = vmul.f32 %v4154_v7, %v5354_v19  ;;  %v685_v47 = vmul.f32 0.0078125, %v643_v40 }
 0x1d1   : > { %v811_v8 = vmul.f32 %v5438_v11, %v773_v58  ;;  %4161 = vrsqrt.f32 %v716_v10 }
 0x1d2   : > { %v4156_v15 = vpop.eup %4155  ;;  %4163 = vrsqrt.f32 %v715_v16  ;;  %v814_v32 = vmul.f32 %v5438_v11, %v776_v41  ;;  %v717_v26 = vadd.f32 1e-05, %v685_v47  ;;  %v649_v19 = vpop.xlane.xlu1 %648 }
 0x1d3   : > { %v836_v17 = vpack.c.bf16 %v812_v12, %v811_v8  ;;  %v775_v18 = vmul.f32 %v4156_v15, %v5356_v20  ;;  %v718_v20 = vadd.f32 1e-05, %v686_v46  ;;  %v647_v30 = vpop.xlane.xlu0 %646  ;;  %v688_v34 = vmul.f32 0.0078125, %v649_v19 }
 0x1d4   : > { %v4158_v21 = vpop.eup %4157  ;;  %v687_v31 = vmul.f32 0.0078125, %v647_v30 }
 0x1d5   : > { %1132 = vmatmul.mubr.bf16.gmra.mrb[16].mxu0 %v833_v22  ;;  %1325 = vmatmul.mubr.bf16.gmra.mrb[16].mxu1 %v833_v22  ;;  %v813_v22 = vmul.f32 %v5438_v11, %v775_v18  ;;  %v778_v29 = vmul.f32 %v4158_v21, %v5361_v24  ;;  %4165 = vrsqrt.f32 %v718_v20 }
 0x1d6   : > { %1141 = vmatprep.mubr.bf16.mxu0 %v4801_v36  ;;  %1334 = vmatprep.mubr.bf16.mxu1 %v4801_v36  ;;  %v4160_v23 = vpop.eup %4159  ;;  %4167 = vrsqrt.f32 %v717_v26  ;;  %v719_v43 = vadd.f32 1e-05, %v687_v31  ;;  %v653_v24 = vpop.xlane.xlu1 %652 }
 0x1d7   : > { %v837_v27 = vpack.c.bf16 %v814_v32, %v813_v22  ;;  %v777_v28 = vmul.f32 %v4160_v23, %v5363_v25  ;;  %v816_v54 = vmul.f32 %v5438_v11, %v778_v29  ;;  %v720_v25 = vadd.f32 1e-05, %v688_v34  ;;  %v651_v49 = vpop.xlane.xlu0 %650 }
 0x1d8   : > { %v690_v50 = vmul.f32 0.0078125, %v653_v24  ;;  %v689_v51 = vmul.f32 0.0078125, %v651_v49  ;;  %v4114_v24 = vld [vmem:[%s5228_s8 + $0x30] sm:$0xff]  }
 0x1d9   : > { %v815_v35 = vmul.f32 %v5438_v11, %v777_v28  ;;  %4169 = vrsqrt.f32 %v720_v25  ;;  %v4113_v25 = vld [vmem:[%s5228_s8 + $0x70] sm:$0xff]  }
 0x1da   : > { %4171 = vrsqrt.f32 %v719_v43  ;;  %v721_v0 = vadd.f32 1e-05, %v689_v51  ;;  %v4115_v43 = vld [vmem:[%s5228_s8 + $0xf0] sm:$0xff]   ;;  %3693 = vmatprep.subr.bf16.mxu0 %v4113_v25 }
 0x1db   : > { %v4162_v55 = vpop.eup %4161  ;;  %v838_v48 = vpack.c.bf16 %v816_v54, %v815_v35  ;;  %v655_v62 = vpop.xlane.xlu0 %654  ;;  %3805 = vmatprep.subr.bf16.mxu1 %v4115_v43  ;;  %3694 = vmatpush3.bf16.msra.mxu0 %v4114_v24 }
 0x1dc   : > { %v780_v37 = vmul.f32 %v4162_v55, %v5375_v38  ;;  %v657_v38 = vpop.xlane.xlu1 %656  ;;  %v691_v4 = vmul.f32 0.0078125, %v655_v62 }
 0x1dd   : > { %1142 = vmatmul.mubr.bf16.gmra.mrb[20].mxu0 %v834_v42  ;;  %1335 = vmatmul.mubr.bf16.gmra.mrb[20].mxu1 %v834_v42  ;;  %v4164_v42 = vpop.eup %4163  ;;  %v692_v3 = vmul.f32 0.0078125, %v657_v38 }
 0x1de   : > { %1151 = vmatprep.mubr.bf16.mxu0 %v4801_v36  ;;  %1344 = vmatprep.mubr.bf16.mxu1 %v4801_v36  ;;  %v779_v33 = vmul.f32 %v4164_v42, %v5377_v39  ;;  %v818_v1 = vmul.f32 %v5438_v11, %v780_v37  ;;  %v722_v39 = vadd.f32 1e-05, %v690_v50  ;;  %v723_v10 = vadd.f32 1e-05, %v691_v4  ;;  %v4120_v37 = vld [vmem:[%s5228_s8 + $0xb8] sm:$0xff]  }
 0x1df   : > { %v4166_v44 = vpop.eup %4165  ;;  %v659_v18 = vpop.xlane.xlu0 %658 }
 0x1e0   : > { %v817_v45 = vmul.f32 %v5438_v11, %v779_v33  ;;  %v4168_v56 = vpop.eup %4167  ;;  %v782_v61 = vmul.f32 %v4166_v44, %v5388_v52  ;;  %4173 = vrsqrt.f32 %v722_v39  ;;  %v661_v52 = vpop.xlane.xlu1 %660  ;;  %v693_v40 = vmul.f32 0.0078125, %v659_v18  ;;  %v4118_v33 = vld [vmem:[%s5228_s8 + $0x38] sm:$0xff]  }
 0x1e1   : > { %v781_v58 = vmul.f32 %v4168_v56, %v5390_v53  ;;  %4175 = vrsqrt.f32 %v721_v0  ;;  %v724_v53 = vadd.f32 1e-05, %v692_v3  ;;  %v694_v41 = vmul.f32 0.0078125, %v661_v52  ;;  %v877_v44 = vld [vmem:[%s5222_s0] sm:$0xf] }
 0x1e2   : > { %v820_v12 = vmul.f32 %v5438_v11, %v782_v61  ;;  %v725_v32 = vadd.f32 1e-05, %v693_v40 }
 0x1e3   : > { %v4170_v7 = vpop.eup %4169  ;;  %v819_v8 = vmul.f32 %v5438_v11, %v781_v58  ;;  %4177 = vrsqrt.f32 %v724_v53 }
 0x1e4   : > { %v4172_v15 = vpop.eup %4171  ;;  %4179 = vrsqrt.f32 %v723_v10 }
 0x1e5   : > { %1152 = vmatmul.mubr.bf16.gmra.mrb[24].mxu0 %v835_v57  ;;  %1345 = vmatmul.mubr.bf16.gmra.mrb[24].mxu1 %v835_v57  ;;  %v839_v57 = vpack.c.bf16 %v818_v1, %v817_v45  ;;  %v840_v16 = vpack.c.bf16 %v820_v12, %v819_v8  ;;  %v783_v9 = vmul.f32 %v4172_v15, %v5399_v60  ;;  %v726_v60 = vadd.f32 1e-05, %v694_v41 }
 0x1e6   : > { %1161 = vmatprep.mubr.bf16.mxu0 %v4801_v36  ;;  %1354 = vmatprep.mubr.bf16.mxu1 %v4801_v36 }
 0x1e7   : > { %v821_v47 = vmul.f32 %v5438_v11, %v783_v9  ;;  %4181 = vrsqrt.f32 %v726_v60 }
 0x1e8   : > { %4183 = vrsqrt.f32 %v725_v32 }
 0x1ea   : > { %v4174_v46 = vpop.eup %4173 }
 0x1eb   : > { %v4176_v22 = vpop.eup %4175  ;;  %v786_v20 = vmul.f32 %v4174_v46, %v5405_v63 }
 0x1ec   : > { %v785_v23 = vmul.f32 %v4176_v22, %v5407_v2 }
 0x1ed   : > { %1162 = vmatmul.mubr.bf16.gmra.mrb[28].mxu0 %v836_v17  ;;  %1355 = vmatmul.mubr.bf16.gmra.mrb[28].mxu1 %v836_v17  ;;  %v784_v17 = vmul.f32 %v4170_v7, %v5397_v59  ;;  %v4178_v26 = vpop.eup %4177 }
 0x1ee   : > { %1171 = vmatprep.mubr.bf16.mxu0 %v4801_v36  ;;  %1364 = vmatprep.mubr.bf16.mxu1 %v4801_v36  ;;  %v823_v19 = vmul.f32 %v5438_v11, %v785_v23  ;;  %v4180_v28 = vpop.eup %4179  ;;  %v788_v2 = vmul.f32 %v4178_v26, %v5413_v5 }
 0x1ef   : > { %v822_v21 = vmul.f32 %v5438_v11, %v784_v17  ;;  %v787_v30 = vmul.f32 %v4180_v28, %v5415_v6 }
 0x1f0   : > { %v826_v31 = vmul.f32 %v5438_v11, %v788_v2 }
 0x1f1   : > { %v841_v59 = vpack.c.bf16 %v822_v21, %v821_v47  ;;  %v4182_v63 = vpop.eup %4181  ;;  %v825_v34 = vmul.f32 %v5438_v11, %v787_v30 }
 0x1f2   : > { %v4184_v55 = vpop.eup %4183  ;;  %v790_v5 = vmul.f32 %v4182_v63, %v5425_v13 }
 0x1f3   : > { %v843_v35 = vpack.c.bf16 %v826_v31, %v825_v34  ;;  %v789_v6 = vmul.f32 %v4184_v55, %v5427_v14  ;;  %v4116_v14 = vld [vmem:[%s5228_s8 + $0xb0] sm:$0xff]  }
 0x1f4   : > { %v828_v42 = vmul.f32 %v5438_v11, %v790_v5  ;;  %3806 = vmatpush3.bf16.msra.mxu1 %v4116_v14 }
 0x1f5   : > { %1172 = vmatmul.mubr.bf16.gmra.mrb[32].mxu0 %v837_v27  ;;  %1365 = vmatmul.mubr.bf16.gmra.mrb[32].mxu1 %v837_v27  ;;  %v824_v27 = vmul.f32 %v5438_v11, %v786_v20  ;;  %v827_v54 = vmul.f32 %v5438_v11, %v789_v6  ;;  %v4119_v11 = vld [vmem:[%s5228_s8 + $0xf8] sm:$0xff]  }
 0x1f6   : > { %1181 = vmatprep.mubr.bf16.mxu0 %v4801_v36  ;;  %1374 = vmatprep.mubr.bf16.mxu1 %v4801_v36 }
 0x1f7   : > { %v842_v29 = vpack.c.bf16 %v824_v27, %v823_v19  ;;  %v844_v13 = vpack.c.bf16 %v828_v42, %v827_v54  ;;  %3807 = vmatprep.subr.bf16.mxu1 %v4119_v11 }
 0x1f8   : > { %3808 = vmatpush3.bf16.msra.mxu1 %v4120_v37 }
 0x1fd   : > { %1182 = vmatmul.mubr.bf16.gmra.mrb[36].mxu0 %v838_v48  ;;  %1375 = vmatmul.mubr.bf16.gmra.mrb[36].mxu1 %v838_v48  ;;  %v4117_v48 = vld [vmem:[%s5228_s8 + $0x78] sm:$0xff]  }
 0x1fe   : > { %1191 = vmatprep.mubr.bf16.mxu0 %v4801_v36  ;;  %1384 = vmatprep.mubr.bf16.mxu1 %v4801_v36 }
 0x1ff   : > { %3695 = vmatprep.subr.bf16.mxu0 %v4117_v48 }
 0x200   : > { %3696 = vmatpush3.bf16.msra.mxu0 %v4118_v33 }
 0x205   : > { %1192 = vmatmul.mubr.bf16.gmra.mrb[40].mxu0 %v839_v57  ;;  %1385 = vmatmul.mubr.bf16.gmra.mrb[40].mxu1 %v839_v57 }
 0x206   : > { %1201 = vmatprep.mubr.bf16.mxu0 %v4801_v36  ;;  %1394 = vmatprep.mubr.bf16.mxu1 %v4801_v36 }
 0x20d   : > { %1202 = vmatmul.mubr.bf16.gmra.mrb[44].mxu0 %v840_v16  ;;  %1395 = vmatmul.mubr.bf16.gmra.mrb[44].mxu1 %v840_v16 }
 0x20e   : > { %1211 = vmatprep.mubr.bf16.mxu0 %v4801_v36  ;;  %1404 = vmatprep.mubr.bf16.mxu1 %v4801_v36 }
 0x215   : > { %1212 = vmatmul.mubr.bf16.gmra.mrb[48].mxu0 %v841_v59  ;;  %1405 = vmatmul.mubr.bf16.gmra.mrb[48].mxu1 %v841_v59 }
 0x216   : > { %1221 = vmatprep.mubr.bf16.mxu0 %v4801_v36  ;;  %1414 = vmatprep.mubr.bf16.mxu1 %v4801_v36 }
 0x21d   : > { %1222 = vmatmul.mubr.bf16.gmra.mrb[52].mxu0 %v842_v29  ;;  %1415 = vmatmul.mubr.bf16.gmra.mrb[52].mxu1 %v842_v29 }
 0x21e   : > { %1231 = vmatprep.mubr.bf16.mxu0 %v4801_v36  ;;  %1424 = vmatprep.mubr.bf16.mxu1 %v4801_v36 }
 0x225   : > { %1232 = vmatmul.mubr.bf16.gmra.mrb[56].mxu0 %v843_v35  ;;  %1425 = vmatmul.mubr.bf16.gmra.mrb[56].mxu1 %v843_v35 }
 0x226   : > { %1241 = vmatprep.mubr.bf16.mxu0 %v4801_v36  ;;  %1434 = vmatprep.mubr.bf16.mxu1 %v4801_v36  ;;  %v879_v36 = vlaneseq }
 0x228   : > { %v880_v49 = vshrl.u32 %v879_v36, 7 }
 0x22a   : > { %v881_v50 = vsub.s32 0, %v880_v49  ;;  %v889_v51 = vsub.s32 2, %v880_v49  ;;  %v885_v45 = vsub.s32 1, %v880_v49  ;;  %v893_v1 = vsub.s32 3, %v880_v49 }
 0x22c   : > { %v5564_v56 = vrot.slane %v877_v44, %v881_v50  ;;  %v5566_v39 = vrot.slane %v877_v44, %v889_v51  ;;  %v5568_v0 = vrot.slane %v877_v44, %v885_v45  ;;  %v5570_v38 = vrot.slane %v877_v44, %v893_v1 }
 0x22d   : > { %1242 = vmatmul.mubr.bf16.gmra.mrb[60].mxu0 %v844_v13  ;;  %1435 = vmatmul.mubr.bf16.gmra.mrb[60].mxu1 %v844_v13 }
 0x288   : > { %v1093_v57 = vpop.f32.mrb[0].mxu0  ;;  %v1286_v58 = vpop.f32.mrb[0].mxu1 }
 0x289   : > { %v5573_v61 = vadd.f32 %v1093_v57, %v5564_v56  ;;  %v5576_v62 = vadd.f32 %v1286_v58, %v5566_v39  ;;  %v1095_v3 = vpop.f32.mrb[1].mxu0  ;;  %v1288_v4 = vpop.f32.mrb[1].mxu1 }
 0x28a   : > { %v5579_v7 = vadd.f32 %v1095_v3, %v5568_v0  ;;  %v5582_v8 = vadd.f32 %v1288_v4, %v5570_v38  ;;  %v1097_v12 = vpop.f32.mrb[2].mxu0  ;;  %v1290_v15 = vpop.f32.mrb[2].mxu1 }
 0x28b   : > { %v1445_v53 = vmul.f32 %v5573_v61, %v5573_v61  ;;  %v1447_v10 = vmul.f32 %v5576_v62, %v5576_v62  ;;  %v5589_v52 = vadd.f32 %v1097_v12, %v5564_v56  ;;  %v5592_v16 = vadd.f32 %v1290_v15, %v5566_v39  ;;  %v1099_v9 = vpop.f32.mrb[3].mxu0  ;;  %v1292_v17 = vpop.f32.mrb[3].mxu1 }
 0x28c   : > { %v1446_v18 = vmul.f32 %v5579_v7, %v5579_v7  ;;  %v1448_v41 = vmul.f32 %v5582_v8, %v5582_v8  ;;  %v5599_v40 = vadd.f32 %v1099_v9, %v5568_v0  ;;  %v5602_v46 = vadd.f32 %v1292_v17, %v5570_v38 }
 0x28d   : > { %v1573_v47 = vmul.f32 %v1445_v53, %v5573_v61  ;;  %v1575_v21 = vmul.f32 %v1447_v10, %v5576_v62  ;;  %v1449_v22 = vmul.f32 %v5589_v52, %v5589_v52  ;;  %v1451_v60 = vmul.f32 %v5592_v16, %v5592_v16 }
 0x28e   : > { %v1574_v32 = vmul.f32 %v1446_v18, %v5579_v7  ;;  %v1576_v59 = vmul.f32 %v1448_v41, %v5582_v8  ;;  %v1450_v23 = vmul.f32 %v5599_v40, %v5599_v40  ;;  %v1452_v20 = vmul.f32 %v5602_v46, %v5602_v46 }
 0x28f   : > { %v1701_v26 = vmul.f32 0.044715, %v1573_v47  ;;  %v1703_v19 = vmul.f32 0.044715, %v1575_v21  ;;  %v1577_v27 = vmul.f32 %v1449_v22, %v5589_v52  ;;  %v1579_v28 = vmul.f32 %v1451_v60, %v5592_v16 }
 0x290   : > { %v1702_v29 = vmul.f32 0.044715, %v1574_v32  ;;  %v1704_v30 = vmul.f32 0.044715, %v1576_v59  ;;  %v1578_v2 = vmul.f32 %v1450_v23, %v5599_v40  ;;  %v1580_v63 = vmul.f32 %v1452_v20, %v5602_v46  ;;  %v1103_v34 = vpop.f32.mrb[4].mxu0  ;;  %v1296_v31 = vpop.f32.mrb[4].mxu1 }
 0x291   : > { %v1829_v55 = vadd.f32 %v1701_v26, %v5573_v61  ;;  %v1831_v35 = vadd.f32 %v1703_v19, %v5576_v62  ;;  %v1705_v6 = vmul.f32 0.044715, %v1577_v27  ;;  %v1707_v5 = vmul.f32 0.044715, %v1579_v28  ;;  %v1105_v54 = vpop.f32.mrb[5].mxu0  ;;  %v1298_v42 = vpop.f32.mrb[5].mxu1 }
 0x292   : > { %v1830_v25 = vadd.f32 %v1702_v29, %v5579_v7  ;;  %v1832_v43 = vadd.f32 %v1704_v30, %v5582_v8  ;;  %v1706_v24 = vmul.f32 0.044715, %v1578_v2  ;;  %v1708_v14 = vmul.f32 0.044715, %v1580_v63  ;;  %v1107_v13 = vpop.f32.mrb[6].mxu0  ;;  %v1300_v48 = vpop.f32.mrb[6].mxu1 }
 0x293   : > { %v1957_v11 = vmul.f32 0.7978846, %v1829_v55  ;;  %v1959_v33 = vmul.f32 0.7978846, %v1831_v35  ;;  %v1833_v37 = vadd.f32 %v1705_v6, %v5589_v52  ;;  %v1835_v36 = vadd.f32 %v1707_v5, %v5592_v16  ;;  %v1109_v49 = vpop.f32.mrb[7].mxu0  ;;  %v1302_v50 = vpop.f32.mrb[7].mxu1 }
 0x294   : > { %v1958_v51 = vmul.f32 0.7978846, %v1830_v25  ;;  %v1960_v44 = vmul.f32 0.7978846, %v1832_v43  ;;  %v1834_v45 = vadd.f32 %v1706_v24, %v5599_v40  ;;  %v1836_v1 = vadd.f32 %v1708_v14, %v5602_v46 }
 0x295   : > { %4185 = vtanh.f32 %v1957_v11  ;;  %v1961_v57 = vmul.f32 0.7978846, %v1833_v37  ;;  %v1963_v58 = vmul.f32 0.7978846, %v1835_v36  ;;  %v5629_v3 = vadd.f32 %v1103_v34, %v5564_v56 }
 0x296   : > { %4187 = vtanh.f32 %v1959_v33  ;;  %v1962_v4 = vmul.f32 0.7978846, %v1834_v45  ;;  %v1964_v12 = vmul.f32 0.7978846, %v1836_v1  ;;  %v5632_v15 = vadd.f32 %v1296_v31, %v5566_v39 }
 0x297   : > { %7670 = vst [vmem:[#allocation31_spill] sm:$0xff] %v5629_v3  ;;  %4189 = vtanh.f32 %v1958_v51  ;;  %v1453_v53 = vmul.f32 %v5629_v3, %v5629_v3  ;;  %v5637_v10 = vadd.f32 %v1105_v54, %v5568_v0  ;;  %v5640_v9 = vadd.f32 %v1298_v42, %v5570_v38 }
 0x298   : > { %7671 = vst [vmem:[#allocation32_spill] sm:$0xff] %v5632_v15  ;;  %4191 = vtanh.f32 %v1960_v44  ;;  %v1455_v17 = vmul.f32 %v5632_v15, %v5632_v15  ;;  %v5645_v18 = vadd.f32 %v1107_v13, %v5564_v56  ;;  %v5648_v41 = vadd.f32 %v1300_v48, %v5566_v39  ;;  %v5650_v47 = vpop.f32.mrb[8].mxu0  ;;  %v5652_v21 = vpop.f32.mrb[8].mxu1 }
 0x299   : > { %7672 = vst [vmem:[#allocation33_spill] sm:$0xff] %v5640_v9  ;;  %4193 = vtanh.f32 %v1961_v57  ;;  %v1581_v22 = vmul.f32 %v1453_v53, %v5629_v3  ;;  %v1454_v60 = vmul.f32 %v5637_v10, %v5637_v10  ;;  %v1456_v32 = vmul.f32 %v5640_v9, %v5640_v9  ;;  %v5659_v59 = vpop.f32.mrb[9].mxu0  ;;  %v5661_v23 = vpop.f32.mrb[9].mxu1 }
 0x29a   : > { %7673 = vst [vmem:[#allocation34_spill] sm:$0xff] %v5645_v18  ;;  %7674 = vst [vmem:[#allocation35_spill] sm:$0xff] %v5648_v41  ;;  %4195 = vtanh.f32 %v1963_v58  ;;  %v1583_v20 = vmul.f32 %v1455_v17, %v5632_v15  ;;  %v1457_v26 = vmul.f32 %v5645_v18, %v5645_v18  ;;  %v1459_v19 = vmul.f32 %v5648_v41, %v5648_v41  ;;  %v5668_v27 = vpop.f32.mrb[10].mxu0  ;;  %v5670_v28 = vpop.f32.mrb[10].mxu1 }
 0x29b   : > { %4197 = vtanh.f32 %v1962_v4  ;;  %v1709_v29 = vmul.f32 0.044715, %v1581_v22  ;;  %v1582_v30 = vmul.f32 %v1454_v60, %v5637_v10  ;;  %v1584_v2 = vmul.f32 %v1456_v32, %v5640_v9  ;;  %v5674_v63 = vpop.f32.mrb[11].mxu0  ;;  %v5676_v34 = vpop.f32.mrb[11].mxu1 }
 0x29c   : > { %4199 = vtanh.f32 %v1964_v12  ;;  %v1711_v31 = vmul.f32 0.044715, %v1583_v20  ;;  %v1585_v55 = vmul.f32 %v1457_v26, %v5645_v18  ;;  %v1587_v35 = vmul.f32 %v1459_v19, %v5648_v41 }
 0x29d   : > { %v1837_v6 = vadd.f32 %v1709_v29, %v5629_v3  ;;  %v1710_v5 = vmul.f32 0.044715, %v1582_v30  ;;  %v1712_v54 = vmul.f32 0.044715, %v1584_v2  ;;  %v5682_v42 = vadd.f32 %v1109_v49, %v5568_v0 }
 0x29e   : > { %v1839_v25 = vadd.f32 %v1711_v31, %v5632_v15  ;;  %v1713_v43 = vmul.f32 0.044715, %v1585_v55  ;;  %v1715_v24 = vmul.f32 0.044715, %v1587_v35  ;;  %v5686_v14 = vadd.f32 %v1302_v50, %v5570_v38 }
 0x29f   : > { %7675 = vst [vmem:[#allocation36_spill] sm:$0xff] %v5682_v42  ;;  %v4186_v13 = vpop.eup %4185  ;;  %v1965_v48 = vmul.f32 0.7978846, %v1837_v6  ;;  %v1838_v11 = vadd.f32 %v1710_v5, %v5637_v10  ;;  %v1840_v33 = vadd.f32 %v1712_v54, %v5640_v9  ;;  %v1458_v37 = vmul.f32 %v5682_v42, %v5682_v42 }
 0x2a0   : > { %7676 = vst [vmem:[#allocation37_spill] sm:$0xff] %v5686_v14  ;;  %v4188_v36 = vpop.eup %4187  ;;  %v2213_v51 = vadd.f32 1.0, %v4186_v13  ;;  %v1967_v49 = vmul.f32 0.7978846, %v1839_v25  ;;  %v1841_v44 = vadd.f32 %v1713_v43, %v5645_v18  ;;  %v1843_v45 = vadd.f32 %v1715_v24, %v5648_v41  ;;  %v5694_v1 = vpop.f32.mrb[12].mxu0 }
 0x2a1   : > { %v5696_v50 = vpop.f32.mrb[12].mxu1  ;;  %v5698_v57 = vpop.eup %4189  ;;  %v2215_v58 = vadd.f32 1.0, %v4188_v36  ;;  %4201 = vtanh.f32 %v1965_v48  ;;  %v1966_v4 = vmul.f32 0.7978846, %v1838_v11  ;;  %v1968_v12 = vmul.f32 0.7978846, %v1840_v33 }
 0x2a2   : > { %v5700_v53 = vpop.f32.mrb[13].mxu0  ;;  %v5702_v17 = vpop.eup %4191  ;;  %v2341_v22 = vmul.f32 0.5, %v2213_v51  ;;  %4203 = vtanh.f32 %v1967_v49  ;;  %v1969_v60 = vmul.f32 0.7978846, %v1841_v44  ;;  %v1971_v32 = vmul.f32 0.7978846, %v1843_v45 }
 0x2a3   : > { %v5704_v20 = vpop.f32.mrb[13].mxu1  ;;  %v4194_v26 = vpop.eup %4193  ;;  %v2343_v19 = vmul.f32 0.5, %v2215_v58  ;;  %4205 = vtanh.f32 %v1966_v4  ;;  %v1586_v29 = vmul.f32 %v1458_v37, %v5682_v42  ;;  %v1460_v30 = vmul.f32 %v5686_v14, %v5686_v14 }
 0x2a4   : > { %v5709_v2 = vpop.f32.mrb[14].mxu0  ;;  %v5711_v31 = vpop.f32.mrb[14].mxu1  ;;  %v5714_v35 = vmul.f32 %v2341_v22, %v5573_v61  ;;  %v2217_v6 = vadd.f32 1.0, %v4194_v26  ;;  %4207 = vtanh.f32 %v1968_v12  ;;  %v5718_v5 = vadd.f32 %v5650_v47, %v5564_v56 }
 0x2a5   : > { %v4196_v55 = vpop.eup %4195  ;;  %v5720_v54 = vpop.f32.mrb[15].mxu0  ;;  %v5727_v24 = vmul.f32 %v2343_v19, %v5576_v62  ;;  %4209 = vtanh.f32 %v1969_v60  ;;  %v1714_v48 = vmul.f32 0.044715, %v1586_v29  ;;  %v1588_v33 = vmul.f32 %v1460_v30, %v5686_v14 }
 0x2a6   : > { %7677 = vst [vmem:[#allocation38_spill] sm:$0xff] %v5718_v5  ;;  %v5722_v25 = vpop.f32.mrb[15].mxu1  ;;  %v5724_v43 = vpop.eup %4197  ;;  %v2219_v13 = vadd.f32 1.0, %v4196_v55  ;;  %v2345_v11 = vmul.f32 0.5, %v2217_v6  ;;  %4211 = vtanh.f32 %v1971_v32  ;;  %v1461_v47 = vmul.f32 %v5718_v5, %v5718_v5 }
 0x2a7   : > { %v5729_v61 = vpop.eup %4199  ;;  %v1842_v36 = vadd.f32 %v1714_v48, %v5682_v42  ;;  %v5737_v51 = vadd.f32 %v5652_v21, %v5566_v39  ;;  %v5741_v62 = vadd.f32 %v5659_v59, %v5568_v0  ;;  %v1716_v44 = vmul.f32 0.044715, %v1588_v33 }
 0x2a8   : > { %v2347_v37 = vmul.f32 0.5, %v2219_v13  ;;  %v5744_v49 = vmul.f32 %v2345_v11, %v5589_v52  ;;  %v1589_v45 = vmul.f32 %v1461_v47, %v5718_v5  ;;  %v5749_v58 = vadd.f32 %v5661_v23, %v5570_v38  ;;  %v5751_v4 = vpop.f32.mrb[16].mxu0  ;;  %v5753_v12 = vpop.f32.mrb[16].mxu1 }
 0x2a9   : > { %7678 = vst [vmem:[#allocation39_spill] sm:$0xff] %v5737_v51  ;;  %7679 = vst [vmem:[#allocation40_spill] sm:$0xff] %v5741_v62  ;;  %v1970_v22 = vmul.f32 0.7978846, %v1842_v36  ;;  %v1463_v59 = vmul.f32 %v5737_v51, %v5737_v51  ;;  %v1462_v52 = vmul.f32 %v5741_v62, %v5741_v62  ;;  %v5762_v60 = vpop.f32.mrb[17].mxu0  ;;  %v5764_v32 = vpop.f32.mrb[17].mxu1  ;;  %v1844_v26 = vadd.f32 %v1716_v44, %v5686_v14 }
 0x2aa   : > { %7680 = vst [vmem:[#allocation41_spill] sm:$0xff] %v5749_v58  ;;  %v5756_v21 = vmul.f32 %v2347_v37, %v5592_v16  ;;  %v1717_v19 = vmul.f32 0.044715, %v1589_v45  ;;  %v1464_v16 = vmul.f32 %v5749_v58, %v5749_v58  ;;  %v5771_v29 = vpop.f32.mrb[18].mxu0  ;;  %v5773_v30 = vpop.f32.mrb[18].mxu1  ;;  %v5791_v45 = vadd.f32 %v5668_v27, %v5564_v56 }
 0x2ab   : > { %v5775_v55 = vpop.eup %4201  ;;  %4213 = vtanh.f32 %v1970_v22  ;;  %v1591_v13 = vmul.f32 %v1463_v59, %v5737_v51  ;;  %v1590_v48 = vmul.f32 %v1462_v52, %v5741_v62  ;;  %v5781_v11 = vpop.f32.mrb[19].mxu0  ;;  %v1972_v37 = vmul.f32 0.7978846, %v1844_v26 }
 0x2ac   : > { %v5783_v33 = vpop.f32.mrb[19].mxu1  ;;  %v5785_v47 = vpop.eup %4203  ;;  %v1845_v36 = vadd.f32 %v1717_v19, %v5718_v5  ;;  %v1592_v44 = vmul.f32 %v1464_v16, %v5749_v58  ;;  %7682 = vst [vmem:[#allocation43_spill] sm:$0xff] %v5791_v45  ;;  %v5797_v52 = vadd.f32 %v5670_v28, %v5566_v39  ;;  %v5801_v23 = vadd.f32 %v5674_v63, %v5568_v0 }
 0x2ad   : > { %7681 = vst [vmem:[#allocation42_spill] sm:$0xff] %v5785_v47  ;;  %v5793_v22 = vpop.eup %4205  ;;  %v1719_v59 = vmul.f32 0.044715, %v1591_v13  ;;  %v1718_v6 = vmul.f32 0.044715, %v1590_v48  ;;  %4215 = vtanh.f32 %v1972_v37  ;;  %v1465_v27 = vmul.f32 %v5791_v45, %v5791_v45 }
 0x2ae   : > { %7683 = vst [vmem:[#allocation44_spill] sm:$0xff] %v5797_v52  ;;  %7684 = vst [vmem:[#allocation45_spill] sm:$0xff] %v5801_v23  ;;  %v5803_v26 = vpop.eup %4207  ;;  %v1973_v19 = vmul.f32 0.7978846, %v1845_v36  ;;  %v1720_v16 = vmul.f32 0.044715, %v1592_v44  ;;  %v1467_v28 = vmul.f32 %v5797_v52, %v5797_v52  ;;  %v1466_v63 = vmul.f32 %v5801_v23, %v5801_v23 }
 0x2af   : > { %v5807_v5 = vpop.eup %4209  ;;  %v1847_v13 = vadd.f32 %v1719_v59, %v5737_v51  ;;  %v1846_v48 = vadd.f32 %v1718_v6, %v5741_v62  ;;  %v1593_v36 = vmul.f32 %v1465_v27, %v5791_v45  ;;  %v5821_v44 = vadd.f32 %v5676_v34, %v5570_v38 }
 0x2b0   : > { %7685 = vst [vmem:[#allocation46_spill] sm:$0xff] %v5807_v5  ;;  %v5815_v41 = vpop.eup %4211  ;;  %4217 = vtanh.f32 %v1973_v19  ;;  %v1848_v37 = vadd.f32 %v1720_v16, %v5749_v58  ;;  %v5823_v59 = vpop.f32.mrb[20].mxu0  ;;  %v1595_v15 = vmul.f32 %v1467_v28, %v5797_v52  ;;  %v1594_v18 = vmul.f32 %v1466_v63, %v5801_v23 }
 0x2b1   : > { %7686 = vst [vmem:[#allocation47_spill] sm:$0xff] %v5815_v41  ;;  %7687 = vst [vmem:[#allocation48_spill] sm:$0xff] %v5821_v44  ;;  %v5825_v6 = vpop.f32.mrb[20].mxu1  ;;  %v1975_v51 = vmul.f32 0.7978846, %v1847_v13  ;;  %v5829_v3 = vpop.f32.mrb[21].mxu0  ;;  %v1468_v34 = vmul.f32 %v5821_v44, %v5821_v44  ;;  %v5837_v58 = vadd.f32 %v5694_v1, %v5564_v56  ;;  %v5845_v63 = vadd.f32 %v5696_v50, %v5566_v39 }
 0x2b2   : > { %v1974_v62 = vmul.f32 0.7978846, %v1846_v48  ;;  %v5831_v19 = vpop.f32.mrb[21].mxu1  ;;  %v1976_v16 = vmul.f32 0.7978846, %v1848_v37  ;;  %v5839_v41 = vpop.f32.mrb[22].mxu0 }
 0x2b3   : > { %v1721_v27 = vmul.f32 0.044715, %v1593_v36  ;;  %7688 = vst [vmem:[#allocation49_spill] sm:$0xff] %v5837_v58  ;;  %v5841_v13 = vpop.f32.mrb[22].mxu1  ;;  %4219 = vtanh.f32 %v1975_v51  ;;  %v1723_v48 = vmul.f32 0.044715, %v1595_v15  ;;  %v1596_v1 = vmul.f32 %v1468_v34, %v5821_v44 }
 0x2b4   : > { %v1722_v28 = vmul.f32 0.044715, %v1594_v18  ;;  %7689 = vst [vmem:[#allocation50_spill] sm:$0xff] %v5845_v63  ;;  %v5847_v37 = vpop.f32.mrb[23].mxu0  ;;  %v5849_v36 = vpop.f32.mrb[23].mxu1  ;;  %4221 = vtanh.f32 %v1974_v62  ;;  %v1469_v14 = vmul.f32 %v5837_v58, %v5837_v58  ;;  %v1471_v50 = vmul.f32 %v5845_v63, %v5845_v63 }
 0x2b5   : > { %v1849_v47 = vadd.f32 %v1721_v27, %v5791_v45  ;;  %v5855_v5 = vpop.eup %4213  ;;  %4223 = vtanh.f32 %v1976_v16  ;;  %v1851_v15 = vadd.f32 %v1723_v48, %v5797_v52  ;;  %v1724_v9 = vmul.f32 0.044715, %v1596_v1 }
 0x2b6   : > { %v1850_v18 = vadd.f32 %v1722_v28, %v5801_v23  ;;  %v1597_v62 = vmul.f32 %v1469_v14, %v5837_v58  ;;  %v5864_v27 = vadd.f32 %v5700_v53, %v5568_v0  ;;  %v1599_v42 = vmul.f32 %v1471_v50, %v5845_v63 }
 0x2b7   : > { %v1977_v51 = vmul.f32 0.7978846, %v1849_v47  ;;  %v1979_v34 = vmul.f32 0.7978846, %v1851_v15  ;;  %v5869_v16 = vadd.f32 %v5704_v20, %v5570_v38  ;;  %v5871_v48 = vpop.eup %4215  ;;  %v1852_v47 = vadd.f32 %v1724_v9, %v5821_v44 }
 0x2b8   : > { %7690 = vst [vmem:[#allocation51_spill] sm:$0xff] %v5864_v27  ;;  %v1978_v45 = vmul.f32 0.7978846, %v1850_v18  ;;  %v1725_v28 = vmul.f32 0.044715, %v1597_v62  ;;  %v1470_v14 = vmul.f32 %v5864_v27, %v5864_v27  ;;  %v5876_v1 = vpop.f32.mrb[24].mxu0  ;;  %v5884_v20 = vadd.f32 %v5709_v2, %v5564_v56 }
 0x2b9   : > { %7691 = vst [vmem:[#allocation52_spill] sm:$0xff] %v5869_v16  ;;  %4225 = vtanh.f32 %v1977_v51  ;;  %v5878_v53 = vpop.f32.mrb[24].mxu1  ;;  %v1727_v15 = vmul.f32 0.044715, %v1599_v42  ;;  %v1472_v18 = vmul.f32 %v5869_v16, %v5869_v16  ;;  %v5886_v50 = vpop.f32.mrb[25].mxu0 }
 0x2ba   : > { %4227 = vtanh.f32 %v1979_v34  ;;  %7692 = vst [vmem:[#allocation53_spill] sm:$0xff] %v5884_v20  ;;  %7693 = vst [vmem:[#allocation54_spill] sm:$0xff] %v5886_v50  ;;  %v5888_v9 = vpop.f32.mrb[25].mxu1  ;;  %v5890_v51 = vpop.eup %4217  ;;  %v1980_v62 = vmul.f32 0.7978846, %v1852_v47  ;;  %v1853_v52 = vadd.f32 %v1725_v28, %v5837_v58  ;;  %v1598_v34 = vmul.f32 %v1470_v14, %v5864_v27 }
 0x2bb   : > { %7694 = vst [vmem:[#allocation55_spill] sm:$0xff] %v5890_v51  ;;  %4229 = vtanh.f32 %v1978_v45  ;;  %v5894_v42 = vpop.f32.mrb[26].mxu0  ;;  %v5896_v44 = vpop.f32.mrb[26].mxu1  ;;  %v1855_v23 = vadd.f32 %v1727_v15, %v5845_v63  ;;  %v1600_v2 = vmul.f32 %v1472_v18, %v5869_v16  ;;  %v1473_v50 = vmul.f32 %v5884_v20, %v5884_v20 }
 0x2bc   : > { %7695 = vst [vmem:[#allocation56_spill] sm:$0xff] %v5894_v42  ;;  %7696 = vst [vmem:[#allocation57_spill] sm:$0xff] %v5896_v44  ;;  %v5904_v51 = vadd.f32 %v5711_v31, %v5566_v39  ;;  %v5906_v45 = vpop.f32.mrb[27].mxu0  ;;  %v5908_v47 = vpop.f32.mrb[27].mxu1  ;;  %4231 = vtanh.f32 %v1980_v62  ;;  %v1981_v28 = vmul.f32 0.7978846, %v1853_v52  ;;  %v5912_v58 = vadd.f32 %v5720_v54, %v5568_v0 }
 0x2bd   : > { %v1726_v14 = vmul.f32 0.044715, %v1598_v34  ;;  %v5914_v15 = vpop.eup %4219  ;;  %v1983_v18 = vmul.f32 0.7978846, %v1855_v23  ;;  %v1728_v63 = vmul.f32 0.044715, %v1600_v2  ;;  %v1601_v44 = vmul.f32 %v1473_v50, %v5884_v20 }
 0x2be   : > { %7697 = vst [vmem:[#allocation58_spill] sm:$0xff] %v5904_v51  ;;  %7698 = vst [vmem:[#allocation59_spill] sm:$0xff] %v5912_v58  ;;  %v1475_v31 = vmul.f32 %v5904_v51, %v5904_v51  ;;  %v5919_v42 = vpop.eup %4221  ;;  %4233 = vtanh.f32 %v1981_v28  ;;  %v1474_v52 = vmul.f32 %v5912_v58, %v5912_v58  ;;  %v5926_v54 = vadd.f32 %v5722_v25, %v5570_v38 }
 0x2bf   : > { %7699 = vst [vmem:[#allocation60_spill] sm:$0xff] %v5914_v15  ;;  %7700 = vst [vmem:[#allocation61_spill] sm:$0xff] %v5919_v42  ;;  %v1854_v62 = vadd.f32 %v1726_v14, %v5864_v27  ;;  %v5928_v34 = vpop.eup %4223  ;;  %4235 = vtanh.f32 %v1983_v18  ;;  %v1856_v23 = vadd.f32 %v1728_v63, %v5869_v16  ;;  %v1729_v50 = vmul.f32 0.044715, %v1601_v44 }
 0x2c0   : > { %7701 = vst [vmem:[#allocation62_spill] sm:$0xff] %v5926_v54  ;;  %v1603_v2 = vmul.f32 %v1475_v31, %v5904_v51  ;;  %v1602_v28 = vmul.f32 %v1474_v52, %v5912_v58  ;;  %v1476_v14 = vmul.f32 %v5926_v54, %v5926_v54  ;;  %v5937_v27 = vadd.f32 %v5751_v4, %v5564_v56  ;;  %v5939_v25 = vpop.f32.mrb[28].mxu0  ;;  %v5941_v42 = vpop.f32.mrb[28].mxu1 }
 0x2c1   : > { %v1982_v15 = vmul.f32 0.7978846, %v1854_v62  ;;  %7703 = vst [vmem:[#allocation64_spill] sm:$0xff] %v5939_v25  ;;  %7704 = vst [vmem:[#allocation65_spill] sm:$0xff] %v5941_v42  ;;  %v1984_v18 = vmul.f32 0.7978846, %v1856_v23  ;;  %v1857_v63 = vadd.f32 %v1729_v50, %v5884_v20  ;;  %v5946_v31 = vadd.f32 %v5753_v12, %v5566_v39 }
 0x2c2   : > { %7702 = vst [vmem:[#allocation63_spill] sm:$0xff] %v5937_v27  ;;  %v1731_v44 = vmul.f32 0.044715, %v1603_v2  ;;  %v5948_v62 = vpop.f32.mrb[29].mxu0  ;;  %v5950_v52 = vpop.f32.mrb[29].mxu1  ;;  %v1604_v25 = vmul.f32 %v1476_v14, %v5926_v54  ;;  %v1477_v23 = vmul.f32 %v5937_v27, %v5937_v27 }
 0x2c3   : > { %7705 = vst [vmem:[#allocation66_spill] sm:$0xff] %v5946_v31  ;;  %7706 = vst [vmem:[#allocation67_spill] sm:$0xff] %v5948_v62  ;;  %v5952_v16 = vpop.eup %4225  ;;  %4237 = vtanh.f32 %v1982_v15  ;;  %v1730_v4 = vmul.f32 0.044715, %v1602_v28  ;;  %v5957_v42 = vpop.f32.mrb[30].mxu0 }
 0x2c4   : > { %7707 = vst [vmem:[#allocation68_spill] sm:$0xff] %v5950_v52  ;;  %7708 = vst [vmem:[#allocation69_spill] sm:$0xff] %v5957_v42  ;;  %v5959_v50 = vpop.f32.mrb[30].mxu1  ;;  %v5961_v2 = vpop.eup %4227  ;;  %4239 = vtanh.f32 %v1984_v18  ;;  %v1985_v12 = vmul.f32 0.7978846, %v1857_v63  ;;  %v1859_v20 = vadd.f32 %v1731_v44, %v5904_v51  ;;  %v1479_v52 = vmul.f32 %v5946_v31, %v5946_v31 }
 0x2c5   : > { %7709 = vst [vmem:[#allocation70_spill] sm:$0xff] %v5959_v50  ;;  %v5966_v15 = vpop.f32.mrb[31].mxu0  ;;  %v5968_v28 = vpop.f32.mrb[31].mxu1  ;;  %v1858_v62 = vadd.f32 %v1730_v4, %v5912_v58  ;;  %v1732_v42 = vmul.f32 0.044715, %v1604_v25  ;;  %v1605_v50 = vmul.f32 %v1477_v23, %v5937_v27  ;;  %v5976_v18 = vadd.f32 %v5762_v60, %v5568_v0 }
 0x2c6   : > { %7710 = vst [vmem:[#allocation71_spill] sm:$0xff] %v5966_v15  ;;  %7711 = vst [vmem:[#allocation72_spill] sm:$0xff] %v5968_v28  ;;  %v5970_v14 = vpop.eup %4229  ;;  %4241 = vtanh.f32 %v1985_v12  ;;  %v1987_v63 = vmul.f32 0.7978846, %v1859_v20  ;;  %v1607_v44 = vmul.f32 %v1479_v52, %v5946_v31  ;;  %v5981_v51 = vadd.f32 %v5764_v32, %v5570_v38 }
 0x2c7   : > { %7712 = vst [vmem:[#allocation73_spill] sm:$0xff] %v5976_v18  ;;  %v5983_v28 = vpop.eup %4231  ;;  %v1986_v15 = vmul.f32 0.7978846, %v1858_v62  ;;  %v1860_v4 = vadd.f32 %v1732_v42, %v5926_v54  ;;  %v1733_v25 = vmul.f32 0.044715, %v1605_v50  ;;  %v1478_v23 = vmul.f32 %v5976_v18, %v5976_v18 }
 0x2c8   : > { %7713 = vst [vmem:[#allocation74_spill] sm:$0xff] %v5981_v51  ;;  %4243 = vtanh.f32 %v1987_v63  ;;  %v1735_v60 = vmul.f32 0.044715, %v1607_v44  ;;  %v1480_v20 = vmul.f32 %v5981_v51, %v5981_v51  ;;  %v5992_v52 = vadd.f32 %v5771_v29, %v5564_v56  ;;  %v5994_v32 = vpop.eup %4233  ;;  %v5998_v50 = vpop.f32.mrb[32].mxu0 }
 0x2c9   : > { %7715 = vst [vmem:[#allocation76_spill] sm:$0xff] %v5994_v32  ;;  %4245 = vtanh.f32 %v1986_v15  ;;  %v1988_v12 = vmul.f32 0.7978846, %v1860_v4  ;;  %v1861_v62 = vadd.f32 %v1733_v25, %v5937_v27  ;;  %v1606_v42 = vmul.f32 %v1478_v23, %v5976_v18  ;;  %7716 = vst [vmem:[#allocation77_spill] sm:$0xff] %v5998_v50  ;;  %v6000_v54 = vpop.f32.mrb[32].mxu1  ;;  %v6002_v63 = vpop.eup %4235 }
 0x2ca   : > { %7714 = vst [vmem:[#allocation75_spill] sm:$0xff] %v5992_v52  ;;  %7717 = vst [vmem:[#allocation78_spill] sm:$0xff] %v6000_v54  ;;  %v1863_v44 = vadd.f32 %v1735_v60, %v5946_v31  ;;  %v1608_v58 = vmul.f32 %v1480_v20, %v5981_v51  ;;  %v1481_v29 = vmul.f32 %v5992_v52, %v5992_v52  ;;  %v6012_v4 = vpop.f32.mrb[33].mxu0  ;;  %v6014_v25 = vpop.f32.mrb[33].mxu1 }
 0x2cb   : > { %7718 = vst [vmem:[#allocation79_spill] sm:$0xff] %v6002_v63  ;;  %v6010_v15 = vadd.f32 %v5773_v30, %v5566_v39  ;;  %7720 = vst [vmem:[#allocation81_spill] sm:$0xff] %v6012_v4  ;;  %4247 = vtanh.f32 %v1988_v12  ;;  %v1989_v23 = vmul.f32 0.7978846, %v1861_v62  ;;  %v1734_v27 = vmul.f32 0.044715, %v1606_v42 }
 0x2cc   : > { %7721 = vst [vmem:[#allocation82_spill] sm:$0xff] %v6014_v25  ;;  %v6018_v54 = vadd.f32 %v5781_v11, %v5568_v0  ;;  %v6020_v60 = vpop.f32.mrb[34].mxu0  ;;  %v6022_v20 = vpop.f32.mrb[34].mxu1  ;;  %v1991_v31 = vmul.f32 0.7978846, %v1863_v44  ;;  %v1609_v30 = vmul.f32 %v1481_v29, %v5992_v52 }
 0x2cd   : > { %7719 = vst [vmem:[#allocation80_spill] sm:$0xff] %v6010_v15  ;;  %7722 = vst [vmem:[#allocation83_spill] sm:$0xff] %v6020_v60  ;;  %v1736_v50 = vmul.f32 0.044715, %v1608_v58  ;;  %v1483_v4 = vmul.f32 %v6010_v15, %v6010_v15  ;;  %v6027_v63 = vpop.f32.mrb[35].mxu0  ;;  %v6029_v12 = vpop.f32.mrb[35].mxu1  ;;  %4249 = vtanh.f32 %v1989_v23  ;;  %v1862_v11 = vadd.f32 %v1734_v27, %v5976_v18 }
 0x2ce   : > { %7723 = vst [vmem:[#allocation84_spill] sm:$0xff] %v6022_v20  ;;  %7724 = vst [vmem:[#allocation85_spill] sm:$0xff] %v6027_v63  ;;  %v6031_v62 = vpop.eup %4237  ;;  %v1482_v42 = vmul.f32 %v6018_v54, %v6018_v54  ;;  %v6038_v58 = vadd.f32 %v5783_v33, %v5570_v38  ;;  %4251 = vtanh.f32 %v1991_v31  ;;  %v1737_v63 = vmul.f32 0.044715, %v1609_v30 }
 0x2cf   : > { %7725 = vst [vmem:[#allocation86_spill] sm:$0xff] %v6029_v12  ;;  %v6040_v44 = vpop.eup %4239  ;;  %v1864_v29 = vadd.f32 %v1736_v50, %v5981_v51  ;;  %v1611_v12 = vmul.f32 %v1483_v4, %v6010_v15  ;;  %v1990_v20 = vmul.f32 0.7978846, %v1862_v11  ;;  %v2214_v18 = vadd.f32 1.0, %v5698_v57 }
 0x2d0   : > { %v1610_v23 = vmul.f32 %v1482_v42, %v6018_v54  ;;  %v1484_v27 = vmul.f32 %v6038_v58, %v6038_v58  ;;  %v6048_v60 = vpop.eup %4241  ;;  %v1865_v25 = vadd.f32 %v1737_v63, %v5992_v52  ;;  %v2218_v31 = vadd.f32 1.0, %v5724_v43  ;;  %v6053_v11 = vpop.f32.mrb[36].mxu0 }
 0x2d1   : > { %7726 = vst [vmem:[#allocation87_spill] sm:$0xff] %v6048_v60  ;;  %v1992_v33 = vmul.f32 0.7978846, %v1864_v29  ;;  %v1739_v32 = vmul.f32 0.044715, %v1611_v12  ;;  %4253 = vtanh.f32 %v1990_v20  ;;  %v2342_v30 = vmul.f32 0.5, %v2214_v18 }
 0x2d2   : > { %v1738_v50 = vmul.f32 0.044715, %v1610_v23  ;;  %v1612_v4 = vmul.f32 %v1484_v27, %v6038_v58  ;;  %v6055_v42 = vpop.f32.mrb[36].mxu1  ;;  %v6057_v51 = vpop.eup %4243  ;;  %v1993_v57 = vmul.f32 0.7978846, %v1865_v25  ;;  %v2346_v60 = vmul.f32 0.5, %v2218_v31 }
 0x2d3   : > { %4255 = vtanh.f32 %v1992_v33  ;;  %v1867_v29 = vadd.f32 %v1739_v32, %v6010_v15  ;;  %v6060_v63 = vpop.f32.mrb[37].mxu0  ;;  %v6062_v12 = vpop.f32.mrb[37].mxu1  ;;  %v2470_v23 = vmul.f32 %v2342_v30, %v5579_v7  ;;  %v2216_v27 = vadd.f32 1.0, %v5702_v17 }
 0x2d4   : > { %7727 = vst [vmem:[#allocation88_spill] sm:$0xff] %v6062_v12  ;;  %v6064_v43 = vpop.eup %4245  ;;  %v1866_v20 = vadd.f32 %v1738_v50, %v6018_v54  ;;  %v1740_v18 = vmul.f32 0.044715, %v1612_v4  ;;  %v6069_v52 = vpop.f32.mrb[38].mxu0  ;;  %4257 = vtanh.f32 %v1993_v57  ;;  %v2474_v25 = vmul.f32 %v2346_v60, %v5599_v40 }
 0x2d5   : > { %v6071_v33 = vpop.f32.mrb[38].mxu1  ;;  %v1995_v32 = vmul.f32 0.7978846, %v1867_v29  ;;  %v2220_v31 = vadd.f32 1.0, %v5729_v61  ;;  %v6075_v12 = vpop.f32.mrb[39].mxu0  ;;  %v2344_v17 = vmul.f32 0.5, %v2216_v27  ;;  %v6084_v30 = vadd.f32 %v5823_v59, %v5564_v56 }
 0x2d6   : > { %7728 = vst [vmem:[#allocation89_spill] sm:$0xff] %v6075_v12  ;;  %v6077_v15 = vpop.f32.mrb[39].mxu1  ;;  %v6079_v50 = vpop.eup %4247  ;;  %v1994_v4 = vmul.f32 0.7978846, %v1866_v20  ;;  %v1868_v7 = vadd.f32 %v1740_v18, %v6038_v58  ;;  %v2598_v57 = vpack.c.bf16 %v2474_v25, %v2470_v23  ;;  %v6088_v40 = vadd.f32 %v5825_v6, %v5566_v39 }
 0x2d7   : > { %7729 = vst [vmem:[#allocation90_spill] sm:$0xff] %v6077_v15  ;;  %7730 = vst [vmem:[#allocation91_spill] sm:$0xff] %v6084_v30  ;;  %4259 = vtanh.f32 %v1995_v32  ;;  %v2348_v29 = vmul.f32 0.5, %v2220_v31  ;;  %v6090_v61 = vpop.eup %4249  ;;  %v2472_v20 = vmul.f32 %v2344_v17, %v5582_v8  ;;  %v1485_v18 = vmul.f32 %v6084_v30, %v6084_v30 }
 0x2d8   : > { %7731 = vst [vmem:[#allocation92_spill] sm:$0xff] %v6088_v40  ;;  %4261 = vtanh.f32 %v1994_v4  ;;  %v1996_v60 = vmul.f32 0.7978846, %v1868_v7  ;;  %v6095_v27 = vpop.eup %4251  ;;  %2956 = vmatprep.mubr.bf16.mxu0 %v2598_v57  ;;  %v1487_v23 = vmul.f32 %v6088_v40, %v6088_v40  ;;  %v6102_v6 = vadd.f32 %v5829_v3, %v5568_v0  ;;  %v6120_v3 = vpop.f32.mrb[40].mxu0 }
 0x2d9   : > { %v2476_v59 = vmul.f32 %v2348_v29, %v5602_v46  ;;  %v6106_v32 = vadd.f32 %v5831_v19, %v5570_v38  ;;  %v7733_v8 = vpack.c.bf16 %v5744_v49, %v5714_v35  ;;  %v1613_v25 = vmul.f32 %v1485_v18, %v6084_v30  ;;  %7736 = vst [vmem:[#allocation96_spill] sm:$0xff] %v6120_v3  ;;  %v6122_v4 = vpop.f32.mrb[40].mxu1  ;;  %v6129_v17 = vpop.f32.mrb[41].mxu0 }
 0x2da   : > { %4263 = vtanh.f32 %v1996_v60  ;;  %v6114_v46 = vadd.f32 %v5839_v41, %v5564_v56  ;;  %v6118_v31 = vadd.f32 %v5841_v13, %v5566_v39  ;;  %7737 = vst [vmem:[#allocation97_spill] sm:$0xff] %v6122_v4  ;;  %v1615_v7 = vmul.f32 %v1487_v23, %v6088_v40  ;;  %7738 = vst [vmem:[#allocation98_spill] sm:$0xff] %v6129_v17  ;;  %v6131_v41 = vpop.f32.mrb[41].mxu1  ;;  %v6143_v18 = vpop.f32.mrb[42].mxu0 }
 0x2db   : > { %7732 = vst [vmem:[#allocation93_spill] sm:$0xff] %v6106_v32  ;;  %2957 = vmatmul.mubr.bf16.vlgmr.msra.gmra.mrb[64].mxu0 %v7733_v8  ;;  %v2600_v19 = vpack.c.bf16 %v2476_v59, %v2472_v20  ;;  %v1486_v35 = vmul.f32 %v6102_v6, %v6102_v6  ;;  %v1488_v49 = vmul.f32 %v6106_v32, %v6106_v32  ;;  %7739 = vst [vmem:[#allocation99_spill] sm:$0xff] %v6131_v41  ;;  %v6133_v57 = vpop.eup %4253  ;;  %v6145_v59 = vpop.f32.mrb[42].mxu1 }
 0x2dc   : > { %7734 = vst [vmem:[#allocation94_spill] sm:$0xff] %v6114_v46  ;;  %7735 = vst [vmem:[#allocation95_spill] sm:$0xff] %v6118_v31  ;;  %v1741_v13 = vmul.f32 0.044715, %v1613_v25  ;;  %v1489_v29 = vmul.f32 %v6114_v46, %v6114_v46  ;;  %v1491_v60 = vmul.f32 %v6118_v31, %v6118_v31  ;;  %v6141_v20 = vadd.f32 %v5847_v37, %v5568_v0  ;;  %v6155_v4 = vpop.f32.mrb[43].mxu0  ;;  %v6157_v37 = vpop.f32.mrb[43].mxu1 }
 0x2dd   : > { %7740 = vst [vmem:[#allocation100_spill] sm:$0xff] %v6143_v18  ;;  %7741 = vst [vmem:[#allocation101_spill] sm:$0xff] %v6145_v59  ;;  %v6147_v23 = vpop.eup %4255  ;;  %3117 = vmatprep.mubr.bf16.mxu1 %v2600_v19  ;;  %v1743_v8 = vmul.f32 0.044715, %v1615_v7  ;;  %v1614_v25 = vmul.f32 %v1486_v35, %v6102_v6  ;;  %v1616_v41 = vmul.f32 %v1488_v49, %v6106_v32 }
 0x2de   : > { %v6153_v17 = vadd.f32 %v5849_v36, %v5570_v38  ;;  %7743 = vst [vmem:[#allocation103_spill] sm:$0xff] %v6155_v4  ;;  %7744 = vst [vmem:[#allocation104_spill] sm:$0xff] %v6157_v37  ;;  %v7745_v18 = vpack.c.bf16 %v5756_v21, %v5727_v24  ;;  %v1869_v59 = vadd.f32 %v1741_v13, %v6084_v30  ;;  %v6167_v49 = vpop.eup %4257 }
 0x2df   : > { %v1617_v19 = vmul.f32 %v1489_v29, %v6114_v46  ;;  %v1619_v7 = vmul.f32 %v1491_v60, %v6118_v31  ;;  %v1490_v35 = vmul.f32 %v6141_v20, %v6141_v20  ;;  %v1871_v36 = vadd.f32 %v1743_v8, %v6088_v40 }
 0x2e0   : > { %7742 = vst [vmem:[#allocation102_spill] sm:$0xff] %v6153_v17  ;;  %3118 = vmatmul.mubr.bf16.vlgmr.msra.gmra.mrb[64].mxu1 %v7745_v18  ;;  %v1742_v4 = vmul.f32 0.044715, %v1614_v25  ;;  %v1744_v3 = vmul.f32 0.044715, %v1616_v41  ;;  %v1492_v37 = vmul.f32 %v6153_v17, %v6153_v17 }
 0x2e1   : > { %v1997_v24 = vmul.f32 0.7978846, %v1869_v59  ;;  %v1745_v21 = vmul.f32 0.044715, %v1617_v19  ;;  %v1747_v18 = vmul.f32 0.044715, %v1619_v7  ;;  %v1618_v13 = vmul.f32 %v1490_v35, %v6141_v20  ;;  %v6173_v29 = vpop.eup %4259 }
 0x2e2   : > { %v1999_v60 = vmul.f32 0.7978846, %v1871_v36  ;;  %v1870_v30 = vadd.f32 %v1742_v4, %v6102_v6  ;;  %v1872_v15 = vadd.f32 %v1744_v3, %v6106_v32  ;;  %v1620_v12 = vmul.f32 %v1492_v37, %v6153_v17  ;;  %v6178_v8 = vpop.eup %4261  ;;  %v6182_v19 = vpop.f32.mrb[44].mxu0 }
 0x2e3   : > { %4265 = vtanh.f32 %v1997_v24  ;;  %v1873_v41 = vadd.f32 %v1745_v21, %v6114_v46  ;;  %v1875_v59 = vadd.f32 %v1747_v18, %v6118_v31  ;;  %v1746_v25 = vmul.f32 0.044715, %v1618_v13  ;;  %7746 = vst [vmem:[#allocation105_spill] sm:$0xff] %v6182_v19  ;;  %v6184_v7 = vpop.f32.mrb[44].mxu1  ;;  %v6190_v21 = vpop.f32.mrb[45].mxu0  ;;  %v7759_v19 = vld [vmem:[#allocation47_spill] sm:$0xff] }
 0x2e4   : > { %7747 = vst [vmem:[#allocation106_spill] sm:$0xff] %v6184_v7  ;;  %4267 = vtanh.f32 %v1999_v60  ;;  %v1998_v35 = vmul.f32 0.7978846, %v1870_v30  ;;  %v2000_v36 = vmul.f32 0.7978846, %v1872_v15  ;;  %v6186_v40 = vpop.eup %4263  ;;  %v2222_v24 = vadd.f32 1.0, %v5793_v22 }
 0x2e5   : > { %v1748_v4 = vmul.f32 0.044715, %v1620_v12  ;;  %v2001_v3 = vmul.f32 0.7978846, %v1873_v41  ;;  %v2003_v37 = vmul.f32 0.7978846, %v1875_v59  ;;  %v1874_v32 = vadd.f32 %v1746_v25, %v6141_v20 }
 0x2e6   : > { %7748 = vst [vmem:[#allocation107_spill] sm:$0xff] %v6190_v21  ;;  %4269 = vtanh.f32 %v1998_v35  ;;  %v2226_v13 = vadd.f32 1.0, %v5855_v5  ;;  %v2224_v60 = vadd.f32 1.0, %v5803_v26  ;;  %v6195_v30 = vpop.f32.mrb[45].mxu1  ;;  %v6197_v15 = vpop.f32.mrb[46].mxu0  ;;  %v2350_v41 = vmul.f32 0.5, %v2222_v24 }
 0x2e7   : > { %v1876_v18 = vadd.f32 %v1748_v4, %v6153_v17  ;;  %7749 = vst [vmem:[#allocation108_spill] sm:$0xff] %v6195_v30  ;;  %7750 = vst [vmem:[#allocation109_spill] sm:$0xff] %v6197_v15  ;;  %4271 = vtanh.f32 %v2000_v36  ;;  %v2002_v12 = vmul.f32 0.7978846, %v1874_v32  ;;  %v2228_v59 = vadd.f32 1.0, %v5871_v48  ;;  %v6200_v25 = vpop.f32.mrb[46].mxu1 }
 0x2e8   : > { %7751 = vst [vmem:[#allocation110_spill] sm:$0xff] %v6200_v25  ;;  %v6202_v22 = vpop.f32.mrb[47].mxu0  ;;  %4273 = vtanh.f32 %v2001_v3  ;;  %v2354_v4 = vmul.f32 0.5, %v2226_v13  ;;  %v2352_v21 = vmul.f32 0.5, %v2224_v60  ;;  %v6204_v5 = vpop.f32.mrb[47].mxu1  ;;  %v2478_v26 = vmul.f32 %v2350_v41, %v5637_v10  ;;  %v7754_v32 = vld [vmem:[#allocation36_spill] sm:$0xff] }
 0x2e9   : > { %7752 = vst [vmem:[#allocation111_spill] sm:$0xff] %v6202_v22  ;;  %v2004_v35 = vmul.f32 0.7978846, %v1876_v18  ;;  %7753 = vst [vmem:[#allocation112_spill] sm:$0xff] %v6204_v5  ;;  %4275 = vtanh.f32 %v2003_v37  ;;  %v2356_v30 = vmul.f32 0.5, %v2228_v59  ;;  %v2221_v36 = vadd.f32 1.0, %v5775_v55 }
 0x2ea   : > { %4277 = vtanh.f32 %v2002_v12  ;;  %v2482_v24 = vmul.f32 %v2354_v4, %v7754_v32  ;;  %v7755_v48 = vld [vmem:[#allocation33_spill] sm:$0xff]  ;;  %v7756_v25 = vld [vmem:[#allocation46_spill] sm:$0xff]  ;;  %v2227_v10 = vadd.f32 1.0, %v7759_v19  ;;  %v6216_v55 = vadd.f32 %v5876_v1, %v5564_v56 }
 0x2eb   : > { %v2480_v15 = vmul.f32 %v2352_v21, %v7755_v48  ;;  %v2225_v7 = vadd.f32 1.0, %v7756_v25  ;;  %4279 = vtanh.f32 %v2004_v35  ;;  %v7757_v3 = vld [vmem:[#allocation37_spill] sm:$0xff]  ;;  %v2349_v13 = vmul.f32 0.5, %v2221_v36  ;;  %v7758_v60 = vld [vmem:[#allocation42_spill] sm:$0xff]  ;;  %v7761_v21 = vld [vmem:[#allocation31_spill] sm:$0xff] }
 0x2ec   : > { %v2484_v18 = vmul.f32 %v2356_v30, %v7757_v3  ;;  %v2223_v22 = vadd.f32 1.0, %v7758_v60  ;;  %v2602_v5 = vpack.c.bf16 %v2482_v24, %v2478_v26  ;;  %7760 = vst [vmem:[#allocation36_spill] sm:$0xff] %v6216_v55  ;;  %v6223_v30 = vadd.f32 %v5878_v53, %v5566_v39  ;;  %v7764_v26 = vld [vmem:[#allocation54_spill] sm:$0xff] }
 0x2ed   : > { %v2353_v37 = vmul.f32 0.5, %v2225_v7  ;;  %v6218_v12 = vpop.eup %4265  ;;  %v2477_v59 = vmul.f32 %v2349_v13, %v7761_v21  ;;  %v7763_v7 = vld [vmem:[#allocation34_spill] sm:$0xff]  ;;  %v2355_v19 = vmul.f32 0.5, %v2227_v10  ;;  %v1493_v1 = vmul.f32 %v6216_v55, %v6216_v55 }
 0x2ee   : > { %v2604_v41 = vpack.c.bf16 %v2484_v18, %v2480_v15  ;;  %v2351_v25 = vmul.f32 0.5, %v2223_v22  ;;  %7762 = vst [vmem:[#allocation33_spill] sm:$0xff] %v6223_v30  ;;  %v6225_v35 = vpop.eup %4267  ;;  %2964 = vmatprep.mubr.bf16.mxu0 %v2602_v5  ;;  %v6232_v36 = vadd.f32 %v7764_v26, %v5568_v0  ;;  %v7766_v15 = vld [vmem:[#allocation32_spill] sm:$0xff]  ;;  %v1495_v53 = vmul.f32 %v6223_v30, %v6223_v30  ;;  %v7770_v18 = vld [vmem:[#allocation35_spill] sm:$0xff] }
 0x2ef   : > { %v2481_v4 = vmul.f32 %v2353_v37, %v7763_v7  ;;  %v6239_v32 = vadd.f32 %v5888_v9, %v5570_v38  ;;  %v7768_v5 = vld [vmem:[#allocation56_spill] sm:$0xff]  ;;  %v2483_v13 = vmul.f32 %v2355_v19, %v7770_v18  ;;  %v1621_v60 = vmul.f32 %v1493_v1, %v6216_v55  ;;  %v6262_v7 = vpop.f32.mrb[48].mxu0 }
 0x2f0   : > { %7765 = vst [vmem:[#allocation46_spill] sm:$0xff] %v6232_v36  ;;  %3125 = vmatprep.mubr.bf16.mxu1 %v2604_v41  ;;  %v2479_v22 = vmul.f32 %v2351_v25, %v7766_v15  ;;  %v6243_v24 = vadd.f32 %v7768_v5, %v5564_v56  ;;  %v6245_v48 = vpop.eup %4269  ;;  %v1494_v37 = vmul.f32 %v6232_v36, %v6232_v36  ;;  %v7771_v25 = vld [vmem:[#allocation57_spill] sm:$0xff]  ;;  %7773 = vst [vmem:[#allocation31_spill] sm:$0xff] %v6262_v7 }
 0x2f1   : > { %7767 = vst [vmem:[#allocation37_spill] sm:$0xff] %v6239_v32  ;;  %v2601_v3 = vpack.c.bf16 %v2481_v4, %v2477_v59  ;;  %v6251_v10 = vpop.eup %4271  ;;  %v1623_v41 = vmul.f32 %v1495_v53, %v6223_v30  ;;  %v1496_v9 = vmul.f32 %v6239_v32, %v6239_v32  ;;  %v6260_v59 = vadd.f32 %v7771_v25, %v5566_v39 }
 0x2f2   : > { %7769 = vst [vmem:[#allocation42_spill] sm:$0xff] %v6243_v24  ;;  %v1497_v21 = vmul.f32 %v6243_v24, %v6243_v24  ;;  %v6264_v4 = vpop.eup %4273  ;;  %v2603_v19 = vpack.c.bf16 %v2483_v13, %v2479_v22  ;;  %v1749_v1 = vmul.f32 0.044715, %v1621_v60  ;;  %v1622_v26 = vmul.f32 %v1494_v37, %v6232_v36 }
 0x2f3   : > { %7772 = vst [vmem:[#allocation47_spill] sm:$0xff] %v6260_v59  ;;  %2965 = vmatmul.mubr.bf16.gmra.mrb[68].mxu0 %v2601_v3  ;;  %v6269_v15 = vadd.f32 %v5906_v45, %v5568_v0  ;;  %v6271_v53 = vpop.eup %4275  ;;  %v1751_v5 = vmul.f32 0.044715, %v1623_v41  ;;  %v1624_v18 = vmul.f32 %v1496_v9, %v6239_v32  ;;  %v1499_v7 = vmul.f32 %v6260_v59, %v6260_v59 }
 0x2f4   : > { %7775 = vst [vmem:[#allocation54_spill] sm:$0xff] %v6271_v53  ;;  %v1625_v25 = vmul.f32 %v1497_v21, %v6243_v24  ;;  %v6277_v31 = vpop.eup %4277  ;;  %3126 = vmatmul.mubr.bf16.gmra.mrb[68].mxu1 %v2603_v19  ;;  %v1877_v22 = vadd.f32 %v1749_v1, %v6216_v55  ;;  %v1750_v3 = vmul.f32 0.044715, %v1622_v26  ;;  %v6284_v13 = vadd.f32 %v5908_v47, %v5570_v38  ;;  %v6294_v55 = vpop.f32.mrb[48].mxu1 }
 0x2f5   : > { %7774 = vst [vmem:[#allocation34_spill] sm:$0xff] %v6269_v15  ;;  %v1498_v45 = vmul.f32 %v6269_v15, %v6269_v15  ;;  %v6286_v60 = vpop.eup %4279  ;;  %v1879_v37 = vadd.f32 %v1751_v5, %v6223_v30  ;;  %v1752_v41 = vmul.f32 0.044715, %v1624_v18  ;;  %v1627_v21 = vmul.f32 %v1499_v7, %v6260_v59  ;;  %7777 = vst [vmem:[#allocation56_spill] sm:$0xff] %v6294_v55  ;;  %v6298_v18 = vpop.f32.mrb[49].mxu0 }
 0x2f6   : > { %7776 = vst [vmem:[#allocation32_spill] sm:$0xff] %v6284_v13  ;;  %v1753_v9 = vmul.f32 0.044715, %v1625_v25  ;;  %v2005_v46 = vmul.f32 0.7978846, %v1877_v22  ;;  %v1878_v19 = vadd.f32 %v1750_v3, %v6232_v36  ;;  %v1500_v26 = vmul.f32 %v6284_v13, %v6284_v13  ;;  %7778 = vst [vmem:[#allocation35_spill] sm:$0xff] %v6298_v18 }
 0x2f7   : > { %v1626_v1 = vmul.f32 %v1498_v45, %v6269_v15  ;;  %v2007_v47 = vmul.f32 0.7978846, %v1879_v37  ;;  %v1880_v17 = vadd.f32 %v1752_v41, %v6239_v32  ;;  %v1755_v5 = vmul.f32 0.044715, %v1627_v21  ;;  %v6301_v3 = vpop.f32.mrb[49].mxu1  ;;  %v6304_v37 = vpop.f32.mrb[50].mxu0 }
 0x2f8   : > { %v1881_v53 = vadd.f32 %v1753_v9, %v6243_v24  ;;  %4281 = vtanh.f32 %v2005_v46  ;;  %v2006_v7 = vmul.f32 0.7978846, %v1878_v19  ;;  %v1628_v22 = vmul.f32 %v1500_v26, %v6284_v13  ;;  %7779 = vst [vmem:[#allocation57_spill] sm:$0xff] %v6301_v3  ;;  %7780 = vst [vmem:[#allocation113_spill] sm:$0xff] %v6304_v37  ;;  %v7781_v21 = vld [vmem:[#allocation61_spill] sm:$0xff]  ;;  %v6308_v46 = vpop.f32.mrb[50].mxu1 }
 0x2f9   : > { %v1754_v25 = vmul.f32 0.044715, %v1626_v1  ;;  %4283 = vtanh.f32 %v2007_v47  ;;  %v2008_v45 = vmul.f32 0.7978846, %v1880_v17  ;;  %v1883_v55 = vadd.f32 %v1755_v5, %v6260_v59  ;;  %7782 = vst [vmem:[#allocation61_spill] sm:$0xff] %v6308_v46  ;;  %v6312_v17 = vpop.f32.mrb[51].mxu0 }
 0x2fa   : > { %v2009_v30 = vmul.f32 0.7978846, %v1881_v53  ;;  %4285 = vtanh.f32 %v2006_v7  ;;  %v1756_v9 = vmul.f32 0.044715, %v1628_v22  ;;  %v2230_v18 = vadd.f32 1.0, %v7781_v21  ;;  %7783 = vst [vmem:[#allocation114_spill] sm:$0xff] %v6312_v17 }
 0x2fb   : > { %v1882_v41 = vadd.f32 %v1754_v25, %v6269_v15  ;;  %4287 = vtanh.f32 %v2008_v45  ;;  %v2011_v19 = vmul.f32 0.7978846, %v1883_v55  ;;  %v2234_v1 = vadd.f32 1.0, %v5970_v14  ;;  %v6315_v7 = vpop.f32.mrb[51].mxu1  ;;  %v7785_v45 = vld [vmem:[#allocation40_spill] sm:$0xff]  ;;  %v7786_v46 = vld [vmem:[#allocation55_spill] sm:$0xff] }
 0x2fc   : > { %v2232_v26 = vadd.f32 1.0, %v5928_v34  ;;  %4289 = vtanh.f32 %v2009_v30  ;;  %v1884_v47 = vadd.f32 %v1756_v9, %v6284_v13  ;;  %v2358_v5 = vmul.f32 0.5, %v2230_v18  ;;  %7784 = vst [vmem:[#allocation115_spill] sm:$0xff] %v6315_v7  ;;  %v7787_v37 = vld [vmem:[#allocation45_spill] sm:$0xff] }
 0x2fd   : > { %v2010_v53 = vmul.f32 0.7978846, %v1882_v41  ;;  %4291 = vtanh.f32 %v2011_v19  ;;  %v2362_v25 = vmul.f32 0.5, %v2234_v1  ;;  %v2236_v22 = vadd.f32 1.0, %v5983_v28  ;;  %v7788_v41 = vld [vmem:[#allocation41_spill] sm:$0xff]  ;;  %v7789_v19 = vld [vmem:[#allocation60_spill] sm:$0xff] }
 0x2fe   : > { %v2360_v21 = vmul.f32 0.5, %v2232_v26  ;;  %v2012_v55 = vmul.f32 0.7978846, %v1884_v47  ;;  %v2486_v14 = vmul.f32 %v2358_v5, %v7785_v45  ;;  %v2229_v34 = vadd.f32 1.0, %v7786_v46  ;;  %v7791_v5 = vld [vmem:[#allocation64_spill] sm:$0xff] }
 0x2ff   : > { %4293 = vtanh.f32 %v2010_v53  ;;  %v2490_v17 = vmul.f32 %v2362_v25, %v7787_v37  ;;  %v2364_v30 = vmul.f32 0.5, %v2236_v22  ;;  %v2233_v18 = vadd.f32 1.0, %v5952_v16  ;;  %v7790_v53 = vld [vmem:[#allocation48_spill] sm:$0xff]  ;;  %v7794_v25 = vld [vmem:[#allocation38_spill] sm:$0xff] }
 0x300   : > { %v2488_v3 = vmul.f32 %v2360_v21, %v7788_v41  ;;  %4295 = vtanh.f32 %v2012_v55  ;;  %v2357_v9 = vmul.f32 0.5, %v2229_v34  ;;  %v2231_v1 = vadd.f32 1.0, %v7789_v19  ;;  %v7795_v55 = vld [vmem:[#allocation65_spill] sm:$0xff]  ;;  %v7799_v41 = vld [vmem:[#allocation67_spill] sm:$0xff] }
 0x301   : > { %v2235_v28 = vadd.f32 1.0, %v5961_v2  ;;  %v2606_v26 = vpack.c.bf16 %v2490_v17, %v2486_v14  ;;  %v2492_v47 = vmul.f32 %v2364_v30, %v7790_v53  ;;  %v2361_v7 = vmul.f32 0.5, %v2233_v18  ;;  %v7798_v17 = vld [vmem:[#allocation43_spill] sm:$0xff] }
 0x302   : > { %v6328_v46 = vadd.f32 %v7791_v5, %v5564_v56  ;;  %v6330_v37 = vpop.eup %4281  ;;  %v2485_v22 = vmul.f32 %v2357_v9, %v7794_v25  ;;  %v2359_v21 = vmul.f32 0.5, %v2231_v1  ;;  %v6335_v45 = vadd.f32 %v7795_v55, %v5566_v39  ;;  %v7800_v19 = vld [vmem:[#allocation39_spill] sm:$0xff] }
 0x303   : > { %7793 = vst [vmem:[#allocation55_spill] sm:$0xff] %v6330_v37  ;;  %v2363_v16 = vmul.f32 0.5, %v2235_v28  ;;  %v6337_v34 = vpop.eup %4283  ;;  %2972 = vmatprep.mubr.bf16.mxu0 %v2606_v26  ;;  %v2608_v2 = vpack.c.bf16 %v2492_v47, %v2488_v3  ;;  %v2489_v14 = vmul.f32 %v2361_v7, %v7798_v17  ;;  %v6344_v18 = vadd.f32 %v7799_v41, %v5568_v0  ;;  %v7801_v28 = vld [vmem:[#allocation44_spill] sm:$0xff] }
 0x304   : > { %7792 = vst [vmem:[#allocation40_spill] sm:$0xff] %v6328_v46  ;;  %7796 = vst [vmem:[#allocation45_spill] sm:$0xff] %v6335_v45  ;;  %v1501_v30 = vmul.f32 %v6328_v46, %v6328_v46  ;;  %v6346_v9 = vpop.eup %4285  ;;  %v2487_v1 = vmul.f32 %v2359_v21, %v7800_v19  ;;  %v1503_v5 = vmul.f32 %v6335_v45, %v6335_v45  ;;  %v7802_v3 = vld [vmem:[#allocation68_spill] sm:$0xff]  ;;  %v7804_v21 = vld [vmem:[#allocation69_spill] sm:$0xff] }
 0x305   : > { %7797 = vst [vmem:[#allocation41_spill] sm:$0xff] %v6337_v34  ;;  %v2491_v53 = vmul.f32 %v2363_v16, %v7801_v28  ;;  %v6354_v26 = vadd.f32 %v7802_v3, %v5570_v38  ;;  %v6356_v7 = vpop.eup %4287  ;;  %3133 = vmatprep.mubr.bf16.mxu1 %v2608_v2  ;;  %v2605_v47 = vpack.c.bf16 %v2489_v14, %v2485_v22  ;;  %v7807_v2 = vld [vmem:[#allocation70_spill] sm:$0xff]  ;;  %v6374_v14 = vpop.f32.mrb[52].mxu0 }
 0x306   : > { %v1629_v25 = vmul.f32 %v1501_v30, %v6328_v46  ;;  %v1502_v55 = vmul.f32 %v6344_v18, %v6344_v18  ;;  %v6363_v17 = vadd.f32 %v7804_v21, %v5564_v56  ;;  %v6365_v16 = vpop.eup %4289  ;;  %v1631_v19 = vmul.f32 %v1503_v5, %v6335_v45  ;;  %7809 = vst [vmem:[#allocation65_spill] sm:$0xff] %v6374_v14 }
 0x307   : > { %7803 = vst [vmem:[#allocation60_spill] sm:$0xff] %v6354_v26  ;;  %7806 = vst [vmem:[#allocation64_spill] sm:$0xff] %v6365_v16  ;;  %v2607_v41 = vpack.c.bf16 %v2491_v53, %v2487_v1  ;;  %v1504_v28 = vmul.f32 %v6354_v26, %v6354_v26  ;;  %v6372_v22 = vadd.f32 %v7807_v2, %v5566_v39  ;;  %v6376_v30 = vpop.eup %4291  ;;  %2973 = vmatmul.mubr.bf16.gmra.mrb[72].mxu0 %v2605_v47  ;;  %v7811_v53 = vld [vmem:[#allocation71_spill] sm:$0xff]  ;;  %v7813_v47 = vld [vmem:[#allocation72_spill] sm:$0xff] }
 0x308   : > { %7805 = vst [vmem:[#allocation48_spill] sm:$0xff] %v6363_v17  ;;  %7810 = vst [vmem:[#allocation43_spill] sm:$0xff] %v6376_v30  ;;  %v1757_v3 = vmul.f32 0.044715, %v1629_v25  ;;  %v1630_v21 = vmul.f32 %v1502_v55, %v6344_v18  ;;  %v1505_v1 = vmul.f32 %v6363_v17, %v6363_v17  ;;  %v6383_v5 = vadd.f32 %v7811_v53, %v5568_v0 }
 0x309   : > { %7808 = vst [vmem:[#allocation38_spill] sm:$0xff] %v6372_v22  ;;  %v6385_v59 = vpop.eup %4293  ;;  %3134 = vmatmul.mubr.bf16.gmra.mrb[72].mxu1 %v2607_v41  ;;  %v1759_v2 = vmul.f32 0.044715, %v1631_v19  ;;  %v1632_v24 = vmul.f32 %v1504_v28, %v6354_v26  ;;  %v1507_v14 = vmul.f32 %v6372_v22, %v6372_v22  ;;  %v6392_v25 = vadd.f32 %v7813_v47, %v5570_v38 }
 0x30a   : > { %7812 = vst [vmem:[#allocation67_spill] sm:$0xff] %v6383_v5  ;;  %v1885_v55 = vadd.f32 %v1757_v3, %v6328_v46  ;;  %v1758_v13 = vmul.f32 0.044715, %v1630_v21  ;;  %v1633_v30 = vmul.f32 %v1505_v1, %v6363_v17  ;;  %v1506_v53 = vmul.f32 %v6383_v5, %v6383_v5  ;;  %v6398_v34 = vpop.eup %4295  ;;  %v6406_v1 = vpop.f32.mrb[52].mxu1 }
 0x30b   : > { %7814 = vst [vmem:[#allocation39_spill] sm:$0xff] %v6392_v25  ;;  %v1887_v41 = vadd.f32 %v1759_v2, %v6335_v45  ;;  %v1760_v19 = vmul.f32 0.044715, %v1632_v24  ;;  %v1635_v28 = vmul.f32 %v1507_v14, %v6372_v22  ;;  %v1508_v32 = vmul.f32 %v6392_v25, %v6392_v25  ;;  %7815 = vst [vmem:[#allocation44_spill] sm:$0xff] %v6406_v1  ;;  %v6410_v24 = vpop.f32.mrb[53].mxu0  ;;  %v6413_v36 = vpop.f32.mrb[53].mxu1 }
 0x30c   : > { %v2013_v47 = vmul.f32 0.7978846, %v1885_v55  ;;  %v1886_v16 = vadd.f32 %v1758_v13, %v6344_v18  ;;  %v1761_v3 = vmul.f32 0.044715, %v1633_v30  ;;  %v1634_v21 = vmul.f32 %v1506_v53, %v6383_v5  ;;  %7816 = vst [vmem:[#allocation68_spill] sm:$0xff] %v6410_v24  ;;  %7817 = vst [vmem:[#allocation69_spill] sm:$0xff] %v6413_v36 }
 0x30d   : > { %v2015_v46 = vmul.f32 0.7978846, %v1887_v41  ;;  %v1888_v15 = vadd.f32 %v1760_v19, %v6354_v26  ;;  %v1763_v37 = vmul.f32 0.044715, %v1635_v28  ;;  %v1636_v2 = vmul.f32 %v1508_v32, %v6392_v25  ;;  %v6416_v41 = vpop.f32.mrb[54].mxu0 }
 0x30e   : > { %4297 = vtanh.f32 %v2013_v47  ;;  %v2014_v14 = vmul.f32 0.7978846, %v1886_v16  ;;  %v1889_v45 = vadd.f32 %v1761_v3, %v6363_v17  ;;  %v1762_v55 = vmul.f32 0.044715, %v1634_v21  ;;  %7818 = vst [vmem:[#allocation70_spill] sm:$0xff] %v6416_v41  ;;  %v6420_v47 = vpop.f32.mrb[54].mxu1 }
 0x30f   : > { %4299 = vtanh.f32 %v2015_v46  ;;  %v2016_v13 = vmul.f32 0.7978846, %v1888_v15  ;;  %v1891_v30 = vadd.f32 %v1763_v37, %v6372_v22  ;;  %v1764_v53 = vmul.f32 0.044715, %v1636_v2  ;;  %7819 = vst [vmem:[#allocation71_spill] sm:$0xff] %v6420_v47  ;;  %v6424_v15 = vpop.f32.mrb[55].mxu0 }
 0x310   : > { %4301 = vtanh.f32 %v2014_v14  ;;  %v2017_v19 = vmul.f32 0.7978846, %v1889_v45  ;;  %v1890_v32 = vadd.f32 %v1762_v55, %v6383_v5  ;;  %v2238_v28 = vadd.f32 1.0, %v6031_v62  ;;  %7820 = vst [vmem:[#allocation72_spill] sm:$0xff] %v6424_v15  ;;  %v6427_v45 = vpop.f32.mrb[55].mxu1  ;;  %v7823_v47 = vld [vmem:[#allocation76_spill] sm:$0xff] }
 0x311   : > { %4303 = vtanh.f32 %v2016_v13  ;;  %v2019_v16 = vmul.f32 0.7978846, %v1891_v30  ;;  %v1892_v3 = vadd.f32 %v1764_v53, %v6392_v25  ;;  %v2242_v46 = vadd.f32 1.0, %v6064_v43  ;;  %7821 = vst [vmem:[#allocation116_spill] sm:$0xff] %v6427_v45  ;;  %v7822_v13 = vld [vmem:[#allocation51_spill] sm:$0xff] }
 0x312   : > { %4305 = vtanh.f32 %v2017_v19  ;;  %v2018_v37 = vmul.f32 0.7978846, %v1890_v32  ;;  %v2366_v21 = vmul.f32 0.5, %v2238_v28  ;;  %v2240_v2 = vadd.f32 1.0, %v6040_v44  ;;  %v7824_v15 = vld [vmem:[#allocation59_spill] sm:$0xff]  ;;  %v7826_v44 = vld [vmem:[#allocation52_spill] sm:$0xff] }
 0x313   : > { %4307 = vtanh.f32 %v2019_v16  ;;  %v2020_v14 = vmul.f32 0.7978846, %v1892_v3  ;;  %v2370_v62 = vmul.f32 0.5, %v2242_v46  ;;  %v2244_v55 = vadd.f32 1.0, %v6079_v50  ;;  %v7825_v28 = vld [vmem:[#allocation87_spill] sm:$0xff] }
 0x314   : > { %4309 = vtanh.f32 %v2018_v37  ;;  %v2494_v30 = vmul.f32 %v2366_v21, %v7822_v13  ;;  %v2368_v53 = vmul.f32 0.5, %v2240_v2  ;;  %v2237_v43 = vadd.f32 1.0, %v7823_v47  ;;  %v7827_v16 = vld [vmem:[#allocation79_spill] sm:$0xff]  ;;  %v7828_v37 = vld [vmem:[#allocation62_spill] sm:$0xff]  ;;  %v7829_v2 = vld [vmem:[#allocation77_spill] sm:$0xff] }
 0x315   : > { %4311 = vtanh.f32 %v2020_v14  ;;  %v2498_v19 = vmul.f32 %v2370_v62, %v7824_v15  ;;  %v2372_v32 = vmul.f32 0.5, %v2244_v55  ;;  %v2241_v41 = vadd.f32 1.0, %v7825_v28  ;;  %v7832_v15 = vld [vmem:[#allocation49_spill] sm:$0xff] }
 0x316   : > { %v2496_v36 = vmul.f32 %v2368_v53, %v7826_v44  ;;  %v2365_v45 = vmul.f32 0.5, %v2237_v43  ;;  %v2239_v3 = vadd.f32 1.0, %v7827_v16  ;;  %v2243_v46 = vadd.f32 1.0, %v6057_v51  ;;  %v7833_v53 = vld [vmem:[#allocation78_spill] sm:$0xff] }
 0x317   : > { %v2610_v50 = vpack.c.bf16 %v2498_v19, %v2494_v30  ;;  %v2500_v24 = vmul.f32 %v2372_v32, %v7828_v37  ;;  %v2369_v21 = vmul.f32 0.5, %v2241_v41  ;;  %v6440_v47 = vadd.f32 %v7829_v2, %v5564_v56  ;;  %v7836_v30 = vld [vmem:[#allocation53_spill] sm:$0xff]  ;;  %v7838_v16 = vld [vmem:[#allocation50_spill] sm:$0xff] }
 0x318   : > { %v6442_v14 = vpop.eup %4297  ;;  %v2493_v62 = vmul.f32 %v2365_v45, %v7832_v15  ;;  %v2367_v55 = vmul.f32 0.5, %v2239_v3  ;;  %v2371_v13 = vmul.f32 0.5, %v2243_v46  ;;  %v6447_v43 = vadd.f32 %v7833_v53, %v5566_v39  ;;  %v7837_v32 = vld [vmem:[#allocation81_spill] sm:$0xff]  ;;  %v7839_v46 = vld [vmem:[#allocation58_spill] sm:$0xff] }
 0x319   : > { %7830 = vst [vmem:[#allocation51_spill] sm:$0xff] %v6440_v47  ;;  %7831 = vst [vmem:[#allocation76_spill] sm:$0xff] %v6442_v14  ;;  %v6449_v28 = vpop.eup %4299  ;;  %2980 = vmatprep.mubr.bf16.mxu0 %v2610_v50  ;;  %v2612_v51 = vpack.c.bf16 %v2500_v24, %v2496_v36  ;;  %v2497_v41 = vmul.f32 %v2369_v21, %v7836_v30  ;;  %v1509_v19 = vmul.f32 %v6440_v47, %v6440_v47  ;;  %v7840_v36 = vld [vmem:[#allocation82_spill] sm:$0xff] }
 0x31a   : > { %7834 = vst [vmem:[#allocation59_spill] sm:$0xff] %v6447_v43  ;;  %7835 = vst [vmem:[#allocation87_spill] sm:$0xff] %v6449_v28  ;;  %v6456_v44 = vadd.f32 %v7837_v32, %v5568_v0  ;;  %v6458_v45 = vpop.eup %4301  ;;  %v2495_v3 = vmul.f32 %v2367_v55, %v7838_v16  ;;  %v2499_v37 = vmul.f32 %v2371_v13, %v7839_v46  ;;  %v7841_v55 = vld [vmem:[#allocation83_spill] sm:$0xff] }
 0x31b   : > { %v1511_v2 = vmul.f32 %v6447_v43, %v6447_v43  ;;  %v6466_v24 = vadd.f32 %v7840_v36, %v5570_v38  ;;  %v6468_v50 = vpop.eup %4303  ;;  %3141 = vmatprep.mubr.bf16.mxu1 %v2612_v51  ;;  %v2609_v21 = vpack.c.bf16 %v2497_v41, %v2493_v62  ;;  %v1637_v15 = vmul.f32 %v1509_v19, %v6440_v47  ;;  %v7843_v51 = vld [vmem:[#allocation84_spill] sm:$0xff]  ;;  %v6486_v41 = vpop.f32.mrb[56].mxu0 }
 0x31c   : > { %v1510_v53 = vmul.f32 %v6456_v44, %v6456_v44  ;;  %v6475_v30 = vadd.f32 %v7841_v55, %v5564_v56  ;;  %v6477_v13 = vpop.eup %4305  ;;  %v2611_v32 = vpack.c.bf16 %v2499_v37, %v2495_v3  ;;  %v6484_v62 = vadd.f32 %v7843_v51, %v5566_v39  ;;  %7844 = vst [vmem:[#allocation79_spill] sm:$0xff] %v6486_v41  ;;  %v7846_v37 = vld [vmem:[#allocation85_spill] sm:$0xff] }
 0x31d   : > { %7842 = vst [vmem:[#allocation52_spill] sm:$0xff] %v6477_v13  ;;  %v1639_v16 = vmul.f32 %v1511_v2, %v6447_v43  ;;  %v1512_v46 = vmul.f32 %v6466_v24, %v6466_v24  ;;  %v6488_v19 = vpop.eup %4307  ;;  %2981 = vmatmul.mubr.bf16.gmra.mrb[76].mxu0 %v2609_v21  ;;  %v1765_v36 = vmul.f32 0.044715, %v1637_v15  ;;  %v6495_v2 = vadd.f32 %v7846_v37, %v5568_v0  ;;  %v7847_v21 = vld [vmem:[#allocation86_spill] sm:$0xff] }
 0x31e   : > { %7845 = vst [vmem:[#allocation62_spill] sm:$0xff] %v6488_v19  ;;  %v1638_v55 = vmul.f32 %v1510_v53, %v6456_v44  ;;  %v1513_v3 = vmul.f32 %v6475_v30, %v6475_v30  ;;  %v6497_v1 = vpop.eup %4309  ;;  %3142 = vmatmul.mubr.bf16.gmra.mrb[76].mxu1 %v2611_v32  ;;  %v1515_v41 = vmul.f32 %v6484_v62, %v6484_v62 }
 0x31f   : > { %v1767_v51 = vmul.f32 0.044715, %v1639_v16  ;;  %v1640_v22 = vmul.f32 %v1512_v46, %v6466_v24  ;;  %v6504_v15 = vadd.f32 %v7847_v21, %v5570_v38  ;;  %v6506_v53 = vpop.eup %4311  ;;  %v1893_v17 = vadd.f32 %v1765_v36, %v6440_v47 }
 0x320   : > { %v1766_v25 = vmul.f32 0.044715, %v1638_v55  ;;  %v1641_v37 = vmul.f32 %v1513_v3, %v6475_v30  ;;  %v1514_v32 = vmul.f32 %v6495_v2, %v6495_v2  ;;  %v1643_v19 = vmul.f32 %v1515_v41, %v6484_v62  ;;  %v6518_v55 = vpop.f32.mrb[56].mxu1 }
 0x321   : > { %v1895_v16 = vadd.f32 %v1767_v51, %v6447_v43  ;;  %v1768_v46 = vmul.f32 0.044715, %v1640_v22  ;;  %v1516_v28 = vmul.f32 %v6504_v15, %v6504_v15  ;;  %v2021_v21 = vmul.f32 0.7978846, %v1893_v17  ;;  %7848 = vst [vmem:[#allocation77_spill] sm:$0xff] %v6518_v55  ;;  %v6522_v22 = vpop.f32.mrb[57].mxu0 }
 0x322   : > { %v1894_v26 = vadd.f32 %v1766_v25, %v6456_v44  ;;  %v1769_v13 = vmul.f32 0.044715, %v1641_v37  ;;  %v1642_v36 = vmul.f32 %v1514_v32, %v6495_v2  ;;  %v1771_v5 = vmul.f32 0.044715, %v1643_v19  ;;  %7849 = vst [vmem:[#allocation49_spill] sm:$0xff] %v6522_v22  ;;  %v6525_v14 = vpop.f32.mrb[57].mxu1 }
 0x323   : > { %v2023_v3 = vmul.f32 0.7978846, %v1895_v16  ;;  %v1896_v47 = vadd.f32 %v1768_v46, %v6466_v24  ;;  %v1644_v51 = vmul.f32 %v1516_v28, %v6504_v15  ;;  %4313 = vtanh.f32 %v2021_v21  ;;  %7850 = vst [vmem:[#allocation78_spill] sm:$0xff] %v6525_v14  ;;  %v6528_v16 = vpop.f32.mrb[58].mxu0  ;;  %v6532_v21 = vpop.f32.mrb[58].mxu1 }
 0x324   : > { %v2022_v41 = vmul.f32 0.7978846, %v1894_v26  ;;  %v1897_v43 = vadd.f32 %v1769_v13, %v6475_v30  ;;  %v1770_v17 = vmul.f32 0.044715, %v1642_v36  ;;  %v1899_v37 = vadd.f32 %v1771_v5, %v6484_v62  ;;  %7851 = vst [vmem:[#allocation53_spill] sm:$0xff] %v6528_v16  ;;  %7852 = vst [vmem:[#allocation81_spill] sm:$0xff] %v6532_v21 }
 0x325   : > { %4315 = vtanh.f32 %v2023_v3  ;;  %v2024_v25 = vmul.f32 0.7978846, %v1896_v47  ;;  %v1772_v32 = vmul.f32 0.044715, %v1644_v51  ;;  %v2246_v46 = vadd.f32 1.0, %v6133_v57  ;;  %v6536_v47 = vpop.f32.mrb[59].mxu0 }
 0x326   : > { %4317 = vtanh.f32 %v2022_v41  ;;  %v2025_v19 = vmul.f32 0.7978846, %v1897_v43  ;;  %v1898_v28 = vadd.f32 %v1770_v17, %v6495_v2  ;;  %v2027_v26 = vmul.f32 0.7978846, %v1899_v37  ;;  %7853 = vst [vmem:[#allocation50_spill] sm:$0xff] %v6536_v47  ;;  %v6539_v43 = vpop.f32.mrb[59].mxu1 }
 0x327   : > { %4319 = vtanh.f32 %v2024_v25  ;;  %v1900_v13 = vadd.f32 %v1772_v32, %v6504_v15  ;;  %v2250_v36 = vadd.f32 1.0, %v6178_v8  ;;  %v2374_v3 = vmul.f32 0.5, %v2246_v46  ;;  %7854 = vst [vmem:[#allocation58_spill] sm:$0xff] %v6539_v43  ;;  %v7855_v25 = vld [vmem:[#allocation73_spill] sm:$0xff] }
 0x328   : > { %4321 = vtanh.f32 %v2025_v19  ;;  %v2026_v5 = vmul.f32 0.7978846, %v1898_v28  ;;  %v2248_v51 = vadd.f32 1.0, %v6147_v23  ;;  %v2252_v17 = vadd.f32 1.0, %v6186_v40  ;;  %v7856_v23 = vld [vmem:[#allocation74_spill] sm:$0xff] }
 0x329   : > { %4323 = vtanh.f32 %v2027_v26  ;;  %v2028_v41 = vmul.f32 0.7978846, %v1900_v13  ;;  %v2378_v57 = vmul.f32 0.5, %v2250_v36  ;;  %v2502_v37 = vmul.f32 %v2374_v3, %v7855_v25 }
 0x32a   : > { %4325 = vtanh.f32 %v2026_v5  ;;  %v2376_v32 = vmul.f32 0.5, %v2248_v51  ;;  %v2245_v8 = vadd.f32 1.0, %v6090_v61  ;;  %v2380_v28 = vmul.f32 0.5, %v2252_v17 }
 0x32b   : > { %4327 = vtanh.f32 %v2028_v41  ;;  %v2506_v19 = vmul.f32 %v2378_v57, %v6018_v54  ;;  %v2249_v46 = vadd.f32 1.0, %v6167_v49  ;;  %v2247_v26 = vadd.f32 1.0, %v6095_v27  ;;  %v7858_v54 = vld [vmem:[#allocation63_spill] sm:$0xff] }
 0x32c   : > { %v2504_v47 = vmul.f32 %v2376_v32, %v7856_v23  ;;  %v2373_v43 = vmul.f32 0.5, %v2245_v8  ;;  %v2251_v13 = vadd.f32 1.0, %v6173_v29  ;;  %v2508_v36 = vmul.f32 %v2380_v28, %v6038_v58  ;;  %v7860_v58 = vld [vmem:[#allocation75_spill] sm:$0xff]  ;;  %v7862_v8 = vld [vmem:[#allocation80_spill] sm:$0xff] }
 0x32d   : > { %v2614_v40 = vpack.c.bf16 %v2506_v19, %v2502_v37  ;;  %v2377_v5 = vmul.f32 0.5, %v2249_v46  ;;  %v6552_v61 = vadd.f32 %v6053_v11, %v5564_v56  ;;  %v6554_v3 = vpop.eup %4313  ;;  %v2375_v49 = vmul.f32 0.5, %v2247_v26  ;;  %v7861_v37 = vld [vmem:[#allocation66_spill] sm:$0xff] }
 0x32e   : > { %v2501_v51 = vmul.f32 %v2373_v43, %v7858_v54  ;;  %v2379_v41 = vmul.f32 0.5, %v2251_v13  ;;  %v6559_v57 = vadd.f32 %v6055_v42, %v5566_v39  ;;  %v2616_v29 = vpack.c.bf16 %v2508_v36, %v2504_v47  ;;  %v7863_v47 = vld [vmem:[#allocation88_spill] sm:$0xff] }
 0x32f   : > { %7857 = vst [vmem:[#allocation82_spill] sm:$0xff] %v6552_v61  ;;  %v6561_v27 = vpop.eup %4315  ;;  %2988 = vmatprep.mubr.bf16.mxu0 %v2614_v40  ;;  %v2505_v17 = vmul.f32 %v2377_v5, %v7860_v58  ;;  %v1517_v11 = vmul.f32 %v6552_v61, %v6552_v61  ;;  %v6568_v25 = vadd.f32 %v6060_v63, %v5568_v0 }
 0x330   : > { %7859 = vst [vmem:[#allocation83_spill] sm:$0xff] %v6559_v57  ;;  %v6570_v43 = vpop.eup %4317  ;;  %v2503_v32 = vmul.f32 %v2375_v49, %v7861_v37  ;;  %v2507_v42 = vmul.f32 %v2379_v41, %v7862_v8  ;;  %v1519_v19 = vmul.f32 %v6559_v57, %v6559_v57  ;;  %v6578_v28 = vadd.f32 %v7863_v47, %v5570_v38  ;;  %v6598_v49 = vpop.f32.mrb[60].mxu0 }
 0x331   : > { %v6580_v46 = vpop.eup %4319  ;;  %3149 = vmatprep.mubr.bf16.mxu1 %v2616_v29  ;;  %v2613_v23 = vpack.c.bf16 %v2505_v17, %v2501_v51  ;;  %v1645_v63 = vmul.f32 %v1517_v11, %v6552_v61  ;;  %v1518_v26 = vmul.f32 %v6568_v25, %v6568_v25  ;;  %v6587_v13 = vadd.f32 %v6069_v52, %v5564_v56  ;;  %v7867_v17 = vld [vmem:[#allocation89_spill] sm:$0xff] }
 0x332   : > { %v6589_v40 = vpop.eup %4321  ;;  %v2615_v36 = vpack.c.bf16 %v2507_v42, %v2503_v32  ;;  %v1647_v5 = vmul.f32 %v1519_v19, %v6559_v57  ;;  %v1520_v54 = vmul.f32 %v6578_v28, %v6578_v28  ;;  %v6596_v51 = vadd.f32 %v6071_v33, %v5566_v39  ;;  %7866 = vst [vmem:[#allocation86_spill] sm:$0xff] %v6598_v49  ;;  %v7868_v42 = vld [vmem:[#allocation90_spill] sm:$0xff] }
 0x333   : > { %7864 = vst [vmem:[#allocation84_spill] sm:$0xff] %v6587_v13  ;;  %v6600_v41 = vpop.eup %4323  ;;  %2989 = vmatmul.mubr.bf16.gmra.mrb[80].mxu0 %v2613_v23  ;;  %v1773_v29 = vmul.f32 0.044715, %v1645_v63  ;;  %v1646_v52 = vmul.f32 %v1518_v26, %v6568_v25  ;;  %v1521_v58 = vmul.f32 %v6587_v13, %v6587_v13  ;;  %v6607_v11 = vadd.f32 %v7867_v17, %v5568_v0 }
 0x334   : > { %7865 = vst [vmem:[#allocation85_spill] sm:$0xff] %v6596_v51  ;;  %v6609_v37 = vpop.eup %4325  ;;  %3150 = vmatmul.mubr.bf16.gmra.mrb[80].mxu1 %v2615_v36  ;;  %v1775_v33 = vmul.f32 0.044715, %v1647_v5  ;;  %v1648_v32 = vmul.f32 %v1520_v54, %v6578_v28  ;;  %v1523_v8 = vmul.f32 %v6596_v51, %v6596_v51  ;;  %v6616_v19 = vadd.f32 %v7868_v42, %v5570_v38 }
 0x335   : > { %v6618_v47 = vpop.eup %4327  ;;  %v1901_v23 = vadd.f32 %v1773_v29, %v6552_v61  ;;  %v1774_v63 = vmul.f32 0.044715, %v1646_v52  ;;  %v1649_v26 = vmul.f32 %v1521_v58, %v6587_v13  ;;  %v1522_v36 = vmul.f32 %v6607_v11, %v6607_v11  ;;  %v6630_v52 = vpop.f32.mrb[60].mxu1 }
 0x336   : > { %7869 = vst [vmem:[#allocation73_spill] sm:$0xff] %v6616_v19  ;;  %v1903_v5 = vadd.f32 %v1775_v33, %v6559_v57  ;;  %v1776_v54 = vmul.f32 0.044715, %v1648_v32  ;;  %v1651_v17 = vmul.f32 %v1523_v8, %v6596_v51  ;;  %v1524_v49 = vmul.f32 %v6616_v19, %v6616_v19  ;;  %7870 = vst [vmem:[#allocation74_spill] sm:$0xff] %v6630_v52  ;;  %v6634_v32 = vpop.f32.mrb[61].mxu0  ;;  %v6637_v55 = vpop.f32.mrb[61].mxu1 }
 0x337   : > { %v2029_v42 = vmul.f32 0.7978846, %v1901_v23  ;;  %v1902_v21 = vadd.f32 %v1774_v63, %v6568_v25  ;;  %v1777_v16 = vmul.f32 0.044715, %v1649_v26  ;;  %v1650_v29 = vmul.f32 %v1522_v36, %v6607_v11  ;;  %7871 = vst [vmem:[#allocation63_spill] sm:$0xff] %v6634_v32  ;;  %7872 = vst [vmem:[#allocation75_spill] sm:$0xff] %v6637_v55 }
 0x338   : > { %v2031_v58 = vmul.f32 0.7978846, %v1903_v5  ;;  %v1904_v14 = vadd.f32 %v1776_v54, %v6578_v28  ;;  %v1779_v22 = vmul.f32 0.044715, %v1651_v17  ;;  %v1652_v33 = vmul.f32 %v1524_v49, %v6616_v19  ;;  %v6640_v5 = vpop.f32.mrb[62].mxu0 }
 0x339   : > { %4329 = vtanh.f32 %v2029_v42  ;;  %v2030_v8 = vmul.f32 0.7978846, %v1902_v21  ;;  %v1905_v57 = vadd.f32 %v1777_v16, %v6587_v13  ;;  %v1778_v23 = vmul.f32 0.044715, %v1650_v29  ;;  %7873 = vst [vmem:[#allocation66_spill] sm:$0xff] %v6640_v5  ;;  %v6644_v42 = vpop.f32.mrb[62].mxu1 }
 0x33a   : > { %4331 = vtanh.f32 %v2031_v58  ;;  %v2032_v63 = vmul.f32 0.7978846, %v1904_v14  ;;  %v1907_v26 = vadd.f32 %v1779_v22, %v6596_v51  ;;  %v1780_v36 = vmul.f32 0.044715, %v1652_v33  ;;  %7874 = vst [vmem:[#allocation80_spill] sm:$0xff] %v6644_v42  ;;  %v6648_v14 = vpop.f32.mrb[63].mxu0 }
 0x33b   : > { %4333 = vtanh.f32 %v2030_v8  ;;  %v2033_v54 = vmul.f32 0.7978846, %v1905_v57  ;;  %v1906_v49 = vadd.f32 %v1778_v23, %v6607_v11  ;;  %v2254_v17 = vadd.f32 1.0, %v6245_v48  ;;  %7875 = vst [vmem:[#allocation88_spill] sm:$0xff] %v6648_v14  ;;  %v6651_v57 = vpop.f32.mrb[63].mxu1 }
 0x33c   : > { %4335 = vtanh.f32 %v2032_v63  ;;  %v2035_v16 = vmul.f32 0.7978846, %v1907_v26  ;;  %v1908_v21 = vadd.f32 %v1780_v36, %v6616_v19  ;;  %v2258_v29 = vadd.f32 1.0, %v6277_v31  ;;  %7876 = vst [vmem:[#allocation89_spill] sm:$0xff] %v6651_v57 }
 0x33d   : > { %4337 = vtanh.f32 %v2033_v54  ;;  %v2034_v22 = vmul.f32 0.7978846, %v1906_v49  ;;  %v2382_v58 = vmul.f32 0.5, %v2254_v17  ;;  %v2256_v33 = vadd.f32 1.0, %v6251_v10  ;;  %v7877_v10 = vld [vmem:[#allocation93_spill] sm:$0xff] }
 0x33e   : > { %4339 = vtanh.f32 %v2035_v16  ;;  %v2036_v8 = vmul.f32 0.7978846, %v1908_v21  ;;  %v2386_v48 = vmul.f32 0.5, %v2258_v29  ;;  %v2260_v23 = vadd.f32 1.0, %v6286_v60  ;;  %v7878_v21 = vld [vmem:[#allocation54_spill] sm:$0xff] }
 0x33f   : > { %4341 = vtanh.f32 %v2034_v22  ;;  %v2510_v63 = vmul.f32 %v2382_v58, %v6102_v6  ;;  %v2384_v26 = vmul.f32 0.5, %v2256_v33  ;;  %v2253_v31 = vadd.f32 1.0, %v6218_v12  ;;  %v7879_v22 = vld [vmem:[#allocation102_spill] sm:$0xff]  ;;  %v7880_v58 = vld [vmem:[#allocation96_spill] sm:$0xff] }
 0x340   : > { %4343 = vtanh.f32 %v2036_v8  ;;  %v2514_v36 = vmul.f32 %v2386_v48, %v6141_v20  ;;  %v2388_v54 = vmul.f32 0.5, %v2260_v23  ;;  %v2257_v49 = vadd.f32 1.0, %v6264_v4  ;;  %v7882_v20 = vld [vmem:[#allocation91_spill] sm:$0xff]  ;;  %v7883_v23 = vld [vmem:[#allocation97_spill] sm:$0xff] }
 0x341   : > { %v2512_v17 = vmul.f32 %v2384_v26, %v7877_v10  ;;  %v2381_v57 = vmul.f32 0.5, %v2253_v31  ;;  %v2255_v16 = vadd.f32 1.0, %v6225_v35  ;;  %v2259_v29 = vadd.f32 1.0, %v7878_v21  ;;  %v7885_v31 = vld [vmem:[#allocation94_spill] sm:$0xff] }
 0x342   : > { %v2618_v60 = vpack.c.bf16 %v2514_v36, %v2510_v63  ;;  %v2516_v14 = vmul.f32 %v2388_v54, %v7879_v22  ;;  %v2385_v6 = vmul.f32 0.5, %v2257_v49  ;;  %v6664_v12 = vadd.f32 %v7880_v58, %v5564_v56  ;;  %v7886_v49 = vld [vmem:[#allocation98_spill] sm:$0xff] }
 0x343   : > { %v6666_v33 = vpop.eup %4329  ;;  %v2509_v8 = vmul.f32 %v2381_v57, %v7882_v20  ;;  %v2383_v4 = vmul.f32 0.5, %v2255_v16  ;;  %v2387_v48 = vmul.f32 0.5, %v2259_v29  ;;  %v6671_v26 = vadd.f32 %v7883_v23, %v5566_v39  ;;  %v7888_v16 = vld [vmem:[#allocation92_spill] sm:$0xff]  ;;  %v7889_v29 = vld [vmem:[#allocation95_spill] sm:$0xff] }
 0x344   : > { %7881 = vst [vmem:[#allocation90_spill] sm:$0xff] %v6664_v12  ;;  %v6673_v35 = vpop.eup %4331  ;;  %2996 = vmatprep.mubr.bf16.mxu0 %v2618_v60  ;;  %v2620_v63 = vpack.c.bf16 %v2516_v14, %v2512_v17  ;;  %v2513_v36 = vmul.f32 %v2385_v6, %v7885_v31  ;;  %v1525_v54 = vmul.f32 %v6664_v12, %v6664_v12  ;;  %v7890_v14 = vld [vmem:[#allocation99_spill] sm:$0xff] }
 0x345   : > { %7884 = vst [vmem:[#allocation93_spill] sm:$0xff] %v6671_v26  ;;  %v6680_v10 = vadd.f32 %v7886_v49, %v5568_v0  ;;  %v6682_v57 = vpop.eup %4333  ;;  %v2511_v21 = vmul.f32 %v2383_v4, %v7888_v16  ;;  %v2515_v22 = vmul.f32 %v2387_v48, %v7889_v29  ;;  %v1527_v58 = vmul.f32 %v6671_v26, %v6671_v26  ;;  %v7892_v4 = vld [vmem:[#allocation100_spill] sm:$0xff] }
 0x346   : > { %v6690_v17 = vadd.f32 %v7890_v14, %v5570_v38  ;;  %v6692_v60 = vpop.eup %4335  ;;  %3157 = vmatprep.mubr.bf16.mxu1 %v2620_v63  ;;  %v2617_v6 = vpack.c.bf16 %v2513_v36, %v2509_v8  ;;  %v1653_v20 = vmul.f32 %v1525_v54, %v6664_v12  ;;  %v6699_v31 = vadd.f32 %v7892_v4, %v5564_v56  ;;  %v7894_v63 = vld [vmem:[#allocation101_spill] sm:$0xff] }
 0x347   : > { %7887 = vst [vmem:[#allocation54_spill] sm:$0xff] %v6680_v10  ;;  %v1526_v23 = vmul.f32 %v6680_v10, %v6680_v10  ;;  %v6701_v48 = vpop.eup %4337  ;;  %v2619_v49 = vpack.c.bf16 %v2515_v22, %v2511_v21  ;;  %v1655_v16 = vmul.f32 %v1527_v58, %v6671_v26  ;;  %v6708_v8 = vadd.f32 %v7894_v63, %v5566_v39  ;;  %v7897_v21 = vld [vmem:[#allocation103_spill] sm:$0xff] }
 0x348   : > { %7891 = vst [vmem:[#allocation102_spill] sm:$0xff] %v6690_v17  ;;  %7893 = vst [vmem:[#allocation96_spill] sm:$0xff] %v6699_v31  ;;  %v1528_v29 = vmul.f32 %v6690_v17, %v6690_v17  ;;  %v6710_v36 = vpop.eup %4339  ;;  %2997 = vmatmul.mubr.bf16.gmra.mrb[84].mxu0 %v2617_v6  ;;  %v1781_v54 = vmul.f32 0.044715, %v1653_v20  ;;  %v1529_v4 = vmul.f32 %v6699_v31, %v6699_v31  ;;  %v7899_v6 = vld [vmem:[#allocation104_spill] sm:$0xff] }
 0x349   : > { %7895 = vst [vmem:[#allocation91_spill] sm:$0xff] %v6708_v8  ;;  %7896 = vst [vmem:[#allocation97_spill] sm:$0xff] %v6710_v36  ;;  %v1654_v14 = vmul.f32 %v1526_v23, %v6680_v10  ;;  %v6717_v22 = vadd.f32 %v7897_v21, %v5568_v0  ;;  %v6719_v58 = vpop.eup %4341  ;;  %3158 = vmatmul.mubr.bf16.gmra.mrb[84].mxu1 %v2619_v49  ;;  %v1783_v42 = vmul.f32 0.044715, %v1655_v16 }
 0x34a   : > { %v1656_v63 = vmul.f32 %v1528_v29, %v6690_v17  ;;  %v1531_v5 = vmul.f32 %v6708_v8, %v6708_v8  ;;  %v6726_v20 = vadd.f32 %v7899_v6, %v5570_v38  ;;  %v6728_v23 = vpop.eup %4343  ;;  %v1909_v55 = vadd.f32 %v1781_v54, %v6664_v12 }
 0x34b   : > { %7898 = vst [vmem:[#allocation94_spill] sm:$0xff] %v6717_v22  ;;  %v1782_v32 = vmul.f32 0.044715, %v1654_v14  ;;  %v1657_v21 = vmul.f32 %v1529_v4, %v6699_v31  ;;  %v1530_v49 = vmul.f32 %v6717_v22, %v6717_v22  ;;  %v1911_v16 = vadd.f32 %v1783_v42, %v6671_v26 }
 0x34c   : > { %7900 = vst [vmem:[#allocation98_spill] sm:$0xff] %v6726_v20  ;;  %v1784_v29 = vmul.f32 0.044715, %v1656_v63  ;;  %v1659_v52 = vmul.f32 %v1531_v5, %v6708_v8  ;;  %v1532_v51 = vmul.f32 %v6726_v20, %v6726_v20  ;;  %v2037_v6 = vmul.f32 0.7978846, %v1909_v55 }
 0x34d   : > { %v1910_v13 = vadd.f32 %v1782_v32, %v6680_v10  ;;  %v1785_v61 = vmul.f32 0.044715, %v1657_v21  ;;  %v1658_v54 = vmul.f32 %v1530_v49, %v6717_v22  ;;  %v2039_v14 = vmul.f32 0.7978846, %v1911_v16 }
 0x34e   : > { %v1912_v4 = vadd.f32 %v1784_v29, %v6690_v17  ;;  %v1787_v12 = vmul.f32 0.044715, %v1659_v52  ;;  %v1660_v19 = vmul.f32 %v1532_v51, %v6726_v20  ;;  %4345 = vtanh.f32 %v2037_v6 }
 0x34f   : > { %v2038_v42 = vmul.f32 0.7978846, %v1910_v13  ;;  %v1913_v63 = vadd.f32 %v1785_v61, %v6699_v31  ;;  %v1786_v5 = vmul.f32 0.044715, %v1658_v54  ;;  %4347 = vtanh.f32 %v2039_v14  ;;  %v7901_v54 = vld [vmem:[#allocation46_spill] sm:$0xff] }
 0x350   : > { %v2040_v26 = vmul.f32 0.7978846, %v1912_v4  ;;  %v1915_v55 = vadd.f32 %v1787_v12, %v6708_v8  ;;  %v1788_v36 = vmul.f32 0.044715, %v1660_v19  ;;  %v2262_v49 = vadd.f32 1.0, %v6346_v9 }
 0x351   : > { %4349 = vtanh.f32 %v2038_v42  ;;  %v2041_v32 = vmul.f32 0.7978846, %v1913_v63  ;;  %v1914_v21 = vadd.f32 %v1786_v5, %v6717_v22  ;;  %v2266_v13 = vadd.f32 1.0, %v6385_v59  ;;  %v7904_v63 = vld [vmem:[#allocation64_spill] sm:$0xff] }
 0x352   : > { %4351 = vtanh.f32 %v2040_v26  ;;  %v2043_v52 = vmul.f32 0.7978846, %v1915_v55  ;;  %v1916_v51 = vadd.f32 %v1788_v36, %v6726_v20  ;;  %v2390_v16 = vmul.f32 0.5, %v2262_v49  ;;  %v7902_v26 = vld [vmem:[#allocation55_spill] sm:$0xff]  ;;  %v7903_v36 = vld [vmem:[#allocation34_spill] sm:$0xff]  ;;  %v7905_v55 = vld [vmem:[#allocation37_spill] sm:$0xff] }
 0x353   : > { %4353 = vtanh.f32 %v2041_v32  ;;  %v2042_v61 = vmul.f32 0.7978846, %v1914_v21  ;;  %v2264_v29 = vadd.f32 1.0, %v6356_v7  ;;  %v2394_v19 = vmul.f32 0.5, %v2266_v13  ;;  %v7906_v21 = vld [vmem:[#allocation41_spill] sm:$0xff]  ;;  %v7908_v13 = vld [vmem:[#allocation32_spill] sm:$0xff] }
 0x354   : > { %4355 = vtanh.f32 %v2043_v52  ;;  %v2044_v12 = vmul.f32 0.7978846, %v1916_v51  ;;  %v2268_v6 = vadd.f32 1.0, %v6398_v34  ;;  %v2518_v14 = vmul.f32 %v2390_v16, %v7901_v54  ;;  %v7907_v52 = vld [vmem:[#allocation43_spill] sm:$0xff] }
 0x355   : > { %4357 = vtanh.f32 %v2042_v61  ;;  %v2392_v9 = vmul.f32 0.5, %v2264_v29  ;;  %v2261_v4 = vadd.f32 1.0, %v7902_v26  ;;  %v2522_v42 = vmul.f32 %v2394_v19, %v7903_v36  ;;  %v7909_v29 = vld [vmem:[#allocation105_spill] sm:$0xff]  ;;  %v7912_v19 = vld [vmem:[#allocation36_spill] sm:$0xff] }
 0x356   : > { %4359 = vtanh.f32 %v2044_v12  ;;  %v2396_v59 = vmul.f32 0.5, %v2268_v6  ;;  %v2265_v5 = vadd.f32 1.0, %v7904_v63  ;;  %v2263_v49 = vadd.f32 1.0, %v7906_v21 }
 0x357   : > { %v2520_v32 = vmul.f32 %v2392_v9, %v7905_v55  ;;  %v2389_v7 = vmul.f32 0.5, %v2261_v4  ;;  %v2267_v51 = vadd.f32 1.0, %v7907_v52  ;;  %v2622_v34 = vpack.c.bf16 %v2522_v42, %v2518_v14  ;;  %v7913_v9 = vld [vmem:[#allocation106_spill] sm:$0xff]  ;;  %v7917_v55 = vld [vmem:[#allocation107_spill] sm:$0xff] }
 0x358   : > { %v2524_v61 = vmul.f32 %v2396_v59, %v7908_v13  ;;  %v2393_v16 = vmul.f32 0.5, %v2265_v5  ;;  %v6760_v54 = vadd.f32 %v7909_v29, %v5564_v56  ;;  %v6762_v12 = vpop.eup %4345  ;;  %v2391_v26 = vmul.f32 0.5, %v2263_v49  ;;  %v7916_v42 = vld [vmem:[#allocation42_spill] sm:$0xff]  ;;  %v7918_v49 = vld [vmem:[#allocation33_spill] sm:$0xff] }
 0x359   : > { %7911 = vst [vmem:[#allocation95_spill] sm:$0xff] %v6762_v12  ;;  %v2517_v6 = vmul.f32 %v2389_v7, %v7912_v19  ;;  %v2395_v36 = vmul.f32 0.5, %v2267_v51  ;;  %v6767_v4 = vadd.f32 %v7913_v9, %v5566_v39  ;;  %v6769_v63 = vpop.eup %4347  ;;  %3004 = vmatprep.mubr.bf16.mxu0 %v2622_v34  ;;  %v6776_v21 = vadd.f32 %v7917_v55, %v5568_v0  ;;  %v7919_v51 = vld [vmem:[#allocation47_spill] sm:$0xff] }
 0x35a   : > { %7910 = vst [vmem:[#allocation92_spill] sm:$0xff] %v6760_v54  ;;  %7915 = vst [vmem:[#allocation100_spill] sm:$0xff] %v6769_v63  ;;  %v2624_v14 = vpack.c.bf16 %v2524_v61, %v2520_v32  ;;  %v2521_v59 = vmul.f32 %v2393_v16, %v7916_v42  ;;  %v1533_v5 = vmul.f32 %v6760_v54, %v6760_v54  ;;  %v7920_v32 = vld [vmem:[#allocation108_spill] sm:$0xff] }
 0x35b   : > { %7914 = vst [vmem:[#allocation99_spill] sm:$0xff] %v6767_v4  ;;  %v6778_v7 = vpop.eup %4349  ;;  %v2519_v52 = vmul.f32 %v2391_v26, %v7918_v49  ;;  %v2523_v13 = vmul.f32 %v2395_v36, %v7919_v51  ;;  %v1535_v29 = vmul.f32 %v6767_v4, %v6767_v4  ;;  %v6786_v34 = vadd.f32 %v7920_v32, %v5570_v38  ;;  %v7922_v26 = vld [vmem:[#allocation109_spill] sm:$0xff] }
 0x35c   : > { %v6788_v61 = vpop.eup %4351  ;;  %3165 = vmatprep.mubr.bf16.mxu1 %v2624_v14  ;;  %v2621_v16 = vpack.c.bf16 %v2521_v59, %v2517_v6  ;;  %v1661_v19 = vmul.f32 %v1533_v5, %v6760_v54  ;;  %v1534_v9 = vmul.f32 %v6776_v21, %v6776_v21  ;;  %v6795_v42 = vadd.f32 %v7922_v26, %v5564_v56  ;;  %v7925_v14 = vld [vmem:[#allocation110_spill] sm:$0xff] }
 0x35d   : > { %7921 = vst [vmem:[#allocation101_spill] sm:$0xff] %v6786_v34  ;;  %v6797_v36 = vpop.eup %4353  ;;  %v2623_v55 = vpack.c.bf16 %v2523_v13, %v2519_v52  ;;  %v1663_v49 = vmul.f32 %v1535_v29, %v6767_v4  ;;  %v1536_v51 = vmul.f32 %v6786_v34, %v6786_v34  ;;  %v6804_v6 = vadd.f32 %v7925_v14, %v5566_v39  ;;  %v7928_v52 = vld [vmem:[#allocation111_spill] sm:$0xff] }
 0x35e   : > { %7923 = vst [vmem:[#allocation103_spill] sm:$0xff] %v6795_v42  ;;  %7924 = vst [vmem:[#allocation104_spill] sm:$0xff] %v6797_v36  ;;  %v6806_v59 = vpop.eup %4355  ;;  %3005 = vmatmul.mubr.bf16.gmra.mrb[88].mxu0 %v2621_v16  ;;  %v1789_v5 = vmul.f32 0.044715, %v1661_v19  ;;  %v1662_v32 = vmul.f32 %v1534_v9, %v6776_v21  ;;  %v1537_v26 = vmul.f32 %v6795_v42, %v6795_v42  ;;  %v7930_v16 = vld [vmem:[#allocation112_spill] sm:$0xff] }
 0x35f   : > { %7926 = vst [vmem:[#allocation46_spill] sm:$0xff] %v6804_v6  ;;  %7927 = vst [vmem:[#allocation55_spill] sm:$0xff] %v6806_v59  ;;  %v6813_v13 = vadd.f32 %v7928_v52, %v5568_v0  ;;  %v6815_v29 = vpop.eup %4357  ;;  %3166 = vmatmul.mubr.bf16.gmra.mrb[88].mxu1 %v2623_v55  ;;  %v1791_v8 = vmul.f32 0.044715, %v1663_v49  ;;  %v1664_v14 = vmul.f32 %v1536_v51, %v6786_v34 }
 0x360   : > { %v1539_v31 = vmul.f32 %v6804_v6, %v6804_v6  ;;  %v6822_v19 = vadd.f32 %v7930_v16, %v5570_v38  ;;  %v6824_v9 = vpop.eup %4359  ;;  %v1917_v20 = vadd.f32 %v1789_v5, %v6760_v54  ;;  %v1790_v59 = vmul.f32 0.044715, %v1662_v32 }
 0x361   : > { %7929 = vst [vmem:[#allocation34_spill] sm:$0xff] %v6813_v13  ;;  %v1665_v52 = vmul.f32 %v1537_v26, %v6795_v42  ;;  %v1538_v55 = vmul.f32 %v6813_v13, %v6813_v13  ;;  %v1919_v49 = vadd.f32 %v1791_v8, %v6767_v4  ;;  %v1792_v51 = vmul.f32 0.044715, %v1664_v14 }
 0x362   : > { %7931 = vst [vmem:[#allocation64_spill] sm:$0xff] %v6822_v19  ;;  %v1667_v63 = vmul.f32 %v1539_v31, %v6804_v6  ;;  %v1540_v17 = vmul.f32 %v6822_v19, %v6822_v19  ;;  %v2045_v16 = vmul.f32 0.7978846, %v1917_v20  ;;  %v1918_v36 = vadd.f32 %v1790_v59, %v6776_v21 }
 0x363   : > { %v1793_v22 = vmul.f32 0.044715, %v1665_v52  ;;  %v1666_v5 = vmul.f32 %v1538_v55, %v6813_v13  ;;  %v2047_v32 = vmul.f32 0.7978846, %v1919_v49  ;;  %v1920_v26 = vadd.f32 %v1792_v51, %v6786_v34 }
 0x364   : > { %v1795_v54 = vmul.f32 0.044715, %v1667_v63  ;;  %v1668_v12 = vmul.f32 %v1540_v17, %v6822_v19  ;;  %4361 = vtanh.f32 %v2045_v16  ;;  %v2046_v8 = vmul.f32 0.7978846, %v1918_v36 }
 0x365   : > { %v1921_v14 = vadd.f32 %v1793_v22, %v6795_v42  ;;  %v1794_v31 = vmul.f32 0.044715, %v1666_v5  ;;  %4363 = vtanh.f32 %v2047_v32  ;;  %v2048_v4 = vmul.f32 0.7978846, %v1920_v26 }
 0x366   : > { %v1923_v20 = vadd.f32 %v1795_v54, %v6804_v6  ;;  %v1796_v10 = vmul.f32 0.044715, %v1668_v12  ;;  %4365 = vtanh.f32 %v2046_v8  ;;  %v2270_v55 = vadd.f32 1.0, %v6458_v45  ;;  %v7934_v8 = vld [vmem:[#allocation52_spill] sm:$0xff] }
 0x367   : > { %v2049_v59 = vmul.f32 0.7978846, %v1921_v14  ;;  %v1922_v52 = vadd.f32 %v1794_v31, %v6813_v13  ;;  %4367 = vtanh.f32 %v2048_v4  ;;  %v2274_v36 = vadd.f32 1.0, %v6497_v1  ;;  %v7932_v4 = vld [vmem:[#allocation76_spill] sm:$0xff] }
 0x368   : > { %v2051_v63 = vmul.f32 0.7978846, %v1923_v20  ;;  %v1924_v17 = vadd.f32 %v1796_v10, %v6822_v19  ;;  %v2398_v49 = vmul.f32 0.5, %v2270_v55  ;;  %v2272_v51 = vadd.f32 1.0, %v6468_v50  ;;  %v7933_v10 = vld [vmem:[#allocation67_spill] sm:$0xff]  ;;  %v7935_v31 = vld [vmem:[#allocation60_spill] sm:$0xff] }
 0x369   : > { %4369 = vtanh.f32 %v2049_v59  ;;  %v2050_v22 = vmul.f32 0.7978846, %v1922_v52  ;;  %v2402_v12 = vmul.f32 0.5, %v2274_v36  ;;  %v2276_v16 = vadd.f32 1.0, %v6506_v53  ;;  %v7936_v59 = vld [vmem:[#allocation87_spill] sm:$0xff]  ;;  %v7937_v55 = vld [vmem:[#allocation62_spill] sm:$0xff] }
 0x36a   : > { %4371 = vtanh.f32 %v2051_v63  ;;  %v2052_v54 = vmul.f32 0.7978846, %v1924_v17  ;;  %v2526_v5 = vmul.f32 %v2398_v49, %v6344_v18  ;;  %v2400_v45 = vmul.f32 0.5, %v2272_v51  ;;  %v7938_v17 = vld [vmem:[#allocation39_spill] sm:$0xff] }
 0x36b   : > { %4373 = vtanh.f32 %v2050_v22  ;;  %v2269_v32 = vadd.f32 1.0, %v7932_v4  ;;  %v2530_v26 = vmul.f32 %v2402_v12, %v7933_v10  ;;  %v2404_v1 = vmul.f32 0.5, %v2276_v16  ;;  %v7939_v22 = vld [vmem:[#allocation31_spill] sm:$0xff] }
 0x36c   : > { %4375 = vtanh.f32 %v2052_v54  ;;  %v2273_v14 = vadd.f32 1.0, %v7934_v8  ;;  %v2528_v20 = vmul.f32 %v2400_v45, %v7935_v31  ;;  %v2271_v52 = vadd.f32 1.0, %v7936_v59  ;;  %v7942_v54 = vld [vmem:[#allocation40_spill] sm:$0xff]  ;;  %v7948_v59 = vld [vmem:[#allocation45_spill] sm:$0xff] }
 0x36d   : > { %v2397_v50 = vmul.f32 0.5, %v2269_v32  ;;  %v2275_v63 = vadd.f32 1.0, %v7937_v55  ;;  %v2626_v53 = vpack.c.bf16 %v2530_v26, %v2526_v5  ;;  %v2532_v36 = vmul.f32 %v2404_v1, %v7938_v17  ;;  %v7943_v45 = vld [vmem:[#allocation56_spill] sm:$0xff]  ;;  %v7949_v55 = vld [vmem:[#allocation38_spill] sm:$0xff] }
 0x36e   : > { %v2401_v18 = vmul.f32 0.5, %v2273_v14  ;;  %v6856_v49 = vadd.f32 %v7939_v22, %v5564_v56  ;;  %v6858_v51 = vpop.eup %4361  ;;  %v2399_v16 = vmul.f32 0.5, %v2271_v52  ;;  %v6863_v32 = vadd.f32 %v7943_v45, %v5566_v39  ;;  %v7946_v26 = vld [vmem:[#allocation48_spill] sm:$0xff]  ;;  %v7947_v14 = vld [vmem:[#allocation35_spill] sm:$0xff] }
 0x36f   : > { %7941 = vst [vmem:[#allocation41_spill] sm:$0xff] %v6858_v51  ;;  %v2525_v12 = vmul.f32 %v2397_v50, %v7942_v54  ;;  %v2403_v4 = vmul.f32 0.5, %v2275_v63  ;;  %v6865_v10 = vpop.eup %4363  ;;  %3012 = vmatprep.mubr.bf16.mxu0 %v2626_v53  ;;  %v2628_v5 = vpack.c.bf16 %v2532_v36, %v2528_v20  ;;  %v6872_v31 = vadd.f32 %v7947_v14, %v5568_v0  ;;  %v7950_v20 = vld [vmem:[#allocation57_spill] sm:$0xff] }
 0x370   : > { %7940 = vst [vmem:[#allocation37_spill] sm:$0xff] %v6856_v49  ;;  %7944 = vst [vmem:[#allocation43_spill] sm:$0xff] %v6863_v32  ;;  %v2529_v1 = vmul.f32 %v2401_v18, %v7946_v26  ;;  %v1541_v8 = vmul.f32 %v6856_v49, %v6856_v49  ;;  %v6874_v50 = vpop.eup %4365  ;;  %v2527_v52 = vmul.f32 %v2399_v16, %v7948_v59  ;;  %v7951_v16 = vld [vmem:[#allocation113_spill] sm:$0xff] }
 0x371   : > { %7945 = vst [vmem:[#allocation32_spill] sm:$0xff] %v6865_v10  ;;  %v2531_v63 = vmul.f32 %v2403_v4, %v7949_v55  ;;  %v1543_v17 = vmul.f32 %v6863_v32, %v6863_v32  ;;  %v6882_v53 = vadd.f32 %v7950_v20, %v5570_v38  ;;  %v6884_v36 = vpop.eup %4367  ;;  %3173 = vmatprep.mubr.bf16.mxu1 %v2628_v5  ;;  %v7953_v5 = vld [vmem:[#allocation61_spill] sm:$0xff] }
 0x372   : > { %v2625_v18 = vpack.c.bf16 %v2529_v1, %v2525_v12  ;;  %v1669_v22 = vmul.f32 %v1541_v8, %v6856_v49  ;;  %v1542_v54 = vmul.f32 %v6872_v31, %v6872_v31  ;;  %v6891_v45 = vadd.f32 %v7951_v16, %v5564_v56 }
 0x373   : > { %v6893_v4 = vpop.eup %4369  ;;  %v2627_v26 = vpack.c.bf16 %v2531_v63, %v2527_v52  ;;  %v1671_v14 = vmul.f32 %v1543_v17, %v6863_v32  ;;  %v1544_v59 = vmul.f32 %v6882_v53, %v6882_v53  ;;  %v6900_v12 = vadd.f32 %v7953_v5, %v5566_v39  ;;  %v7955_v52 = vld [vmem:[#allocation114_spill] sm:$0xff] }
 0x374   : > { %7952 = vst [vmem:[#allocation105_spill] sm:$0xff] %v6893_v4  ;;  %v6902_v1 = vpop.eup %4371  ;;  %3013 = vmatmul.mubr.bf16.gmra.mrb[92].mxu0 %v2625_v18  ;;  %v1797_v8 = vmul.f32 0.044715, %v1669_v22  ;;  %v1670_v55 = vmul.f32 %v1542_v54, %v6872_v31  ;;  %v1545_v20 = vmul.f32 %v6891_v45, %v6891_v45  ;;  %v6909_v63 = vadd.f32 %v7955_v52, %v5568_v0  ;;  %v7956_v18 = vld [vmem:[#allocation115_spill] sm:$0xff] }
 0x375   : > { %7954 = vst [vmem:[#allocation36_spill] sm:$0xff] %v6902_v1  ;;  %v6911_v17 = vpop.eup %4373  ;;  %3174 = vmatmul.mubr.bf16.gmra.mrb[92].mxu1 %v2627_v26  ;;  %v1799_v16 = vmul.f32 0.044715, %v1671_v14  ;;  %v1672_v5 = vmul.f32 %v1544_v59, %v6882_v53  ;;  %v1547_v6 = vmul.f32 %v6900_v12, %v6900_v12  ;;  %v6918_v22 = vadd.f32 %v7956_v18, %v5570_v38 }
 0x376   : > { %v6920_v54 = vpop.eup %4375  ;;  %v1925_v42 = vadd.f32 %v1797_v8, %v6856_v49  ;;  %v1798_v19 = vmul.f32 0.044715, %v1670_v55  ;;  %v1673_v52 = vmul.f32 %v1545_v20, %v6891_v45  ;;  %v1546_v26 = vmul.f32 %v6909_v63, %v6909_v63 }
 0x377   : > { %v1927_v14 = vadd.f32 %v1799_v16, %v6863_v32  ;;  %v1800_v59 = vmul.f32 0.044715, %v1672_v5  ;;  %v1675_v1 = vmul.f32 %v1547_v6, %v6900_v12  ;;  %v1548_v10 = vmul.f32 %v6918_v22, %v6918_v22 }
 0x378   : > { %v2053_v18 = vmul.f32 0.7978846, %v1925_v42  ;;  %v1926_v34 = vadd.f32 %v1798_v19, %v6872_v31  ;;  %v1801_v4 = vmul.f32 0.044715, %v1673_v52  ;;  %v1674_v8 = vmul.f32 %v1546_v26, %v6909_v63 }
 0x379   : > { %v2055_v55 = vmul.f32 0.7978846, %v1927_v14  ;;  %v1928_v20 = vadd.f32 %v1800_v59, %v6882_v53  ;;  %v1803_v49 = vmul.f32 0.044715, %v1675_v1  ;;  %v1676_v13 = vmul.f32 %v1548_v10, %v6918_v22 }
 0x37a   : > { %4377 = vtanh.f32 %v2053_v18  ;;  %v2054_v16 = vmul.f32 0.7978846, %v1926_v34  ;;  %v1929_v5 = vadd.f32 %v1801_v4, %v6891_v45  ;;  %v1802_v6 = vmul.f32 0.044715, %v1674_v8 }
 0x37b   : > { %4379 = vtanh.f32 %v2055_v55  ;;  %v2056_v32 = vmul.f32 0.7978846, %v1928_v20  ;;  %v1931_v42 = vadd.f32 %v1803_v49, %v6900_v12  ;;  %v1804_v51 = vmul.f32 0.044715, %v1676_v13 }
 0x37c   : > { %4381 = vtanh.f32 %v2054_v16  ;;  %v2057_v19 = vmul.f32 0.7978846, %v1929_v5  ;;  %v1930_v52 = vadd.f32 %v1802_v6, %v6909_v63  ;;  %v2278_v26 = vadd.f32 1.0, %v6570_v43 }
 0x37d   : > { %4383 = vtanh.f32 %v2056_v32  ;;  %v2059_v1 = vmul.f32 0.7978846, %v1931_v42  ;;  %v1932_v10 = vadd.f32 %v1804_v51, %v6918_v22  ;;  %v2282_v34 = vadd.f32 1.0, %v6609_v37  ;;  %v7957_v42 = vld [vmem:[#allocation65_spill] sm:$0xff] }
 0x37e   : > { %4385 = vtanh.f32 %v2057_v19  ;;  %v2058_v4 = vmul.f32 0.7978846, %v1930_v52  ;;  %v2406_v14 = vmul.f32 0.5, %v2278_v26  ;;  %v2280_v59 = vadd.f32 1.0, %v6580_v46 }
 0x37f   : > { %4387 = vtanh.f32 %v2059_v1  ;;  %v2060_v49 = vmul.f32 0.7978846, %v1932_v10  ;;  %v2410_v13 = vmul.f32 0.5, %v2282_v34  ;;  %v2284_v18 = vadd.f32 1.0, %v6618_v47  ;;  %v7962_v34 = vld [vmem:[#allocation68_spill] sm:$0xff] }
 0x380   : > { %4389 = vtanh.f32 %v2058_v4  ;;  %v2534_v8 = vmul.f32 %v2406_v14, %v6456_v44  ;;  %v2408_v43 = vmul.f32 0.5, %v2280_v59  ;;  %v2277_v32 = vadd.f32 1.0, %v6554_v3  ;;  %v7963_v59 = vld [vmem:[#allocation59_spill] sm:$0xff] }
 0x381   : > { %4391 = vtanh.f32 %v2060_v49  ;;  %v2538_v51 = vmul.f32 %v2410_v13, %v6495_v2  ;;  %v2412_v37 = vmul.f32 0.5, %v2284_v18  ;;  %v2281_v55 = vadd.f32 1.0, %v6589_v40  ;;  %v7959_v2 = vld [vmem:[#allocation51_spill] sm:$0xff] }
 0x382   : > { %v2536_v20 = vmul.f32 %v2408_v43, %v6466_v24  ;;  %v2405_v46 = vmul.f32 0.5, %v2277_v32  ;;  %v2279_v16 = vadd.f32 1.0, %v6561_v27  ;;  %v2283_v5 = vadd.f32 1.0, %v6600_v41  ;;  %v7960_v24 = vld [vmem:[#allocation44_spill] sm:$0xff] }
 0x383   : > { %v2630_v47 = vpack.c.bf16 %v2538_v51, %v2534_v8  ;;  %v2540_v6 = vmul.f32 %v2412_v37, %v6504_v15  ;;  %v2409_v44 = vmul.f32 0.5, %v2281_v55  ;;  %v6952_v3 = vadd.f32 %v7957_v42, %v5564_v56  ;;  %v7964_v8 = vld [vmem:[#allocation69_spill] sm:$0xff]  ;;  %v7965_v55 = vld [vmem:[#allocation70_spill] sm:$0xff] }
 0x384   : > { %v6954_v19 = vpop.eup %4377  ;;  %v2533_v52 = vmul.f32 %v2405_v46, %v7959_v2  ;;  %v2407_v40 = vmul.f32 0.5, %v2279_v16  ;;  %v2411_v26 = vmul.f32 0.5, %v2283_v5  ;;  %v6959_v1 = vadd.f32 %v7960_v24, %v5566_v39 }
 0x385   : > { %7958 = vst [vmem:[#allocation106_spill] sm:$0xff] %v6952_v3  ;;  %v6961_v27 = vpop.eup %4379  ;;  %3020 = vmatprep.mubr.bf16.mxu0 %v2630_v47  ;;  %v2632_v41 = vpack.c.bf16 %v2540_v6, %v2536_v20  ;;  %v2537_v15 = vmul.f32 %v2409_v44, %v6475_v30  ;;  %v1549_v10 = vmul.f32 %v6952_v3, %v6952_v3  ;;  %v7967_v47 = vld [vmem:[#allocation71_spill] sm:$0xff] }
 0x386   : > { %7961 = vst [vmem:[#allocation42_spill] sm:$0xff] %v6959_v1  ;;  %v6968_v4 = vadd.f32 %v7962_v34, %v5568_v0  ;;  %v6970_v14 = vpop.eup %4381  ;;  %v2535_v49 = vmul.f32 %v2407_v40, %v7963_v59  ;;  %v2539_v13 = vmul.f32 %v2411_v26, %v6484_v62  ;;  %v1551_v18 = vmul.f32 %v6959_v1, %v6959_v1  ;;  %v7969_v40 = vld [vmem:[#allocation72_spill] sm:$0xff] }
 0x387   : > { %v6978_v43 = vadd.f32 %v7964_v8, %v5570_v38  ;;  %v6980_v30 = vpop.eup %4383  ;;  %3181 = vmatprep.mubr.bf16.mxu1 %v2632_v41  ;;  %v2629_v32 = vpack.c.bf16 %v2537_v15, %v2533_v52  ;;  %v1677_v51 = vmul.f32 %v1549_v10, %v6952_v3  ;;  %v6987_v20 = vadd.f32 %v7965_v55, %v5564_v56  ;;  %v7970_v34 = vld [vmem:[#allocation116_spill] sm:$0xff] }
 0x388   : > { %v1550_v37 = vmul.f32 %v6968_v4, %v6968_v4  ;;  %v6989_v62 = vpop.eup %4385  ;;  %v2631_v46 = vpack.c.bf16 %v2539_v13, %v2535_v49  ;;  %v1679_v16 = vmul.f32 %v1551_v18, %v6959_v1  ;;  %v6996_v6 = vadd.f32 %v7967_v47, %v5566_v39 }
 0x389   : > { %7966 = vst [vmem:[#allocation107_spill] sm:$0xff] %v6987_v20  ;;  %v1552_v5 = vmul.f32 %v6978_v43, %v6978_v43  ;;  %v6998_v44 = vpop.eup %4387  ;;  %3021 = vmatmul.mubr.bf16.gmra.mrb[96].mxu0 %v2629_v32  ;;  %v1805_v42 = vmul.f32 0.044715, %v1677_v51  ;;  %v1553_v52 = vmul.f32 %v6987_v20, %v6987_v20  ;;  %v7005_v26 = vadd.f32 %v7969_v40, %v5568_v0 }
 0x38a   : > { %7968 = vst [vmem:[#allocation33_spill] sm:$0xff] %v6996_v6  ;;  %v1678_v2 = vmul.f32 %v1550_v37, %v6968_v4  ;;  %v7007_v24 = vpop.eup %4389  ;;  %3182 = vmatmul.mubr.bf16.gmra.mrb[96].mxu1 %v2631_v46  ;;  %v1807_v41 = vmul.f32 0.044715, %v1679_v16  ;;  %v1555_v10 = vmul.f32 %v6996_v6, %v6996_v6  ;;  %v7014_v59 = vadd.f32 %v7970_v34, %v5570_v38 }
 0x38b   : > { %v1680_v15 = vmul.f32 %v1552_v5, %v6978_v43  ;;  %v7016_v49 = vpop.eup %4391  ;;  %v1933_v13 = vadd.f32 %v1805_v42, %v6952_v3  ;;  %v1681_v8 = vmul.f32 %v1553_v52, %v6987_v20  ;;  %v1554_v32 = vmul.f32 %v7005_v26, %v7005_v26 }
 0x38c   : > { %7971 = vst [vmem:[#allocation47_spill] sm:$0xff] %v7014_v59  ;;  %v1806_v18 = vmul.f32 0.044715, %v1678_v2  ;;  %v1935_v51 = vadd.f32 %v1807_v41, %v6959_v1  ;;  %v1683_v55 = vmul.f32 %v1555_v10, %v6996_v6  ;;  %v1556_v46 = vmul.f32 %v7014_v59, %v7014_v59 }
 0x38d   : > { %v1808_v37 = vmul.f32 0.044715, %v1680_v15  ;;  %v2061_v16 = vmul.f32 0.7978846, %v1933_v13  ;;  %v1809_v47 = vmul.f32 0.044715, %v1681_v8  ;;  %v1682_v42 = vmul.f32 %v1554_v32, %v7005_v26 }
 0x38e   : > { %v1934_v5 = vadd.f32 %v1806_v18, %v6968_v4  ;;  %v2063_v2 = vmul.f32 0.7978846, %v1935_v51  ;;  %v1811_v40 = vmul.f32 0.044715, %v1683_v55  ;;  %v1684_v34 = vmul.f32 %v1556_v46, %v7014_v59 }
 0x38f   : > { %v1936_v52 = vadd.f32 %v1808_v37, %v6978_v43  ;;  %4393 = vtanh.f32 %v2061_v16  ;;  %v1937_v15 = vadd.f32 %v1809_v47, %v6987_v20  ;;  %v1810_v10 = vmul.f32 0.044715, %v1682_v42 }
 0x390   : > { %v2062_v41 = vmul.f32 0.7978846, %v1934_v5  ;;  %4395 = vtanh.f32 %v2063_v2  ;;  %v1939_v13 = vadd.f32 %v1811_v40, %v6996_v6  ;;  %v1812_v3 = vmul.f32 0.044715, %v1684_v34 }
 0x391   : > { %v2064_v1 = vmul.f32 0.7978846, %v1936_v52  ;;  %v2065_v18 = vmul.f32 0.7978846, %v1937_v15  ;;  %v1938_v8 = vadd.f32 %v1810_v10, %v7005_v26  ;;  %v2286_v32 = vadd.f32 1.0, %v6682_v57  ;;  %v7972_v15 = vld [vmem:[#allocation97_spill] sm:$0xff] }
 0x392   : > { %4397 = vtanh.f32 %v2062_v41  ;;  %v2067_v51 = vmul.f32 0.7978846, %v1939_v13  ;;  %v1940_v37 = vadd.f32 %v1812_v3, %v7014_v59  ;;  %v2290_v55 = vadd.f32 1.0, %v6719_v58  ;;  %v7973_v13 = vld [vmem:[#allocation73_spill] sm:$0xff] }
 0x393   : > { %4399 = vtanh.f32 %v2064_v1  ;;  %v2066_v46 = vmul.f32 0.7978846, %v1938_v8  ;;  %v2414_v16 = vmul.f32 0.5, %v2286_v32  ;;  %v2288_v5 = vadd.f32 1.0, %v6692_v60  ;;  %v7974_v8 = vld [vmem:[#allocation79_spill] sm:$0xff] }
 0x394   : > { %4401 = vtanh.f32 %v2065_v18  ;;  %v2068_v47 = vmul.f32 0.7978846, %v1940_v37  ;;  %v2418_v42 = vmul.f32 0.5, %v2290_v55  ;;  %v2292_v2 = vadd.f32 1.0, %v6728_v23 }
 0x395   : > { %4403 = vtanh.f32 %v2067_v51  ;;  %v2542_v52 = vmul.f32 %v2414_v16, %v6568_v25  ;;  %v2416_v57 = vmul.f32 0.5, %v2288_v5  ;;  %v2285_v1 = vadd.f32 1.0, %v6666_v33  ;;  %v7979_v16 = vld [vmem:[#allocation84_spill] sm:$0xff] }
 0x396   : > { %4405 = vtanh.f32 %v2066_v46  ;;  %v2546_v3 = vmul.f32 %v2418_v42, %v6607_v11  ;;  %v2420_v58 = vmul.f32 0.5, %v2292_v2  ;;  %v2289_v40 = vadd.f32 1.0, %v6701_v48  ;;  %v7976_v11 = vld [vmem:[#allocation82_spill] sm:$0xff]  ;;  %v7980_v42 = vld [vmem:[#allocation49_spill] sm:$0xff] }
 0x397   : > { %4407 = vtanh.f32 %v2068_v47  ;;  %v2544_v34 = vmul.f32 %v2416_v57, %v6578_v28  ;;  %v2413_v60 = vmul.f32 0.5, %v2285_v1  ;;  %v2287_v41 = vadd.f32 1.0, %v6673_v35  ;;  %v7977_v28 = vld [vmem:[#allocation77_spill] sm:$0xff]  ;;  %v7981_v57 = vld [vmem:[#allocation83_spill] sm:$0xff] }
 0x398   : > { %v2291_v10 = vadd.f32 1.0, %v7972_v15  ;;  %v2634_v23 = vpack.c.bf16 %v2546_v3, %v2542_v52  ;;  %v2548_v18 = vmul.f32 %v2420_v58, %v7973_v13  ;;  %v2417_v25 = vmul.f32 0.5, %v2289_v40  ;;  %v7982_v3 = vld [vmem:[#allocation85_spill] sm:$0xff] }
 0x399   : > { %v7048_v33 = vadd.f32 %v7974_v8, %v5564_v56  ;;  %v7050_v32 = vpop.eup %4393  ;;  %v2541_v51 = vmul.f32 %v2413_v60, %v7976_v11  ;;  %v2415_v48 = vmul.f32 0.5, %v2287_v41  ;;  %v7055_v55 = vadd.f32 %v7977_v28, %v5566_v39  ;;  %v7985_v13 = vld [vmem:[#allocation53_spill] sm:$0xff] }
 0x39a   : > { %v2419_v37 = vmul.f32 0.5, %v2291_v10  ;;  %v7057_v35 = vpop.eup %4395  ;;  %3028 = vmatprep.mubr.bf16.mxu0 %v2634_v23  ;;  %v2636_v46 = vpack.c.bf16 %v2548_v18, %v2544_v34  ;;  %v2545_v5 = vmul.f32 %v2417_v25, %v7979_v16  ;;  %v7064_v2 = vadd.f32 %v7980_v42, %v5568_v0  ;;  %v7983_v34 = vld [vmem:[#allocation78_spill] sm:$0xff] }
 0x39b   : > { %7975 = vst [vmem:[#allocation108_spill] sm:$0xff] %v7048_v33  ;;  %7978 = vst [vmem:[#allocation109_spill] sm:$0xff] %v7055_v55  ;;  %v1557_v47 = vmul.f32 %v7048_v33, %v7048_v33  ;;  %v2543_v1 = vmul.f32 %v2415_v48, %v7981_v57  ;;  %v1559_v40 = vmul.f32 %v7055_v55, %v7055_v55 }
 0x39c   : > { %v7066_v52 = vpop.eup %4397  ;;  %v2547_v58 = vmul.f32 %v2419_v37, %v7982_v3  ;;  %v7074_v60 = vadd.f32 %v7983_v34, %v5570_v38  ;;  %3189 = vmatprep.mubr.bf16.mxu1 %v2636_v46  ;;  %v2633_v15 = vpack.c.bf16 %v2545_v5, %v2541_v51  ;;  %v1558_v23 = vmul.f32 %v7064_v2, %v7064_v2  ;;  %v7987_v37 = vld [vmem:[#allocation81_spill] sm:$0xff] }
 0x39d   : > { %v7076_v41 = vpop.eup %4399  ;;  %v1685_v10 = vmul.f32 %v1557_v47, %v7048_v33  ;;  %v7083_v18 = vadd.f32 %v7985_v13, %v5564_v56  ;;  %v1687_v11 = vmul.f32 %v1559_v40, %v7055_v55  ;;  %v7092_v51 = vadd.f32 %v7987_v37, %v5566_v39  ;;  %v7990_v47 = vld [vmem:[#allocation50_spill] sm:$0xff] }
 0x39e   : > { %7984 = vst [vmem:[#allocation110_spill] sm:$0xff] %v7074_v60  ;;  %v7085_v25 = vpop.eup %4401  ;;  %v2635_v8 = vpack.c.bf16 %v2547_v58, %v2543_v1  ;;  %v1560_v48 = vmul.f32 %v7074_v60, %v7074_v60  ;;  %3029 = vmatmul.mubr.bf16.gmra.mrb[100].mxu0 %v2633_v15  ;;  %v1686_v16 = vmul.f32 %v1558_v23, %v7064_v2  ;;  %v7991_v40 = vld [vmem:[#allocation58_spill] sm:$0xff] }
 0x39f   : > { %7986 = vst [vmem:[#allocation111_spill] sm:$0xff] %v7083_v18  ;;  %7988 = vst [vmem:[#allocation112_spill] sm:$0xff] %v7092_v51  ;;  %v7094_v28 = vpop.eup %4403  ;;  %v1813_v46 = vmul.f32 0.044715, %v1685_v10  ;;  %v1561_v5 = vmul.f32 %v7083_v18, %v7083_v18  ;;  %v7101_v42 = vadd.f32 %v7990_v47, %v5568_v0  ;;  %v1815_v1 = vmul.f32 0.044715, %v1687_v11 }
 0x3a0   : > { %7989 = vst [vmem:[#allocation76_spill] sm:$0xff] %v7094_v28  ;;  %v7103_v57 = vpop.eup %4405  ;;  %3190 = vmatmul.mubr.bf16.gmra.mrb[100].mxu1 %v2635_v8  ;;  %v1688_v3 = vmul.f32 %v1560_v48, %v7074_v60  ;;  %v1563_v58 = vmul.f32 %v7092_v51, %v7092_v51  ;;  %v7110_v34 = vadd.f32 %v7991_v40, %v5570_v38  ;;  %v1814_v23 = vmul.f32 0.044715, %v1686_v16 }
 0x3a1   : > { %v7112_v15 = vpop.eup %4407  ;;  %v1941_v10 = vadd.f32 %v1813_v46, %v7048_v33  ;;  %v1689_v13 = vmul.f32 %v1561_v5, %v7083_v18  ;;  %v1562_v8 = vmul.f32 %v7101_v42, %v7101_v42  ;;  %v1943_v11 = vadd.f32 %v1815_v1, %v7055_v55 }
 0x3a2   : > { %7992 = vst [vmem:[#allocation67_spill] sm:$0xff] %v7110_v34  ;;  %v1816_v48 = vmul.f32 0.044715, %v1688_v3  ;;  %v1691_v37 = vmul.f32 %v1563_v58, %v7092_v51  ;;  %v1564_v47 = vmul.f32 %v7110_v34, %v7110_v34  ;;  %v1942_v6 = vadd.f32 %v1814_v23, %v7064_v2 }
 0x3a3   : > { %v2069_v40 = vmul.f32 0.7978846, %v1941_v10  ;;  %v1817_v20 = vmul.f32 0.044715, %v1689_v13  ;;  %v1690_v46 = vmul.f32 %v1562_v8, %v7101_v42  ;;  %v2071_v16 = vmul.f32 0.7978846, %v1943_v11 }
 0x3a4   : > { %v1944_v5 = vadd.f32 %v1816_v48, %v7074_v60  ;;  %v1819_v33 = vmul.f32 0.044715, %v1691_v37  ;;  %v1692_v59 = vmul.f32 %v1564_v47, %v7110_v34  ;;  %v2070_v1 = vmul.f32 0.7978846, %v1942_v6 }
 0x3a5   : > { %4409 = vtanh.f32 %v2069_v40  ;;  %v1945_v3 = vadd.f32 %v1817_v20, %v7083_v18  ;;  %v1818_v58 = vmul.f32 0.044715, %v1690_v46  ;;  %v2294_v8 = vadd.f32 1.0, %v6778_v7  ;;  %v7993_v46 = vld [vmem:[#allocation54_spill] sm:$0xff] }
 0x3a6   : > { %4411 = vtanh.f32 %v2071_v16  ;;  %v2072_v55 = vmul.f32 0.7978846, %v1944_v5  ;;  %v1947_v10 = vadd.f32 %v1819_v33, %v7092_v51  ;;  %v1820_v28 = vmul.f32 0.044715, %v1692_v59 }
 0x3a7   : > { %4413 = vtanh.f32 %v2070_v1  ;;  %v2073_v23 = vmul.f32 0.7978846, %v1945_v3  ;;  %v1946_v13 = vadd.f32 %v1818_v58, %v7101_v42  ;;  %v2298_v6 = vadd.f32 1.0, %v6815_v29  ;;  %v7996_v3 = vld [vmem:[#allocation104_spill] sm:$0xff] }
 0x3a8   : > { %4415 = vtanh.f32 %v2072_v55  ;;  %v2075_v11 = vmul.f32 0.7978846, %v1947_v10  ;;  %v1948_v48 = vadd.f32 %v1820_v28, %v7110_v34  ;;  %v2422_v37 = vmul.f32 0.5, %v2294_v8  ;;  %v7994_v55 = vld [vmem:[#allocation95_spill] sm:$0xff]  ;;  %v7995_v28 = vld [vmem:[#allocation94_spill] sm:$0xff] }
 0x3a9   : > { %4417 = vtanh.f32 %v2073_v23  ;;  %v2074_v20 = vmul.f32 0.7978846, %v1946_v13  ;;  %v2296_v47 = vadd.f32 1.0, %v6788_v61  ;;  %v2426_v59 = vmul.f32 0.5, %v2298_v6  ;;  %v7997_v10 = vld [vmem:[#allocation102_spill] sm:$0xff]  ;;  %v7998_v13 = vld [vmem:[#allocation100_spill] sm:$0xff] }
 0x3aa   : > { %4419 = vtanh.f32 %v2075_v11  ;;  %v2076_v33 = vmul.f32 0.7978846, %v1948_v48  ;;  %v2300_v40 = vadd.f32 1.0, %v6824_v9  ;;  %v2550_v16 = vmul.f32 %v2422_v37, %v7993_v46  ;;  %v7999_v11 = vld [vmem:[#allocation55_spill] sm:$0xff]  ;;  %v8000_v6 = vld [vmem:[#allocation98_spill] sm:$0xff] }
 0x3ab   : > { %4421 = vtanh.f32 %v2074_v20  ;;  %v2424_v7 = vmul.f32 0.5, %v2296_v47  ;;  %v2293_v5 = vadd.f32 1.0, %v7994_v55  ;;  %v2554_v1 = vmul.f32 %v2426_v59, %v7995_v28  ;;  %v8001_v47 = vld [vmem:[#allocation86_spill] sm:$0xff] }
 0x3ac   : > { %4423 = vtanh.f32 %v2076_v33  ;;  %v2428_v29 = vmul.f32 0.5, %v2300_v40  ;;  %v2297_v58 = vadd.f32 1.0, %v7996_v3  ;;  %v2295_v8 = vadd.f32 1.0, %v7998_v13  ;;  %v8003_v59 = vld [vmem:[#allocation90_spill] sm:$0xff] }
 0x3ad   : > { %v2552_v23 = vmul.f32 %v2424_v7, %v7997_v10  ;;  %v2421_v61 = vmul.f32 0.5, %v2293_v5  ;;  %v2299_v48 = vadd.f32 1.0, %v7999_v11  ;;  %v2638_v9 = vpack.c.bf16 %v2554_v1, %v2550_v16  ;;  %v8004_v7 = vld [vmem:[#allocation74_spill] sm:$0xff]  ;;  %v8007_v1 = vld [vmem:[#allocation96_spill] sm:$0xff]  ;;  %v8008_v10 = vld [vmem:[#allocation63_spill] sm:$0xff] }
 0x3ae   : > { %v2556_v20 = vmul.f32 %v2428_v29, %v8000_v6  ;;  %v2425_v37 = vmul.f32 0.5, %v2297_v58  ;;  %v7144_v46 = vadd.f32 %v8001_v47, %v5564_v56  ;;  %v2423_v55 = vmul.f32 0.5, %v2295_v8  ;;  %v8009_v8 = vld [vmem:[#allocation93_spill] sm:$0xff] }
 0x3af   : > { %v7146_v33 = vpop.eup %4409  ;;  %v2549_v40 = vmul.f32 %v2421_v61, %v8003_v59  ;;  %v2427_v28 = vmul.f32 0.5, %v2299_v48  ;;  %v7151_v5 = vadd.f32 %v8004_v7, %v5566_v39  ;;  %3036 = vmatprep.mubr.bf16.mxu0 %v2638_v9  ;;  %v7160_v13 = vadd.f32 %v8008_v10, %v5568_v0  ;;  %v8010_v48 = vld [vmem:[#allocation91_spill] sm:$0xff] }
 0x3b0   : > { %8002 = vst [vmem:[#allocation52_spill] sm:$0xff] %v7144_v46  ;;  %v7153_v3 = vpop.eup %4411  ;;  %v2640_v16 = vpack.c.bf16 %v2556_v20, %v2552_v23  ;;  %v2553_v29 = vmul.f32 %v2425_v37, %v8007_v1  ;;  %v1565_v58 = vmul.f32 %v7144_v46, %v7144_v46  ;;  %v2551_v11 = vmul.f32 %v2423_v55, %v8009_v8  ;;  %v8011_v23 = vld [vmem:[#allocation75_spill] sm:$0xff]  ;;  %v8012_v55 = vld [vmem:[#allocation66_spill] sm:$0xff] }
 0x3b1   : > { %8005 = vst [vmem:[#allocation60_spill] sm:$0xff] %v7151_v5  ;;  %8006 = vst [vmem:[#allocation87_spill] sm:$0xff] %v7153_v3  ;;  %v7162_v61 = vpop.eup %4413  ;;  %v2555_v6 = vmul.f32 %v2427_v28, %v8010_v48  ;;  %v1567_v47 = vmul.f32 %v7151_v5, %v7151_v5  ;;  %v7170_v9 = vadd.f32 %v8011_v23, %v5570_v38 }
 0x3b2   : > { %v7172_v20 = vpop.eup %4415  ;;  %3197 = vmatprep.mubr.bf16.mxu1 %v2640_v16  ;;  %v2637_v37 = vpack.c.bf16 %v2553_v29, %v2549_v40  ;;  %v1693_v59 = vmul.f32 %v1565_v58, %v7144_v46  ;;  %v1566_v7 = vmul.f32 %v7160_v13, %v7160_v13  ;;  %v7179_v1 = vadd.f32 %v8012_v55, %v5564_v56  ;;  %v8013_v16 = vld [vmem:[#allocation80_spill] sm:$0xff]  ;;  %v7190_v29 = vpop.f32.mrb[64].mxu0 }
 0x3b3   : > { %v7181_v28 = vpop.eup %4417  ;;  %v2639_v10 = vpack.c.bf16 %v2555_v6, %v2551_v11  ;;  %v1695_v8 = vmul.f32 %v1567_v47, %v7151_v5  ;;  %v1568_v48 = vmul.f32 %v7170_v9, %v7170_v9  ;;  %v7188_v40 = vadd.f32 %v8013_v16, %v5566_v39  ;;  %8014 = vst [vmem:[#allocation62_spill] sm:$0xff] %v7190_v29  ;;  %v8016_v6 = vld [vmem:[#allocation88_spill] sm:$0xff]  ;;  %v7201_v55 = vpop.f32.mrb[65].mxu0 }
 0x3b4   : > { %v7192_v58 = vpop.eup %4419  ;;  %3037 = vmatmul.mubr.bf16.gmra.mrb[104].mxu0 %v2637_v37  ;;  %v1821_v23 = vmul.f32 0.044715, %v1693_v59  ;;  %v1694_v56 = vmul.f32 %v1566_v7, %v7160_v13  ;;  %v1569_v11 = vmul.f32 %v7179_v1, %v7179_v1  ;;  %v7199_v47 = vadd.f32 %v8016_v6, %v5568_v0  ;;  %8017 = vst [vmem:[#allocation31_spill] sm:$0xff] %v7201_v55  ;;  %v8018_v59 = vld [vmem:[#allocation89_spill] sm:$0xff]  ;;  %v7212_v29 = vpop.f32.mrb[66].mxu0 }
 0x3b5   : > { %8015 = vst [vmem:[#allocation39_spill] sm:$0xff] %v7192_v58  ;;  %v7203_v51 = vpop.eup %4421  ;;  %3198 = vmatmul.mubr.bf16.gmra.mrb[104].mxu1 %v2639_v10  ;;  %v1823_v39 = vmul.f32 0.044715, %v1695_v8  ;;  %v1696_v16 = vmul.f32 %v1568_v48, %v7170_v9  ;;  %v1571_v37 = vmul.f32 %v7188_v40, %v7188_v40  ;;  %v7210_v7 = vadd.f32 %v8018_v59, %v5570_v38  ;;  %v7220_v8 = vpop.f32.mrb[67].mxu0 }
 0x3b6   : > { %8019 = vst [vmem:[#allocation40_spill] sm:$0xff] %v7212_v29  ;;  %v7214_v18 = vpop.eup %4423  ;;  %v1949_v0 = vadd.f32 %v1821_v23, %v7144_v46  ;;  %v1822_v6 = vmul.f32 0.044715, %v1694_v56  ;;  %v1697_v55 = vmul.f32 %v1569_v11, %v7179_v1  ;;  %v1570_v10 = vmul.f32 %v7199_v47, %v7199_v47  ;;  %8020 = vst [vmem:[#allocation56_spill] sm:$0xff] %v7220_v8  ;;  %v7226_v29 = vpop.f32.mrb[64].mxu1 }
 0x3b7   : > { %v1951_v48 = vadd.f32 %v1823_v39, %v7151_v5  ;;  %v1824_v34 = vmul.f32 0.044715, %v1696_v16  ;;  %v1699_v38 = vmul.f32 %v1571_v37, %v7188_v40  ;;  %v1572_v59 = vmul.f32 %v7210_v7, %v7210_v7  ;;  %8021 = vst [vmem:[#allocation48_spill] sm:$0xff] %v7226_v29  ;;  %v7230_v46 = vpop.f32.mrb[65].mxu1 }
 0x3b8   : > { %v2077_v58 = vmul.f32 0.7978846, %v1949_v0  ;;  %v1950_v23 = vadd.f32 %v1822_v6, %v7160_v13  ;;  %v1825_v56 = vmul.f32 0.044715, %v1697_v55  ;;  %v1698_v11 = vmul.f32 %v1570_v10, %v7199_v47  ;;  %v7234_v37 = vpop.f32.mrb[66].mxu1 }
 0x3b9   : > { %v2079_v3 = vmul.f32 0.7978846, %v1951_v48  ;;  %v1952_v8 = vadd.f32 %v1824_v34, %v7170_v9  ;;  %v1827_v39 = vmul.f32 0.044715, %v1699_v38  ;;  %v1700_v16 = vmul.f32 %v1572_v59, %v7210_v7  ;;  %8022 = vst [vmem:[#allocation35_spill] sm:$0xff] %v7234_v37  ;;  %v7237_v60 = vpop.f32.mrb[67].mxu1 }
 0x3ba   : > { %4425 = vtanh.f32 %v2077_v58  ;;  %v2078_v5 = vmul.f32 0.7978846, %v1950_v23  ;;  %v1953_v29 = vadd.f32 %v1825_v56, %v7179_v1  ;;  %v1826_v0 = vmul.f32 0.044715, %v1698_v11  ;;  %8023 = vst [vmem:[#allocation45_spill] sm:$0xff] %v7237_v60 }
 0x3bb   : > { %4427 = vtanh.f32 %v2079_v3  ;;  %v2080_v55 = vmul.f32 0.7978846, %v1952_v8  ;;  %v1955_v6 = vadd.f32 %v1827_v39, %v7188_v40  ;;  %v1828_v10 = vmul.f32 0.044715, %v1700_v16  ;;  %v8024_v16 = vld [vmem:[#allocation41_spill] sm:$0xff] }
 0x3bc   : > { %4429 = vtanh.f32 %v2078_v5  ;;  %v2081_v48 = vmul.f32 0.7978846, %v1953_v29  ;;  %v1954_v34 = vadd.f32 %v1826_v0, %v7199_v47  ;;  %v2302_v38 = vadd.f32 1.0, %v6874_v50 }
 0x3bd   : > { %4431 = vtanh.f32 %v2080_v55  ;;  %v2083_v59 = vmul.f32 0.7978846, %v1955_v6  ;;  %v1956_v58 = vadd.f32 %v1828_v10, %v7210_v7  ;;  %v2306_v23 = vadd.f32 1.0, %v6911_v17  ;;  %v8025_v55 = vld [vmem:[#allocation34_spill] sm:$0xff]  ;;  %v8026_v10 = vld [vmem:[#allocation105_spill] sm:$0xff] }
 0x3be   : > { %4433 = vtanh.f32 %v2081_v48  ;;  %v2082_v56 = vmul.f32 0.7978846, %v1954_v34  ;;  %v2430_v11 = vmul.f32 0.5, %v2302_v38  ;;  %v2304_v3 = vadd.f32 1.0, %v6884_v36  ;;  %v8027_v34 = vld [vmem:[#allocation101_spill] sm:$0xff] }
 0x3bf   : > { %4435 = vtanh.f32 %v2083_v59  ;;  %v2084_v8 = vmul.f32 0.7978846, %v1956_v58  ;;  %v2434_v39 = vmul.f32 0.5, %v2306_v23  ;;  %v2308_v5 = vadd.f32 1.0, %v6920_v54  ;;  %v8028_v59 = vld [vmem:[#allocation32_spill] sm:$0xff] }
 0x3c0   : > { %4437 = vtanh.f32 %v2082_v56  ;;  %v2558_v29 = vmul.f32 %v2430_v11, %v6776_v21  ;;  %v2432_v50 = vmul.f32 0.5, %v2304_v3  ;;  %v2301_v0 = vadd.f32 1.0, %v8024_v16  ;;  %v8029_v23 = vld [vmem:[#allocation36_spill] sm:$0xff] }
 0x3c1   : > { %4439 = vtanh.f32 %v2084_v8  ;;  %v2562_v6 = vmul.f32 %v2434_v39, %v8025_v55  ;;  %v2436_v17 = vmul.f32 0.5, %v2308_v5  ;;  %v2305_v48 = vadd.f32 1.0, %v8026_v10  ;;  %v8030_v56 = vld [vmem:[#allocation64_spill] sm:$0xff]  ;;  %v8032_v10 = vld [vmem:[#allocation103_spill] sm:$0xff] }
 0x3c2   : > { %v2560_v38 = vmul.f32 %v2432_v50, %v8027_v34  ;;  %v2429_v36 = vmul.f32 0.5, %v2301_v0  ;;  %v2303_v58 = vadd.f32 1.0, %v8028_v59  ;;  %v2307_v60 = vadd.f32 1.0, %v8029_v23  ;;  %v8031_v8 = vld [vmem:[#allocation92_spill] sm:$0xff]  ;;  %v8034_v59 = vld [vmem:[#allocation46_spill] sm:$0xff] }
 0x3c3   : > { %v2642_v54 = vpack.c.bf16 %v2562_v6, %v2558_v29  ;;  %v2564_v37 = vmul.f32 %v2436_v17, %v8030_v56  ;;  %v2433_v21 = vmul.f32 0.5, %v2305_v48  ;;  %v2310_v11 = vadd.f32 1.0, %v6970_v14  ;;  %v8033_v14 = vld [vmem:[#allocation99_spill] sm:$0xff] }
 0x3c4   : > { %v7255_v3 = vpop.eup %4425  ;;  %v2557_v39 = vmul.f32 %v2429_v36, %v8031_v8  ;;  %v2431_v5 = vmul.f32 0.5, %v2303_v58  ;;  %v2435_v16 = vmul.f32 0.5, %v2307_v60  ;;  %v2314_v55 = vadd.f32 1.0, %v7007_v24 }
 0x3c5   : > { %v7259_v50 = vpop.eup %4427  ;;  %3044 = vmatprep.mubr.bf16.mxu0 %v2642_v54  ;;  %v2644_v0 = vpack.c.bf16 %v2564_v37, %v2560_v38  ;;  %v2561_v34 = vmul.f32 %v2433_v21, %v8032_v10  ;;  %v2438_v29 = vmul.f32 0.5, %v2310_v11  ;;  %v2312_v6 = vadd.f32 1.0, %v6980_v30 }
 0x3c6   : > { %v7263_v17 = vpop.eup %4429  ;;  %v2559_v48 = vmul.f32 %v2431_v5, %v8033_v14  ;;  %v2563_v23 = vmul.f32 %v2435_v16, %v8034_v59  ;;  %v2442_v36 = vmul.f32 0.5, %v2314_v55  ;;  %v2316_v60 = vadd.f32 1.0, %v7016_v49 }
 0x3c7   : > { %v7268_v58 = vpop.eup %4431  ;;  %3205 = vmatprep.mubr.bf16.mxu1 %v2644_v0  ;;  %v2641_v24 = vpack.c.bf16 %v2561_v34, %v2557_v39  ;;  %v2566_v37 = vmul.f32 %v2438_v29, %v6872_v31  ;;  %v2440_v38 = vmul.f32 0.5, %v2312_v6  ;;  %v2309_v54 = vadd.f32 1.0, %v6954_v19  ;;  %v8035_v29 = vld [vmem:[#allocation37_spill] sm:$0xff] }
 0x3c8   : > { %v7272_v56 = vpop.eup %4433  ;;  %v2643_v30 = vpack.c.bf16 %v2563_v23, %v2559_v48  ;;  %v2570_v21 = vmul.f32 %v2442_v36, %v6909_v63  ;;  %v2444_v11 = vmul.f32 0.5, %v2316_v60  ;;  %v2313_v8 = vadd.f32 1.0, %v6989_v62  ;;  %v7285_v62 = vpop.f32.mrb[68].mxu0  ;;  %v8036_v60 = vld [vmem:[#allocation43_spill] sm:$0xff] }
 0x3c9   : > { %v7276_v5 = vpop.eup %4435  ;;  %3045 = vmatmul.mubr.bf16.gmra.mrb[108].mxu0 %v2641_v24  ;;  %v2568_v49 = vmul.f32 %v2440_v38, %v6882_v53  ;;  %v2437_v16 = vmul.f32 0.5, %v2309_v54  ;;  %v2311_v39 = vadd.f32 1.0, %v6961_v27  ;;  %v2315_v31 = vadd.f32 1.0, %v6998_v44  ;;  %v7291_v44 = vpop.f32.mrb[69].mxu0 }
 0x3ca   : > { %v7281_v55 = vpop.eup %4437  ;;  %3206 = vmatmul.mubr.bf16.gmra.mrb[108].mxu1 %v2643_v30  ;;  %v2646_v19 = vpack.c.bf16 %v2570_v21, %v2566_v37  ;;  %v2572_v0 = vmul.f32 %v2444_v11, %v6918_v22  ;;  %v2441_v63 = vmul.f32 0.5, %v2313_v8  ;;  %v2318_v10 = vadd.f32 1.0, %v7066_v52  ;;  %v7295_v52 = vpop.f32.mrb[68].mxu1 }
 0x3cb   : > { %v7287_v34 = vpop.eup %4439  ;;  %v2565_v53 = vmul.f32 %v2437_v16, %v8035_v29  ;;  %v2439_v6 = vmul.f32 0.5, %v2311_v39  ;;  %v2443_v14 = vmul.f32 0.5, %v2315_v31  ;;  %v2322_v27 = vadd.f32 1.0, %v7103_v57  ;;  %v7297_v36 = vpop.f32.mrb[70].mxu0 }
 0x3cc   : > { %3052 = vmatprep.mubr.bf16.mxu0 %v2646_v19  ;;  %v2648_v48 = vpack.c.bf16 %v2572_v0, %v2568_v49  ;;  %v2569_v59 = vmul.f32 %v2441_v63, %v6891_v45  ;;  %v2446_v22 = vmul.f32 0.5, %v2318_v10  ;;  %v2320_v23 = vadd.f32 1.0, %v7076_v41  ;;  %v7302_v54 = vpop.f32.mrb[69].mxu1  ;;  %v7304_v30 = vpop.f32.mrb[71].mxu0  ;;  %v8037_v63 = vld [vmem:[#allocation76_spill] sm:$0xff] }
 0x3cd   : > { %v2567_v24 = vmul.f32 %v2439_v6, %v8036_v60  ;;  %v2571_v37 = vmul.f32 %v2443_v14, %v6900_v12  ;;  %v2450_v38 = vmul.f32 0.5, %v2322_v27  ;;  %v2324_v57 = vadd.f32 1.0, %v7112_v15  ;;  %v7308_v8 = vpop.f32.mrb[70].mxu1  ;;  %v8041_v60 = vld [vmem:[#allocation42_spill] sm:$0xff] }
 0x3ce   : > { %3213 = vmatprep.mubr.bf16.mxu1 %v2648_v48  ;;  %v2645_v45 = vpack.c.bf16 %v2569_v59, %v2565_v53  ;;  %v2574_v21 = vmul.f32 %v2446_v22, %v6968_v4  ;;  %v2448_v41 = vmul.f32 0.5, %v2320_v23  ;;  %v2317_v11 = vadd.f32 1.0, %v7050_v32  ;;  %v7312_v15 = vpop.f32.mrb[71].mxu1  ;;  %v8038_v32 = vld [vmem:[#allocation47_spill] sm:$0xff] }
 0x3cf   : > { %v2647_v49 = vpack.c.bf16 %v2571_v37, %v2567_v24  ;;  %v2578_v16 = vmul.f32 %v2450_v38, %v7005_v26  ;;  %v2452_v12 = vmul.f32 0.5, %v2324_v57  ;;  %v2321_v39 = vadd.f32 1.0, %v7085_v25  ;;  %v8039_v26 = vld [vmem:[#allocation106_spill] sm:$0xff]  ;;  %v8040_v59 = vld [vmem:[#allocation107_spill] sm:$0xff]  ;;  %v8042_v37 = vld [vmem:[#allocation33_spill] sm:$0xff] }
 0x3d0   : > { %v2576_v31 = vmul.f32 %v2448_v41, %v6978_v43  ;;  %v2445_v19 = vmul.f32 0.5, %v2317_v11  ;;  %v2319_v0 = vadd.f32 1.0, %v7057_v35  ;;  %v2323_v4 = vadd.f32 1.0, %v8037_v63  ;;  %v8045_v63 = vld [vmem:[#allocation39_spill] sm:$0xff] }
 0x3d1   : > { %3053 = vmatmul.mubr.bf16.gmra.mrb[112].mxu0 %v2645_v45  ;;  %v2650_v10 = vpack.c.bf16 %v2578_v16, %v2574_v21  ;;  %v2580_v29 = vmul.f32 %v2452_v12, %v8038_v32  ;;  %v2449_v53 = vmul.f32 0.5, %v2321_v39  ;;  %v2326_v6 = vadd.f32 1.0, %v7162_v61  ;;  %v8043_v12 = vld [vmem:[#allocation110_spill] sm:$0xff] }
 0x3d2   : > { %3214 = vmatmul.mubr.bf16.gmra.mrb[112].mxu1 %v2647_v49  ;;  %v2573_v14 = vmul.f32 %v2445_v19, %v8039_v26  ;;  %v2447_v25 = vmul.f32 0.5, %v2319_v0  ;;  %v2451_v27 = vmul.f32 0.5, %v2323_v4  ;;  %v2330_v48 = vadd.f32 1.0, %v7203_v51  ;;  %v8044_v19 = vld [vmem:[#allocation87_spill] sm:$0xff] }
 0x3d3   : > { %3060 = vmatprep.mubr.bf16.mxu0 %v2650_v10  ;;  %v2652_v43 = vpack.c.bf16 %v2580_v29, %v2576_v31  ;;  %v2577_v35 = vmul.f32 %v2449_v53, %v8040_v59  ;;  %v2454_v22 = vmul.f32 0.5, %v2326_v6  ;;  %v2328_v23 = vadd.f32 1.0, %v7172_v20  ;;  %v8046_v10 = vld [vmem:[#allocation67_spill] sm:$0xff] }
 0x3d4   : > { %v2575_v24 = vmul.f32 %v2447_v25, %v8041_v60  ;;  %v2579_v38 = vmul.f32 %v2451_v27, %v8042_v37  ;;  %v2458_v57 = vmul.f32 0.5, %v2330_v48  ;;  %v2332_v61 = vadd.f32 1.0, %v7214_v18 }
 0x3d5   : > { %3221 = vmatprep.mubr.bf16.mxu1 %v2652_v43  ;;  %v2649_v45 = vpack.c.bf16 %v2577_v35, %v2573_v14  ;;  %v2582_v21 = vmul.f32 %v2454_v22, %v7064_v2  ;;  %v2456_v41 = vmul.f32 0.5, %v2328_v23  ;;  %v2325_v51 = vadd.f32 1.0, %v7146_v33  ;;  %v8047_v33 = vld [vmem:[#allocation108_spill] sm:$0xff]  ;;  %v8048_v14 = vld [vmem:[#allocation111_spill] sm:$0xff]  ;;  %v8049_v43 = vld [vmem:[#allocation109_spill] sm:$0xff] }
 0x3d6   : > { %v2651_v11 = vpack.c.bf16 %v2579_v38, %v2575_v24  ;;  %v2586_v49 = vmul.f32 %v2458_v57, %v7101_v42  ;;  %v2460_v16 = vmul.f32 0.5, %v2332_v61  ;;  %v2329_v20 = vadd.f32 1.0, %v7181_v28  ;;  %v8050_v35 = vld [vmem:[#allocation112_spill] sm:$0xff] }
 0x3d7   : > { %v2584_v39 = vmul.f32 %v2456_v41, %v8043_v12  ;;  %v2453_v31 = vmul.f32 0.5, %v2325_v51  ;;  %v2327_v0 = vadd.f32 1.0, %v8044_v19  ;;  %v2331_v18 = vadd.f32 1.0, %v8045_v63  ;;  %v7351_v51 = vld [vmem:[%s410_s6] ss:$0 sm:$0xff]  ;;  %v8053_v12 = vld [vmem:[#allocation52_spill] sm:$0xff] }
 0x3d8   : > { %v2654_v4 = vpack.c.bf16 %v2586_v49, %v2582_v21  ;;  %v2588_v32 = vmul.f32 %v2460_v16, %v8046_v10  ;;  %v2457_v2 = vmul.f32 0.5, %v2329_v20  ;;  %v2334_v29 = vadd.f32 1.0, %v7263_v17  ;;  %v8051_v49 = vld [vmem:[#allocation62_spill] sm:$0xff]  ;;  %v8052_v16 = vld [vmem:[#allocation31_spill] sm:$0xff] }
 0x3d9   : > { %3061 = vmatmul.mubr.bf16.gmra.mrb[116].mxu0 %v2649_v45  ;;  %v2581_v53 = vmul.f32 %v2453_v31, %v8047_v33  ;;  %v2455_v42 = vmul.f32 0.5, %v2327_v0  ;;  %v2459_v6 = vmul.f32 0.5, %v2331_v18  ;;  %v2338_v28 = vadd.f32 1.0, %v7281_v55  ;;  %v8054_v31 = vld [vmem:[#allocation48_spill] sm:$0xff] }
 0x3da   : > { %3222 = vmatmul.mubr.bf16.gmra.mrb[116].mxu1 %v2651_v11  ;;  %3068 = vmatprep.mubr.bf16.mxu0 %v2654_v4  ;;  %v2656_v26 = vpack.c.bf16 %v2588_v32, %v2584_v39  ;;  %v2585_v25 = vmul.f32 %v2457_v2, %v8048_v14  ;;  %v2462_v27 = vmul.f32 0.5, %v2334_v29  ;;  %v2336_v48 = vadd.f32 1.0, %v7268_v58  ;;  %v3709_v20 = vpop.f32.mrb[72].mxu0  ;;  %v8055_v18 = vld [vmem:[#allocation40_spill] sm:$0xff] }
 0x3db   : > { %v2583_v59 = vmul.f32 %v2455_v42, %v8049_v43  ;;  %v2587_v22 = vmul.f32 %v2459_v6, %v8050_v35  ;;  %v2466_v17 = vmul.f32 0.5, %v2338_v28  ;;  %v2340_v23 = vadd.f32 1.0, %v7287_v34  ;;  %v8056_v4 = vld [vmem:[#allocation56_spill] sm:$0xff]  ;;  %v8059_v42 = vld [vmem:[#allocation45_spill] sm:$0xff] }
 0x3dc   : > { %3229 = vmatprep.mubr.bf16.mxu1 %v2656_v26  ;;  %v2653_v60 = vpack.c.bf16 %v2585_v25, %v2581_v53  ;;  %v2590_v55 = vmul.f32 %v2462_v27, %v7160_v13  ;;  %v2464_v24 = vmul.f32 0.5, %v2336_v48  ;;  %v2333_v37 = vadd.f32 1.0, %v7255_v3  ;;  %v3821_v19 = vpop.f32.mrb[72].mxu1  ;;  %v8057_v29 = vld [vmem:[#allocation60_spill] sm:$0xff] }
 0x3dd   : > { %v2655_v38 = vpack.c.bf16 %v2587_v22, %v2583_v59  ;;  %v2594_v57 = vmul.f32 %v2466_v17, %v7199_v47  ;;  %v2468_v61 = vmul.f32 0.5, %v2340_v23  ;;  %v2337_v58 = vadd.f32 1.0, %v7272_v56  ;;  %v3822_v32 = vpop.f32.mrb[73].mxu1  ;;  %v4441_v22 = vld [vmem:[#allocation2] sm:$0xff] }
 0x3de   : > { %v2592_v45 = vmul.f32 %v2464_v24, %v7170_v9  ;;  %v2461_v21 = vmul.f32 0.5, %v2333_v37  ;;  %v2335_v41 = vadd.f32 1.0, %v7259_v50  ;;  %v2339_v34 = vadd.f32 1.0, %v7276_v5  ;;  %v3710_v5 = vpop.f32.mrb[73].mxu0  ;;  %v3824_v28 = vpop.f32.mrb[74].mxu1 }
 0x3df   : > { %v2658_v13 = vpack.c.bf16 %v2594_v57, %v2590_v55  ;;  %v2596_v11 = vmul.f32 %v2468_v61, %v7210_v7  ;;  %v2465_v3 = vmul.f32 0.5, %v2337_v58  ;;  %v3699_v47 = vadd.f32 %v8052_v16, %v8051_v49  ;;  %v3712_v2 = vpop.f32.mrb[74].mxu0  ;;  %v3825_v48 = vpop.f32.mrb[75].mxu1  ;;  %v4444_v58 = vld [vmem:[#allocation2 + $0x18] sm:$0xff] }
 0x3e0   : > { %v2589_v56 = vmul.f32 %v2461_v21, %v8053_v12  ;;  %v2463_v39 = vmul.f32 0.5, %v2335_v41  ;;  %v2467_v9 = vmul.f32 0.5, %v2339_v34  ;;  %v3811_v50 = vadd.f32 %v7230_v46, %v8054_v31  ;;  %v8058_v46 = vld [vmem:[#allocation35_spill] sm:$0xff]  ;;  %v3713_v26 = vpop.f32.mrb[75].mxu0  ;;  %v4445_v41 = vld [vmem:[#allocation2 + $0x20] sm:$0xff] }
 0x3e1   : > { %3069 = vmatmul.mubr.bf16.gmra.mrb[120].mxu0 %v2653_v60  ;;  %v2660_v0 = vpack.c.bf16 %v2596_v11, %v2592_v45  ;;  %v2593_v63 = vmul.f32 %v2465_v3, %v7179_v1  ;;  %v2959_v7 = vadd.f32 %v3699_v47, %v7351_v51  ;;  %v3702_v10 = vadd.f32 %v8056_v4, %v8055_v18 }
 0x3e2   : > { %3230 = vmatmul.mubr.bf16.gmra.mrb[120].mxu1 %v2655_v38  ;;  %3076 = vmatprep.mubr.bf16.mxu0 %v2658_v13  ;;  %v2591_v33 = vmul.f32 %v2463_v39, %v8057_v29  ;;  %v2595_v53 = vmul.f32 %v2467_v9, %v7188_v40  ;;  %v3814_v6 = vadd.f32 %v8059_v42, %v8058_v46  ;;  %v4442_v38 = vld [vmem:[#allocation2 + $0x8] sm:$0xff] }
 0x3e3   : > { %3237 = vmatprep.mubr.bf16.mxu1 %v2660_v0  ;;  %v2657_v1 = vpack.c.bf16 %v2593_v63, %v2589_v56  ;;  %v3120_v14 = vadd.f32 %v3811_v50, %v2959_v7  ;;  %v2962_v25 = vadd.f32 %v3702_v10, %v7351_v51  ;;  %v3705_v27 = vadd.f32 %v7291_v44, %v7285_v62  ;;  %v4446_v13 = vld [vmem:[#allocation2 + $0x28] sm:$0xff]  ;;  %v4447_v7 = vld [vmem:[#allocation2 + $0x30] sm:$0xff]  ;;  %v4448_v10 = vld [vmem:[#allocation2 + $0x38] sm:$0xff] }
 0x3e4   : > { %v2659_v43 = vpack.c.bf16 %v2595_v53, %v2591_v33  ;;  %v3817_v59 = vadd.f32 %v7302_v54, %v7295_v52  ;;  %v3708_v40 = vadd.f32 %v7304_v30, %v7297_v36  ;;  %v3820_v35 = vadd.f32 %v7312_v15, %v7308_v8  ;;  %v4443_v15 = vld [vmem:[#allocation2 + $0x10] sm:$0xff] }
 0x3e5   : > { %v3246_v17 = vadd.f32 %v4441_v22, %v3120_v14  ;;  %v3123_v23 = vadd.f32 %v3814_v6, %v2962_v25  ;;  %v2967_v60 = vadd.f32 %v3705_v27, %v7351_v51  ;;  %v3711_v55 = vadd.f32 %v3710_v5, %v3709_v20  ;;  %v4450_v22 = vld [vmem:[#allocation2 + $0x48] sm:$0xff] }
 0x3e6   : > { %v2970_v24 = vadd.f32 %v3708_v40, %v7351_v51  ;;  %v3823_v62 = vadd.f32 %v3822_v32, %v3821_v19  ;;  %v3714_v44 = vadd.f32 %v3713_v26, %v3712_v2  ;;  %v3826_v37 = vadd.f32 %v3825_v48, %v3824_v28 }
 0x3e7   : > { %3278 = vst [vmem:[#allocation2] sm:$0xff] %v3246_v17  ;;  %v3247_v52 = vadd.f32 %v4442_v38, %v3123_v23  ;;  %v3128_v54 = vadd.f32 %v3817_v59, %v2967_v60  ;;  %v2975_v36 = vadd.f32 %v3711_v55, %v7351_v51  ;;  %v4449_v59 = vld [vmem:[#allocation2 + $0x40] sm:$0xff] }
 0x3e8   : > { %v3131_v30 = vadd.f32 %v3820_v35, %v2970_v24  ;;  %v2978_v8 = vadd.f32 %v3714_v44, %v7351_v51 }
 0x3e9   : > { %3077 = vmatmul.mubr.bf16.gmra.mrb[124].mxu0 %v2657_v1  ;;  %3279 = vst [vmem:[#allocation2 + $0x8] sm:$0xff] %v3247_v52  ;;  %v3248_v57 = vadd.f32 %v4443_v15, %v3128_v54  ;;  %v3136_v61 = vadd.f32 %v3823_v62, %v2975_v36 }
 0x3ea   : > { %3238 = vmatmul.mubr.bf16.gmra.mrb[124].mxu1 %v2659_v43  ;;  %v3249_v45 = vadd.f32 %v4444_v58, %v3131_v30  ;;  %v3139_v21 = vadd.f32 %v3826_v37, %v2978_v8 }
 0x3eb   : > { %3280 = vst [vmem:[#allocation2 + $0x10] sm:$0xff] %v3248_v57  ;;  %v3250_v34 = vadd.f32 %v4445_v41, %v3136_v61  ;;  %v4451_v61 = vld [vmem:[#allocation2 + $0x50] sm:$0xff] }
 0x3ec   : > { %3281 = vst [vmem:[#allocation2 + $0x18] sm:$0xff] %v3249_v45  ;;  %v3251_v11 = vadd.f32 %v4446_v13, %v3139_v21  ;;  %v4452_v21 = vld [vmem:[#allocation2 + $0x58] sm:$0xff] }
 0x3ed   : > { %3282 = vst [vmem:[#allocation2 + $0x20] sm:$0xff] %v3250_v34 }
 0x3ee   : > { %3283 = vst [vmem:[#allocation2 + $0x28] sm:$0xff] %v3251_v11 }
 0x3f0   : > { %v3715_v3 = vpop.f32.mrb[76].mxu0 }
 0x3f1   : > { %v3827_v49 = vpop.f32.mrb[76].mxu1  ;;  %v3716_v16 = vpop.f32.mrb[77].mxu0 }
 0x3f2   : > { %v3717_v47 = vadd.f32 %v3716_v16, %v3715_v3  ;;  %v3828_v20 = vpop.f32.mrb[77].mxu1  ;;  %v3718_v12 = vpop.f32.mrb[78].mxu0 }
 0x3f3   : > { %v3829_v56 = vadd.f32 %v3828_v20, %v3827_v49  ;;  %v3830_v39 = vpop.f32.mrb[78].mxu1  ;;  %v3719_v9 = vpop.f32.mrb[79].mxu0 }
 0x3f4   : > { %v2983_v31 = vadd.f32 %v3717_v47, %v7351_v51  ;;  %v3720_v50 = vadd.f32 %v3719_v9, %v3718_v12  ;;  %v3831_v19 = vpop.f32.mrb[79].mxu1 }
 0x3f5   : > { %v3832_v5 = vadd.f32 %v3831_v19, %v3830_v39 }
 0x3f6   : > { %v3144_v0 = vadd.f32 %v3829_v56, %v2983_v31  ;;  %v2986_v63 = vadd.f32 %v3720_v50, %v7351_v51 }
 0x3f8   : > { %v3252_v18 = vadd.f32 %v4447_v7, %v3144_v0  ;;  %v3147_v4 = vadd.f32 %v3832_v5, %v2986_v63  ;;  %v4453_v5 = vld [vmem:[#allocation2 + $0x60] sm:$0xff]  ;;  %v4454_v7 = vld [vmem:[#allocation2 + $0x68] sm:$0xff] }
 0x3fa   : > { %3284 = vst [vmem:[#allocation2 + $0x30] sm:$0xff] %v3252_v18  ;;  %v3253_v32 = vadd.f32 %v4448_v10, %v3147_v4 }
 0x3fc   : > { %3285 = vst [vmem:[#allocation2 + $0x38] sm:$0xff] %v3253_v32 }
 0x406   : > { %v3721_v2 = vpop.f32.mrb[80].mxu0 }
 0x407   : > { %v3833_v29 = vpop.f32.mrb[80].mxu1  ;;  %v3722_v33 = vpop.f32.mrb[81].mxu0 }
 0x408   : > { %v3723_v53 = vadd.f32 %v3722_v33, %v3721_v2  ;;  %v3834_v46 = vpop.f32.mrb[81].mxu1  ;;  %v3724_v42 = vpop.f32.mrb[82].mxu0 }
 0x409   : > { %v3835_v6 = vadd.f32 %v3834_v46, %v3833_v29  ;;  %v3836_v28 = vpop.f32.mrb[82].mxu1  ;;  %v3725_v26 = vpop.f32.mrb[83].mxu0 }
 0x40a   : > { %v2991_v1 = vadd.f32 %v3723_v53, %v7351_v51  ;;  %v3726_v14 = vadd.f32 %v3725_v26, %v3724_v42  ;;  %v3837_v25 = vpop.f32.mrb[83].mxu1 }
 0x40b   : > { %v3838_v27 = vadd.f32 %v3837_v25, %v3836_v28 }
 0x40c   : > { %v3152_v48 = vadd.f32 %v3835_v6, %v2991_v1  ;;  %v2994_v43 = vadd.f32 %v3726_v14, %v7351_v51 }
 0x40e   : > { %v3254_v40 = vadd.f32 %v4449_v59, %v3152_v48  ;;  %v3155_v35 = vadd.f32 %v3838_v27, %v2994_v43  ;;  %v4455_v27 = vld [vmem:[#allocation2 + $0x70] sm:$0xff]  ;;  %v4456_v59 = vld [vmem:[#allocation2 + $0x78] sm:$0xff] }
 0x410   : > { %3286 = vst [vmem:[#allocation2 + $0x40] sm:$0xff] %v3254_v40  ;;  %v3255_v17 = vadd.f32 %v4450_v22, %v3155_v35 }
 0x412   : > { %3287 = vst [vmem:[#allocation2 + $0x48] sm:$0xff] %v3255_v17 }
 0x41b   : > { %v3727_v23 = vpop.f32.mrb[84].mxu0 }
 0x41c   : > { %v3839_v60 = vpop.f32.mrb[84].mxu1  ;;  %v3728_v55 = vpop.f32.mrb[85].mxu0 }
 0x41d   : > { %v3729_v24 = vadd.f32 %v3728_v55, %v3727_v23  ;;  %v3840_v62 = vpop.f32.mrb[85].mxu1  ;;  %v3730_v44 = vpop.f32.mrb[86].mxu0 }
 0x41e   : > { %v3841_v37 = vadd.f32 %v3840_v62, %v3839_v60  ;;  %v3842_v38 = vpop.f32.mrb[86].mxu1  ;;  %v3731_v52 = vpop.f32.mrb[87].mxu0 }
 0x41f   : > { %v2999_v54 = vadd.f32 %v3729_v24, %v7351_v51  ;;  %v3732_v36 = vadd.f32 %v3731_v52, %v3730_v44  ;;  %v3843_v30 = vpop.f32.mrb[87].mxu1 }
 0x420   : > { %v3844_v8 = vadd.f32 %v3843_v30, %v3842_v38 }
 0x421   : > { %v3160_v15 = vadd.f32 %v3841_v37, %v2999_v54  ;;  %v3002_v57 = vadd.f32 %v3732_v36, %v7351_v51 }
 0x423   : > { %v3256_v58 = vadd.f32 %v4451_v61, %v3160_v15  ;;  %v3163_v45 = vadd.f32 %v3844_v8, %v3002_v57  ;;  %v4457_v8 = vld [vmem:[#allocation2 + $0x80] sm:$0xff]  ;;  %v4458_v61 = vld [vmem:[#allocation2 + $0x88] sm:$0xff] }
 0x425   : > { %3288 = vst [vmem:[#allocation2 + $0x50] sm:$0xff] %v3256_v58  ;;  %v3257_v41 = vadd.f32 %v4452_v21, %v3163_v45 }
 0x427   : > { %3289 = vst [vmem:[#allocation2 + $0x58] sm:$0xff] %v3257_v41 }
 0x431   : > { %v3733_v34 = vpop.f32.mrb[88].mxu0 }
 0x432   : > { %v3845_v13 = vpop.f32.mrb[88].mxu1  ;;  %v3734_v11 = vpop.f32.mrb[89].mxu0 }
 0x433   : > { %v3735_v3 = vadd.f32 %v3734_v11, %v3733_v34  ;;  %v3846_v49 = vpop.f32.mrb[89].mxu1  ;;  %v3736_v16 = vpop.f32.mrb[90].mxu0 }
 0x434   : > { %v3847_v47 = vadd.f32 %v3846_v49, %v3845_v13  ;;  %v3848_v20 = vpop.f32.mrb[90].mxu1  ;;  %v3737_v12 = vpop.f32.mrb[91].mxu0 }
 0x435   : > { %v3007_v56 = vadd.f32 %v3735_v3, %v7351_v51  ;;  %v3738_v39 = vadd.f32 %v3737_v12, %v3736_v16  ;;  %v3849_v9 = vpop.f32.mrb[91].mxu1 }
 0x436   : > { %v3850_v31 = vadd.f32 %v3849_v9, %v3848_v20 }
 0x437   : > { %v3168_v50 = vadd.f32 %v3847_v47, %v3007_v56  ;;  %v3010_v19 = vadd.f32 %v3738_v39, %v7351_v51 }
 0x439   : > { %v3258_v0 = vadd.f32 %v4453_v5, %v3168_v50  ;;  %v3171_v63 = vadd.f32 %v3850_v31, %v3010_v19  ;;  %v4459_v31 = vld [vmem:[#allocation2 + $0x90] sm:$0xff]  ;;  %v4460_v5 = vld [vmem:[#allocation2 + $0x98] sm:$0xff] }
 0x43b   : > { %3290 = vst [vmem:[#allocation2 + $0x60] sm:$0xff] %v3258_v0  ;;  %v3259_v18 = vadd.f32 %v4454_v7, %v3171_v63 }
 0x43d   : > { %3291 = vst [vmem:[#allocation2 + $0x68] sm:$0xff] %v3259_v18 }
 0x447   : > { %v3739_v4 = vpop.f32.mrb[92].mxu0 }
 0x448   : > { %v3851_v10 = vpop.f32.mrb[92].mxu1  ;;  %v3740_v32 = vpop.f32.mrb[93].mxu0 }
 0x449   : > { %v3741_v2 = vadd.f32 %v3740_v32, %v3739_v4  ;;  %v3852_v29 = vpop.f32.mrb[93].mxu1  ;;  %v3742_v33 = vpop.f32.mrb[94].mxu0 }
 0x44a   : > { %v3853_v53 = vadd.f32 %v3852_v29, %v3851_v10  ;;  %v3854_v46 = vpop.f32.mrb[94].mxu1  ;;  %v3743_v42 = vpop.f32.mrb[95].mxu0 }
 0x44b   : > { %v3015_v6 = vadd.f32 %v3741_v2, %v7351_v51  ;;  %v3744_v28 = vadd.f32 %v3743_v42, %v3742_v33  ;;  %v3855_v26 = vpop.f32.mrb[95].mxu1 }
 0x44c   : > { %v3856_v1 = vadd.f32 %v3855_v26, %v3854_v46 }
 0x44d   : > { %v3176_v14 = vadd.f32 %v3853_v53, %v3015_v6  ;;  %v3018_v25 = vadd.f32 %v3744_v28, %v7351_v51 }
 0x44f   : > { %v3260_v48 = vadd.f32 %v4455_v27, %v3176_v14  ;;  %v3179_v43 = vadd.f32 %v3856_v1, %v3018_v25  ;;  %v4461_v1 = vld [vmem:[#allocation2 + $0xa0] sm:$0xff]  ;;  %v4462_v27 = vld [vmem:[#allocation2 + $0xa8] sm:$0xff] }
 0x451   : > { %3292 = vst [vmem:[#allocation2 + $0x70] sm:$0xff] %v3260_v48  ;;  %v3261_v40 = vadd.f32 %v4456_v59, %v3179_v43 }
 0x453   : > { %3293 = vst [vmem:[#allocation2 + $0x78] sm:$0xff] %v3261_v40 }
 0x45c   : > { %v3745_v35 = vpop.f32.mrb[96].mxu0 }
 0x45d   : > { %v3857_v22 = vpop.f32.mrb[96].mxu1  ;;  %v3746_v17 = vpop.f32.mrb[97].mxu0 }
 0x45e   : > { %v3747_v23 = vadd.f32 %v3746_v17, %v3745_v35  ;;  %v3858_v60 = vpop.f32.mrb[97].mxu1  ;;  %v3748_v55 = vpop.f32.mrb[98].mxu0 }
 0x45f   : > { %v3859_v24 = vadd.f32 %v3858_v60, %v3857_v22  ;;  %v3860_v62 = vpop.f32.mrb[98].mxu1  ;;  %v3749_v44 = vpop.f32.mrb[99].mxu0 }
 0x460   : > { %v3023_v37 = vadd.f32 %v3747_v23, %v7351_v51  ;;  %v3750_v38 = vadd.f32 %v3749_v44, %v3748_v55  ;;  %v3861_v52 = vpop.f32.mrb[99].mxu1 }
 0x461   : > { %v3862_v54 = vadd.f32 %v3861_v52, %v3860_v62 }
 0x462   : > { %v3184_v36 = vadd.f32 %v3859_v24, %v3023_v37  ;;  %v3026_v30 = vadd.f32 %v3750_v38, %v7351_v51 }
 0x464   : > { %v3262_v15 = vadd.f32 %v4457_v8, %v3184_v36  ;;  %v3187_v57 = vadd.f32 %v3862_v54, %v3026_v30  ;;  %v4463_v54 = vld [vmem:[#allocation2 + $0xb0] sm:$0xff] }
 0x466   : > { %3294 = vst [vmem:[#allocation2 + $0x80] sm:$0xff] %v3262_v15  ;;  %v3263_v58 = vadd.f32 %v4458_v61, %v3187_v57  ;;  %v4464_v61 = vld [vmem:[#allocation2 + $0xb8] sm:$0xff] }
 0x468   : > { %3295 = vst [vmem:[#allocation2 + $0x88] sm:$0xff] %v3263_v58 }
 0x471   : > { %v3751_v45 = vpop.f32.mrb[100].mxu0 }
 0x472   : > { %v3752_v41 = vpop.f32.mrb[101].mxu0 }
 0x473   : > { %v3863_v21 = vpop.f32.mrb[100].mxu1  ;;  %v3753_v34 = vadd.f32 %v3752_v41, %v3751_v45  ;;  %v3754_v11 = vpop.f32.mrb[102].mxu0 }
 0x474   : > { %v3864_v13 = vpop.f32.mrb[101].mxu1  ;;  %v3755_v16 = vpop.f32.mrb[103].mxu0 }
 0x475   : > { %v3865_v3 = vadd.f32 %v3864_v13, %v3863_v21  ;;  %v3866_v49 = vpop.f32.mrb[102].mxu1  ;;  %v3031_v47 = vadd.f32 %v3753_v34, %v7351_v51  ;;  %v3756_v20 = vadd.f32 %v3755_v16, %v3754_v11 }
 0x476   : > { %v3867_v12 = vpop.f32.mrb[103].mxu1 }
 0x477   : > { %v3868_v56 = vadd.f32 %v3867_v12, %v3866_v49  ;;  %v3192_v39 = vadd.f32 %v3865_v3, %v3031_v47  ;;  %v3034_v9 = vadd.f32 %v3756_v20, %v7351_v51 }
 0x479   : > { %v3264_v50 = vadd.f32 %v4459_v31, %v3192_v39  ;;  %v3195_v19 = vadd.f32 %v3868_v56, %v3034_v9  ;;  %v4465_v56 = vld [vmem:[#allocation2 + $0xc0] sm:$0xff] }
 0x47b   : > { %3296 = vst [vmem:[#allocation2 + $0x90] sm:$0xff] %v3264_v50  ;;  %v3265_v0 = vadd.f32 %v4460_v5, %v3195_v19  ;;  %v4466_v5 = vld [vmem:[#allocation2 + $0xc8] sm:$0xff] }
 0x47d   : > { %3297 = vst [vmem:[#allocation2 + $0x98] sm:$0xff] %v3265_v0 }
 0x487   : > { %v3757_v63 = vpop.f32.mrb[104].mxu0 }
 0x488   : > { %v3869_v7 = vpop.f32.mrb[104].mxu1  ;;  %v3758_v18 = vpop.f32.mrb[105].mxu0 }
 0x489   : > { %v3759_v4 = vadd.f32 %v3758_v18, %v3757_v63  ;;  %v3870_v10 = vpop.f32.mrb[105].mxu1  ;;  %v3760_v32 = vpop.f32.mrb[106].mxu0 }
 0x48a   : > { %v3871_v2 = vadd.f32 %v3870_v10, %v3869_v7  ;;  %v3872_v29 = vpop.f32.mrb[106].mxu1  ;;  %v3761_v33 = vpop.f32.mrb[107].mxu0 }
 0x48b   : > { %v3039_v53 = vadd.f32 %v3759_v4, %v7351_v51  ;;  %v3762_v46 = vadd.f32 %v3761_v33, %v3760_v32  ;;  %v3873_v42 = vpop.f32.mrb[107].mxu1 }
 0x48c   : > { %v3874_v6 = vadd.f32 %v3873_v42, %v3872_v29 }
 0x48d   : > { %v3200_v28 = vadd.f32 %v3871_v2, %v3039_v53  ;;  %v3042_v26 = vadd.f32 %v3762_v46, %v7351_v51 }
 0x48f   : > { %v3266_v14 = vadd.f32 %v4461_v1, %v3200_v28  ;;  %v3203_v25 = vadd.f32 %v3874_v6, %v3042_v26  ;;  %v4467_v6 = vld [vmem:[#allocation2 + $0xd0] sm:$0xff] }
 0x491   : > { %3298 = vst [vmem:[#allocation2 + $0xa0] sm:$0xff] %v3266_v14  ;;  %v3267_v48 = vadd.f32 %v4462_v27, %v3203_v25  ;;  %v4468_v27 = vld [vmem:[#allocation2 + $0xd8] sm:$0xff] }
 0x493   : > { %3299 = vst [vmem:[#allocation2 + $0xa8] sm:$0xff] %v3267_v48 }
 0x49c   : > { %v3763_v43 = vpop.f32.mrb[108].mxu0 }
 0x49d   : > { %v3875_v59 = vpop.f32.mrb[108].mxu1  ;;  %v3764_v40 = vpop.f32.mrb[109].mxu0 }
 0x49e   : > { %v3765_v35 = vadd.f32 %v3764_v40, %v3763_v43  ;;  %v3876_v22 = vpop.f32.mrb[109].mxu1  ;;  %v3766_v17 = vpop.f32.mrb[110].mxu0 }
 0x49f   : > { %v3877_v23 = vadd.f32 %v3876_v22, %v3875_v59  ;;  %v3878_v60 = vpop.f32.mrb[110].mxu1  ;;  %v3767_v55 = vpop.f32.mrb[111].mxu0 }
 0x4a0   : > { %v3047_v24 = vadd.f32 %v3765_v35, %v7351_v51  ;;  %v3768_v62 = vadd.f32 %v3767_v55, %v3766_v17  ;;  %v3879_v44 = vpop.f32.mrb[111].mxu1 }
 0x4a1   : > { %v3880_v37 = vadd.f32 %v3879_v44, %v3878_v60 }
 0x4a2   : > { %v3208_v38 = vadd.f32 %v3877_v23, %v3047_v24  ;;  %v3050_v52 = vadd.f32 %v3768_v62, %v7351_v51 }
 0x4a4   : > { %v3268_v36 = vadd.f32 %v4463_v54, %v3208_v38  ;;  %v3211_v30 = vadd.f32 %v3880_v37, %v3050_v52  ;;  %v3769_v8 = vpop.f32.mrb[112].mxu0  ;;  %v4469_v37 = vld [vmem:[#allocation2 + $0xe0] sm:$0xff] }
 0x4a5   : > { %v3881_v15 = vpop.f32.mrb[112].mxu1  ;;  %v3770_v57 = vpop.f32.mrb[113].mxu0 }
 0x4a6   : > { %3300 = vst [vmem:[#allocation2 + $0xb0] sm:$0xff] %v3268_v36  ;;  %v3269_v58 = vadd.f32 %v4464_v61, %v3211_v30  ;;  %v3771_v45 = vadd.f32 %v3770_v57, %v3769_v8  ;;  %v3882_v21 = vpop.f32.mrb[113].mxu1  ;;  %v3772_v41 = vpop.f32.mrb[114].mxu0  ;;  %v4470_v8 = vld [vmem:[#allocation2 + $0xe8] sm:$0xff] }
 0x4a7   : > { %v3883_v34 = vadd.f32 %v3882_v21, %v3881_v15  ;;  %v3884_v13 = vpop.f32.mrb[114].mxu1  ;;  %v3773_v11 = vpop.f32.mrb[115].mxu0 }
 0x4a8   : > { %3301 = vst [vmem:[#allocation2 + $0xb8] sm:$0xff] %v3269_v58  ;;  %v3055_v3 = vadd.f32 %v3771_v45, %v7351_v51  ;;  %v3774_v49 = vadd.f32 %v3773_v11, %v3772_v41  ;;  %v3885_v16 = vpop.f32.mrb[115].mxu1 }
 0x4a9   : > { %v3886_v47 = vadd.f32 %v3885_v16, %v3884_v13 }
 0x4aa   : > { %v3216_v20 = vadd.f32 %v3883_v34, %v3055_v3  ;;  %v3058_v12 = vadd.f32 %v3774_v49, %v7351_v51 }
 0x4ac   : > { %v3270_v39 = vadd.f32 %v4465_v56, %v3216_v20  ;;  %v3219_v9 = vadd.f32 %v3886_v47, %v3058_v12  ;;  %v3775_v31 = vpop.f32.mrb[116].mxu0  ;;  %v4471_v47 = vld [vmem:[#allocation2 + $0xf0] sm:$0xff]  ;;  %v4472_v56 = vld [vmem:[#allocation2 + $0xf8] sm:$0xff] }
 0x4ad   : > { %v3887_v50 = vpop.f32.mrb[116].mxu1  ;;  %v3776_v19 = vpop.f32.mrb[117].mxu0 }
 0x4ae   : > { %3302 = vst [vmem:[#allocation2 + $0xc0] sm:$0xff] %v3270_v39  ;;  %v3271_v0 = vadd.f32 %v4466_v5, %v3219_v9  ;;  %v3777_v63 = vadd.f32 %v3776_v19, %v3775_v31  ;;  %v3888_v7 = vpop.f32.mrb[117].mxu1  ;;  %v3778_v18 = vpop.f32.mrb[118].mxu0  ;;  %v3314_v9 = vld [vmem:[#allocation2] sm:$0xff] (!%p3670_p2)  ;;  %v3316_v31 = vld [vmem:[#allocation2 + $0x10] sm:$0xff] (!%p3670_p2)  ;;  %v3319_v5 = vld [vmem:[#allocation2 + $0x28] sm:$0xff] (!%p3670_p2) }
 0x4af   : > { %v3889_v4 = vadd.f32 %v3888_v7, %v3887_v50  ;;  %v3890_v10 = vpop.f32.mrb[118].mxu1  ;;  %v3779_v32 = vpop.f32.mrb[119].mxu0  ;;  %3346 = vst [vmem:[%s5236_s16] sm:$0xff] (!%p3670_p2), %v3314_v9  ;;  %3348 = vst [vmem:[%s5236_s16 + $0x10] sm:$0xff] (!%p3670_p2), %v3316_v31  ;;  %v3317_v50 = vld [vmem:[#allocation2 + $0x18] sm:$0xff] (!%p3670_p2)  ;;  %v3318_v19 = vld [vmem:[#allocation2 + $0x20] sm:$0xff] (!%p3670_p2) }
 0x4b0   : > { %3303 = vst [vmem:[#allocation2 + $0xc8] sm:$0xff] %v3271_v0  ;;  %v3063_v2 = vadd.f32 %v3777_v63, %v7351_v51  ;;  %v3780_v29 = vadd.f32 %v3779_v32, %v3778_v18  ;;  %v3891_v33 = vpop.f32.mrb[119].mxu1  ;;  %3349 = vst [vmem:[%s5236_s16 + $0x18] sm:$0xff] (!%p3670_p2), %v3317_v50  ;;  %v3320_v0 = vld [vmem:[#allocation2 + $0x30] sm:$0xff] (!%p3670_p2)  ;;  %v3321_v63 = vld [vmem:[#allocation2 + $0x38] sm:$0xff] (!%p3670_p2) }
 0x4b1   : > { %v3892_v53 = vadd.f32 %v3891_v33, %v3890_v10  ;;  %3350 = vst [vmem:[%s5236_s16 + $0x20] sm:$0xff] (!%p3670_p2), %v3318_v19  ;;  %3351 = vst [vmem:[%s5236_s16 + $0x28] sm:$0xff] (!%p3670_p2), %v3319_v5  ;;  %v3322_v7 = vld [vmem:[#allocation2 + $0x40] sm:$0xff] (!%p3670_p2)  ;;  %v3323_v18 = vld [vmem:[#allocation2 + $0x48] sm:$0xff] (!%p3670_p2) }
 0x4b2   : > { %v3224_v46 = vadd.f32 %v3889_v4, %v3063_v2  ;;  %v3066_v42 = vadd.f32 %v3780_v29, %v7351_v51  ;;  %3352 = vst [vmem:[%s5236_s16 + $0x30] sm:$0xff] (!%p3670_p2), %v3320_v0  ;;  %3353 = vst [vmem:[%s5236_s16 + $0x38] sm:$0xff] (!%p3670_p2), %v3321_v63  ;;  %v3324_v4 = vld [vmem:[#allocation2 + $0x50] sm:$0xff] (!%p3670_p2)  ;;  %v3325_v10 = vld [vmem:[#allocation2 + $0x58] sm:$0xff] (!%p3670_p2) }
 0x4b3   : > { %3354 = vst [vmem:[%s5236_s16 + $0x40] sm:$0xff] (!%p3670_p2), %v3322_v7  ;;  %3355 = vst [vmem:[%s5236_s16 + $0x48] sm:$0xff] (!%p3670_p2), %v3323_v18  ;;  %v3326_v32 = vld [vmem:[#allocation2 + $0x60] sm:$0xff] (!%p3670_p2)  ;;  %v3327_v2 = vld [vmem:[#allocation2 + $0x68] sm:$0xff] (!%p3670_p2) }
 0x4b4   : > { %v3272_v28 = vadd.f32 %v4467_v6, %v3224_v46  ;;  %v3227_v26 = vadd.f32 %v3892_v53, %v3066_v42  ;;  %v3781_v1 = vpop.f32.mrb[120].mxu0  ;;  %3356 = vst [vmem:[%s5236_s16 + $0x50] sm:$0xff] (!%p3670_p2), %v3324_v4  ;;  %3357 = vst [vmem:[%s5236_s16 + $0x58] sm:$0xff] (!%p3670_p2), %v3325_v10  ;;  %v3328_v29 = vld [vmem:[#allocation2 + $0x70] sm:$0xff] (!%p3670_p2)  ;;  %v3329_v33 = vld [vmem:[#allocation2 + $0x78] sm:$0xff] (!%p3670_p2) }
 0x4b5   : > { %v3893_v14 = vpop.f32.mrb[120].mxu1  ;;  %v3782_v25 = vpop.f32.mrb[121].mxu0  ;;  %3358 = vst [vmem:[%s5236_s16 + $0x60] sm:$0xff] (!%p3670_p2), %v3326_v32  ;;  %3359 = vst [vmem:[%s5236_s16 + $0x68] sm:$0xff] (!%p3670_p2), %v3327_v2  ;;  %v3330_v53 = vld [vmem:[#allocation2 + $0x80] sm:$0xff] (!%p3670_p2)  ;;  %v3331_v46 = vld [vmem:[#allocation2 + $0x88] sm:$0xff] (!%p3670_p2) }
 0x4b6   : > { %3304 = vst [vmem:[#allocation2 + $0xd0] sm:$0xff] %v3272_v28  ;;  %v3273_v48 = vadd.f32 %v4468_v27, %v3227_v26  ;;  %v3783_v43 = vadd.f32 %v3782_v25, %v3781_v1  ;;  %v3894_v59 = vpop.f32.mrb[121].mxu1  ;;  %v3784_v40 = vpop.f32.mrb[122].mxu0  ;;  %3360 = vst [vmem:[%s5236_s16 + $0x70] sm:$0xff] (!%p3670_p2), %v3328_v29  ;;  %v3332_v42 = vld [vmem:[#allocation2 + $0x90] sm:$0xff] (!%p3670_p2)  ;;  %v3333_v6 = vld [vmem:[#allocation2 + $0x98] sm:$0xff] (!%p3670_p2) }
 0x4b7   : > { %v3895_v35 = vadd.f32 %v3894_v59, %v3893_v14  ;;  %v3896_v22 = vpop.f32.mrb[122].mxu1  ;;  %v3785_v17 = vpop.f32.mrb[123].mxu0  ;;  %3361 = vst [vmem:[%s5236_s16 + $0x78] sm:$0xff] (!%p3670_p2), %v3329_v33  ;;  %3362 = vst [vmem:[%s5236_s16 + $0x80] sm:$0xff] (!%p3670_p2), %v3330_v53  ;;  %v3334_v28 = vld [vmem:[#allocation2 + $0xa0] sm:$0xff] (!%p3670_p2)  ;;  %v3335_v26 = vld [vmem:[#allocation2 + $0xa8] sm:$0xff] (!%p3670_p2) }
 0x4b8   : > { %3305 = vst [vmem:[#allocation2 + $0xd8] sm:$0xff] %v3273_v48  ;;  %v3071_v23 = vadd.f32 %v3783_v43, %v7351_v51  ;;  %v3786_v60 = vadd.f32 %v3785_v17, %v3784_v40  ;;  %v3897_v55 = vpop.f32.mrb[123].mxu1  ;;  %3363 = vst [vmem:[%s5236_s16 + $0x88] sm:$0xff] (!%p3670_p2), %v3331_v46  ;;  %v3336_v1 = vld [vmem:[#allocation2 + $0xb0] sm:$0xff] (!%p3670_p2)  ;;  %v3337_v14 = vld [vmem:[#allocation2 + $0xb8] sm:$0xff] (!%p3670_p2) }
 0x4b9   : > { %v3898_v24 = vadd.f32 %v3897_v55, %v3896_v22  ;;  %3364 = vst [vmem:[%s5236_s16 + $0x90] sm:$0xff] (!%p3670_p2), %v3332_v42  ;;  %3365 = vst [vmem:[%s5236_s16 + $0x98] sm:$0xff] (!%p3670_p2), %v3333_v6  ;;  %v3338_v25 = vld [vmem:[#allocation2 + $0xc0] sm:$0xff] (!%p3670_p2)  ;;  %v3339_v27 = vld [vmem:[#allocation2 + $0xc8] sm:$0xff] (!%p3670_p2) }
 0x4ba   : > { %v3232_v62 = vadd.f32 %v3895_v35, %v3071_v23  ;;  %v3074_v44 = vadd.f32 %v3786_v60, %v7351_v51  ;;  %3366 = vst [vmem:[%s5236_s16 + $0xa0] sm:$0xff] (!%p3670_p2), %v3334_v28  ;;  %3367 = vst [vmem:[%s5236_s16 + $0xa8] sm:$0xff] (!%p3670_p2), %v3335_v26 }
 0x4bb   : > { %3368 = vst [vmem:[%s5236_s16 + $0xb0] sm:$0xff] (!%p3670_p2), %v3336_v1  ;;  %3369 = vst [vmem:[%s5236_s16 + $0xb8] sm:$0xff] (!%p3670_p2), %v3337_v14 }
 0x4bc   : > { %v3274_v38 = vadd.f32 %v4469_v37, %v3232_v62  ;;  %v3235_v52 = vadd.f32 %v3898_v24, %v3074_v44  ;;  %v3787_v54 = vpop.f32.mrb[124].mxu0  ;;  %3370 = vst [vmem:[%s5236_s16 + $0xc0] sm:$0xff] (!%p3670_p2), %v3338_v25  ;;  %3371 = vst [vmem:[%s5236_s16 + $0xc8] sm:$0xff] (!%p3670_p2), %v3339_v27 }
 0x4bd   : > { %v3899_v36 = vpop.f32.mrb[124].mxu1  ;;  %v3788_v30 = vpop.f32.mrb[125].mxu0  ;;  %v3340_v48 = vld [vmem:[#allocation2 + $0xd0] sm:$0xff] (!%p3670_p2) }
 0x4be   : > { %3306 = vst [vmem:[#allocation2 + $0xe0] sm:$0xff] %v3274_v38  ;;  %v3275_v15 = vadd.f32 %v4470_v8, %v3235_v52  ;;  %v3789_v57 = vadd.f32 %v3788_v30, %v3787_v54  ;;  %v3900_v61 = vpop.f32.mrb[125].mxu1  ;;  %v3790_v58 = vpop.f32.mrb[126].mxu0  ;;  %3372 = vst [vmem:[%s5236_s16 + $0xd0] sm:$0xff] (!%p3670_p2), %v3340_v48 }
 0x4bf   : > { %v3901_v45 = vadd.f32 %v3900_v61, %v3899_v36  ;;  %v3902_v21 = vpop.f32.mrb[126].mxu1  ;;  %v3791_v41 = vpop.f32.mrb[127].mxu0  ;;  %v3341_v43 = vld [vmem:[#allocation2 + $0xd8] sm:$0xff] (!%p3670_p2) }
 0x4c0   : > { %3307 = vst [vmem:[#allocation2 + $0xe8] sm:$0xff] %v3275_v15  ;;  %v3079_v34 = vadd.f32 %v3789_v57, %v7351_v51  ;;  %v3792_v13 = vadd.f32 %v3791_v41, %v3790_v58  ;;  %v3903_v11 = vpop.f32.mrb[127].mxu1  ;;  %3373 = vst [vmem:[%s5236_s16 + $0xd8] sm:$0xff] (!%p3670_p2), %v3341_v43 }
 0x4c1   : > { %v3904_v3 = vadd.f32 %v3903_v11, %v3902_v21 }
 0x4c2   : > { %v3240_v49 = vadd.f32 %v3901_v45, %v3079_v34  ;;  %v3082_v16 = vadd.f32 %v3792_v13, %v7351_v51  ;;  %3313 = sbr.rel (%p3670_p2) target bundleno = 1233 (0x4d1), region = 76  ;;  %v3315_v51 = vld [vmem:[#allocation2 + $0x8] sm:$0xff] (!%p3670_p2) }
 0x4c3   : > { %3347 = vst [vmem:[%s5236_s16 + $0x8] sm:$0xff] (!%p3670_p2), %v3315_v51 }
 0x4c4   : > { %v3276_v20 = vadd.f32 %v4471_v47, %v3240_v49  ;;  %v3243_v12 = vadd.f32 %v3904_v3, %v3082_v16 }
 0x4c5   : > { %v3342_v59 = vld [vmem:[#allocation2 + $0xe0] sm:$0xff] (!%p3670_p2) }
 0x4c6   : > { %3308 = vst [vmem:[#allocation2 + $0xf0] sm:$0xff] %v3276_v20  ;;  %v3277_v39 = vadd.f32 %v4472_v56, %v3243_v12  ;;  %3374 = vst [vmem:[%s5236_s16 + $0xe0] sm:$0xff] (!%p3670_p2), %v3342_v59 }
 0x4c7   : > { %v3343_v40 = vld [vmem:[#allocation2 + $0xe8] sm:$0xff] (!%p3670_p2) }
 0x4c8   : > { %3309 = vst [vmem:[#allocation2 + $0xf8] sm:$0xff] %v3277_v39  ;;  %3375 = vst [vmem:[%s5236_s16 + $0xe8] sm:$0xff] (!%p3670_p2), %v3343_v40 }
 0x4cd   : > { %v3344_v35 = vld [vmem:[#allocation2 + $0xf0] sm:$0xff] }
 0x4ce   : > { %3376 = vst [vmem:[%s5236_s16 + $0xf0] sm:$0xff] %v3344_v35 }
 0x4cf   : > { %v3345_v22 = vld [vmem:[#allocation2 + $0xf8] sm:$0xff] }
 0x4d0   : > { %3377 = vst [vmem:[%s5236_s16 + $0xf8] sm:$0xff] %v3345_v22 }
 0x4d1 PF: > { %s8061_s14 = sld [smem:[#allocation24_spill]]  ;;  %s8062_s11 = sld [smem:[#allocation120_spill]] }
 0x4d2   : > { %s3392_s23 = sshll.u32 %s5236_s16, 4  ;;  %s3379_s18 = scalar_lea.sflag [#allocation5], %s5199_s21  ;;  %s7446_s23 = int_to_ptr.vmem [resolvable:$true] %s3392_s23 }
 0x4d3   : > { %s4653_s24 = scalar_lea.vmem %s7446_s23, 4096  ;;  %p8063_p10 = scmp.ne.s32.totalorder %s7655_s10, 0 }
 0x4d4   : > { %p4654_p9 = scmp.ne.s32.totalorder %s7446_s23, %s4653_s24  ;;  %s4802_s17 = smov [#allocation14]  }
 0x4d5   : > { %s4657_s27 = sshll.u32 %s4802_s17, 4  ;;  %s4658_s27 = int_to_ptr.vmem [resolvable:$false] %s4657_s27 }
 0x4d6   : > { %p4655_p3 = pnand %p4654_p9, %p8063_p10  ;;  %s4659_s1 = scalar_lea.vmem %s4658_s27, 8192 }
 0x4d7   : > { %s3680_s3 = sshll.u32 %s8061_s14, 12  ;;  %p4660_p12 = scmp.lt.s32.totalorder %s7446_s23, %s4658_s27 }
 0x4d8   : > { %s7443_s9 = scalar_lea.hbm %s8062_s11, %s3680_s3  ;;  %p4656_p8 = pneg %p4655_p3 }
 0x4d9   : > { %p4661_p1 = scmp.lt.s32.totalorder %s4659_s1, %s4653_s24 }
 0x4db   : > { %p4662_p6 = por %p4661_p1, %p4660_p12 }
 0x4dd   : > { %p4663_p4 = pnand %p4662_p6, %p4656_p8 }
 0x4df   : > { %4666 = shalt.err (!%p4663_p4)
}
 0x4e0   : > { %s4667_s12 = scalar_lea.hbm %s7443_s9, 4096  ;;  %s4671_s8 = scalar_lea.hbm %s8062_s11, 8192 }
 0x4e1   : > { %p4668_p7 = scmp.ne.s32.totalorder %s7443_s9, %s4667_s12  ;;  %p4672_p0 = scmp.lt.u32.totalorder %s7443_s9, %s8062_s11 }
 0x4e2   : > { %p4673_p11 = scmp.lt.u32.totalorder %s4671_s8, %s4667_s12  ;;  %p4675_p9 = scmp.lt.u32.totalorder %s4667_s12, %s7443_s9 }
 0x4e3   : > { %p4669_p5 = pnand %p4668_p7, %p8063_p10 }
 0x4e4   : > { %p4674_p2 = por %p4673_p11, %p4672_p0 }
 0x4e5   : > { %p4670_p13 = pneg %p4669_p5 }
 0x4e6   : > { %p4676_p3 = por %p4675_p9, %p4674_p2 }
 0x4e8   : > { %p4677_p8 = pnand %p4676_p3, %p4670_p13 }
 0x4ea   : > { %4680 = shalt.err (!%p4677_p8)
}
 0x4eb   : > { %s4803_s16 = smov 128   ;;  %s4804_s22 = smov 8  }
 0x4ec   : > { %3917 = dma.vmem_to_hbm [thread:$0]  (%p8063_p10), %s7446_s23, 4096, %s7443_s9, %s3379_s18, %s4803_s16, %s4803_s16, %s4804_s22  }
 0x4ed PF: > { %s8064_s28 = sld [smem:[#allocation22_spill]]  ;;  %p3943_p12 = scmp.ge.s32.totalorder %s4787_s7, 2 }
 0x4ee   : > { %p8065_p1 = scmp.ne.s32.totalorder %s7656_s15, 0 }
 0x4f0   : > { %p3939_p6 = pnand %p3943_p12, %p8065_p1 }
 0x4f3   : > { %s3407_s14 = sand.u32 1, %s8064_s28  }
 0x4f4   : > { %s3408_s3 = scalar_lea.sflag [#allocation5], %s3407_s14 }
 0x4f5   : > { %4742 = dma.done.wait (!%p3939_p6), %s3408_s3, 4096  }
 0x4f6   : > { %4744 = vsyncadd (!%p3939_p6), %s3408_s3, 4294963200  ;;  %s31_s7 = sadd.s32 1, %s4787_s7   ;;  %s8066_s21 = sld [smem:[#allocation20_spill]] }
 0x4f7   : > { %p28_p4 = scmp.ge.s32.totalorder %s31_s7, 6   ;;  %s8067_s22 = sld [smem:[#allocation21_spill]] }
 0x4f8   : > { %s8068_s23 = sld [smem:[#allocation28_spill]]  ;;  %s8069_s10 = sld [smem:[#allocation30_spill]] }
 0x4f9   : > { %s8070_s28 = sld [smem:[#allocation25_spill]]  ;;  %s8071_s19 = sld [smem:[#allocation26_spill]] }
 0x4fa   : > { %s8072_s30 = sld [smem:[#allocation29_spill]]  ;;  %s8073_s24 = smov %s4763_s25 }
 0x4fb   : > { %s8074_s25 = smov %s4767_s26  ;;  %s8076_s27 = smov %s4779_s29 }
 0x4fc   :  { %30 = sbr.rel (!%p28_p4) target bundleno = 20 (0x14), region = 158 }
 0x4fe   : > { %s8075_s26 = smov %s8069_s10 }
 0x4ff   : > { %s8077_s29 = smov %s8071_s19 }
 0x503   :  { %3413 = vsyncpa [#allocation4], 1 }
 0x504   :  { %3415 = vsyncpa [#allocation4 + $0x1], 1 }
 0x505   :  { %3416 = vsyncpa [#allocation7], 1 }
 0x506   :  { %3418 = vsyncpa [#allocation7 + $0x1], 1 }
 0x507   :  { %3419 = vsyncpa [#allocation10], 1 }
 0x508   :  { %3421 = vsyncpa [#allocation10 + $0x1], 1 }
 0x509   :  { %3422 = vsyncpa [#allocation13], 1 }
 0x50a   :  { %3424 = vsyncpa [#allocation13 + $0x1], 1 }
 0x50b   :  { %3425 = vsyncpa [#allocation5], 1 }
 0x50c   :  { %3427 = vsyncpa [#allocation5 + $0x1], 1 }

// kernel: vq_transformer_forward.3
= control target key start
LH: loop header
LB: loop body
LE: loop exit
PB: predicated region body
PF: predicated region fallthrough
CT: control target
= control target key end

     0   :  { %9 = vsyncpa [#allocation3], 0  ;;  %s8133_s0 = inlined_call_operand.hbm [shape: f32[512,128], index: 0, kind: input, shape index: {}]   ;;  %s8134_s1 = inlined_call_operand.hbm [shape: f32[1,128], index: 1, kind: input, shape index: {}]   ;;  %s8135_s2 = inlined_call_operand.hbm [shape: bf16[128,1024], index: 2, kind: input, shape index: {}]   ;;  %s8136_s3 = inlined_call_operand.hbm [shape: f32[1,1024], index: 3, kind: input, shape index: {}]   ;;  %s8137_s4 = inlined_call_operand.hbm [shape: f32[512,1024], index: 4, kind: output, shape index: {}]  }
   0x1   :  { %11 = vsyncpa [#allocation3 + $0x1], 0 }
   0x2   :  { %12 = vsyncpa [#allocation6], 0 }
   0x3   :  { %13 = vsyncpa [#allocation9], 0 }
   0x4   :  { %14 = vsyncpa [#allocation4], 0 }
   0x5   :  { %16 = vsyncpa [#allocation4 + $0x1], 0  ;;  %s4878_s15 = smov 0   ;;  %s4880_s16 = smov 0  }
   0x6   :  { %s4882_s17 = smov 0   ;;  %s4884_s18 = smov 0  }
   0x7 LB: > { %s4899_s19 = sadd.s32 4294967295, %s4839_s18   ;;  %s3838_s20 = sadd.s32 4294967294, %s4839_s18   ;;  %s4839_s18 = sphi %s4884_s18, %s9533_s18   ;;  %s4835_s17 = sphi %s4882_s17, %s9532_s17   ;;  %s4831_s16 = sphi %s4880_s16, %s9531_s16   ;;  %s4827_s15 = sphi %s4878_s15, %s9530_s15  }
   0x8   : > { %p42_p0 = scmp.ne.s32.totalorder %s4831_s16, %s4827_s15  ;;  %p8138_p1 = scmp.eq.s32.totalorder %s4899_s19, 0 }
   0x9   : > { %p135_p3 = scmp.eq.s32.totalorder %s3838_s20, 1  ;;  %p3839_p5 = scmp.ge.s32.totalorder %s4839_s18, 1 }
   0xa   : > { %p4908_p4 = por %p8138_p1, %p42_p0  ;;  %p142_p7 = scmp.lt.s32.totalorder %s4839_s18, 3 }
   0xb   : > { %p4913_p6 = por %p135_p3, %p42_p0  ;;  %s4841_s24 = smov [#allocation5]  }
   0xc   : > { %s8618_s21 = scalar_select %p4908_p4, 1, 0 }
   0xd   : > { %s8619_s22 = scalar_select %p4913_p6, 1, 0 }
   0xe   : > { %p4918_p8 = pnand %p3839_p5, %p142_p7  ;;  %s155_s25 = sshll.u32 %s4841_s24, 4  ;;  %s156_s25 = int_to_ptr.vmem [resolvable:$true] %s155_s25 }
   0xf   : > { %s4842_s26 = smov [#allocation7]   ;;  %s4843_s29 = smov [#allocation8]  }
  0x10   : > { %s8620_s23 = scalar_select %p4918_p8, 1, 0 }
  0x11   : > { %p3943_p10 = pneg %p4918_p8  ;;  %s165_s27 = sshll.u32 %s4842_s26, 4  ;;  %s4931_s27 = int_to_ptr.vmem [resolvable:$true] %s165_s27 }
  0x12   : > { %s4933_s30 = sshll.u32 %s4843_s29, 4  ;;  %s4651_s7 = scalar_lea.hbm %s8134_s1, 16  ;;  %s180_s30 = int_to_ptr.vmem [resolvable:$true] %s4933_s30 }
  0x13   : > { %p4927_p11 = pnand %p3943_p10, %p8138_p1  ;;  %p4652_p12 = scmp.ne.s32.totalorder %s8134_s1, %s4651_s7 }
  0x14   : > { %p4658_p5 = scmp.lt.u32.totalorder %s4651_s7, %s8134_s1 }
  0x15   : > { %p4943_p13 = pneg %p4927_p11 }
  0x17   : > { %p4654_p0 = pnand %p4943_p13, %p4652_p12 }
  0x19   : > { %p4655_p3 = pneg %p4654_p0 }
  0x1b   : > { %p4660_p7 = pnand %p4658_p5, %p4655_p3 }
  0x1d   : > { %4663 = shalt.err (!%p4660_p7)
}
  0x1e   : > { %s4664_s13 = scalar_lea.vmem %s156_s25, 16  ;;  %s4671_s14 = scalar_lea.vmem %s156_s25, 32 }
  0x1f   : > { %p4665_p10 = scmp.ne.s32.totalorder %s156_s25, %s4664_s13  ;;  %p4672_p2 = scmp.lt.s32.totalorder %s156_s25, %s156_s25 }
  0x20   : > { %p4673_p6 = scmp.lt.s32.totalorder %s4671_s14, %s4664_s13 }
  0x21   : > { %p4667_p9 = pnand %p4665_p10, %p4943_p13 }
  0x22   : > { %p4674_p4 = por %p4673_p6, %p4672_p2 }
  0x23   : > { %p4668_p1 = pneg %p4667_p9 }
  0x25   : > { %p4675_p8 = pnand %p4674_p4, %p4668_p1 }
  0x27   : > { %4678 = shalt.err (!%p4675_p8)
}
  0x28   : > { %3946 = dma.hbm_to_vmem [thread:$0]  (!%p4927_p11), %s8134_s1, 16, %s156_s25, [#allocation6]  }
  0x29   : > { %s4679_s5 = scalar_lea.hbm %s8135_s2, 8192 }
  0x2a   : > { %p4680_p9 = scmp.ne.s32.totalorder %s8135_s2, %s4679_s5  ;;  %p4686_p1 = scmp.lt.u32.totalorder %s4679_s5, %s8135_s2 }
  0x2c   : > { %p4682_p12 = pnand %p4680_p9, %p4943_p13 }
  0x2e   : > { %p4683_p2 = pneg %p4682_p12 }
  0x30   : > { %p4688_p4 = pnand %p4686_p1, %p4683_p2 }
  0x32   : > { %4691 = shalt.err (!%p4688_p4)
}
  0x33   : > { %s4692_s25 = scalar_lea.vmem %s4931_s27, 8192  ;;  %p4700_p3 = scmp.lt.s32.totalorder %s4931_s27, %s4931_s27 }
  0x34   : > { %p4693_p6 = scmp.ne.s32.totalorder %s4931_s27, %s4692_s25  ;;  %p4701_p5 = scmp.lt.s32.totalorder %s4692_s25, %s4692_s25 }
  0x36   : > { %p4695_p8 = pnand %p4693_p6, %p4943_p13  ;;  %p4702_p7 = por %p4701_p5, %p4700_p3 }
  0x38   : > { %p4696_p0 = pneg %p4695_p8 }
  0x3a   : > { %p4703_p10 = pnand %p4702_p7, %p4696_p0 }
  0x3c   : > { %4706 = shalt.err (!%p4703_p10)
}
  0x3d   : > { %s4844_s11 = smov 512   ;;  %s4845_s12 = smov 32  }
  0x3e   : > { %3949 = dma.hbm_to_vmem [thread:$0]  (!%p4927_p11), %s8135_s2, 8192, %s4931_s27, [#allocation6], %s4844_s11, %s4844_s11, %s4845_s12  }
  0x3f   : > { %s4707_s26 = scalar_lea.hbm %s8136_s3, 128 }
  0x40   : > { %p4708_p9 = scmp.ne.s32.totalorder %s8136_s3, %s4707_s26  ;;  %p4714_p1 = scmp.lt.u32.totalorder %s4707_s26, %s8136_s3 }
  0x42   : > { %p4710_p12 = pnand %p4708_p9, %p4943_p13 }
  0x44   : > { %p4711_p2 = pneg %p4710_p12 }
  0x46   : > { %p4716_p4 = pnand %p4714_p1, %p4711_p2 }
  0x48   : > { %4719 = shalt.err (!%p4716_p4)
}
  0x49   : > { %s4720_s8 = scalar_lea.vmem %s180_s30, 128  ;;  %p4728_p3 = scmp.lt.s32.totalorder %s180_s30, %s180_s30 }
  0x4a   : > { %p4721_p6 = scmp.ne.s32.totalorder %s180_s30, %s4720_s8  ;;  %p4729_p5 = scmp.lt.s32.totalorder %s4720_s8, %s4720_s8 }
  0x4c   : > { %p4723_p8 = pnand %p4721_p6, %p4943_p13  ;;  %p4730_p7 = por %p4729_p5, %p4728_p3 }
  0x4e   : > { %p4724_p0 = pneg %p4723_p8 }
  0x50   : > { %p4731_p10 = pnand %p4730_p7, %p4724_p0 }
  0x52   : > { %4734 = shalt.err (!%p4731_p10)
}
  0x53   : > { %3952 = dma.hbm_to_vmem [thread:$0]  (!%p4927_p11), %s8136_s3, 128, %s180_s30, [#allocation9]  }
  0x54   : > { %s5002_s10 = sadd.s32 1, %s4839_s18   ;;  %s29_s28 = sadd.s32 1, %s4835_s17 }
  0x55   : > { %s26_s25 = ssub.s32 %s4839_s18, %s5002_s10  ;;  %p36_p9 = scmp.ne.s32.totalorder %s4835_s17, %s4831_s16 }
  0x56   : > { %p27_p13 = scmp.eq.s32.totalorder %s26_s25, 0  ;;  %p37_p12 = scmp.eq.s32.totalorder %s4839_s18, 0 }
  0x57   : > { %p3964_p2 = scmp.lt.s32.totalorder %s4839_s18, 2  ;;  %p8623_p4 = scmp.eq.s32.totalorder %s4899_s19, 1 }
  0x58   : > { %s5012_s11 = scalar_select %p27_p13, %s4835_s17, %s29_s28  }
  0x59   : > { %p38_p1 = por %p37_p12, %p36_p9  ;;  %p5016_p6 = por %p8623_p4, %p36_p9 }
  0x5a   : > { %s190_s13 = sand.u32 1, %s4835_s17   ;;  %s3924_s14 = sshll.u32 %s4839_s18, 12 }
  0x5b   : > { %s3844_s30 = sshll.u32 %s190_s13, 8  ;;  %s5025_s26 = scalar_lea.hbm %s8133_s0, %s3924_s14 }
  0x5c   : > { %s194_s29 = scalar_lea.vmem [#allocation2], %s3844_s30  ;;  %p5027_p11 = pnand %p3964_p2, %p38_p1 }
  0x5d   : > { %s201_s5 = sshll.u32 %s194_s29, 4  ;;  %s5033_s7 = scalar_lea.sflag [#allocation3], %s190_s13  ;;  %s5031_s5 = int_to_ptr.vmem [resolvable:$true] %s201_s5 }
  0x5e   : > { %s4735_s8 = scalar_lea.hbm %s5025_s26, 4096  ;;  %p4737_p0 = pneg %p5027_p11 }
  0x5f   : > { %p4736_p8 = scmp.ne.s32.totalorder %s5025_s26, %s4735_s8  ;;  %s4740_s25 = scalar_lea.hbm %s8133_s0, 8192 }
  0x60   : > { %p4741_p7 = scmp.lt.u32.totalorder %s5025_s26, %s8133_s0  ;;  %p4742_p10 = scmp.lt.u32.totalorder %s4740_s25, %s4735_s8 }
  0x61   : > { %p4738_p3 = pnand %p4737_p0, %p4736_p8  ;;  %p4744_p9 = scmp.lt.u32.totalorder %s4735_s8, %s5025_s26 }
  0x62   : > { %p4743_p13 = por %p4742_p10, %p4741_p7 }
  0x63   : > { %p4739_p5 = pneg %p4738_p3 }
  0x64   : > { %p4745_p12 = por %p4744_p9, %p4743_p13 }
  0x66   : > { %p4746_p2 = pnand %p4745_p12, %p4739_p5 }
  0x68   : > { %4749 = shalt.err (!%p4746_p2)
}
  0x69   : > { %s4750_s13 = scalar_lea.vmem %s5031_s5, 4096  ;;  %s4846_s30 = smov [#allocation2]  }
  0x6a   : > { %p4751_p1 = scmp.ne.s32.totalorder %s5031_s5, %s4750_s13  ;;  %s4755_s20 = sshll.u32 %s4846_s30, 4  ;;  %s4756_s20 = int_to_ptr.vmem [resolvable:$false] %s4755_s20 }
  0x6b   : > { %s4757_s24 = scalar_lea.vmem %s4756_s20, 8192  ;;  %p4758_p3 = scmp.lt.s32.totalorder %s5031_s5, %s4756_s20 }
  0x6c   : > { %p4753_p4 = pnand %p4751_p1, %p4737_p0  ;;  %p4759_p7 = scmp.lt.s32.totalorder %s4757_s24, %s4750_s13 }
  0x6e   : > { %p4754_p8 = pneg %p4753_p4  ;;  %p4760_p10 = por %p4759_p7, %p4758_p3 }
  0x70   : > { %p4761_p13 = pnand %p4760_p10, %p4754_p8 }
  0x72   : > { %4764 = shalt.err (!%p4761_p13)
}
  0x73   : > { %s4847_s29 = smov 128   ;;  %s4848_s8 = smov 8  }
  0x74   : > { %3956 = dma.hbm_to_vmem [thread:$0]  (!%p5027_p11), %s5025_s26, 4096, %s5031_s5, %s5033_s7, %s4847_s29, %s4847_s29, %s4848_s8  }
  0x75   : > { %p8626_p0 = scmp.ne.s32.totalorder %s8620_s23, 0 }
  0x77   : > { %213 = sbr.rel (%p8626_p0) target bundleno = 1254 (0x4e6), region = 36 }
  0x7e   : > { %s5064_s27 = sand.u32 1, %s4831_s16   ;;  %p8627_p5 = scmp.ne.s32.totalorder %s8618_s21, 0 }
  0x7f   : > { %s3848_s9 = sshll.u32 %s5064_s27, 8  ;;  %s216_s25 = scalar_lea.sflag [#allocation3], %s5064_s27 }
  0x80   : > { %s5068_s28 = scalar_lea.vmem [#allocation2], %s3848_s9 }
  0x81   : > { %4810 = dma.done.wait (%p8627_p5), %s216_s25, 4096  }
  0x82   : > { %4812 = vsyncadd (%p8627_p5), %s216_s25, 4294963200  ;;  %p8628_p11 = scmp.eq.s32.totalorder %s4899_s19, 0 }
  0x84   : > { %4814 = dma.done.wait (%p8628_p11), [#allocation6], 8208   ;;  %p8629_p9 = pmov %p8628_p11 }
  0x86   : > { %4816 = vsyncadd (%p8629_p9), [#allocation6], 4294959088  ;;  %p8630_p12 = pmov %p8629_p9 }
  0x87   : > { %p8631_p2 = pmov %p8629_p9 }
  0x88   : > { %4818 = dma.done.wait (%p8630_p12), [#allocation9], 128  }
  0x89   : > { %4820 = vsyncadd (%p8631_p2), [#allocation9], 4294967168  ;;  %v5083_v0 = vld [vmem:[%s5068_s28] sm:$0xff]  ;;  %v5086_v1 = vld [vmem:[%s5068_s28 + $0x10] sm:$0xff]  ;;  %s3852_s21 = sshll.u32 %s5064_s27, 11  ;;  %s3926_s26 = sshll.u32 %s4899_s19, 15 }
  0x8a   : > { %v5089_v2 = vld [vmem:[%s5068_s28 + $0x8] sm:$0xff]  ;;  %v292_v3 = vmul.f32 %v5083_v0, %v5083_v0  ;;  %v294_v4 = vmul.f32 %v5086_v1, %v5086_v1  ;;  %v5096_v5 = vld [vmem:[%s5068_s28 + $0x18] sm:$0xff]  ;;  %v5106_v9 = vld [vmem:[%s5068_s28 + $0x20] sm:$0xff]  ;;  %s7511_s23 = scalar_lea.vmem [#allocation10], %s3852_s21  ;;  %s8075_s19 = scalar_lea.hbm %s8137_s4, %s3926_s26 }
  0x8b   : > { %v293_v6 = vmul.f32 %v5089_v2, %v5089_v2  ;;  %v295_v7 = vmul.f32 %v5096_v5, %v5096_v5  ;;  %v5103_v8 = vld [vmem:[%s5068_s28 + $0x28] sm:$0xff]  ;;  %v296_v11 = vmul.f32 %v5106_v9, %v5106_v9  ;;  %v5113_v12 = vld [vmem:[%s5068_s28 + $0x38] sm:$0xff]  ;;  %v5116_v13 = vld [vmem:[%s5068_s28 + $0x30] sm:$0xff]  ;;  %s3736_s5 = sshll.u32 %s7511_s23, 4  ;;  %s3722_s14 = scalar_lea.sflag [#allocation4], %s5064_s27  ;;  %s8077_s5 = int_to_ptr.vmem [resolvable:$true] %s3736_s5 }
  0x8c   : > { %324 = vadd.xlane.f32.xlu0 %v292_v3  ;;  %328 = vadd.xlane.f32.xlu1 %v294_v4  ;;  %v297_v10 = vmul.f32 %v5103_v8, %v5103_v8  ;;  %v5119_v14 = vld [vmem:[%s5068_s28 + $0x48] sm:$0xff]  ;;  %v5122_v15 = vld [vmem:[%s5068_s28 + $0x40] sm:$0xff]  ;;  %v299_v17 = vmul.f32 %v5113_v12, %v5113_v12  ;;  %v298_v18 = vmul.f32 %v5116_v13, %v5116_v13  ;;  %v5133_v37 = vld [vmem:[%s5068_s28 + $0x58] sm:$0xff]  ;;  %s4765_s13 = scalar_lea.vmem %s8077_s5, 32768  ;;  %s4850_s30 = smov [#allocation10]  }
  0x8d   : > { %v571_v16 = vld [vmem:[#allocation7] sm:$0xff]  ;;  %v572_v20 = vld [vmem:[#allocation7 + $0x8] sm:$0xff]  ;;  %v301_v32 = vmul.f32 %v5119_v14, %v5119_v14  ;;  %v300_v33 = vmul.f32 %v5122_v15, %v5122_v15  ;;  %v303_v44 = vmul.f32 %v5133_v37, %v5133_v37  ;;  %v5153_v61 = vld [vmem:[%s5068_s28 + $0x78] sm:$0xff]  ;;  %p4766_p1 = scmp.ne.s32.totalorder %s8077_s5, %s4765_s13  ;;  %s4769_s20 = sshll.u32 %s4850_s30, 4  ;;  %s4770_s20 = int_to_ptr.vmem [resolvable:$false] %s4769_s20 }
  0x8e   : > { %v575_v19 = vld [vmem:[#allocation7 + $0x20] sm:$0xff]  ;;  %v576_v21 = vld [vmem:[#allocation7 + $0x28] sm:$0xff]  ;;  %s4771_s24 = scalar_lea.vmem %s4770_s20, 65536  ;;  %p4772_p3 = scmp.lt.s32.totalorder %s8077_s5, %s4770_s20 }
  0x8f   : > { %v3855_v22 = vcombine.high %v571_v16, %v575_v19  ;;  %v3854_v23 = vcombine.low %v571_v16, %v575_v19  ;;  %v3857_v24 = vcombine.high %v572_v20, %v576_v21  ;;  %v3856_v25 = vcombine.low %v572_v20, %v576_v21  ;;  %v579_v26 = vld [vmem:[#allocation7 + $0x40] sm:$0xff]  ;;  %v580_v28 = vld [vmem:[#allocation7 + $0x48] sm:$0xff]  ;;  %p4767_p4 = pnand %p4766_p1, %p5016_p6  ;;  %p4773_p7 = scmp.lt.s32.totalorder %s4771_s24, %s4765_s13 }
  0x90   : > { %326 = vadd.xlane.f32.xlu0 %v293_v6  ;;  %330 = vadd.xlane.f32.xlu1 %v295_v7  ;;  %v583_v27 = vld [vmem:[#allocation7 + $0x60] sm:$0xff]  ;;  %v584_v30 = vld [vmem:[#allocation7 + $0x68] sm:$0xff] }
  0x91   : > { %v3863_v29 = vcombine.high %v579_v26, %v583_v27  ;;  %997 = vmatprep.subr.bf16.mxu0 %v3855_v22  ;;  %1190 = vmatprep.subr.bf16.mxu1 %v3857_v24  ;;  %v3865_v31 = vcombine.high %v580_v28, %v584_v30  ;;  %v587_v34 = vld [vmem:[#allocation7 + $0x80] sm:$0xff]  ;;  %v588_v36 = vld [vmem:[#allocation7 + $0x88] sm:$0xff]  ;;  %v3862_v39 = vcombine.low %v579_v26, %v583_v27  ;;  %p4768_p8 = pneg %p4767_p4  ;;  %p4774_p10 = por %p4773_p7, %p4772_p3 }
  0x92   : > { %v591_v35 = vld [vmem:[#allocation7 + $0xa0] sm:$0xff]  ;;  %v5136_v38 = vld [vmem:[%s5068_s28 + $0x50] sm:$0xff]  ;;  %998 = vmatpush1.bf16.msra.mxu0 %v3854_v23  ;;  %1191 = vmatpush1.bf16.msra.mxu1 %v3856_v25  ;;  %v3864_v40 = vcombine.low %v580_v28, %v584_v30 }
  0x93   : > { %v592_v41 = vld [vmem:[#allocation7 + $0xa8] sm:$0xff]  ;;  %999 = vmatprep.subr.bf16.mxu0 %v3863_v29  ;;  %1192 = vmatprep.subr.bf16.mxu1 %v3865_v31  ;;  %v3871_v42 = vcombine.high %v587_v34, %v591_v35  ;;  %v302_v45 = vmul.f32 %v5136_v38, %v5136_v38  ;;  %v595_v46 = vld [vmem:[#allocation7 + $0xc0] sm:$0xff]  ;;  %v3870_v51 = vcombine.low %v587_v34, %v591_v35  ;;  %v5177_v34 = vld [vmem:[%s5068_s28 + $0x98] sm:$0xff]  ;;  %p4775_p13 = pnand %p4774_p10, %p4768_p8 }
  0x94   : > { %334 = vadd.xlane.f32.xlu1 %v297_v10  ;;  %332 = vadd.xlane.f32.xlu0 %v296_v11  ;;  %v3873_v43 = vcombine.high %v588_v36, %v592_v41  ;;  %v599_v47 = vld [vmem:[#allocation7 + $0xe0] sm:$0xff]  ;;  %v596_v48 = vld [vmem:[#allocation7 + $0xc8] sm:$0xff]  ;;  %v3872_v52 = vcombine.low %v588_v36, %v592_v41 }
  0x95   : > { %v5143_v49 = vld [vmem:[%s5068_s28 + $0x68] sm:$0xff]  ;;  %v5146_v50 = vld [vmem:[%s5068_s28 + $0x60] sm:$0xff]  ;;  %v3879_v54 = vcombine.high %v595_v46, %v599_v47  ;;  %v5156_v62 = vld [vmem:[%s5068_s28 + $0x70] sm:$0xff]  ;;  %v3878_v63 = vcombine.low %v595_v46, %v599_v47  ;;  %v4849_v47 = vmov 0  }
  0x96   : > { %1000 = vmatpush1.bf16.msra.mxu0 %v3862_v39  ;;  %1193 = vmatpush1.bf16.msra.mxu1 %v3864_v40  ;;  %v600_v53 = vld [vmem:[#allocation7 + $0xe8] sm:$0xff]  ;;  %v305_v56 = vmul.f32 %v5143_v49, %v5143_v49  ;;  %v304_v57 = vmul.f32 %v5146_v50, %v5146_v50  ;;  %v603_v58 = vld [vmem:[#allocation7 + $0x100] sm:$0xff] }
  0x97   : > { %1001 = vmatprep.subr.bf16.mxu0 %v3871_v42  ;;  %1194 = vmatprep.subr.bf16.mxu1 %v3873_v43  ;;  %v3881_v55 = vcombine.high %v596_v48, %v600_v53  ;;  %v607_v59 = vld [vmem:[#allocation7 + $0x120] sm:$0xff]  ;;  %v604_v60 = vld [vmem:[#allocation7 + $0x108] sm:$0xff]  ;;  %v3880_v3 = vcombine.low %v596_v48, %v600_v53  ;;  %v311_v48 = vmul.f32 %v5177_v34, %v5177_v34 }
  0x98   : > { %338 = vadd.xlane.f32.xlu1 %v299_v17  ;;  %336 = vadd.xlane.f32.xlu0 %v298_v18  ;;  %v608_v4 = vld [vmem:[#allocation7 + $0x128] sm:$0xff]  ;;  %v3887_v6 = vcombine.high %v603_v58, %v607_v59  ;;  %v611_v10 = vld [vmem:[#allocation7 + $0x140] sm:$0xff]  ;;  %v307_v17 = vmul.f32 %v5153_v61, %v5153_v61  ;;  %v306_v18 = vmul.f32 %v5156_v62, %v5156_v62 }
  0x99   : > { %v3889_v7 = vcombine.high %v604_v60, %v608_v4  ;;  %v615_v11 = vld [vmem:[#allocation7 + $0x160] sm:$0xff]  ;;  %v612_v16 = vld [vmem:[#allocation7 + $0x148] sm:$0xff]  ;;  %v3886_v22 = vcombine.low %v603_v58, %v607_v59  ;;  %v3888_v23 = vcombine.low %v604_v60, %v608_v4  ;;  %1029 = vmatprep.mubr.bf16.mxu0 %v4849_v47  ;;  %1222 = vmatprep.mubr.bf16.mxu1 %v4849_v47  ;;  %v5201_v60 = vld [vmem:[%s5068_s28 + $0xb8] sm:$0xff] }
  0x9a   : > { %1002 = vmatpush1.bf16.msra.mxu0 %v3870_v51  ;;  %1195 = vmatpush1.bf16.msra.mxu1 %v3872_v52  ;;  %v616_v19 = vld [vmem:[#allocation7 + $0x168] sm:$0xff]  ;;  %v5166_v21 = vld [vmem:[%s5068_s28 + $0x80] sm:$0xff]  ;;  %v3895_v24 = vcombine.high %v611_v10, %v615_v11  ;;  %v3894_v36 = vcombine.low %v611_v10, %v615_v11 }
  0x9b   : > { %1003 = vmatprep.subr.bf16.mxu0 %v3879_v54  ;;  %1196 = vmatprep.subr.bf16.mxu1 %v3881_v55  ;;  %v5163_v20 = vld [vmem:[%s5068_s28 + $0x88] sm:$0xff]  ;;  %v3897_v25 = vcombine.high %v612_v16, %v616_v19  ;;  %v308_v31 = vmul.f32 %v5166_v21, %v5166_v21  ;;  %v5180_v35 = vld [vmem:[%s5068_s28 + $0x90] sm:$0xff]  ;;  %v3896_v39 = vcombine.low %v612_v16, %v616_v19  ;;  %v5194_v53 = vld [vmem:[%s5068_s28 + $0xa0] sm:$0xff] }
  0x9c   : > { %342 = vadd.xlane.f32.xlu1 %v301_v32  ;;  %340 = vadd.xlane.f32.xlu0 %v300_v33  ;;  %v619_v26 = vld [vmem:[#allocation7 + $0x180] sm:$0xff]  ;;  %v620_v28 = vld [vmem:[#allocation7 + $0x188] sm:$0xff]  ;;  %v309_v30 = vmul.f32 %v5163_v20, %v5163_v20  ;;  %v5172_v32 = vld [vmem:[#allocation7 + $0x10] sm:$0xff]  ;;  %v310_v51 = vmul.f32 %v5180_v35, %v5180_v35  ;;  %v312_v59 = vmul.f32 %v5194_v53, %v5194_v53 }
  0x9d   : > { %v623_v27 = vld [vmem:[#allocation7 + $0x1a0] sm:$0xff]  ;;  %v624_v29 = vld [vmem:[#allocation7 + $0x1a8] sm:$0xff]  ;;  %v5174_v33 = vld [vmem:[#allocation7 + $0x30] sm:$0xff] }
  0x9e   : > { %1004 = vmatpush1.bf16.msra.mxu0 %v3878_v63  ;;  %1197 = vmatpush1.bf16.msra.mxu1 %v3880_v3  ;;  %v3858_v40 = vcombine.low %v5172_v32, %v5174_v33  ;;  %v3903_v41 = vcombine.high %v619_v26, %v623_v27  ;;  %v3905_v42 = vcombine.high %v620_v28, %v624_v29  ;;  %v627_v43 = vld [vmem:[#allocation7 + $0x1c0] sm:$0xff]  ;;  %v632_v46 = vld [vmem:[#allocation7 + $0x1e8] sm:$0xff]  ;;  %v5212_v11 = vld [vmem:[#allocation7 + $0x18] sm:$0xff] }
  0x9f   : > { %1005 = vmatprep.subr.bf16.mxu0 %v3887_v6  ;;  %1198 = vmatprep.subr.bf16.mxu1 %v3889_v7  ;;  %v5191_v52 = vld [vmem:[%s5068_s28 + $0xa8] sm:$0xff]  ;;  %v3902_v54 = vcombine.low %v619_v26, %v623_v27  ;;  %v3904_v55 = vcombine.low %v620_v28, %v624_v29  ;;  %v5204_v63 = vld [vmem:[%s5068_s28 + $0xb0] sm:$0xff]  ;;  %v3859_v6 = vcombine.high %v5172_v32, %v5174_v33  ;;  %v5214_v16 = vld [vmem:[#allocation7 + $0x38] sm:$0xff] }
  0xa0   : > { %346 = vadd.xlane.f32.xlu1 %v303_v44  ;;  %344 = vadd.xlane.f32.xlu0 %v302_v45  ;;  %v631_v44 = vld [vmem:[#allocation7 + $0x1e0] sm:$0xff]  ;;  %v628_v45 = vld [vmem:[#allocation7 + $0x1c8] sm:$0xff]  ;;  %v313_v58 = vmul.f32 %v5191_v52, %v5191_v52  ;;  %v315_v7 = vmul.f32 %v5201_v60, %v5201_v60  ;;  %v314_v10 = vmul.f32 %v5204_v63, %v5204_v63  ;;  %v597_v33 = vld [vmem:[#allocation7 + $0xd0] sm:$0xff] }
  0xa1   : > { %v3910_v3 = vcombine.low %v627_v43, %v631_v44  ;;  %v3912_v4 = vcombine.low %v628_v45, %v632_v46  ;;  %v3860_v19 = vcombine.low %v5212_v11, %v5214_v16  ;;  %v5234_v26 = vld [vmem:[%s5068_s28 + $0xd0] sm:$0xff]  ;;  %v5241_v29 = vld [vmem:[%s5068_s28 + $0xe8] sm:$0xff] }
  0xa2   : > { %1006 = vmatpush1.bf16.msra.mxu0 %v3886_v22  ;;  %1199 = vmatpush1.bf16.msra.mxu1 %v3888_v23  ;;  %v3861_v22 = vcombine.high %v5212_v11, %v5214_v16  ;;  %v318_v28 = vmul.f32 %v5234_v26, %v5234_v26 }
  0xa3   : > { %1007 = vmatprep.subr.bf16.mxu0 %v3895_v24  ;;  %1200 = vmatprep.subr.bf16.mxu1 %v3897_v25  ;;  %v5231_v25 = vld [vmem:[%s5068_s28 + $0xd8] sm:$0xff] }
  0xa4   : > { %350 = vadd.xlane.f32.xlu1 %v305_v56  ;;  %348 = vadd.xlane.f32.xlu0 %v304_v57  ;;  %v3911_v56 = vcombine.high %v627_v43, %v631_v44  ;;  %v3913_v57 = vcombine.high %v628_v45, %v632_v46  ;;  %v319_v27 = vmul.f32 %v5231_v25, %v5231_v25 }
  0xa6   : > { %1008 = vmatpush1.bf16.msra.mxu0 %v3894_v36  ;;  %1201 = vmatpush1.bf16.msra.mxu1 %v3896_v39  ;;  %v5251_v39 = vld [vmem:[%s5068_s28 + $0xf8] sm:$0xff] }
  0xa7   : > { %1009 = vmatprep.subr.bf16.mxu0 %v3903_v41  ;;  %1202 = vmatprep.subr.bf16.mxu1 %v3905_v42  ;;  %v5254_v41 = vld [vmem:[%s5068_s28 + $0xf0] sm:$0xff]  ;;  %v323_v42 = vmul.f32 %v5251_v39, %v5251_v39 }
  0xa8   : > { %354 = vadd.xlane.f32.xlu1 %v307_v17  ;;  %352 = vadd.xlane.f32.xlu0 %v306_v18  ;;  %v5217_v17 = vld [vmem:[%s5068_s28 + $0xc8] sm:$0xff]  ;;  %v5220_v18 = vld [vmem:[%s5068_s28 + $0xc0] sm:$0xff]  ;;  %v322_v43 = vmul.f32 %v5254_v41, %v5254_v41 }
  0xa9   : > { %v317_v23 = vmul.f32 %v5217_v17, %v5217_v17  ;;  %v316_v24 = vmul.f32 %v5220_v18, %v5220_v18 }
  0xaa   : > { %1010 = vmatpush1.bf16.msra.mxu0 %v3902_v54  ;;  %1203 = vmatpush1.bf16.msra.mxu1 %v3904_v55 }
  0xab   : > { %1011 = vmatprep.subr.bf16.mxu0 %v3911_v56  ;;  %1204 = vmatprep.subr.bf16.mxu1 %v3913_v57 }
  0xac   : > { %358 = vadd.xlane.f32.xlu1 %v309_v30  ;;  %356 = vadd.xlane.f32.xlu0 %v308_v31  ;;  %v5244_v30 = vld [vmem:[%s5068_s28 + $0xe0] sm:$0xff]  ;;  %v321_v31 = vmul.f32 %v5241_v29, %v5241_v29 }
  0xad   : > { %v320_v36 = vmul.f32 %v5244_v30, %v5244_v30 }
  0xae   : > { %1012 = vmatpush1.bf16.msra.mxu0 %v3910_v3  ;;  %1205 = vmatpush1.bf16.msra.mxu1 %v3912_v4 }
  0xaf   : > { %1383 = vmatprep.subr.bf16.mxu0 %v3859_v6  ;;  %1576 = vmatprep.subr.bf16.mxu1 %v3861_v22 }
  0xb0   : > { %362 = vadd.xlane.f32.xlu1 %v311_v48  ;;  %360 = vadd.xlane.f32.xlu0 %v310_v51 }
  0xb4   : > { %366 = vadd.xlane.f32.xlu1 %v313_v58  ;;  %364 = vadd.xlane.f32.xlu0 %v312_v59 }
  0xb8   : > { %370 = vadd.xlane.f32.xlu1 %v315_v7  ;;  %368 = vadd.xlane.f32.xlu0 %v314_v10 }
  0xbc   : > { %374 = vadd.xlane.f32.xlu1 %v317_v23  ;;  %372 = vadd.xlane.f32.xlu0 %v316_v24 }
  0xc0   : > { %378 = vadd.xlane.f32.xlu1 %v319_v27  ;;  %376 = vadd.xlane.f32.xlu0 %v318_v28 }
  0xc4   : > { %382 = vadd.xlane.f32.xlu1 %v321_v31  ;;  %380 = vadd.xlane.f32.xlu0 %v320_v36 }
  0xc8   : > { %386 = vadd.xlane.f32.xlu1 %v323_v42  ;;  %384 = vadd.xlane.f32.xlu0 %v322_v43 }
 0x119   : > { %v325_v44 = vpop.xlane.xlu0 %324  ;;  %v329_v45 = vpop.xlane.xlu1 %328 }
 0x11a   : > { %v389_v46 = vmul.f32 0.0078125, %v325_v44  ;;  %v391_v48 = vmul.f32 0.0078125, %v329_v45  ;;  %v5261_v44 = vld [vmem:[#allocation5] ss:$0 sm:$0xff] }
 0x11c   : > { %v421_v51 = vadd.f32 1e-05, %v389_v46  ;;  %v423_v58 = vadd.f32 1e-05, %v391_v48 }
 0x11d   : > { %v327_v54 = vpop.xlane.xlu0 %326  ;;  %v331_v55 = vpop.xlane.xlu1 %330 }
 0x11e   : > { %4011 = vrsqrt.f32 %v421_v51  ;;  %v390_v56 = vmul.f32 0.0078125, %v327_v54  ;;  %v392_v57 = vmul.f32 0.0078125, %v331_v55 }
 0x120   : > { %v422_v59 = vadd.f32 1e-05, %v390_v56  ;;  %v424_v3 = vadd.f32 1e-05, %v392_v57  ;;  %v581_v56 = vld [vmem:[#allocation7 + $0x50] sm:$0xff] }
 0x121   : > { %v335_v4 = vpop.xlane.xlu1 %334  ;;  %v333_v6 = vpop.xlane.xlu0 %332 }
 0x122   : > { %4013 = vrsqrt.f32 %v422_v59  ;;  %v394_v7 = vmul.f32 0.0078125, %v335_v4  ;;  %v393_v10 = vmul.f32 0.0078125, %v333_v6  ;;  %v582_v4 = vld [vmem:[#allocation7 + $0x58] sm:$0xff] }
 0x123   : > { %4015 = vrsqrt.f32 %v423_v58  ;;  %v586_v6 = vld [vmem:[#allocation7 + $0x78] sm:$0xff] }
 0x124   : > { %4017 = vrsqrt.f32 %v424_v3  ;;  %v426_v22 = vadd.f32 1e-05, %v394_v7  ;;  %v425_v24 = vadd.f32 1e-05, %v393_v10  ;;  %v585_v3 = vld [vmem:[#allocation7 + $0x70] sm:$0xff] }
 0x125   : > { %v339_v23 = vpop.xlane.xlu1 %338  ;;  %v337_v27 = vpop.xlane.xlu0 %336 }
 0x126   : > { %v396_v31 = vmul.f32 0.0078125, %v339_v23  ;;  %4019 = vrsqrt.f32 %v426_v22  ;;  %v395_v36 = vmul.f32 0.0078125, %v337_v27  ;;  %v589_v22 = vld [vmem:[#allocation7 + $0x90] sm:$0xff]  ;;  %v3867_v27 = vcombine.high %v581_v56, %v585_v3 }
 0x127   : > { %4021 = vrsqrt.f32 %v425_v24  ;;  %v593_v23 = vld [vmem:[#allocation7 + $0xb0] sm:$0xff] }
 0x128   : > { %v4012_v28 = vpop.eup %4011  ;;  %v428_v45 = vadd.f32 1e-05, %v396_v31  ;;  %v427_v54 = vadd.f32 1e-05, %v395_v36  ;;  %v590_v31 = vld [vmem:[#allocation7 + $0x98] sm:$0xff] }
 0x129   : > { %v485_v42 = vmul.f32 %v4012_v28, %v5083_v0  ;;  %v343_v55 = vpop.xlane.xlu1 %342  ;;  %v341_v59 = vpop.xlane.xlu0 %340  ;;  %v3869_v28 = vcombine.high %v582_v4, %v586_v6  ;;  %v594_v36 = vld [vmem:[#allocation7 + $0xb8] sm:$0xff] }
 0x12a   : > { %4023 = vrsqrt.f32 %v428_v45  ;;  %v397_v24 = vmul.f32 0.0078125, %v341_v59  ;;  %v3875_v45 = vcombine.high %v589_v22, %v593_v23 }
 0x12b   : > { %v523_v57 = vmul.f32 %v5261_v44, %v485_v42  ;;  %4025 = vrsqrt.f32 %v427_v54  ;;  %v3877_v54 = vcombine.high %v590_v31, %v594_v36 }
 0x12c   : > { %v4014_v43 = vpop.eup %4013 }
 0x12d   : > { %v4016_v46 = vpop.eup %4015  ;;  %v486_v48 = vmul.f32 %v4014_v43, %v5089_v2  ;;  %v398_v2 = vmul.f32 0.0078125, %v343_v55  ;;  %v429_v55 = vadd.f32 1e-05, %v397_v24  ;;  %v347_v32 = vpop.xlane.xlu1 %346  ;;  %v606_v24 = vld [vmem:[#allocation7 + $0x118] sm:$0xff] }
 0x12e   : > { %v4018_v51 = vpop.eup %4017  ;;  %v487_v7 = vmul.f32 %v4016_v46, %v5086_v1  ;;  %v3866_v1 = vcombine.low %v581_v56, %v585_v3  ;;  %v345_v16 = vpop.xlane.xlu0 %344  ;;  %v598_v56 = vld [vmem:[#allocation7 + $0xd8] sm:$0xff]  ;;  %v400_v3 = vmul.f32 0.0078125, %v347_v32  ;;  %v617_v32 = vld [vmem:[#allocation7 + $0x170] sm:$0xff] }
 0x12f   : > { %v524_v58 = vmul.f32 %v5261_v44, %v486_v48  ;;  %v488_v10 = vmul.f32 %v4018_v51, %v5096_v5  ;;  %v3868_v5 = vcombine.low %v582_v4, %v586_v6  ;;  %v430_v51 = vadd.f32 1e-05, %v398_v2 }
 0x130   : > { %v4020_v42 = vpop.eup %4019  ;;  %v525_v46 = vmul.f32 %v5261_v44, %v487_v7  ;;  %v3876_v4 = vcombine.low %v590_v31, %v594_v36  ;;  %v399_v7 = vmul.f32 0.0078125, %v345_v16  ;;  %v432_v31 = vadd.f32 1e-05, %v400_v3  ;;  %v621_v3 = vld [vmem:[#allocation7 + $0x190] sm:$0xff] }
 0x131   : > { %v5266_v0 = vpack.c.bf16 %v524_v58, %v523_v57  ;;  %v4022_v43 = vpop.eup %4021  ;;  %v526_v48 = vmul.f32 %v5261_v44, %v488_v10  ;;  %v490_v11 = vmul.f32 %v4020_v42, %v5103_v8  ;;  %v602_v57 = vld [vmem:[#allocation7 + $0xf8] sm:$0xff]  ;;  %v3874_v58 = vcombine.low %v589_v22, %v593_v23  ;;  %v605_v8 = vld [vmem:[#allocation7 + $0x110] sm:$0xff] }
 0x132   : > { %4027 = vrsqrt.f32 %v430_v51  ;;  %v3885_v10 = vcombine.high %v598_v56, %v602_v57  ;;  %v609_v23 = vld [vmem:[#allocation7 + $0x130] sm:$0xff]  ;;  %v3884_v42 = vcombine.low %v598_v56, %v602_v57 }
 0x133   : > { %1030 = vmatmul.mubr.bf16.vlgmr.msra.gmra.mrb[0].mxu0 %v5266_v0  ;;  %1223 = vmatmul.mubr.bf16.vlgmr.msra.gmra.mrb[0].mxu1 %v5266_v0  ;;  %v5284_v59 = vpack.c.bf16 %v526_v48, %v525_v46  ;;  %4029 = vrsqrt.f32 %v429_v55  ;;  %v528_v22 = vmul.f32 %v5261_v44, %v490_v11  ;;  %v613_v46 = vld [vmem:[#allocation7 + $0x150] sm:$0xff]  ;;  %v349_v55 = vpop.xlane.xlu0 %348  ;;  %v618_v11 = vld [vmem:[#allocation7 + $0x178] sm:$0xff]  ;;  %v3890_v16 = vcombine.low %v605_v8, %v609_v23 }
 0x134   : > { %1384 = vmatpush1.bf16.msra.mxu0 %v3858_v40  ;;  %1577 = vmatpush1.bf16.msra.mxu1 %v3860_v19  ;;  %v489_v40 = vmul.f32 %v4022_v43, %v5106_v9  ;;  %v601_v19 = vld [vmem:[#allocation7 + $0xf0] sm:$0xff]  ;;  %v4024_v6 = vpop.eup %4023  ;;  %v431_v43 = vadd.f32 1e-05, %v399_v7  ;;  %4031 = vrsqrt.f32 %v432_v31  ;;  %v401_v56 = vmul.f32 0.0078125, %v349_v55  ;;  %v622_v7 = vld [vmem:[#allocation7 + $0x198] sm:$0xff] }
 0x135   : > { %1039 = vmatprep.mubr.bf16.mxu0 %v4849_v47  ;;  %1232 = vmatprep.mubr.bf16.mxu1 %v4849_v47  ;;  %v3883_v9 = vcombine.high %v597_v33, %v601_v19  ;;  %v3882_v36 = vcombine.low %v597_v33, %v601_v19  ;;  %v3899_v57 = vcombine.high %v613_v46, %v617_v32  ;;  %v629_v31 = vld [vmem:[#allocation7 + $0x1d0] sm:$0xff] }
 0x136   : > { %1385 = vmatprep.subr.bf16.mxu0 %v3867_v27  ;;  %1578 = vmatprep.subr.bf16.mxu1 %v3869_v28  ;;  %v527_v2 = vmul.f32 %v5261_v44, %v489_v40  ;;  %v610_v27 = vld [vmem:[#allocation7 + $0x138] sm:$0xff]  ;;  %v4026_v28 = vpop.eup %4025  ;;  %4033 = vrsqrt.f32 %v431_v43 }
 0x137   : > { %v491_v51 = vmul.f32 %v4026_v28, %v5116_v13  ;;  %v614_v40 = vld [vmem:[#allocation7 + $0x158] sm:$0xff]  ;;  %v3892_v19 = vcombine.low %v606_v24, %v610_v27 }
 0x138   : > { %1386 = vmatpush1.bf16.msra.mxu0 %v3866_v1  ;;  %1579 = vmatpush1.bf16.msra.mxu1 %v3868_v5  ;;  %v351_v1 = vpop.xlane.xlu1 %350  ;;  %v3891_v5 = vcombine.high %v605_v8, %v609_v23  ;;  %v5292_v48 = vpack.c.bf16 %v528_v22, %v527_v2  ;;  %v3898_v2 = vcombine.low %v613_v46, %v617_v32  ;;  %v433_v23 = vadd.f32 1e-05, %v401_v56 }
 0x139   : > { %1387 = vmatprep.subr.bf16.mxu0 %v3875_v45  ;;  %1580 = vmatprep.subr.bf16.mxu1 %v3877_v54  ;;  %v3893_v45 = vcombine.high %v606_v24, %v610_v27  ;;  %v492_v54 = vmul.f32 %v4024_v6, %v5113_v12  ;;  %v402_v33 = vmul.f32 0.0078125, %v351_v1  ;;  %v529_v12 = vmul.f32 %v5261_v44, %v491_v51  ;;  %v625_v6 = vld [vmem:[#allocation7 + $0x1b0] sm:$0xff]  ;;  %v353_v1 = vpop.xlane.xlu0 %352  ;;  %v634_v51 = vld [vmem:[#allocation7 + $0x1f8] sm:$0xff] }
 0x13a   : > { %v3900_v22 = vcombine.low %v614_v40, %v618_v11  ;;  %v3907_v27 = vcombine.high %v621_v3, %v625_v6  ;;  %v403_v32 = vmul.f32 0.0078125, %v353_v1 }
 0x13b   : > { %1040 = vmatmul.mubr.bf16.gmra.mrb[4].mxu0 %v5284_v59  ;;  %1233 = vmatmul.mubr.bf16.gmra.mrb[4].mxu1 %v5284_v59  ;;  %v434_v8 = vadd.f32 1e-05, %v402_v33 }
 0x13c   : > { %1049 = vmatprep.mubr.bf16.mxu0 %v4849_v47  ;;  %1242 = vmatprep.mubr.bf16.mxu1 %v4849_v47  ;;  %v4028_v13 = vpop.eup %4027  ;;  %v355_v24 = vpop.xlane.xlu1 %354 }
 0x13d   : > { %1388 = vmatpush1.bf16.msra.mxu0 %v3874_v58  ;;  %1581 = vmatpush1.bf16.msra.mxu1 %v3876_v4  ;;  %v3901_v58 = vcombine.high %v614_v40, %v618_v11  ;;  %v530_v4 = vmul.f32 %v5261_v44, %v492_v54  ;;  %v494_v43 = vmul.f32 %v4028_v13, %v5119_v14  ;;  %4035 = vrsqrt.f32 %v434_v8 }
 0x13e   : > { %1389 = vmatprep.subr.bf16.mxu0 %v3883_v9  ;;  %1582 = vmatprep.subr.bf16.mxu1 %v3885_v10  ;;  %v626_v9 = vld [vmem:[#allocation7 + $0x1b8] sm:$0xff]  ;;  %v4030_v10 = vpop.eup %4029  ;;  %v404_v46 = vmul.f32 0.0078125, %v355_v24  ;;  %v3906_v54 = vcombine.low %v621_v3, %v625_v6  ;;  %4037 = vrsqrt.f32 %v433_v23  ;;  %v357_v6 = vpop.xlane.xlu0 %356 }
 0x13f   : > { %v3909_v28 = vcombine.high %v622_v7, %v626_v9  ;;  %v3908_v55 = vcombine.low %v622_v7, %v626_v9  ;;  %v4032_v33 = vpop.eup %4031  ;;  %v405_v9 = vmul.f32 0.0078125, %v357_v6 }
 0x140   : > { %v359_v3 = vpop.xlane.xlu1 %358 }
 0x141   : > { %1390 = vmatpush1.bf16.msra.mxu0 %v3882_v36  ;;  %1583 = vmatpush1.bf16.msra.mxu1 %v3884_v42  ;;  %v5302_v36 = vpack.c.bf16 %v530_v4, %v529_v12  ;;  %v493_v42 = vmul.f32 %v4030_v10, %v5122_v15  ;;  %v532_v15 = vmul.f32 %v5261_v44, %v494_v43  ;;  %v406_v7 = vmul.f32 0.0078125, %v359_v3 }
 0x142   : > { %1391 = vmatprep.subr.bf16.mxu0 %v3891_v5  ;;  %1584 = vmatprep.subr.bf16.mxu1 %v3893_v45  ;;  %v633_v5 = vld [vmem:[#allocation7 + $0x1f0] sm:$0xff]  ;;  %v630_v45 = vld [vmem:[#allocation7 + $0x1d8] sm:$0xff]  ;;  %v496_v4 = vmul.f32 %v4032_v33, %v5133_v37 }
 0x143   : > { %1050 = vmatmul.mubr.bf16.gmra.mrb[8].mxu0 %v5292_v48  ;;  %1243 = vmatmul.mubr.bf16.gmra.mrb[8].mxu1 %v5292_v48  ;;  %v3915_v40 = vcombine.high %v629_v31, %v633_v5  ;;  %v3917_v11 = vcombine.high %v630_v45, %v634_v51  ;;  %v531_v14 = vmul.f32 %v5261_v44, %v493_v42  ;;  %v438_v37 = vadd.f32 1e-05, %v406_v7 }
 0x144   : > { %1059 = vmatprep.mubr.bf16.mxu0 %v4849_v47  ;;  %1252 = vmatprep.mubr.bf16.mxu1 %v4849_v47  ;;  %v3914_v56 = vcombine.low %v629_v31, %v633_v5  ;;  %v363_v23 = vpop.xlane.xlu1 %362  ;;  %v361_v31 = vpop.xlane.xlu0 %360 }
 0x145   : > { %1392 = vmatpush1.bf16.msra.mxu0 %v3890_v16  ;;  %1585 = vmatpush1.bf16.msra.mxu1 %v3892_v19  ;;  %v4034_v16 = vpop.eup %4033  ;;  %v436_v19 = vadd.f32 1e-05, %v404_v46  ;;  %v5312_v13 = vpack.c.bf16 %v532_v15, %v531_v14  ;;  %v408_v42 = vmul.f32 0.0078125, %v363_v23  ;;  %v407_v43 = vmul.f32 0.0078125, %v361_v31 }
 0x146   : > { %1393 = vmatprep.subr.bf16.mxu0 %v3899_v57  ;;  %1586 = vmatprep.subr.bf16.mxu1 %v3901_v58  ;;  %v3916_v57 = vcombine.low %v630_v45, %v634_v51  ;;  %v435_v58 = vadd.f32 1e-05, %v403_v32  ;;  %v495_v12 = vmul.f32 %v4034_v16, %v5136_v38  ;;  %v437_v38 = vadd.f32 1e-05, %v405_v9 }
 0x147   : > { %4039 = vrsqrt.f32 %v436_v19  ;;  %v4036_v10 = vpop.eup %4035 }
 0x148   : > { %4041 = vrsqrt.f32 %v435_v58  ;;  %v533_v8 = vmul.f32 %v5261_v44, %v495_v12  ;;  %v367_v46 = vpop.xlane.xlu1 %366 }
 0x149   : > { %1394 = vmatpush1.bf16.msra.mxu0 %v3898_v2  ;;  %1587 = vmatpush1.bf16.msra.mxu1 %v3900_v22  ;;  %v534_v2 = vmul.f32 %v5261_v44, %v496_v4  ;;  %v4038_v22 = vpop.eup %4037  ;;  %4043 = vrsqrt.f32 %v438_v37 }
 0x14a   : > { %1395 = vmatprep.subr.bf16.mxu0 %v3907_v27  ;;  %1588 = vmatprep.subr.bf16.mxu1 %v3909_v28  ;;  %v497_v27 = vmul.f32 %v4038_v22, %v5146_v50  ;;  %v498_v28 = vmul.f32 %v4036_v10, %v5143_v49  ;;  %4045 = vrsqrt.f32 %v437_v38  ;;  %v440_v49 = vadd.f32 1e-05, %v408_v42 }
 0x14b   : > { %1060 = vmatmul.mubr.bf16.gmra.mrb[12].mxu0 %v5302_v36  ;;  %1253 = vmatmul.mubr.bf16.gmra.mrb[12].mxu1 %v5302_v36  ;;  %v5322_v24 = vpack.c.bf16 %v534_v2, %v533_v8  ;;  %v439_v50 = vadd.f32 1e-05, %v407_v43 }
 0x14c   : > { %1069 = vmatprep.mubr.bf16.mxu0 %v4849_v47  ;;  %1262 = vmatprep.mubr.bf16.mxu1 %v4849_v47  ;;  %v535_v5 = vmul.f32 %v5261_v44, %v497_v27  ;;  %v536_v45 = vmul.f32 %v5261_v44, %v498_v28  ;;  %4047 = vrsqrt.f32 %v440_v49 }
 0x14d   : > { %1396 = vmatpush1.bf16.msra.mxu0 %v3906_v54  ;;  %1589 = vmatpush1.bf16.msra.mxu1 %v3908_v55  ;;  %4049 = vrsqrt.f32 %v439_v50 }
 0x14e   : > { %1397 = vmatprep.subr.bf16.mxu0 %v3915_v40  ;;  %1590 = vmatprep.subr.bf16.mxu1 %v3917_v11  ;;  %v5332_v54 = vpack.c.bf16 %v536_v45, %v535_v5  ;;  %v365_v40 = vpop.xlane.xlu0 %364  ;;  %v410_v11 = vmul.f32 0.0078125, %v367_v46 }
 0x14f   : > { %v409_v33 = vmul.f32 0.0078125, %v365_v40 }
 0x151   : > { %1398 = vmatpush1.bf16.msra.mxu0 %v3914_v56  ;;  %1591 = vmatpush1.bf16.msra.mxu1 %v3916_v57  ;;  %v4040_v1 = vpop.eup %4039  ;;  %v371_v56 = vpop.xlane.xlu1 %370 }
 0x152   : > { %v4042_v51 = vpop.eup %4041  ;;  %v500_v32 = vmul.f32 %v4040_v1, %v5153_v61  ;;  %v442_v61 = vadd.f32 1e-05, %v410_v11  ;;  %v369_v12 = vpop.xlane.xlu0 %368  ;;  %v412_v4 = vmul.f32 0.0078125, %v371_v56 }
 0x153   : > { %1070 = vmatmul.mubr.bf16.gmra.mrb[16].mxu0 %v5312_v13  ;;  %1263 = vmatmul.mubr.bf16.gmra.mrb[16].mxu1 %v5312_v13  ;;  %v499_v55 = vmul.f32 %v4042_v51, %v5156_v62  ;;  %v4044_v14 = vpop.eup %4043  ;;  %v441_v62 = vadd.f32 1e-05, %v409_v33  ;;  %v411_v6 = vmul.f32 0.0078125, %v369_v12 }
 0x154   : > { %1079 = vmatprep.mubr.bf16.mxu0 %v4849_v47  ;;  %1272 = vmatprep.mubr.bf16.mxu1 %v4849_v47  ;;  %v538_v16 = vmul.f32 %v5261_v44, %v500_v32  ;;  %v4046_v19 = vpop.eup %4045  ;;  %v502_v3 = vmul.f32 %v4044_v14, %v5163_v20  ;;  %4051 = vrsqrt.f32 %v442_v61  ;;  %v444_v20 = vadd.f32 1e-05, %v412_v4 }
 0x155   : > { %v537_v15 = vmul.f32 %v5261_v44, %v499_v55  ;;  %v501_v58 = vmul.f32 %v4046_v19, %v5166_v21  ;;  %4053 = vrsqrt.f32 %v441_v62  ;;  %v443_v21 = vadd.f32 1e-05, %v411_v6  ;;  %v375_v2 = vpop.xlane.xlu1 %374 }
 0x156   : > { %v4048_v7 = vpop.eup %4047  ;;  %v540_v10 = vmul.f32 %v5261_v44, %v502_v3  ;;  %v373_v23 = vpop.xlane.xlu0 %372  ;;  %4055 = vrsqrt.f32 %v444_v20  ;;  %v414_v27 = vmul.f32 0.0078125, %v375_v2 }
 0x157   : > { %v5342_v57 = vpack.c.bf16 %v538_v16, %v537_v15  ;;  %v539_v9 = vmul.f32 %v5261_v44, %v501_v58  ;;  %v4050_v8 = vpop.eup %4049  ;;  %v504_v38 = vmul.f32 %v4048_v7, %v5177_v34  ;;  %4057 = vrsqrt.f32 %v443_v21 }
 0x158   : > { %v503_v37 = vmul.f32 %v4050_v8, %v5180_v35  ;;  %v413_v28 = vmul.f32 0.0078125, %v373_v23  ;;  %v446_v34 = vadd.f32 1e-05, %v414_v27 }
 0x159   : > { %v5352_v22 = vpack.c.bf16 %v540_v10, %v539_v9  ;;  %v542_v43 = vmul.f32 %v5261_v44, %v504_v38  ;;  %v379_v5 = vpop.xlane.xlu1 %378 }
 0x15a   : > { %v541_v42 = vmul.f32 %v5261_v44, %v503_v37  ;;  %v445_v35 = vadd.f32 1e-05, %v413_v28  ;;  %v377_v50 = vpop.xlane.xlu0 %376  ;;  %4059 = vrsqrt.f32 %v446_v34  ;;  %v416_v46 = vmul.f32 0.0078125, %v379_v5 }
 0x15b   : > { %1080 = vmatmul.mubr.bf16.gmra.mrb[20].mxu0 %v5322_v24  ;;  %1273 = vmatmul.mubr.bf16.gmra.mrb[20].mxu1 %v5322_v24  ;;  %v415_v55 = vmul.f32 0.0078125, %v377_v50 }
 0x15c   : > { %1089 = vmatprep.mubr.bf16.mxu0 %v4849_v47  ;;  %1282 = vmatprep.mubr.bf16.mxu1 %v4849_v47  ;;  %v5362_v45 = vpack.c.bf16 %v542_v43, %v541_v42  ;;  %4061 = vrsqrt.f32 %v445_v35 }
 0x15d   : > { %v383_v14 = vpop.xlane.xlu1 %382 }
 0x15e   : > { %v4052_v31 = vpop.eup %4051  ;;  %v381_v61 = vpop.xlane.xlu0 %380  ;;  %v418_v62 = vmul.f32 0.0078125, %v383_v14 }
 0x15f   : > { %v4054_v1 = vpop.eup %4053  ;;  %v506_v49 = vmul.f32 %v4052_v31, %v5191_v52  ;;  %v448_v52 = vadd.f32 1e-05, %v416_v46  ;;  %v417_v56 = vmul.f32 0.0078125, %v381_v61 }
 0x160   : > { %v505_v51 = vmul.f32 %v4054_v1, %v5194_v53  ;;  %v4056_v32 = vpop.eup %4055  ;;  %v447_v53 = vadd.f32 1e-05, %v415_v55 }
 0x161   : > { %v544_v11 = vmul.f32 %v5261_v44, %v506_v49  ;;  %v4058_v33 = vpop.eup %4057  ;;  %v508_v19 = vmul.f32 %v4056_v32, %v5201_v60  ;;  %4063 = vrsqrt.f32 %v448_v52  ;;  %v450_v60 = vadd.f32 1e-05, %v418_v62  ;;  %v387_v6 = vpop.xlane.xlu1 %386 }
 0x162   : > { %v543_v40 = vmul.f32 %v5261_v44, %v505_v51  ;;  %v507_v16 = vmul.f32 %v4058_v33, %v5204_v63  ;;  %4065 = vrsqrt.f32 %v447_v53  ;;  %v449_v63 = vadd.f32 1e-05, %v417_v56  ;;  %v385_v8 = vpop.xlane.xlu0 %384 }
 0x163   : > { %1090 = vmatmul.mubr.bf16.gmra.mrb[24].mxu0 %v5332_v54  ;;  %1283 = vmatmul.mubr.bf16.gmra.mrb[24].mxu1 %v5332_v54  ;;  %v546_v12 = vmul.f32 %v5261_v44, %v508_v19  ;;  %4067 = vrsqrt.f32 %v450_v60  ;;  %v420_v20 = vmul.f32 0.0078125, %v387_v6  ;;  %v419_v21 = vmul.f32 0.0078125, %v385_v8 }
 0x164   : > { %1099 = vmatprep.mubr.bf16.mxu0 %v4849_v47  ;;  %1292 = vmatprep.mubr.bf16.mxu1 %v4849_v47  ;;  %v5372_v15 = vpack.c.bf16 %v544_v11, %v543_v40  ;;  %v4060_v58 = vpop.eup %4059  ;;  %v545_v3 = vmul.f32 %v5261_v44, %v507_v16  ;;  %4069 = vrsqrt.f32 %v449_v63 }
 0x165   : > { %v510_v10 = vmul.f32 %v4060_v58, %v5217_v17  ;;  %v452_v17 = vadd.f32 1e-05, %v420_v20 }
 0x166   : > { %v4062_v4 = vpop.eup %4061  ;;  %v5382_v7 = vpack.c.bf16 %v546_v12, %v545_v3 }
 0x167   : > { %v509_v9 = vmul.f32 %v4062_v4, %v5220_v18  ;;  %v548_v38 = vmul.f32 %v5261_v44, %v510_v10  ;;  %v451_v18 = vadd.f32 1e-05, %v419_v21  ;;  %4071 = vrsqrt.f32 %v452_v17 }
 0x169   : > { %v547_v37 = vmul.f32 %v5261_v44, %v509_v9  ;;  %4073 = vrsqrt.f32 %v451_v18 }
 0x16b   : > { %1100 = vmatmul.mubr.bf16.gmra.mrb[28].mxu0 %v5342_v57  ;;  %1293 = vmatmul.mubr.bf16.gmra.mrb[28].mxu1 %v5342_v57  ;;  %v4064_v2 = vpop.eup %4063  ;;  %v5392_v27 = vpack.c.bf16 %v548_v38, %v547_v37 }
 0x16c   : > { %1109 = vmatprep.mubr.bf16.mxu0 %v4849_v47  ;;  %1302 = vmatprep.mubr.bf16.mxu1 %v4849_v47  ;;  %v4066_v23 = vpop.eup %4065  ;;  %v512_v31 = vmul.f32 %v4064_v2, %v5231_v25 }
 0x16d   : > { %v511_v28 = vmul.f32 %v4066_v23, %v5234_v26  ;;  %v4068_v42 = vpop.eup %4067 }
 0x16e   : > { %v550_v1 = vmul.f32 %v5261_v44, %v512_v31  ;;  %v4070_v34 = vpop.eup %4069  ;;  %v514_v26 = vmul.f32 %v4068_v42, %v5241_v29 }
 0x16f   : > { %v549_v43 = vmul.f32 %v5261_v44, %v511_v28  ;;  %v513_v25 = vmul.f32 %v4070_v34, %v5244_v30 }
 0x170   : > { %v552_v49 = vmul.f32 %v5261_v44, %v514_v26 }
 0x171   : > { %v5402_v35 = vpack.c.bf16 %v550_v1, %v549_v43  ;;  %v4072_v5 = vpop.eup %4071  ;;  %v551_v51 = vmul.f32 %v5261_v44, %v513_v25 }
 0x172   : > { %v516_v29 = vmul.f32 %v4072_v5, %v5251_v39 }
 0x173   : > { %1110 = vmatmul.mubr.bf16.gmra.mrb[32].mxu0 %v5352_v22  ;;  %1303 = vmatmul.mubr.bf16.gmra.mrb[32].mxu1 %v5352_v22  ;;  %v4074_v50 = vpop.eup %4073  ;;  %v5412_v46 = vpack.c.bf16 %v552_v49, %v551_v51 }
 0x174   : > { %1119 = vmatprep.mubr.bf16.mxu0 %v4849_v47  ;;  %1312 = vmatprep.mubr.bf16.mxu1 %v4849_v47  ;;  %v515_v30 = vmul.f32 %v4074_v50, %v5254_v41  ;;  %v554_v32 = vmul.f32 %v5261_v44, %v516_v29 }
 0x176   : > { %v553_v55 = vmul.f32 %v5261_v44, %v515_v30 }
 0x178   : > { %v5422_v40 = vpack.c.bf16 %v554_v32, %v553_v55 }
 0x17b   : > { %1120 = vmatmul.mubr.bf16.gmra.mrb[36].mxu0 %v5362_v45  ;;  %1313 = vmatmul.mubr.bf16.gmra.mrb[36].mxu1 %v5362_v45 }
 0x17c   : > { %1129 = vmatprep.mubr.bf16.mxu0 %v4849_v47  ;;  %1322 = vmatprep.mubr.bf16.mxu1 %v4849_v47 }
 0x183   : > { %1130 = vmatmul.mubr.bf16.gmra.mrb[40].mxu0 %v5372_v15  ;;  %1323 = vmatmul.mubr.bf16.gmra.mrb[40].mxu1 %v5372_v15 }
 0x184   : > { %1139 = vmatprep.mubr.bf16.mxu0 %v4849_v47  ;;  %1332 = vmatprep.mubr.bf16.mxu1 %v4849_v47 }
 0x18b   : > { %1140 = vmatmul.mubr.bf16.gmra.mrb[44].mxu0 %v5382_v7  ;;  %1333 = vmatmul.mubr.bf16.gmra.mrb[44].mxu1 %v5382_v7 }
 0x18c   : > { %1149 = vmatprep.mubr.bf16.mxu0 %v4849_v47  ;;  %1342 = vmatprep.mubr.bf16.mxu1 %v4849_v47 }
 0x193   : > { %1150 = vmatmul.mubr.bf16.gmra.mrb[48].mxu0 %v5392_v27  ;;  %1343 = vmatmul.mubr.bf16.gmra.mrb[48].mxu1 %v5392_v27 }
 0x194   : > { %1159 = vmatprep.mubr.bf16.mxu0 %v4849_v47  ;;  %1352 = vmatprep.mubr.bf16.mxu1 %v4849_v47 }
 0x19b   : > { %1160 = vmatmul.mubr.bf16.gmra.mrb[52].mxu0 %v5402_v35  ;;  %1353 = vmatmul.mubr.bf16.gmra.mrb[52].mxu1 %v5402_v35 }
 0x19c   : > { %1169 = vmatprep.mubr.bf16.mxu0 %v4849_v47  ;;  %1362 = vmatprep.mubr.bf16.mxu1 %v4849_v47 }
 0x1a3   : > { %1170 = vmatmul.mubr.bf16.gmra.mrb[56].mxu0 %v5412_v46  ;;  %1363 = vmatmul.mubr.bf16.gmra.mrb[56].mxu1 %v5412_v46 }
 0x1a4   : > { %1179 = vmatprep.mubr.bf16.mxu0 %v4849_v47  ;;  %1372 = vmatprep.mubr.bf16.mxu1 %v4849_v47 }
 0x1ab   : > { %1180 = vmatmul.mubr.bf16.gmra.mrb[60].mxu0 %v5422_v40  ;;  %1373 = vmatmul.mubr.bf16.gmra.mrb[60].mxu1 %v5422_v40 }
 0x1ac   : > { %1415 = vmatprep.mubr.bf16.mxu0 %v4849_v47  ;;  %1608 = vmatprep.mubr.bf16.mxu1 %v4849_v47 }
 0x1b3   : > { %1416 = vmatmul.mubr.bf16.vlgmr.msra.gmra.mrb[64].mxu0 %v5266_v0  ;;  %1609 = vmatmul.mubr.bf16.vlgmr.msra.gmra.mrb[64].mxu1 %v5266_v0 }
 0x1b4   : > { %1425 = vmatprep.mubr.bf16.mxu0 %v4849_v47  ;;  %1618 = vmatprep.mubr.bf16.mxu1 %v4849_v47 }
 0x1bb   : > { %1426 = vmatmul.mubr.bf16.gmra.mrb[68].mxu0 %v5284_v59  ;;  %1619 = vmatmul.mubr.bf16.gmra.mrb[68].mxu1 %v5284_v59 }
 0x1bc   : > { %1435 = vmatprep.mubr.bf16.mxu0 %v4849_v47  ;;  %1628 = vmatprep.mubr.bf16.mxu1 %v4849_v47 }
 0x1c3   : > { %1436 = vmatmul.mubr.bf16.gmra.mrb[72].mxu0 %v5292_v48  ;;  %1629 = vmatmul.mubr.bf16.gmra.mrb[72].mxu1 %v5292_v48 }
 0x1c4   : > { %1445 = vmatprep.mubr.bf16.mxu0 %v4849_v47  ;;  %1638 = vmatprep.mubr.bf16.mxu1 %v4849_v47 }
 0x1cb   : > { %1446 = vmatmul.mubr.bf16.gmra.mrb[76].mxu0 %v5302_v36  ;;  %1639 = vmatmul.mubr.bf16.gmra.mrb[76].mxu1 %v5302_v36 }
 0x1cc   : > { %1455 = vmatprep.mubr.bf16.mxu0 %v4849_v47  ;;  %1648 = vmatprep.mubr.bf16.mxu1 %v4849_v47 }
 0x1d3   : > { %1456 = vmatmul.mubr.bf16.gmra.mrb[80].mxu0 %v5312_v13  ;;  %1649 = vmatmul.mubr.bf16.gmra.mrb[80].mxu1 %v5312_v13 }
 0x1d4   : > { %1465 = vmatprep.mubr.bf16.mxu0 %v4849_v47  ;;  %1658 = vmatprep.mubr.bf16.mxu1 %v4849_v47 }
 0x1db   : > { %1466 = vmatmul.mubr.bf16.gmra.mrb[84].mxu0 %v5322_v24  ;;  %1659 = vmatmul.mubr.bf16.gmra.mrb[84].mxu1 %v5322_v24 }
 0x1dc   : > { %1475 = vmatprep.mubr.bf16.mxu0 %v4849_v47  ;;  %1668 = vmatprep.mubr.bf16.mxu1 %v4849_v47 }
 0x1e3   : > { %1476 = vmatmul.mubr.bf16.gmra.mrb[88].mxu0 %v5332_v54  ;;  %1669 = vmatmul.mubr.bf16.gmra.mrb[88].mxu1 %v5332_v54 }
 0x1e4   : > { %1485 = vmatprep.mubr.bf16.mxu0 %v4849_v47  ;;  %1678 = vmatprep.mubr.bf16.mxu1 %v4849_v47 }
 0x1eb   : > { %1486 = vmatmul.mubr.bf16.gmra.mrb[92].mxu0 %v5342_v57  ;;  %1679 = vmatmul.mubr.bf16.gmra.mrb[92].mxu1 %v5342_v57 }
 0x1ec   : > { %1495 = vmatprep.mubr.bf16.mxu0 %v4849_v47  ;;  %1688 = vmatprep.mubr.bf16.mxu1 %v4849_v47 }
 0x1f3   : > { %1496 = vmatmul.mubr.bf16.gmra.mrb[96].mxu0 %v5352_v22  ;;  %1689 = vmatmul.mubr.bf16.gmra.mrb[96].mxu1 %v5352_v22 }
 0x1f4   : > { %1505 = vmatprep.mubr.bf16.mxu0 %v4849_v47  ;;  %1698 = vmatprep.mubr.bf16.mxu1 %v4849_v47 }
 0x1fb   : > { %1506 = vmatmul.mubr.bf16.gmra.mrb[100].mxu0 %v5362_v45  ;;  %1699 = vmatmul.mubr.bf16.gmra.mrb[100].mxu1 %v5362_v45 }
 0x1fc   : > { %1515 = vmatprep.mubr.bf16.mxu0 %v4849_v47  ;;  %1708 = vmatprep.mubr.bf16.mxu1 %v4849_v47 }
 0x203   : > { %1516 = vmatmul.mubr.bf16.gmra.mrb[104].mxu0 %v5372_v15  ;;  %1709 = vmatmul.mubr.bf16.gmra.mrb[104].mxu1 %v5372_v15 }
 0x204   : > { %1525 = vmatprep.mubr.bf16.mxu0 %v4849_v47  ;;  %1718 = vmatprep.mubr.bf16.mxu1 %v4849_v47 }
 0x206   : > { %v5472_v39 = vpop.f32.mrb[0].mxu0  ;;  %v5474_v41 = vpop.f32.mrb[0].mxu1 }
 0x207   : > { %v5476_v44 = vpop.f32.mrb[1].mxu0  ;;  %v5478_v0 = vpop.f32.mrb[1].mxu1 }
 0x208   : > { %v5480_v59 = vpop.f32.mrb[2].mxu0  ;;  %v5482_v48 = vpop.f32.mrb[2].mxu1 }
 0x209   : > { %v5484_v36 = vpop.f32.mrb[3].mxu0  ;;  %v5486_v13 = vpop.f32.mrb[3].mxu1 }
 0x20b   : > { %1526 = vmatmul.mubr.bf16.gmra.mrb[108].mxu0 %v5382_v7  ;;  %1719 = vmatmul.mubr.bf16.gmra.mrb[108].mxu1 %v5382_v7 }
 0x20c   : > { %1535 = vmatprep.mubr.bf16.mxu0 %v4849_v47  ;;  %1728 = vmatprep.mubr.bf16.mxu1 %v4849_v47 }
 0x20e   : > { %v5492_v24 = vpop.f32.mrb[4].mxu0  ;;  %v5494_v54 = vpop.f32.mrb[4].mxu1 }
 0x20f   : > { %v5496_v57 = vpop.f32.mrb[5].mxu0  ;;  %v5498_v22 = vpop.f32.mrb[5].mxu1 }
 0x210   : > { %v5500_v45 = vpop.f32.mrb[6].mxu0  ;;  %v5502_v11 = vpop.f32.mrb[6].mxu1 }
 0x211   : > { %v5504_v33 = vpop.f32.mrb[7].mxu0  ;;  %v5506_v52 = vpop.f32.mrb[7].mxu1 }
 0x213   : > { %1536 = vmatmul.mubr.bf16.gmra.mrb[112].mxu0 %v5392_v27  ;;  %1729 = vmatmul.mubr.bf16.gmra.mrb[112].mxu1 %v5392_v27 }
 0x214   : > { %1545 = vmatprep.mubr.bf16.mxu0 %v4849_v47  ;;  %1738 = vmatprep.mubr.bf16.mxu1 %v4849_v47 }
 0x216   : > { %v5512_v53 = vpop.f32.mrb[8].mxu0  ;;  %v5514_v14 = vpop.f32.mrb[8].mxu1 }
 0x217   : > { %v5516_v15 = vpop.f32.mrb[9].mxu0  ;;  %v5518_v16 = vpop.f32.mrb[9].mxu1 }
 0x218   : > { %v5520_v19 = vpop.f32.mrb[10].mxu0  ;;  %v5522_v61 = vpop.f32.mrb[10].mxu1 }
 0x219   : > { %v5524_v62 = vpop.f32.mrb[11].mxu0  ;;  %v5526_v56 = vpop.f32.mrb[11].mxu1 }
 0x21b   : > { %1546 = vmatmul.mubr.bf16.gmra.mrb[116].mxu0 %v5402_v35  ;;  %1739 = vmatmul.mubr.bf16.gmra.mrb[116].mxu1 %v5402_v35 }
 0x21c   : > { %1555 = vmatprep.mubr.bf16.mxu0 %v4849_v47  ;;  %1748 = vmatprep.mubr.bf16.mxu1 %v4849_v47 }
 0x21e   : > { %v5532_v58 = vpop.f32.mrb[12].mxu0  ;;  %v5534_v3 = vpop.f32.mrb[12].mxu1 }
 0x21f   : > { %v5536_v12 = vpop.f32.mrb[13].mxu0  ;;  %v5538_v4 = vpop.f32.mrb[13].mxu1 }
 0x220   : > { %v5540_v60 = vpop.f32.mrb[14].mxu0  ;;  %v5542_v63 = vpop.f32.mrb[14].mxu1 }
 0x221   : > { %v5544_v6 = vpop.f32.mrb[15].mxu0  ;;  %v5546_v7 = vpop.f32.mrb[15].mxu1 }
 0x223   : > { %1556 = vmatmul.mubr.bf16.gmra.mrb[120].mxu0 %v5412_v46  ;;  %1749 = vmatmul.mubr.bf16.gmra.mrb[120].mxu1 %v5412_v46 }
 0x224   : > { %1565 = vmatprep.mubr.bf16.mxu0 %v4849_v47  ;;  %1758 = vmatprep.mubr.bf16.mxu1 %v4849_v47 }
 0x226   : > { %v5552_v9 = vpop.f32.mrb[16].mxu0  ;;  %v5554_v10 = vpop.f32.mrb[16].mxu1 }
 0x227   : > { %v5556_v8 = vpop.f32.mrb[17].mxu0  ;;  %v5558_v20 = vpop.f32.mrb[17].mxu1 }
 0x228   : > { %v5560_v21 = vpop.f32.mrb[18].mxu0  ;;  %v5562_v2 = vpop.f32.mrb[18].mxu1 }
 0x229   : > { %v5564_v37 = vpop.f32.mrb[19].mxu0  ;;  %v5566_v38 = vpop.f32.mrb[19].mxu1 }
 0x22b   : > { %1566 = vmatmul.mubr.bf16.gmra.mrb[124].mxu0 %v5422_v40  ;;  %1759 = vmatmul.mubr.bf16.gmra.mrb[124].mxu1 %v5422_v40 }
 0x22e   : > { %v5570_v47 = vpop.f32.mrb[20].mxu0  ;;  %v5572_v23 = vpop.f32.mrb[20].mxu1 }
 0x22f   : > { %v5574_v17 = vpop.f32.mrb[21].mxu0  ;;  %v5576_v18 = vpop.f32.mrb[21].mxu1 }
 0x230   : > { %8632 = vst [vmem:[#allocation15_spill] sm:$0xff] %v5576_v18  ;;  %v5578_v27 = vpop.f32.mrb[22].mxu0  ;;  %v5580_v28 = vpop.f32.mrb[22].mxu1 }
 0x231   : > { %v5582_v31 = vpop.f32.mrb[23].mxu0  ;;  %v5584_v42 = vpop.f32.mrb[23].mxu1 }
 0x232   : > { %8633 = vst [vmem:[#allocation16_spill] sm:$0xff] %v5584_v42 }
 0x236   : > { %v5586_v43 = vpop.f32.mrb[24].mxu0  ;;  %v5588_v1 = vpop.f32.mrb[24].mxu1 }
 0x237   : > { %8634 = vst [vmem:[#allocation17_spill] sm:$0xff] %v5588_v1  ;;  %v5590_v34 = vpop.f32.mrb[25].mxu0  ;;  %v5592_v35 = vpop.f32.mrb[25].mxu1  ;;  %v635_v1 = vld [vmem:[#allocation8] sm:$0xff] }
 0x238   : > { %8635 = vst [vmem:[#allocation18_spill] sm:$0xff] %v5590_v34  ;;  %8636 = vst [vmem:[#allocation19_spill] sm:$0xff] %v5592_v35  ;;  %v5594_v25 = vpop.f32.mrb[26].mxu0  ;;  %v5596_v26 = vpop.f32.mrb[26].mxu1 }
 0x239   : > { %8637 = vst [vmem:[#allocation20_spill] sm:$0xff] %v5594_v25  ;;  %8638 = vst [vmem:[#allocation21_spill] sm:$0xff] %v5596_v26  ;;  %v5598_v5 = vpop.f32.mrb[27].mxu0  ;;  %v5600_v51 = vpop.f32.mrb[27].mxu1 }
 0x23a   : > { %8639 = vst [vmem:[#allocation22_spill] sm:$0xff] %v5598_v5  ;;  %8640 = vst [vmem:[#allocation23_spill] sm:$0xff] %v5600_v51 }
 0x23e   : > { %v5602_v49 = vpop.f32.mrb[28].mxu0  ;;  %v5604_v50 = vpop.f32.mrb[28].mxu1 }
 0x23f   : > { %8641 = vst [vmem:[#allocation24_spill] sm:$0xff] %v5602_v49  ;;  %8642 = vst [vmem:[#allocation25_spill] sm:$0xff] %v5604_v50  ;;  %v5606_v46 = vpop.f32.mrb[29].mxu0  ;;  %v5608_v30 = vpop.f32.mrb[29].mxu1 }
 0x240   : > { %8643 = vst [vmem:[#allocation26_spill] sm:$0xff] %v5606_v46  ;;  %8644 = vst [vmem:[#allocation27_spill] sm:$0xff] %v5608_v30  ;;  %v5610_v29 = vpop.f32.mrb[30].mxu0  ;;  %v5612_v55 = vpop.f32.mrb[30].mxu1 }
 0x241   : > { %8645 = vst [vmem:[#allocation28_spill] sm:$0xff] %v5610_v29  ;;  %8646 = vst [vmem:[#allocation29_spill] sm:$0xff] %v5612_v55  ;;  %v5614_v32 = vpop.f32.mrb[31].mxu0  ;;  %v5616_v40 = vpop.f32.mrb[31].mxu1 }
 0x242   : > { %8647 = vst [vmem:[#allocation30_spill] sm:$0xff] %v5614_v32  ;;  %8648 = vst [vmem:[#allocation31_spill] sm:$0xff] %v5616_v40 }
 0x246   : > { %v5618_v35 = vpop.f32.mrb[32].mxu0  ;;  %v5620_v26 = vpop.f32.mrb[32].mxu1 }
 0x247   : > { %8649 = vst [vmem:[#allocation32_spill] sm:$0xff] %v5618_v35  ;;  %8650 = vst [vmem:[#allocation33_spill] sm:$0xff] %v5620_v26  ;;  %v5622_v51 = vpop.f32.mrb[33].mxu0  ;;  %v5624_v49 = vpop.f32.mrb[33].mxu1 }
 0x248   : > { %8651 = vst [vmem:[#allocation34_spill] sm:$0xff] %v5622_v51  ;;  %8652 = vst [vmem:[#allocation35_spill] sm:$0xff] %v5624_v49  ;;  %v5626_v50 = vpop.f32.mrb[34].mxu0  ;;  %v5628_v46 = vpop.f32.mrb[34].mxu1 }
 0x249   : > { %8653 = vst [vmem:[#allocation36_spill] sm:$0xff] %v5626_v50  ;;  %8654 = vst [vmem:[#allocation37_spill] sm:$0xff] %v5628_v46  ;;  %v5630_v30 = vpop.f32.mrb[35].mxu0  ;;  %v5632_v29 = vpop.f32.mrb[35].mxu1 }
 0x24a   : > { %8655 = vst [vmem:[#allocation38_spill] sm:$0xff] %v5630_v30  ;;  %8656 = vst [vmem:[#allocation39_spill] sm:$0xff] %v5632_v29 }
 0x24e   : > { %v5634_v55 = vpop.f32.mrb[36].mxu0  ;;  %v5636_v32 = vpop.f32.mrb[36].mxu1 }
 0x24f   : > { %8657 = vst [vmem:[#allocation40_spill] sm:$0xff] %v5634_v55  ;;  %8658 = vst [vmem:[#allocation41_spill] sm:$0xff] %v5636_v32  ;;  %v5638_v40 = vpop.f32.mrb[37].mxu0  ;;  %v5640_v35 = vpop.f32.mrb[37].mxu1 }
 0x250   : > { %8659 = vst [vmem:[#allocation42_spill] sm:$0xff] %v5638_v40  ;;  %8660 = vst [vmem:[#allocation43_spill] sm:$0xff] %v5640_v35  ;;  %v5642_v26 = vpop.f32.mrb[38].mxu0  ;;  %v5644_v51 = vpop.f32.mrb[38].mxu1 }
 0x251   : > { %8661 = vst [vmem:[#allocation44_spill] sm:$0xff] %v5642_v26  ;;  %8662 = vst [vmem:[#allocation45_spill] sm:$0xff] %v5644_v51  ;;  %v5646_v49 = vpop.f32.mrb[39].mxu0  ;;  %v5648_v50 = vpop.f32.mrb[39].mxu1 }
 0x252   : > { %8663 = vst [vmem:[#allocation46_spill] sm:$0xff] %v5646_v49  ;;  %8664 = vst [vmem:[#allocation47_spill] sm:$0xff] %v5648_v50 }
 0x256   : > { %v5650_v46 = vpop.f32.mrb[40].mxu0  ;;  %v5652_v30 = vpop.f32.mrb[40].mxu1 }
 0x257   : > { %8665 = vst [vmem:[#allocation48_spill] sm:$0xff] %v5650_v46  ;;  %8666 = vst [vmem:[#allocation49_spill] sm:$0xff] %v5652_v30  ;;  %v5654_v29 = vpop.f32.mrb[41].mxu0  ;;  %v5656_v55 = vpop.f32.mrb[41].mxu1 }
 0x258   : > { %8667 = vst [vmem:[#allocation50_spill] sm:$0xff] %v5654_v29  ;;  %8668 = vst [vmem:[#allocation51_spill] sm:$0xff] %v5656_v55  ;;  %v5658_v32 = vpop.f32.mrb[42].mxu0  ;;  %v5660_v40 = vpop.f32.mrb[42].mxu1 }
 0x259   : > { %8669 = vst [vmem:[#allocation52_spill] sm:$0xff] %v5658_v32  ;;  %8670 = vst [vmem:[#allocation53_spill] sm:$0xff] %v5660_v40  ;;  %v5662_v35 = vpop.f32.mrb[43].mxu0  ;;  %v5664_v26 = vpop.f32.mrb[43].mxu1 }
 0x25a   : > { %8671 = vst [vmem:[#allocation54_spill] sm:$0xff] %v5662_v35  ;;  %8672 = vst [vmem:[#allocation55_spill] sm:$0xff] %v5664_v26 }
 0x25e   : > { %v5666_v51 = vpop.f32.mrb[44].mxu0  ;;  %v5668_v49 = vpop.f32.mrb[44].mxu1 }
 0x25f   : > { %8673 = vst [vmem:[#allocation56_spill] sm:$0xff] %v5666_v51  ;;  %8674 = vst [vmem:[#allocation57_spill] sm:$0xff] %v5668_v49  ;;  %v5670_v50 = vpop.f32.mrb[45].mxu0  ;;  %v5672_v46 = vpop.f32.mrb[45].mxu1 }
 0x260   : > { %8675 = vst [vmem:[#allocation58_spill] sm:$0xff] %v5670_v50  ;;  %8676 = vst [vmem:[#allocation59_spill] sm:$0xff] %v5672_v46  ;;  %v5674_v30 = vpop.f32.mrb[46].mxu0  ;;  %v5676_v29 = vpop.f32.mrb[46].mxu1 }
 0x261   : > { %8677 = vst [vmem:[#allocation60_spill] sm:$0xff] %v5674_v30  ;;  %8678 = vst [vmem:[#allocation61_spill] sm:$0xff] %v5676_v29  ;;  %v5678_v55 = vpop.f32.mrb[47].mxu0  ;;  %v5680_v32 = vpop.f32.mrb[47].mxu1  ;;  %v637_v29 = vlaneseq }
 0x262   : > { %8679 = vst [vmem:[#allocation62_spill] sm:$0xff] %v5678_v55  ;;  %8680 = vst [vmem:[#allocation63_spill] sm:$0xff] %v5680_v32 }
 0x266   : > { %v5682_v40 = vpop.f32.mrb[48].mxu0  ;;  %v5684_v35 = vpop.f32.mrb[48].mxu1 }
 0x267   : > { %8681 = vst [vmem:[#allocation64_spill] sm:$0xff] %v5682_v40  ;;  %8682 = vst [vmem:[#allocation65_spill] sm:$0xff] %v5684_v35  ;;  %v5686_v26 = vpop.f32.mrb[49].mxu0  ;;  %v5688_v51 = vpop.f32.mrb[49].mxu1  ;;  %v5702_v40 = vshrl.u32 %v637_v29, 7 }
 0x268   : > { %8683 = vst [vmem:[#allocation66_spill] sm:$0xff] %v5686_v26  ;;  %8684 = vst [vmem:[#allocation67_spill] sm:$0xff] %v5688_v51  ;;  %v5690_v49 = vpop.f32.mrb[50].mxu0  ;;  %v5692_v50 = vpop.f32.mrb[50].mxu1 }
 0x269   : > { %8685 = vst [vmem:[#allocation68_spill] sm:$0xff] %v5690_v49  ;;  %8686 = vst [vmem:[#allocation69_spill] sm:$0xff] %v5692_v50  ;;  %v5694_v46 = vpop.f32.mrb[51].mxu0  ;;  %v5696_v30 = vpop.f32.mrb[51].mxu1  ;;  %v647_v42 = vsub.s32 2, %v5702_v40 }
 0x26a   : > { %8687 = vst [vmem:[#allocation70_spill] sm:$0xff] %v5694_v46  ;;  %8688 = vst [vmem:[#allocation71_spill] sm:$0xff] %v5696_v30  ;;  %v639_v30 = vsub.s32 0, %v5702_v40 }
 0x26e   : > { %v5698_v55 = vpop.f32.mrb[52].mxu0  ;;  %v5700_v32 = vpop.f32.mrb[52].mxu1 }
 0x26f   : > { %8689 = vst [vmem:[#allocation72_spill] sm:$0xff] %v5698_v55  ;;  %8690 = vst [vmem:[#allocation73_spill] sm:$0xff] %v5700_v32  ;;  %v5704_v35 = vpop.f32.mrb[53].mxu0  ;;  %v5706_v26 = vpop.f32.mrb[53].mxu1  ;;  %v643_v55 = vsub.s32 1, %v5702_v40 }
 0x270   : > { %8691 = vst [vmem:[#allocation74_spill] sm:$0xff] %v5704_v35  ;;  %8692 = vst [vmem:[#allocation75_spill] sm:$0xff] %v5706_v26  ;;  %v5708_v51 = vpop.f32.mrb[54].mxu0  ;;  %v5710_v49 = vpop.f32.mrb[54].mxu1  ;;  %v5722_v35 = vrot.slane %v635_v1, %v639_v30 }
 0x271   : > { %8693 = vst [vmem:[#allocation76_spill] sm:$0xff] %v5708_v51  ;;  %8694 = vst [vmem:[#allocation77_spill] sm:$0xff] %v5710_v49  ;;  %v5712_v50 = vpop.f32.mrb[55].mxu0  ;;  %v5714_v46 = vpop.f32.mrb[55].mxu1  ;;  %v5724_v26 = vrot.slane %v635_v1, %v643_v55 }
 0x272   : > { %8695 = vst [vmem:[#allocation78_spill] sm:$0xff] %v5712_v50  ;;  %8696 = vst [vmem:[#allocation79_spill] sm:$0xff] %v5714_v46  ;;  %v5741_v30 = vadd.f32 %v5472_v39, %v5722_v35 }
 0x273   : > { %v5745_v55 = vadd.f32 %v5476_v44, %v5724_v26 }
 0x274   : > { %8705 = vst [vmem:[#allocation88_spill] sm:$0xff] %v5741_v30 }
 0x275   : > { %8706 = vst [vmem:[#allocation89_spill] sm:$0xff] %v5745_v55  ;;  %v1769_v44 = vmax.f32 %v5741_v30, %v5745_v55 }
 0x276   : > { %v5718_v32 = vpop.f32.mrb[56].mxu0  ;;  %v5720_v29 = vpop.f32.mrb[56].mxu1 }
 0x277   : > { %8697 = vst [vmem:[#allocation80_spill] sm:$0xff] %v5718_v32  ;;  %8698 = vst [vmem:[#allocation81_spill] sm:$0xff] %v5720_v29  ;;  %v5726_v51 = vpop.f32.mrb[57].mxu0  ;;  %v5728_v49 = vpop.f32.mrb[57].mxu1  ;;  %v5747_v29 = vrot.slane %v635_v1, %v647_v42 }
 0x278   : > { %8699 = vst [vmem:[#allocation82_spill] sm:$0xff] %v5726_v51  ;;  %8700 = vst [vmem:[#allocation83_spill] sm:$0xff] %v5728_v49  ;;  %v5730_v50 = vpop.f32.mrb[58].mxu0  ;;  %v5732_v46 = vpop.f32.mrb[58].mxu1  ;;  %v651_v49 = vsub.s32 3, %v5702_v40  ;;  %v655_v51 = vsub.s32 4, %v5702_v40 }
 0x279   : > { %8701 = vst [vmem:[#allocation84_spill] sm:$0xff] %v5730_v50  ;;  %8702 = vst [vmem:[#allocation85_spill] sm:$0xff] %v5732_v46  ;;  %v5735_v5 = vpop.f32.mrb[59].mxu0  ;;  %v5737_v25 = vpop.f32.mrb[59].mxu1  ;;  %v5752_v46 = vadd.f32 %v5480_v59, %v5722_v35 }
 0x27a   : > { %8703 = vst [vmem:[#allocation86_spill] sm:$0xff] %v5735_v5  ;;  %8704 = vst [vmem:[#allocation87_spill] sm:$0xff] %v5737_v25  ;;  %v5756_v5 = vadd.f32 %v5484_v36, %v5724_v26  ;;  %v659_v36 = vsub.s32 5, %v5702_v40 }
 0x27b   : > { %8707 = vst [vmem:[#allocation90_spill] sm:$0xff] %v5752_v46 }
 0x27c   : > { %8708 = vst [vmem:[#allocation91_spill] sm:$0xff] %v5756_v5  ;;  %v1778_v55 = vmax.f32 %v5752_v46, %v5756_v5  ;;  %v663_v5 = vsub.s32 6, %v5702_v40  ;;  %v5804_v46 = vadd.f32 %v5500_v45, %v5722_v35 }
 0x27e   : > { %v5758_v25 = vpop.f32.mrb[60].mxu0  ;;  %v5760_v39 = vpop.f32.mrb[60].mxu1  ;;  %8721 = vst [vmem:[#allocation104_spill] sm:$0xff] %v5804_v46 }
 0x27f   : > { %8709 = vst [vmem:[#allocation92_spill] sm:$0xff] %v5758_v25  ;;  %8710 = vst [vmem:[#allocation93_spill] sm:$0xff] %v5760_v39  ;;  %v5764_v50 = vpop.f32.mrb[61].mxu0  ;;  %v5766_v42 = vpop.f32.mrb[61].mxu1  ;;  %v5776_v25 = vadd.f32 %v5474_v41, %v5747_v29  ;;  %v5778_v39 = vrot.slane %v635_v1, %v651_v49  ;;  %v5797_v49 = vadd.f32 %v5482_v48, %v5747_v29 }
 0x280   : > { %8711 = vst [vmem:[#allocation94_spill] sm:$0xff] %v5764_v50  ;;  %8712 = vst [vmem:[#allocation95_spill] sm:$0xff] %v5766_v42  ;;  %v5769_v32 = vpop.f32.mrb[62].mxu0  ;;  %v5771_v59 = vpop.f32.mrb[62].mxu1  ;;  %v5799_v50 = vrot.slane %v635_v1, %v655_v51 }
 0x281   : > { %8713 = vst [vmem:[#allocation96_spill] sm:$0xff] %v5769_v32  ;;  %8714 = vst [vmem:[#allocation97_spill] sm:$0xff] %v5771_v59  ;;  %v5782_v30 = vpop.f32.mrb[63].mxu0  ;;  %v5784_v42 = vpop.f32.mrb[63].mxu1  ;;  %v5788_v32 = vadd.f32 %v5492_v24, %v5722_v35  ;;  %v5792_v59 = vadd.f32 %v5496_v57, %v5724_v26  ;;  %v1770_v41 = vmax.f32 %v1769_v44, %v5776_v25  ;;  %v667_v44 = vsub.s32 7, %v5702_v40 }
 0x282   : > { %8715 = vst [vmem:[#allocation98_spill] sm:$0xff] %v5776_v25  ;;  %8716 = vst [vmem:[#allocation99_spill] sm:$0xff] %v5782_v30  ;;  %v5808_v24 = vadd.f32 %v5504_v33, %v5724_v26  ;;  %v5810_v57 = vrot.slane %v635_v1, %v659_v36  ;;  %v5815_v48 = vadd.f32 %v5478_v0, %v5778_v39 }
 0x283   : > { %8717 = vst [vmem:[#allocation100_spill] sm:$0xff] %v5784_v42  ;;  %8718 = vst [vmem:[#allocation101_spill] sm:$0xff] %v5788_v32  ;;  %v1779_v51 = vmax.f32 %v1778_v55, %v5797_v49  ;;  %v1787_v25 = vmax.f32 %v5788_v32, %v5792_v59  ;;  %v5823_v33 = vadd.f32 %v5486_v13, %v5778_v39 }
 0x284   : > { %8719 = vst [vmem:[#allocation102_spill] sm:$0xff] %v5792_v59  ;;  %8720 = vst [vmem:[#allocation103_spill] sm:$0xff] %v5797_v49  ;;  %v1771_v30 = vmax.f32 %v1770_v41, %v5815_v48  ;;  %v5828_v40 = vrot.slane %v635_v1, %v663_v5  ;;  %v5832_v55 = vadd.f32 %v5494_v54, %v5747_v29 }
 0x285   : > { %8722 = vst [vmem:[#allocation105_spill] sm:$0xff] %v5808_v24  ;;  %8723 = vst [vmem:[#allocation106_spill] sm:$0xff] %v5815_v48  ;;  %v1796_v59 = vmax.f32 %v5804_v46, %v5808_v24  ;;  %v5839_v32 = vrot.slane %v635_v1, %v667_v44  ;;  %v5844_v5 = vadd.f32 %v5502_v11, %v5747_v29 }
 0x286   : > { %v1417_v42 = vpop.f32.mrb[64].mxu0  ;;  %v1610_v45 = vpop.f32.mrb[64].mxu1  ;;  %8724 = vst [vmem:[#allocation107_spill] sm:$0xff] %v5823_v33  ;;  %8726 = vst [vmem:[#allocation109_spill] sm:$0xff] %v5832_v55  ;;  %v5853_v1 = vadd.f32 %v5512_v53, %v5722_v35  ;;  %v5857_v44 = vadd.f32 %v5516_v15, %v5724_v26  ;;  %v5874_v15 = vadd.f32 %v5520_v19, %v5722_v35 }
 0x287   : > { %v5826_v36 = vadd.f32 %v1417_v42, %v5799_v50  ;;  %v1419_v0 = vpop.f32.mrb[65].mxu0  ;;  %v1612_v18 = vpop.f32.mrb[65].mxu1  ;;  %v1780_v42 = vmax.f32 %v1779_v51, %v5823_v33  ;;  %8728 = vst [vmem:[#allocation111_spill] sm:$0xff] %v5844_v5  ;;  %v1797_v53 = vmax.f32 %v1796_v59, %v5844_v5  ;;  %v5891_v19 = vadd.f32 %v5506_v52, %v5778_v39 }
 0x288   : > { %v5837_v41 = vadd.f32 %v1419_v0, %v5810_v57  ;;  %v1421_v13 = vpop.f32.mrb[66].mxu0  ;;  %v1614_v49 = vpop.f32.mrb[66].mxu1  ;;  %v1788_v0 = vmax.f32 %v1787_v25, %v5832_v55  ;;  %8730 = vst [vmem:[#allocation113_spill] sm:$0xff] %v5853_v1  ;;  %8731 = vst [vmem:[#allocation114_spill] sm:$0xff] %v5857_v44  ;;  %v5869_v25 = vadd.f32 %v5498_v22, %v5778_v39 }
 0x289   : > { %8725 = vst [vmem:[#allocation108_spill] sm:$0xff] %v5826_v36  ;;  %v1772_v48 = vmax.f32 %v1771_v30, %v5826_v36  ;;  %v5848_v54 = vadd.f32 %v1421_v13, %v5799_v50  ;;  %v1423_v34 = vpop.f32.mrb[67].mxu0  ;;  %v1616_v24 = vpop.f32.mrb[67].mxu1  ;;  %v5863_v30 = vadd.f32 %v1610_v45, %v5828_v40  ;;  %8735 = vst [vmem:[#allocation118_spill] sm:$0xff] %v5874_v15 }
 0x28a   : > { %8727 = vst [vmem:[#allocation110_spill] sm:$0xff] %v5837_v41  ;;  %v5860_v11 = vadd.f32 %v1423_v34, %v5810_v57  ;;  %8734 = vst [vmem:[#allocation117_spill] sm:$0xff] %v5869_v25  ;;  %v5878_v34 = vadd.f32 %v5524_v62, %v5724_v26  ;;  %v5881_v45 = vadd.f32 %v1612_v18, %v5839_v32 }
 0x28b   : > { %8729 = vst [vmem:[#allocation112_spill] sm:$0xff] %v5848_v54  ;;  %8733 = vst [vmem:[#allocation116_spill] sm:$0xff] %v5863_v30  ;;  %v1773_v51 = vmax.f32 %v1772_v48, %v5837_v41  ;;  %v1781_v13 = vmax.f32 %v1780_v42, %v5848_v54  ;;  %v5884_v48 = vadd.f32 %v1614_v49, %v5828_v40 }
 0x28c   : > { %8732 = vst [vmem:[#allocation115_spill] sm:$0xff] %v5860_v11  ;;  %8736 = vst [vmem:[#allocation119_spill] sm:$0xff] %v5878_v34  ;;  %v1789_v59 = vmax.f32 %v1788_v0, %v5869_v25  ;;  %v1805_v62 = vmax.f32 %v5853_v1, %v5857_v44  ;;  %v5896_v18 = vadd.f32 %v1616_v24, %v5839_v32 }
 0x28d   : > { %8737 = vst [vmem:[#allocation120_spill] sm:$0xff] %v5881_v45  ;;  %8738 = vst [vmem:[#allocation121_spill] sm:$0xff] %v5884_v48  ;;  %v1782_v42 = vmax.f32 %v1781_v13, %v5860_v11  ;;  %v1774_v22 = vmax.f32 %v1773_v51, %v5863_v30  ;;  %v1798_v52 = vmax.f32 %v1797_v53, %v5891_v19 }
 0x28e   : > { %8739 = vst [vmem:[#allocation122_spill] sm:$0xff] %v5891_v19  ;;  %v1427_v5 = vpop.f32.mrb[68].mxu0  ;;  %v1620_v46 = vpop.f32.mrb[68].mxu1  ;;  %8740 = vst [vmem:[#allocation123_spill] sm:$0xff] %v5896_v18  ;;  %v5906_v25 = vadd.f32 %v5514_v14, %v5747_v29  ;;  %v1814_v44 = vmax.f32 %v5874_v15, %v5878_v34  ;;  %v5915_v11 = vadd.f32 %v5522_v61, %v5747_v29 }
 0x28f   : > { %v5899_v49 = vadd.f32 %v1427_v5, %v5799_v50  ;;  %v1429_v13 = vpop.f32.mrb[69].mxu0  ;;  %v1622_v55 = vpop.f32.mrb[69].mxu1  ;;  %v1775_v51 = vmax.f32 %v1774_v22, %v5881_v45  ;;  %v1783_v0 = vmax.f32 %v1782_v42, %v5884_v48  ;;  %v5929_v61 = vadd.f32 %v5536_v12, %v5724_v26 }
 0x290   : > { %8742 = vst [vmem:[#allocation125_spill] sm:$0xff] %v5906_v25  ;;  %v5911_v24 = vadd.f32 %v1429_v13, %v5810_v57  ;;  %v1431_v5 = vpop.f32.mrb[70].mxu0  ;;  %v1624_v1 = vpop.f32.mrb[70].mxu1  ;;  %8744 = vst [vmem:[#allocation127_spill] sm:$0xff] %v5915_v11  ;;  %v1806_v34 = vmax.f32 %v1805_v62, %v5906_v25  ;;  %v5925_v13 = vadd.f32 %v5532_v58, %v5722_v35 }
 0x291   : > { %8741 = vst [vmem:[#allocation124_spill] sm:$0xff] %v5899_v49  ;;  %v1790_v42 = vmax.f32 %v1789_v59, %v5899_v49  ;;  %v5919_v53 = vadd.f32 %v1431_v5, %v5799_v50  ;;  %v1433_v22 = vpop.f32.mrb[71].mxu0  ;;  %v1626_v14 = vpop.f32.mrb[71].mxu1  ;;  %1776 = vmax.xlane.f32.xlu0 %v1775_v51  ;;  %v1784_v19 = vmax.f32 %v1783_v0, %v5896_v18  ;;  %8746 = vst [vmem:[#allocation129_spill] sm:$0xff] %v5929_v61 }
 0x292   : > { %8743 = vst [vmem:[#allocation126_spill] sm:$0xff] %v5911_v24  ;;  %8745 = vst [vmem:[#allocation128_spill] sm:$0xff] %v5925_v13  ;;  %v5932_v59 = vadd.f32 %v1433_v22, %v5810_v57  ;;  %v5935_v5 = vadd.f32 %v1620_v46, %v5828_v40  ;;  %v5941_v62 = vadd.f32 %v5518_v16, %v5778_v39 }
 0x293   : > { %v1791_v51 = vmax.f32 %v1790_v42, %v5911_v24  ;;  %v1799_v0 = vmax.f32 %v1798_v52, %v5919_v53  ;;  %1785 = vmax.xlane.f32.xlu1 %v1784_v19  ;;  %v1815_v58 = vmax.f32 %v1814_v44, %v5915_v11  ;;  %v5946_v12 = vadd.f32 %v5540_v60, %v5722_v35 }
 0x294   : > { %8747 = vst [vmem:[#allocation130_spill] sm:$0xff] %v5935_v5  ;;  %8748 = vst [vmem:[#allocation131_spill] sm:$0xff] %v5941_v62  ;;  %v5950_v22 = vadd.f32 %v5544_v6, %v5724_v26  ;;  %v5953_v46 = vadd.f32 %v1622_v55, %v5839_v32  ;;  %v5956_v52 = vadd.f32 %v1624_v1, %v5828_v40 }
 0x295   : > { %8749 = vst [vmem:[#allocation132_spill] sm:$0xff] %v5946_v12  ;;  %v1800_v19 = vmax.f32 %v1799_v0, %v5932_v59  ;;  %v1792_v16 = vmax.f32 %v1791_v51, %v5935_v5  ;;  %v1807_v44 = vmax.f32 %v1806_v34, %v5941_v62  ;;  %v5963_v60 = vadd.f32 %v5526_v56, %v5778_v39 }
 0x296   : > { %8750 = vst [vmem:[#allocation133_spill] sm:$0xff] %v5950_v22  ;;  %8751 = vst [vmem:[#allocation134_spill] sm:$0xff] %v5953_v46  ;;  %v1823_v6 = vmax.f32 %v5925_v13, %v5929_v61  ;;  %v1437_v42 = vpop.f32.mrb[72].mxu0  ;;  %v1630_v11 = vpop.f32.mrb[72].mxu1  ;;  %v5968_v55 = vadd.f32 %v1626_v14, %v5839_v32  ;;  %v5978_v62 = vadd.f32 %v5534_v3, %v5747_v29 }
 0x297   : > { %8752 = vst [vmem:[#allocation135_spill] sm:$0xff] %v5956_v52  ;;  %8753 = vst [vmem:[#allocation136_spill] sm:$0xff] %v5963_v60  ;;  %v5971_v1 = vadd.f32 %v1437_v42, %v5799_v50  ;;  %v1439_v0 = vpop.f32.mrb[73].mxu0  ;;  %v1632_v15 = vpop.f32.mrb[73].mxu1  ;;  %v1793_v51 = vmax.f32 %v1792_v16, %v5953_v46  ;;  %v1801_v34 = vmax.f32 %v1800_v19, %v5956_v52 }
 0x298   : > { %v1816_v56 = vmax.f32 %v1815_v58, %v5963_v60  ;;  %8755 = vst [vmem:[#allocation138_spill] sm:$0xff] %v5978_v62  ;;  %v1832_v61 = vmax.f32 %v5946_v12, %v5950_v22  ;;  %v5983_v14 = vadd.f32 %v1439_v0, %v5810_v57  ;;  %v1441_v42 = vpop.f32.mrb[74].mxu0  ;;  %v1634_v13 = vpop.f32.mrb[74].mxu1  ;;  %v5987_v25 = vadd.f32 %v5542_v63, %v5747_v29 }
 0x299   : > { %8754 = vst [vmem:[#allocation137_spill] sm:$0xff] %v5971_v1  ;;  %v1808_v19 = vmax.f32 %v1807_v44, %v5971_v1  ;;  %v5991_v58 = vadd.f32 %v1441_v42, %v5799_v50  ;;  %v1443_v16 = vpop.f32.mrb[75].mxu0  ;;  %v1636_v3 = vpop.f32.mrb[75].mxu1  ;;  %1794 = vmax.xlane.f32.xlu0 %v1793_v51  ;;  %v1802_v60 = vmax.f32 %v1801_v34, %v5968_v55 }
 0x29a   : > { %8756 = vst [vmem:[#allocation139_spill] sm:$0xff] %v5983_v14  ;;  %8757 = vst [vmem:[#allocation140_spill] sm:$0xff] %v5987_v25  ;;  %v1824_v22 = vmax.f32 %v1823_v6, %v5978_v62  ;;  %v5997_v0 = vadd.f32 %v5552_v9, %v5722_v35  ;;  %v6001_v63 = vadd.f32 %v5556_v8, %v5724_v26 }
 0x29b   : > { %v6004_v44 = vadd.f32 %v1443_v16, %v5810_v57  ;;  %v6007_v42 = vadd.f32 %v1630_v11, %v5828_v40  ;;  %v1809_v51 = vmax.f32 %v1808_v19, %v5983_v14  ;;  %v1817_v34 = vmax.f32 %v1816_v56, %v5991_v58  ;;  %1803 = vmax.xlane.f32.xlu1 %v1802_v60 }
 0x29c   : > { %8758 = vst [vmem:[#allocation141_spill] sm:$0xff] %v5997_v0  ;;  %8759 = vst [vmem:[#allocation142_spill] sm:$0xff] %v6001_v63  ;;  %v6013_v6 = vadd.f32 %v5538_v4, %v5778_v39  ;;  %v1833_v9 = vmax.f32 %v1832_v61, %v5987_v25  ;;  %v6018_v8 = vadd.f32 %v5560_v21, %v5722_v35 }
 0x29d   : > { %8760 = vst [vmem:[#allocation143_spill] sm:$0xff] %v6007_v42  ;;  %v6022_v16 = vadd.f32 %v5564_v37, %v5724_v26  ;;  %v6025_v11 = vadd.f32 %v1632_v15, %v5839_v32  ;;  %v6028_v56 = vadd.f32 %v1634_v13, %v5828_v40  ;;  %v1818_v60 = vmax.f32 %v1817_v34, %v6004_v44 }
 0x29e   : > { %8761 = vst [vmem:[#allocation144_spill] sm:$0xff] %v6013_v6  ;;  %8762 = vst [vmem:[#allocation145_spill] sm:$0xff] %v6018_v8  ;;  %v1810_v4 = vmax.f32 %v1809_v51, %v6007_v42  ;;  %v1825_v61 = vmax.f32 %v1824_v22, %v6013_v6  ;;  %v6035_v21 = vadd.f32 %v5546_v7, %v5778_v39  ;;  %v1447_v19 = vpop.f32.mrb[76].mxu0  ;;  %v1640_v25 = vpop.f32.mrb[76].mxu1 }
 0x29f   : > { %8763 = vst [vmem:[#allocation146_spill] sm:$0xff] %v6022_v16  ;;  %8764 = vst [vmem:[#allocation147_spill] sm:$0xff] %v6025_v11  ;;  %v1841_v37 = vmax.f32 %v5997_v0, %v6001_v63  ;;  %v6040_v15 = vadd.f32 %v1636_v3, %v5839_v32  ;;  %v6043_v13 = vadd.f32 %v1447_v19, %v5799_v50  ;;  %v1449_v34 = vpop.f32.mrb[77].mxu0  ;;  %v1642_v12 = vpop.f32.mrb[77].mxu1 }
 0x2a0   : > { %8765 = vst [vmem:[#allocation148_spill] sm:$0xff] %v6028_v56  ;;  %8766 = vst [vmem:[#allocation149_spill] sm:$0xff] %v6035_v21  ;;  %v1811_v51 = vmax.f32 %v1810_v4, %v6025_v11  ;;  %v1819_v22 = vmax.f32 %v1818_v60, %v6028_v56  ;;  %v1834_v7 = vmax.f32 %v1833_v9, %v6035_v21  ;;  %v1451_v19 = vpop.f32.mrb[78].mxu0  ;;  %v1644_v0 = vpop.f32.mrb[78].mxu1 }
 0x2a1   : > { %8767 = vst [vmem:[#allocation150_spill] sm:$0xff] %v6040_v15  ;;  %8768 = vst [vmem:[#allocation151_spill] sm:$0xff] %v6043_v13  ;;  %v6050_v6 = vadd.f32 %v5554_v10, %v5747_v29  ;;  %v1850_v63 = vmax.f32 %v6018_v8, %v6022_v16  ;;  %v6055_v3 = vadd.f32 %v1449_v34, %v5810_v57  ;;  %v1453_v4 = vpop.f32.mrb[79].mxu0  ;;  %v1646_v10 = vpop.f32.mrb[79].mxu1 }
 0x2a2   : > { %v6059_v62 = vadd.f32 %v5562_v2, %v5747_v29  ;;  %v1826_v60 = vmax.f32 %v1825_v61, %v6043_v13  ;;  %v6063_v9 = vadd.f32 %v1451_v19, %v5799_v50  ;;  %1812 = vmax.xlane.f32.xlu0 %v1811_v51  ;;  %v1820_v21 = vmax.f32 %v1819_v22, %v6040_v15 }
 0x2a3   : > { %8769 = vst [vmem:[#allocation152_spill] sm:$0xff] %v6050_v6  ;;  %8770 = vst [vmem:[#allocation153_spill] sm:$0xff] %v6055_v3  ;;  %v1842_v16 = vmax.f32 %v1841_v37, %v6050_v6  ;;  %v6069_v34 = vadd.f32 %v5570_v47, %v5722_v35  ;;  %v6073_v2 = vadd.f32 %v5574_v17, %v5724_v26 }
 0x2a4   : > { %8771 = vst [vmem:[#allocation154_spill] sm:$0xff] %v6059_v62  ;;  %8772 = vst [vmem:[#allocation155_spill] sm:$0xff] %v6063_v9  ;;  %v6076_v61 = vadd.f32 %v1453_v4, %v5810_v57  ;;  %v6079_v19 = vadd.f32 %v1640_v25, %v5828_v40  ;;  %v1827_v51 = vmax.f32 %v1826_v60, %v6055_v3  ;;  %1821 = vmax.xlane.f32.xlu1 %v1820_v21 }
 0x2a5   : > { %8773 = vst [vmem:[#allocation156_spill] sm:$0xff] %v6069_v34  ;;  %8774 = vst [vmem:[#allocation157_spill] sm:$0xff] %v6073_v2  ;;  %v1835_v22 = vmax.f32 %v1834_v7, %v6063_v9  ;;  %v6085_v37 = vadd.f32 %v5558_v20, %v5778_v39  ;;  %v1851_v47 = vmax.f32 %v1850_v63, %v6059_v62 }
 0x2a6   : > { %8775 = vst [vmem:[#allocation158_spill] sm:$0xff] %v6076_v61  ;;  %8776 = vst [vmem:[#allocation159_spill] sm:$0xff] %v6079_v19  ;;  %v6090_v17 = vadd.f32 %v5578_v27, %v5722_v35  ;;  %v6094_v4 = vadd.f32 %v5582_v31, %v5724_v26  ;;  %v6097_v25 = vadd.f32 %v1642_v12, %v5839_v32  ;;  %v1457_v60 = vpop.f32.mrb[80].mxu0  ;;  %v1650_v62 = vpop.f32.mrb[80].mxu1 }
 0x2a7   : > { %8777 = vst [vmem:[#allocation160_spill] sm:$0xff] %v6085_v37  ;;  %v6100_v7 = vadd.f32 %v1644_v0, %v5828_v40  ;;  %v1836_v21 = vmax.f32 %v1835_v22, %v6076_v61  ;;  %v1828_v20 = vmax.f32 %v1827_v51, %v6079_v19  ;;  %v1843_v63 = vmax.f32 %v1842_v16, %v6085_v37  ;;  %v1459_v22 = vpop.f32.mrb[81].mxu0  ;;  %v1652_v8 = vpop.f32.mrb[81].mxu1 }
 0x2a8   : > { %8778 = vst [vmem:[#allocation161_spill] sm:$0xff] %v6090_v17  ;;  %8779 = vst [vmem:[#allocation162_spill] sm:$0xff] %v6094_v4  ;;  %v6107_v27 = vadd.f32 %v5566_v38, %v5778_v39  ;;  %v1859_v31 = vmax.f32 %v6069_v34, %v6073_v2  ;;  %v6112_v12 = vadd.f32 %v1646_v10, %v5839_v32  ;;  %v1654_v34 = vpop.f32.mrb[82].mxu1 }
 0x2a9   : > { %8780 = vst [vmem:[#allocation163_spill] sm:$0xff] %v6097_v25  ;;  %8781 = vst [vmem:[#allocation164_spill] sm:$0xff] %v6100_v7  ;;  %v6115_v0 = vadd.f32 %v1457_v60, %v5799_v50  ;;  %v1829_v51 = vmax.f32 %v1828_v20, %v6097_v25  ;;  %v1837_v16 = vmax.f32 %v1836_v21, %v6100_v7  ;;  %v1461_v60 = vpop.f32.mrb[82].mxu0 }
 0x2aa   : > { %8782 = vst [vmem:[#allocation165_spill] sm:$0xff] %v6107_v27  ;;  %8783 = vst [vmem:[#allocation166_spill] sm:$0xff] %v6112_v12  ;;  %v1852_v38 = vmax.f32 %v1851_v47, %v6107_v27  ;;  %v6122_v37 = vadd.f32 %v5572_v23, %v5747_v29  ;;  %v1868_v2 = vmax.f32 %v6090_v17, %v6094_v4  ;;  %v1463_v20 = vpop.f32.mrb[83].mxu0  ;;  %v1656_v23 = vpop.f32.mrb[83].mxu1  ;;  %v8790_v17 = vld [vmem:[#allocation18_spill] sm:$0xff] }
 0x2ab   : > { %8784 = vst [vmem:[#allocation167_spill] sm:$0xff] %v6115_v0  ;;  %v6127_v10 = vadd.f32 %v1459_v22, %v5810_v57  ;;  %v6131_v6 = vadd.f32 %v5580_v28, %v5747_v29  ;;  %v1844_v21 = vmax.f32 %v1843_v63, %v6115_v0  ;;  %v6135_v47 = vadd.f32 %v1461_v60, %v5799_v50 }
 0x2ac   : > { %8785 = vst [vmem:[#allocation168_spill] sm:$0xff] %v6122_v37  ;;  %1830 = vmax.xlane.f32.xlu0 %v1829_v51  ;;  %v1838_v27 = vmax.f32 %v1837_v16, %v6112_v12  ;;  %v1860_v4 = vmax.f32 %v1859_v31, %v6122_v37  ;;  %v6141_v22 = vadd.f32 %v5586_v43, %v5722_v35  ;;  %v8794_v31 = vld [vmem:[#allocation15_spill] sm:$0xff] }
 0x2ad   : > { %8786 = vst [vmem:[#allocation169_spill] sm:$0xff] %v6127_v10  ;;  %8787 = vst [vmem:[#allocation170_spill] sm:$0xff] %v6131_v6  ;;  %v6145_v28 = vadd.f32 %v8790_v17, %v5724_v26  ;;  %v6148_v63 = vadd.f32 %v1463_v20, %v5810_v57  ;;  %v6151_v60 = vadd.f32 %v1650_v62, %v5828_v40  ;;  %v8796_v17 = vld [vmem:[#allocation20_spill] sm:$0xff]  ;;  %v8798_v20 = vld [vmem:[#allocation22_spill] sm:$0xff] }
 0x2ae   : > { %8788 = vst [vmem:[#allocation171_spill] sm:$0xff] %v6135_v47  ;;  %8789 = vst [vmem:[#allocation172_spill] sm:$0xff] %v6141_v22  ;;  %v1845_v51 = vmax.f32 %v1844_v21, %v6127_v10  ;;  %v1853_v16 = vmax.f32 %v1852_v38, %v6135_v47  ;;  %1839 = vmax.xlane.f32.xlu1 %v1838_v27  ;;  %v6157_v37 = vadd.f32 %v8794_v31, %v5778_v39  ;;  %v8802_v31 = vld [vmem:[#allocation16_spill] sm:$0xff]  ;;  %v1660_v47 = vpop.f32.mrb[84].mxu1  ;;  %v8809_v10 = vld [vmem:[#allocation21_spill] sm:$0xff] }
 0x2af   : > { %8791 = vst [vmem:[#allocation18_spill] sm:$0xff] %v6145_v28  ;;  %8792 = vst [vmem:[#allocation173_spill] sm:$0xff] %v6148_v63  ;;  %v1869_v43 = vmax.f32 %v1868_v2, %v6131_v6  ;;  %v6162_v0 = vadd.f32 %v8796_v17, %v5722_v35  ;;  %v6166_v12 = vadd.f32 %v8798_v20, %v5724_v26  ;;  %v1467_v6 = vpop.f32.mrb[84].mxu0 }
 0x2b0   : > { %8793 = vst [vmem:[#allocation174_spill] sm:$0xff] %v6151_v60  ;;  %8795 = vst [vmem:[#allocation15_spill] sm:$0xff] %v6157_v37  ;;  %v6169_v62 = vadd.f32 %v1652_v8, %v5839_v32  ;;  %v6172_v38 = vadd.f32 %v1654_v34, %v5828_v40  ;;  %v1854_v27 = vmax.f32 %v1853_v16, %v6148_v63  ;;  %v1469_v16 = vpop.f32.mrb[85].mxu0  ;;  %v1662_v63 = vpop.f32.mrb[85].mxu1 }
 0x2b1   : > { %8797 = vst [vmem:[#allocation20_spill] sm:$0xff] %v6162_v0  ;;  %8799 = vst [vmem:[#allocation22_spill] sm:$0xff] %v6166_v12  ;;  %v1846_v21 = vmax.f32 %v1845_v51, %v6151_v60  ;;  %v1861_v2 = vmax.f32 %v1860_v4, %v6157_v37  ;;  %v6179_v17 = vadd.f32 %v8802_v31, %v5778_v39  ;;  %v8806_v37 = vld [vmem:[#allocation17_spill] sm:$0xff] }
 0x2b2   : > { %8800 = vst [vmem:[#allocation175_spill] sm:$0xff] %v6169_v62  ;;  %8801 = vst [vmem:[#allocation176_spill] sm:$0xff] %v6172_v38  ;;  %v1877_v20 = vmax.f32 %v6141_v22, %v6145_v28  ;;  %v6184_v8 = vadd.f32 %v1656_v23, %v5839_v32  ;;  %v6187_v34 = vadd.f32 %v1467_v6, %v5799_v50  ;;  %v1471_v6 = vpop.f32.mrb[86].mxu0  ;;  %v1664_v22 = vpop.f32.mrb[86].mxu1 }
 0x2b3   : > { %8803 = vst [vmem:[#allocation16_spill] sm:$0xff] %v6179_v17  ;;  %v1847_v51 = vmax.f32 %v1846_v21, %v6169_v62  ;;  %v1855_v4 = vmax.f32 %v1854_v27, %v6172_v38  ;;  %v1870_v31 = vmax.f32 %v1869_v43, %v6179_v17  ;;  %v6194_v60 = vadd.f32 %v8806_v37, %v5747_v29  ;;  %v1473_v21 = vpop.f32.mrb[87].mxu0  ;;  %v1666_v37 = vpop.f32.mrb[87].mxu1  ;;  %v8814_v38 = vld [vmem:[#allocation26_spill] sm:$0xff] }
 0x2b4   : > { %8804 = vst [vmem:[#allocation177_spill] sm:$0xff] %v6184_v8  ;;  %8805 = vst [vmem:[#allocation178_spill] sm:$0xff] %v6187_v34  ;;  %v1886_v28 = vmax.f32 %v6162_v0, %v6166_v12  ;;  %v6199_v23 = vadd.f32 %v1469_v16, %v5810_v57  ;;  %v6203_v7 = vadd.f32 %v8809_v10, %v5747_v29  ;;  %v8812_v16 = vld [vmem:[#allocation24_spill] sm:$0xff] }
 0x2b5   : > { %8807 = vst [vmem:[#allocation17_spill] sm:$0xff] %v6194_v60  ;;  %v1862_v27 = vmax.f32 %v1861_v2, %v6187_v34  ;;  %v6207_v43 = vadd.f32 %v1471_v6, %v5799_v50  ;;  %1848 = vmax.xlane.f32.xlu0 %v1847_v51  ;;  %v1856_v17 = vmax.f32 %v1855_v4, %v6184_v8 }
 0x2b6   : > { %8808 = vst [vmem:[#allocation179_spill] sm:$0xff] %v6199_v23  ;;  %8810 = vst [vmem:[#allocation21_spill] sm:$0xff] %v6203_v7  ;;  %v1878_v12 = vmax.f32 %v1877_v20, %v6194_v60  ;;  %v6213_v0 = vadd.f32 %v8812_v16, %v5722_v35  ;;  %v6217_v10 = vadd.f32 %v8814_v38, %v5724_v26  ;;  %v8818_v20 = vld [vmem:[#allocation19_spill] sm:$0xff]  ;;  %v8820_v38 = vld [vmem:[#allocation28_spill] sm:$0xff] }
 0x2b7   : > { %8811 = vst [vmem:[#allocation180_spill] sm:$0xff] %v6207_v43  ;;  %v6220_v2 = vadd.f32 %v1473_v21, %v5810_v57  ;;  %v6223_v6 = vadd.f32 %v1660_v47, %v5828_v40  ;;  %v1863_v51 = vmax.f32 %v1862_v27, %v6199_v23  ;;  %v1871_v4 = vmax.f32 %v1870_v31, %v6207_v43  ;;  %v8822_v21 = vld [vmem:[#allocation30_spill] sm:$0xff]  ;;  %v1670_v43 = vpop.f32.mrb[88].mxu1  ;;  %v8833_v23 = vld [vmem:[#allocation29_spill] sm:$0xff] }
 0x2b8   : > { %8813 = vst [vmem:[#allocation24_spill] sm:$0xff] %v6213_v0  ;;  %8815 = vst [vmem:[#allocation26_spill] sm:$0xff] %v6217_v10  ;;  %1857 = vmax.xlane.f32.xlu1 %v1856_v17  ;;  %v6229_v60 = vadd.f32 %v8818_v20, %v5778_v39  ;;  %v1887_v16 = vmax.f32 %v1886_v28, %v6203_v7  ;;  %v6234_v34 = vadd.f32 %v8820_v38, %v5722_v35  ;;  %v8826_v20 = vld [vmem:[#allocation23_spill] sm:$0xff]  ;;  %v1477_v7 = vpop.f32.mrb[88].mxu0 }
 0x2b9   : > { %8816 = vst [vmem:[#allocation181_spill] sm:$0xff] %v6220_v2  ;;  %8817 = vst [vmem:[#allocation182_spill] sm:$0xff] %v6223_v6  ;;  %v6238_v8 = vadd.f32 %v8822_v21, %v5724_v26  ;;  %v6241_v47 = vadd.f32 %v1662_v63, %v5839_v32  ;;  %v6244_v31 = vadd.f32 %v1664_v22, %v5828_v40 }
 0x2ba   : > { %8819 = vst [vmem:[#allocation19_spill] sm:$0xff] %v6229_v60  ;;  %8821 = vst [vmem:[#allocation28_spill] sm:$0xff] %v6234_v34  ;;  %v1872_v17 = vmax.f32 %v1871_v4, %v6220_v2  ;;  %v1864_v27 = vmax.f32 %v1863_v51, %v6223_v6  ;;  %v1879_v28 = vmax.f32 %v1878_v12, %v6229_v60  ;;  %v1479_v4 = vpop.f32.mrb[89].mxu0  ;;  %v1672_v2 = vpop.f32.mrb[89].mxu1  ;;  %v8830_v60 = vld [vmem:[#allocation25_spill] sm:$0xff] }
 0x2bb   : > { %8823 = vst [vmem:[#allocation30_spill] sm:$0xff] %v6238_v8  ;;  %8824 = vst [vmem:[#allocation183_spill] sm:$0xff] %v6241_v47  ;;  %v6251_v38 = vadd.f32 %v8826_v20, %v5778_v39  ;;  %v1895_v21 = vmax.f32 %v6213_v0, %v6217_v10  ;;  %v6256_v63 = vadd.f32 %v1666_v37, %v5839_v32  ;;  %v1674_v0 = vpop.f32.mrb[90].mxu1 }
 0x2bc   : > { %8825 = vst [vmem:[#allocation184_spill] sm:$0xff] %v6244_v31  ;;  %v6259_v22 = vadd.f32 %v1477_v7, %v5799_v50  ;;  %v1865_v51 = vmax.f32 %v1864_v27, %v6241_v47  ;;  %v1873_v12 = vmax.f32 %v1872_v17, %v6244_v31  ;;  %v6266_v6 = vadd.f32 %v8830_v60, %v5747_v29  ;;  %v1481_v7 = vpop.f32.mrb[90].mxu0  ;;  %v1676_v60 = vpop.f32.mrb[91].mxu1  ;;  %v8838_v31 = vld [vmem:[#allocation34_spill] sm:$0xff] }
 0x2bd   : > { %8827 = vst [vmem:[#allocation23_spill] sm:$0xff] %v6251_v38  ;;  %8828 = vst [vmem:[#allocation185_spill] sm:$0xff] %v6256_v63  ;;  %v1888_v20 = vmax.f32 %v1887_v16, %v6251_v38  ;;  %v1904_v10 = vmax.f32 %v6234_v34, %v6238_v8  ;;  %v6271_v37 = vadd.f32 %v1479_v4, %v5810_v57  ;;  %v1483_v27 = vpop.f32.mrb[91].mxu0  ;;  %v8836_v4 = vld [vmem:[#allocation32_spill] sm:$0xff] }
 0x2be   : > { %8829 = vst [vmem:[#allocation186_spill] sm:$0xff] %v6259_v22  ;;  %8831 = vst [vmem:[#allocation25_spill] sm:$0xff] %v6266_v6  ;;  %v6275_v62 = vadd.f32 %v8833_v23, %v5747_v29  ;;  %v1880_v17 = vmax.f32 %v1879_v28, %v6259_v22  ;;  %v6279_v16 = vadd.f32 %v1481_v7, %v5799_v50  ;;  %1866 = vmax.xlane.f32.xlu0 %v1865_v51 }
 0x2bf   : > { %8832 = vst [vmem:[#allocation187_spill] sm:$0xff] %v6271_v37  ;;  %v1874_v38 = vmax.f32 %v1873_v12, %v6256_v63  ;;  %v1896_v8 = vmax.f32 %v1895_v21, %v6266_v6  ;;  %v6285_v34 = vadd.f32 %v8836_v4, %v5722_v35  ;;  %v6289_v23 = vadd.f32 %v8838_v31, %v5724_v26  ;;  %v8842_v21 = vld [vmem:[#allocation27_spill] sm:$0xff]  ;;  %v8844_v31 = vld [vmem:[#allocation36_spill] sm:$0xff] }
 0x2c0   : > { %8834 = vst [vmem:[#allocation29_spill] sm:$0xff] %v6275_v62  ;;  %8835 = vst [vmem:[#allocation188_spill] sm:$0xff] %v6279_v16  ;;  %v6292_v28 = vadd.f32 %v1483_v27, %v5810_v57  ;;  %v6295_v7 = vadd.f32 %v1670_v43, %v5828_v40  ;;  %v1881_v51 = vmax.f32 %v1880_v17, %v6271_v37  ;;  %v8846_v27 = vld [vmem:[#allocation38_spill] sm:$0xff]  ;;  %v8857_v37 = vld [vmem:[#allocation37_spill] sm:$0xff] }
 0x2c1   : > { %8837 = vst [vmem:[#allocation32_spill] sm:$0xff] %v6285_v34  ;;  %8839 = vst [vmem:[#allocation34_spill] sm:$0xff] %v6289_v23  ;;  %v1889_v12 = vmax.f32 %v1888_v20, %v6279_v16  ;;  %1875 = vmax.xlane.f32.xlu1 %v1874_v38  ;;  %v6301_v6 = vadd.f32 %v8842_v21, %v5778_v39  ;;  %v1905_v4 = vmax.f32 %v1904_v10, %v6275_v62  ;;  %v8850_v21 = vld [vmem:[#allocation31_spill] sm:$0xff]  ;;  %v1487_v62 = vpop.f32.mrb[92].mxu0  ;;  %v1680_v16 = vpop.f32.mrb[92].mxu1 }
 0x2c2   : > { %8840 = vst [vmem:[#allocation189_spill] sm:$0xff] %v6292_v28  ;;  %8841 = vst [vmem:[#allocation190_spill] sm:$0xff] %v6295_v7  ;;  %v6306_v22 = vadd.f32 %v8844_v31, %v5722_v35  ;;  %v6310_v63 = vadd.f32 %v8846_v27, %v5724_v26  ;;  %v6313_v43 = vadd.f32 %v1672_v2, %v5839_v32 }
 0x2c3   : > { %8843 = vst [vmem:[#allocation27_spill] sm:$0xff] %v6301_v6  ;;  %v6316_v20 = vadd.f32 %v1674_v0, %v5828_v40  ;;  %v1890_v38 = vmax.f32 %v1889_v12, %v6292_v28  ;;  %v1882_v17 = vmax.f32 %v1881_v51, %v6295_v7  ;;  %v1897_v10 = vmax.f32 %v1896_v8, %v6301_v6  ;;  %v1489_v12 = vpop.f32.mrb[93].mxu0  ;;  %v1682_v28 = vpop.f32.mrb[93].mxu1  ;;  %v8854_v6 = vld [vmem:[#allocation33_spill] sm:$0xff] }
 0x2c4   : > { %8845 = vst [vmem:[#allocation36_spill] sm:$0xff] %v6306_v22  ;;  %8847 = vst [vmem:[#allocation38_spill] sm:$0xff] %v6310_v63  ;;  %v6323_v31 = vadd.f32 %v8850_v21, %v5778_v39  ;;  %v1913_v27 = vmax.f32 %v6285_v34, %v6289_v23  ;;  %v6328_v2 = vadd.f32 %v1676_v60, %v5839_v32  ;;  %v1684_v34 = vpop.f32.mrb[94].mxu1 }
 0x2c5   : > { %8848 = vst [vmem:[#allocation191_spill] sm:$0xff] %v6313_v43  ;;  %8849 = vst [vmem:[#allocation192_spill] sm:$0xff] %v6316_v20  ;;  %v6331_v0 = vadd.f32 %v1487_v62, %v5799_v50  ;;  %v1883_v51 = vmax.f32 %v1882_v17, %v6313_v43  ;;  %v1891_v8 = vmax.f32 %v1890_v38, %v6316_v20  ;;  %v1491_v62 = vpop.f32.mrb[94].mxu0  ;;  %v8862_v20 = vld [vmem:[#allocation42_spill] sm:$0xff] }
 0x2c6   : > { %8851 = vst [vmem:[#allocation31_spill] sm:$0xff] %v6323_v31  ;;  %8852 = vst [vmem:[#allocation193_spill] sm:$0xff] %v6328_v2  ;;  %v1906_v21 = vmax.f32 %v1905_v4, %v6323_v31  ;;  %v6338_v7 = vadd.f32 %v8854_v6, %v5747_v29  ;;  %v1922_v23 = vmax.f32 %v6306_v22, %v6310_v63  ;;  %v1493_v17 = vpop.f32.mrb[95].mxu0  ;;  %v1686_v6 = vpop.f32.mrb[95].mxu1 }
 0x2c7   : > { %8853 = vst [vmem:[#allocation194_spill] sm:$0xff] %v6331_v0  ;;  %v6343_v60 = vadd.f32 %v1489_v12, %v5810_v57  ;;  %v6347_v47 = vadd.f32 %v8857_v37, %v5747_v29  ;;  %v1898_v38 = vmax.f32 %v1897_v10, %v6331_v0  ;;  %v6351_v4 = vadd.f32 %v1491_v62, %v5799_v50  ;;  %v8860_v12 = vld [vmem:[#allocation40_spill] sm:$0xff] }
 0x2c8   : > { %8855 = vst [vmem:[#allocation33_spill] sm:$0xff] %v6338_v7  ;;  %1884 = vmax.xlane.f32.xlu0 %v1883_v51  ;;  %v1892_v31 = vmax.f32 %v1891_v8, %v6328_v2  ;;  %v1914_v63 = vmax.f32 %v1913_v27, %v6338_v7  ;;  %v6357_v22 = vadd.f32 %v8860_v12, %v5722_v35  ;;  %v8866_v27 = vld [vmem:[#allocation35_spill] sm:$0xff] }
 0x2c9   : > { %8856 = vst [vmem:[#allocation195_spill] sm:$0xff] %v6343_v60  ;;  %8858 = vst [vmem:[#allocation37_spill] sm:$0xff] %v6347_v47  ;;  %v6361_v37 = vadd.f32 %v8862_v20, %v5724_v26  ;;  %v6364_v10 = vadd.f32 %v1493_v17, %v5810_v57  ;;  %v6367_v62 = vadd.f32 %v1680_v16, %v5828_v40  ;;  %v8868_v20 = vld [vmem:[#allocation44_spill] sm:$0xff]  ;;  %v8870_v17 = vld [vmem:[#allocation46_spill] sm:$0xff] }
 0x2ca   : > { %8859 = vst [vmem:[#allocation196_spill] sm:$0xff] %v6351_v4  ;;  %8861 = vst [vmem:[#allocation40_spill] sm:$0xff] %v6357_v22  ;;  %v1899_v51 = vmax.f32 %v1898_v38, %v6343_v60  ;;  %v1907_v8 = vmax.f32 %v1906_v21, %v6351_v4  ;;  %1893 = vmax.xlane.f32.xlu1 %v1892_v31  ;;  %v6373_v7 = vadd.f32 %v8866_v27, %v5778_v39  ;;  %v8874_v27 = vld [vmem:[#allocation39_spill] sm:$0xff]  ;;  %v1690_v4 = vpop.f32.mrb[96].mxu1  ;;  %v8881_v60 = vld [vmem:[#allocation45_spill] sm:$0xff] }
 0x2cb   : > { %8863 = vst [vmem:[#allocation42_spill] sm:$0xff] %v6361_v37  ;;  %8864 = vst [vmem:[#allocation197_spill] sm:$0xff] %v6364_v10  ;;  %v1923_v12 = vmax.f32 %v1922_v23, %v6347_v47  ;;  %v6378_v0 = vadd.f32 %v8868_v20, %v5722_v35  ;;  %v6382_v2 = vadd.f32 %v8870_v17, %v5724_v26  ;;  %v1497_v47 = vpop.f32.mrb[96].mxu0 }
 0x2cc   : > { %8865 = vst [vmem:[#allocation198_spill] sm:$0xff] %v6367_v62  ;;  %8867 = vst [vmem:[#allocation35_spill] sm:$0xff] %v6373_v7  ;;  %v6385_v16 = vadd.f32 %v1682_v28, %v5839_v32  ;;  %v6388_v21 = vadd.f32 %v1684_v34, %v5828_v40  ;;  %v1908_v31 = vmax.f32 %v1907_v8, %v6364_v10  ;;  %v1499_v8 = vpop.f32.mrb[97].mxu0  ;;  %v1692_v10 = vpop.f32.mrb[97].mxu1 }
 0x2cd   : > { %8869 = vst [vmem:[#allocation44_spill] sm:$0xff] %v6378_v0  ;;  %8871 = vst [vmem:[#allocation46_spill] sm:$0xff] %v6382_v2  ;;  %v1900_v38 = vmax.f32 %v1899_v51, %v6367_v62  ;;  %v1915_v23 = vmax.f32 %v1914_v63, %v6373_v7  ;;  %v6395_v20 = vadd.f32 %v8874_v27, %v5778_v39  ;;  %v8878_v7 = vld [vmem:[#allocation41_spill] sm:$0xff] }
 0x2ce   : > { %8872 = vst [vmem:[#allocation199_spill] sm:$0xff] %v6385_v16  ;;  %8873 = vst [vmem:[#allocation200_spill] sm:$0xff] %v6388_v21  ;;  %v1931_v17 = vmax.f32 %v6357_v22, %v6361_v37  ;;  %v6400_v28 = vadd.f32 %v1686_v6, %v5839_v32  ;;  %v6403_v34 = vadd.f32 %v1497_v47, %v5799_v50  ;;  %v1501_v47 = vpop.f32.mrb[98].mxu0  ;;  %v1694_v22 = vpop.f32.mrb[98].mxu1 }
 0x2cf   : > { %8875 = vst [vmem:[#allocation39_spill] sm:$0xff] %v6395_v20  ;;  %v1901_v51 = vmax.f32 %v1900_v38, %v6385_v16  ;;  %v1909_v63 = vmax.f32 %v1908_v31, %v6388_v21  ;;  %v1924_v27 = vmax.f32 %v1923_v12, %v6395_v20  ;;  %v6410_v62 = vadd.f32 %v8878_v7, %v5747_v29  ;;  %v1503_v38 = vpop.f32.mrb[99].mxu0  ;;  %v1696_v7 = vpop.f32.mrb[99].mxu1  ;;  %v8886_v21 = vld [vmem:[#allocation50_spill] sm:$0xff] }
 0x2d0   : > { %8876 = vst [vmem:[#allocation201_spill] sm:$0xff] %v6400_v28  ;;  %8877 = vst [vmem:[#allocation202_spill] sm:$0xff] %v6403_v34  ;;  %v1940_v37 = vmax.f32 %v6378_v0, %v6382_v2  ;;  %v6415_v6 = vadd.f32 %v1499_v8, %v5810_v57  ;;  %v6419_v43 = vadd.f32 %v8881_v60, %v5747_v29  ;;  %v8884_v8 = vld [vmem:[#allocation48_spill] sm:$0xff] }
 0x2d1   : > { %8879 = vst [vmem:[#allocation41_spill] sm:$0xff] %v6410_v62  ;;  %v1916_v31 = vmax.f32 %v1915_v23, %v6403_v34  ;;  %v6423_v12 = vadd.f32 %v1501_v47, %v5799_v50  ;;  %1902 = vmax.xlane.f32.xlu0 %v1901_v51  ;;  %v1910_v20 = vmax.f32 %v1909_v63, %v6400_v28 }
 0x2d2   : > { %8880 = vst [vmem:[#allocation203_spill] sm:$0xff] %v6415_v6  ;;  %8882 = vst [vmem:[#allocation45_spill] sm:$0xff] %v6419_v43  ;;  %v1932_v2 = vmax.f32 %v1931_v17, %v6410_v62  ;;  %v6429_v0 = vadd.f32 %v8884_v8, %v5722_v35  ;;  %v6433_v60 = vadd.f32 %v8886_v21, %v5724_v26  ;;  %v8890_v17 = vld [vmem:[#allocation43_spill] sm:$0xff]  ;;  %v8892_v21 = vld [vmem:[#allocation52_spill] sm:$0xff] }
 0x2d3   : > { %8883 = vst [vmem:[#allocation204_spill] sm:$0xff] %v6423_v12  ;;  %v6436_v23 = vadd.f32 %v1503_v38, %v5810_v57  ;;  %v6439_v47 = vadd.f32 %v1690_v4, %v5828_v40  ;;  %v1917_v51 = vmax.f32 %v1916_v31, %v6415_v6  ;;  %v1925_v63 = vmax.f32 %v1924_v27, %v6423_v12  ;;  %v8894_v38 = vld [vmem:[#allocation54_spill] sm:$0xff]  ;;  %v1700_v12 = vpop.f32.mrb[100].mxu1  ;;  %v8905_v6 = vld [vmem:[#allocation53_spill] sm:$0xff] }
 0x2d4   : > { %8885 = vst [vmem:[#allocation48_spill] sm:$0xff] %v6429_v0  ;;  %8887 = vst [vmem:[#allocation50_spill] sm:$0xff] %v6433_v60  ;;  %1911 = vmax.xlane.f32.xlu1 %v1910_v20  ;;  %v6445_v62 = vadd.f32 %v8890_v17, %v5778_v39  ;;  %v1941_v8 = vmax.f32 %v1940_v37, %v6419_v43  ;;  %v6450_v34 = vadd.f32 %v8892_v21, %v5722_v35  ;;  %v8898_v17 = vld [vmem:[#allocation47_spill] sm:$0xff]  ;;  %v1507_v43 = vpop.f32.mrb[100].mxu0 }
 0x2d5   : > { %8888 = vst [vmem:[#allocation205_spill] sm:$0xff] %v6436_v23  ;;  %8889 = vst [vmem:[#allocation206_spill] sm:$0xff] %v6439_v47  ;;  %v6454_v28 = vadd.f32 %v8894_v38, %v5724_v26  ;;  %v6457_v4 = vadd.f32 %v1692_v10, %v5839_v32  ;;  %v6460_v27 = vadd.f32 %v1694_v22, %v5828_v40 }
 0x2d6   : > { %8891 = vst [vmem:[#allocation43_spill] sm:$0xff] %v6445_v62  ;;  %8893 = vst [vmem:[#allocation52_spill] sm:$0xff] %v6450_v34  ;;  %v1926_v20 = vmax.f32 %v1925_v63, %v6436_v23  ;;  %v1918_v31 = vmax.f32 %v1917_v51, %v6439_v47  ;;  %v1933_v37 = vmax.f32 %v1932_v2, %v6445_v62  ;;  %v1509_v63 = vpop.f32.mrb[101].mxu0  ;;  %v1702_v23 = vpop.f32.mrb[101].mxu1  ;;  %v8902_v62 = vld [vmem:[#allocation49_spill] sm:$0xff] }
 0x2d7   : > { %8895 = vst [vmem:[#allocation54_spill] sm:$0xff] %v6454_v28  ;;  %8896 = vst [vmem:[#allocation207_spill] sm:$0xff] %v6457_v4  ;;  %v6467_v21 = vadd.f32 %v8898_v17, %v5778_v39  ;;  %v1949_v38 = vmax.f32 %v6429_v0, %v6433_v60  ;;  %v6472_v10 = vadd.f32 %v1696_v7, %v5839_v32  ;;  %v1704_v0 = vpop.f32.mrb[102].mxu1 }
 0x2d8   : > { %8897 = vst [vmem:[#allocation208_spill] sm:$0xff] %v6460_v27  ;;  %v6475_v22 = vadd.f32 %v1507_v43, %v5799_v50  ;;  %v1919_v51 = vmax.f32 %v1918_v31, %v6457_v4  ;;  %v1927_v2 = vmax.f32 %v1926_v20, %v6460_v27  ;;  %v6482_v47 = vadd.f32 %v8902_v62, %v5747_v29  ;;  %v1511_v43 = vpop.f32.mrb[102].mxu0  ;;  %v1706_v62 = vpop.f32.mrb[103].mxu1  ;;  %v8910_v27 = vld [vmem:[#allocation58_spill] sm:$0xff] }
 0x2d9   : > { %8899 = vst [vmem:[#allocation47_spill] sm:$0xff] %v6467_v21  ;;  %8900 = vst [vmem:[#allocation209_spill] sm:$0xff] %v6472_v10  ;;  %v1942_v17 = vmax.f32 %v1941_v8, %v6467_v21  ;;  %v1958_v60 = vmax.f32 %v6450_v34, %v6454_v28  ;;  %v6487_v7 = vadd.f32 %v1509_v63, %v5810_v57  ;;  %v1513_v31 = vpop.f32.mrb[103].mxu0  ;;  %v8908_v63 = vld [vmem:[#allocation56_spill] sm:$0xff] }
 0x2da   : > { %8901 = vst [vmem:[#allocation210_spill] sm:$0xff] %v6475_v22  ;;  %8903 = vst [vmem:[#allocation49_spill] sm:$0xff] %v6482_v47  ;;  %v6491_v16 = vadd.f32 %v8905_v6, %v5747_v29  ;;  %v1934_v20 = vmax.f32 %v1933_v37, %v6475_v22  ;;  %v6495_v8 = vadd.f32 %v1511_v43, %v5799_v50  ;;  %1920 = vmax.xlane.f32.xlu0 %v1919_v51 }
 0x2db   : > { %8904 = vst [vmem:[#allocation211_spill] sm:$0xff] %v6487_v7  ;;  %v1928_v21 = vmax.f32 %v1927_v2, %v6472_v10  ;;  %v1950_v28 = vmax.f32 %v1949_v38, %v6482_v47  ;;  %v6501_v34 = vadd.f32 %v8908_v63, %v5722_v35  ;;  %v6505_v6 = vadd.f32 %v8910_v27, %v5724_v26  ;;  %v8914_v38 = vld [vmem:[#allocation51_spill] sm:$0xff]  ;;  %v8916_v27 = vld [vmem:[#allocation60_spill] sm:$0xff] }
 0x2dc   : > { %8906 = vst [vmem:[#allocation53_spill] sm:$0xff] %v6491_v16  ;;  %8907 = vst [vmem:[#allocation212_spill] sm:$0xff] %v6495_v8  ;;  %v6508_v37 = vadd.f32 %v1513_v31, %v5810_v57  ;;  %v6511_v43 = vadd.f32 %v1700_v12, %v5828_v40  ;;  %v1935_v51 = vmax.f32 %v1934_v20, %v6487_v7  ;;  %v8918_v31 = vld [vmem:[#allocation62_spill] sm:$0xff]  ;;  %v8929_v7 = vld [vmem:[#allocation61_spill] sm:$0xff] }
 0x2dd   : > { %8909 = vst [vmem:[#allocation56_spill] sm:$0xff] %v6501_v34  ;;  %8911 = vst [vmem:[#allocation58_spill] sm:$0xff] %v6505_v6  ;;  %v1943_v2 = vmax.f32 %v1942_v17, %v6495_v8  ;;  %1929 = vmax.xlane.f32.xlu1 %v1928_v21  ;;  %v6517_v47 = vadd.f32 %v8914_v38, %v5778_v39  ;;  %v1959_v63 = vmax.f32 %v1958_v60, %v6491_v16  ;;  %v8922_v38 = vld [vmem:[#allocation55_spill] sm:$0xff]  ;;  %v1517_v16 = vpop.f32.mrb[104].mxu0  ;;  %v1710_v8 = vpop.f32.mrb[104].mxu1 }
 0x2de   : > { %8912 = vst [vmem:[#allocation213_spill] sm:$0xff] %v6508_v37  ;;  %8913 = vst [vmem:[#allocation214_spill] sm:$0xff] %v6511_v43  ;;  %v6522_v22 = vadd.f32 %v8916_v27, %v5722_v35  ;;  %v6526_v10 = vadd.f32 %v8918_v31, %v5724_v26  ;;  %v6529_v12 = vadd.f32 %v1702_v23, %v5839_v32 }
 0x2df   : > { %8915 = vst [vmem:[#allocation51_spill] sm:$0xff] %v6517_v47  ;;  %v6532_v17 = vadd.f32 %v1704_v0, %v5828_v40  ;;  %v1944_v21 = vmax.f32 %v1943_v2, %v6508_v37  ;;  %v1936_v20 = vmax.f32 %v1935_v51, %v6511_v43  ;;  %v1951_v60 = vmax.f32 %v1950_v28, %v6517_v47  ;;  %v1519_v2 = vpop.f32.mrb[105].mxu0  ;;  %v1712_v37 = vpop.f32.mrb[105].mxu1  ;;  %v8926_v47 = vld [vmem:[#allocation57_spill] sm:$0xff] }
 0x2e0   : > { %8917 = vst [vmem:[#allocation60_spill] sm:$0xff] %v6522_v22  ;;  %8919 = vst [vmem:[#allocation62_spill] sm:$0xff] %v6526_v10  ;;  %v6539_v27 = vadd.f32 %v8922_v38, %v5778_v39  ;;  %v1967_v31 = vmax.f32 %v6501_v34, %v6505_v6  ;;  %v6544_v23 = vadd.f32 %v1706_v62, %v5839_v32  ;;  %v1714_v34 = vpop.f32.mrb[106].mxu1 }
 0x2e1   : > { %8920 = vst [vmem:[#allocation215_spill] sm:$0xff] %v6529_v12  ;;  %8921 = vst [vmem:[#allocation216_spill] sm:$0xff] %v6532_v17  ;;  %v6547_v0 = vadd.f32 %v1517_v16, %v5799_v50  ;;  %v1937_v51 = vmax.f32 %v1936_v20, %v6529_v12  ;;  %v1945_v28 = vmax.f32 %v1944_v21, %v6532_v17  ;;  %v1521_v16 = vpop.f32.mrb[106].mxu0  ;;  %v8934_v17 = vld [vmem:[#allocation66_spill] sm:$0xff] }
 0x2e2   : > { %8923 = vst [vmem:[#allocation55_spill] sm:$0xff] %v6539_v27  ;;  %8924 = vst [vmem:[#allocation217_spill] sm:$0xff] %v6544_v23  ;;  %v1960_v38 = vmax.f32 %v1959_v63, %v6539_v27  ;;  %v6554_v43 = vadd.f32 %v8926_v47, %v5747_v29  ;;  %v1976_v6 = vmax.f32 %v6522_v22, %v6526_v10  ;;  %v1523_v20 = vpop.f32.mrb[107].mxu0  ;;  %v1716_v47 = vpop.f32.mrb[107].mxu1 }
 0x2e3   : > { %8925 = vst [vmem:[#allocation218_spill] sm:$0xff] %v6547_v0  ;;  %v6559_v62 = vadd.f32 %v1519_v2, %v5810_v57  ;;  %v6563_v4 = vadd.f32 %v8929_v7, %v5747_v29  ;;  %v1952_v21 = vmax.f32 %v1951_v60, %v6547_v0  ;;  %v6567_v63 = vadd.f32 %v1521_v16, %v5799_v50  ;;  %v8932_v2 = vld [vmem:[#allocation64_spill] sm:$0xff] }
 0x2e4   : > { %8927 = vst [vmem:[#allocation57_spill] sm:$0xff] %v6554_v43  ;;  %1938 = vmax.xlane.f32.xlu0 %v1937_v51  ;;  %v1946_v27 = vmax.f32 %v1945_v28, %v6544_v23  ;;  %v1968_v10 = vmax.f32 %v1967_v31, %v6554_v43  ;;  %v6573_v22 = vadd.f32 %v8932_v2, %v5722_v35  ;;  %v8938_v31 = vld [vmem:[#allocation59_spill] sm:$0xff] }
 0x2e5   : > { %8928 = vst [vmem:[#allocation219_spill] sm:$0xff] %v6559_v62  ;;  %8930 = vst [vmem:[#allocation61_spill] sm:$0xff] %v6563_v4  ;;  %v6577_v7 = vadd.f32 %v8934_v17, %v5724_v26  ;;  %v6580_v60 = vadd.f32 %v1523_v20, %v5810_v57  ;;  %v6583_v16 = vadd.f32 %v1710_v8, %v5828_v40  ;;  %v8940_v17 = vld [vmem:[#allocation68_spill] sm:$0xff]  ;;  %v8942_v20 = vld [vmem:[#allocation70_spill] sm:$0xff] }
 0x2e6   : > { %8931 = vst [vmem:[#allocation220_spill] sm:$0xff] %v6567_v63  ;;  %8933 = vst [vmem:[#allocation64_spill] sm:$0xff] %v6573_v22  ;;  %v1953_v51 = vmax.f32 %v1952_v21, %v6559_v62  ;;  %v1961_v28 = vmax.f32 %v1960_v38, %v6567_v63  ;;  %1947 = vmax.xlane.f32.xlu1 %v1946_v27  ;;  %v6589_v43 = vadd.f32 %v8938_v31, %v5778_v39  ;;  %v8946_v31 = vld [vmem:[#allocation63_spill] sm:$0xff]  ;;  %v1720_v63 = vpop.f32.mrb[108].mxu1  ;;  %v8953_v62 = vld [vmem:[#allocation69_spill] sm:$0xff] }
 0x2e7   : > { %8935 = vst [vmem:[#allocation66_spill] sm:$0xff] %v6577_v7  ;;  %8936 = vst [vmem:[#allocation221_spill] sm:$0xff] %v6580_v60  ;;  %v1977_v2 = vmax.f32 %v1976_v6, %v6563_v4  ;;  %v6594_v0 = vadd.f32 %v8940_v17, %v5722_v35  ;;  %v6598_v23 = vadd.f32 %v8942_v20, %v5724_v26  ;;  %v1527_v4 = vpop.f32.mrb[108].mxu0 }
 0x2e8   : > { %8937 = vst [vmem:[#allocation222_spill] sm:$0xff] %v6583_v16  ;;  %8939 = vst [vmem:[#allocation59_spill] sm:$0xff] %v6589_v43  ;;  %v6601_v8 = vadd.f32 %v1712_v37, %v5839_v32  ;;  %v6604_v38 = vadd.f32 %v1714_v34, %v5828_v40  ;;  %v1962_v27 = vmax.f32 %v1961_v28, %v6580_v60  ;;  %v1529_v28 = vpop.f32.mrb[109].mxu0  ;;  %v1722_v60 = vpop.f32.mrb[109].mxu1 }
 0x2e9   : > { %8941 = vst [vmem:[#allocation68_spill] sm:$0xff] %v6594_v0  ;;  %8943 = vst [vmem:[#allocation70_spill] sm:$0xff] %v6598_v23  ;;  %v1954_v21 = vmax.f32 %v1953_v51, %v6583_v16  ;;  %v1969_v6 = vmax.f32 %v1968_v10, %v6589_v43  ;;  %v6611_v17 = vadd.f32 %v8946_v31, %v5778_v39  ;;  %v8950_v43 = vld [vmem:[#allocation65_spill] sm:$0xff] }
 0x2ea   : > { %8944 = vst [vmem:[#allocation223_spill] sm:$0xff] %v6601_v8  ;;  %8945 = vst [vmem:[#allocation224_spill] sm:$0xff] %v6604_v38  ;;  %v1985_v20 = vmax.f32 %v6573_v22, %v6577_v7  ;;  %v6616_v37 = vadd.f32 %v1716_v47, %v5839_v32  ;;  %v6619_v34 = vadd.f32 %v1527_v4, %v5799_v50  ;;  %v1531_v4 = vpop.f32.mrb[110].mxu0  ;;  %v1724_v22 = vpop.f32.mrb[110].mxu1 }
 0x2eb   : > { %8947 = vst [vmem:[#allocation63_spill] sm:$0xff] %v6611_v17  ;;  %v1955_v51 = vmax.f32 %v1954_v21, %v6601_v8  ;;  %v1963_v10 = vmax.f32 %v1962_v27, %v6604_v38  ;;  %v1978_v31 = vmax.f32 %v1977_v2, %v6611_v17  ;;  %v6626_v16 = vadd.f32 %v8950_v43, %v5747_v29  ;;  %v1533_v21 = vpop.f32.mrb[111].mxu0  ;;  %v1726_v43 = vpop.f32.mrb[111].mxu1  ;;  %v8958_v38 = vld [vmem:[#allocation74_spill] sm:$0xff] }
 0x2ec   : > { %8948 = vst [vmem:[#allocation225_spill] sm:$0xff] %v6616_v37  ;;  %8949 = vst [vmem:[#allocation226_spill] sm:$0xff] %v6619_v34  ;;  %v1994_v7 = vmax.f32 %v6594_v0, %v6598_v23  ;;  %v6631_v47 = vadd.f32 %v1529_v28, %v5810_v57  ;;  %v6635_v12 = vadd.f32 %v8953_v62, %v5747_v29  ;;  %v8956_v28 = vld [vmem:[#allocation72_spill] sm:$0xff] }
 0x2ed   : > { %8951 = vst [vmem:[#allocation65_spill] sm:$0xff] %v6626_v16  ;;  %v1970_v27 = vmax.f32 %v1969_v6, %v6619_v34  ;;  %v6639_v2 = vadd.f32 %v1531_v4, %v5799_v50  ;;  %1956 = vmax.xlane.f32.xlu0 %v1955_v51  ;;  %v1964_v17 = vmax.f32 %v1963_v10, %v6616_v37 }
 0x2ee   : > { %8952 = vst [vmem:[#allocation227_spill] sm:$0xff] %v6631_v47  ;;  %8954 = vst [vmem:[#allocation69_spill] sm:$0xff] %v6635_v12  ;;  %v1986_v23 = vmax.f32 %v1985_v20, %v6626_v16  ;;  %v6645_v0 = vadd.f32 %v8956_v28, %v5722_v35  ;;  %v6649_v62 = vadd.f32 %v8958_v38, %v5724_v26  ;;  %v8962_v20 = vld [vmem:[#allocation67_spill] sm:$0xff]  ;;  %v8964_v38 = vld [vmem:[#allocation76_spill] sm:$0xff] }
 0x2ef   : > { %8955 = vst [vmem:[#allocation228_spill] sm:$0xff] %v6639_v2  ;;  %v6652_v6 = vadd.f32 %v1533_v21, %v5810_v57  ;;  %v6655_v4 = vadd.f32 %v1720_v63, %v5828_v40  ;;  %v1971_v51 = vmax.f32 %v1970_v27, %v6631_v47  ;;  %v1979_v10 = vmax.f32 %v1978_v31, %v6639_v2  ;;  %v8966_v21 = vld [vmem:[#allocation78_spill] sm:$0xff]  ;;  %v1730_v2 = vpop.f32.mrb[112].mxu1  ;;  %v8977_v47 = vld [vmem:[#allocation77_spill] sm:$0xff] }
 0x2f0   : > { %8957 = vst [vmem:[#allocation72_spill] sm:$0xff] %v6645_v0  ;;  %8959 = vst [vmem:[#allocation74_spill] sm:$0xff] %v6649_v62  ;;  %1965 = vmax.xlane.f32.xlu1 %v1964_v17  ;;  %v6661_v16 = vadd.f32 %v8962_v20, %v5778_v39  ;;  %v1995_v28 = vmax.f32 %v1994_v7, %v6635_v12  ;;  %v6666_v34 = vadd.f32 %v8964_v38, %v5722_v35  ;;  %v8970_v20 = vld [vmem:[#allocation71_spill] sm:$0xff]  ;;  %v1537_v12 = vpop.f32.mrb[112].mxu0 }
 0x2f1   : > { %8960 = vst [vmem:[#allocation229_spill] sm:$0xff] %v6652_v6  ;;  %8961 = vst [vmem:[#allocation230_spill] sm:$0xff] %v6655_v4  ;;  %v6670_v37 = vadd.f32 %v8966_v21, %v5724_v26  ;;  %v6673_v63 = vadd.f32 %v1722_v60, %v5839_v32  ;;  %v6676_v31 = vadd.f32 %v1724_v22, %v5828_v40 }
 0x2f2   : > { %8963 = vst [vmem:[#allocation67_spill] sm:$0xff] %v6661_v16  ;;  %8965 = vst [vmem:[#allocation76_spill] sm:$0xff] %v6666_v34  ;;  %v1980_v17 = vmax.f32 %v1979_v10, %v6652_v6  ;;  %v1972_v27 = vmax.f32 %v1971_v51, %v6655_v4  ;;  %v1987_v7 = vmax.f32 %v1986_v23, %v6661_v16  ;;  %v1539_v10 = vpop.f32.mrb[113].mxu0  ;;  %v1732_v6 = vpop.f32.mrb[113].mxu1  ;;  %v8974_v16 = vld [vmem:[#allocation73_spill] sm:$0xff] }
 0x2f3   : > { %8967 = vst [vmem:[#allocation78_spill] sm:$0xff] %v6670_v37  ;;  %8968 = vst [vmem:[#allocation231_spill] sm:$0xff] %v6673_v63  ;;  %v6683_v38 = vadd.f32 %v8970_v20, %v5778_v39  ;;  %v2003_v21 = vmax.f32 %v6645_v0, %v6649_v62  ;;  %v6688_v60 = vadd.f32 %v1726_v43, %v5839_v32  ;;  %v1734_v0 = vpop.f32.mrb[114].mxu1 }
 0x2f4   : > { %8969 = vst [vmem:[#allocation232_spill] sm:$0xff] %v6676_v31  ;;  %v6691_v22 = vadd.f32 %v1537_v12, %v5799_v50  ;;  %v1973_v51 = vmax.f32 %v1972_v27, %v6673_v63  ;;  %v1981_v23 = vmax.f32 %v1980_v17, %v6676_v31  ;;  %v6698_v4 = vadd.f32 %v8974_v16, %v5747_v29  ;;  %v1541_v12 = vpop.f32.mrb[114].mxu0  ;;  %v1736_v16 = vpop.f32.mrb[115].mxu1  ;;  %v8982_v31 = vld [vmem:[#allocation82_spill] sm:$0xff] }
 0x2f5   : > { %8971 = vst [vmem:[#allocation71_spill] sm:$0xff] %v6683_v38  ;;  %8972 = vst [vmem:[#allocation233_spill] sm:$0xff] %v6688_v60  ;;  %v1996_v20 = vmax.f32 %v1995_v28, %v6683_v38  ;;  %v2012_v62 = vmax.f32 %v6666_v34, %v6670_v37  ;;  %v6703_v43 = vadd.f32 %v1539_v10, %v5810_v57  ;;  %v1543_v27 = vpop.f32.mrb[115].mxu0  ;;  %v8980_v10 = vld [vmem:[#allocation80_spill] sm:$0xff] }
 0x2f6   : > { %8973 = vst [vmem:[#allocation234_spill] sm:$0xff] %v6691_v22  ;;  %8975 = vst [vmem:[#allocation73_spill] sm:$0xff] %v6698_v4  ;;  %v6707_v8 = vadd.f32 %v8977_v47, %v5747_v29  ;;  %v1988_v17 = vmax.f32 %v1987_v7, %v6691_v22  ;;  %v6711_v28 = vadd.f32 %v1541_v12, %v5799_v50  ;;  %1974 = vmax.xlane.f32.xlu0 %v1973_v51 }
 0x2f7   : > { %8976 = vst [vmem:[#allocation235_spill] sm:$0xff] %v6703_v43  ;;  %v1982_v38 = vmax.f32 %v1981_v23, %v6688_v60  ;;  %v2004_v37 = vmax.f32 %v2003_v21, %v6698_v4  ;;  %v6717_v34 = vadd.f32 %v8980_v10, %v5722_v35  ;;  %v6721_v47 = vadd.f32 %v8982_v31, %v5724_v26  ;;  %v8986_v21 = vld [vmem:[#allocation75_spill] sm:$0xff]  ;;  %v8988_v31 = vld [vmem:[#allocation84_spill] sm:$0xff] }
 0x2f8   : > { %8978 = vst [vmem:[#allocation77_spill] sm:$0xff] %v6707_v8  ;;  %8979 = vst [vmem:[#allocation236_spill] sm:$0xff] %v6711_v28  ;;  %v6724_v7 = vadd.f32 %v1543_v27, %v5810_v57  ;;  %v6727_v12 = vadd.f32 %v1730_v2, %v5828_v40  ;;  %v1989_v51 = vmax.f32 %v1988_v17, %v6703_v43  ;;  %v8990_v27 = vld [vmem:[#allocation86_spill] sm:$0xff]  ;;  %v9001_v43 = vld [vmem:[#allocation85_spill] sm:$0xff] }
 0x2f9   : > { %8981 = vst [vmem:[#allocation80_spill] sm:$0xff] %v6717_v34  ;;  %8983 = vst [vmem:[#allocation82_spill] sm:$0xff] %v6721_v47  ;;  %v1997_v23 = vmax.f32 %v1996_v20, %v6711_v28  ;;  %1983 = vmax.xlane.f32.xlu1 %v1982_v38  ;;  %v6733_v4 = vadd.f32 %v8986_v21, %v5778_v39  ;;  %v2013_v10 = vmax.f32 %v2012_v62, %v6707_v8  ;;  %v8994_v21 = vld [vmem:[#allocation79_spill] sm:$0xff]  ;;  %v1547_v8 = vpop.f32.mrb[116].mxu0  ;;  %v1740_v28 = vpop.f32.mrb[116].mxu1 }
 0x2fa   : > { %8984 = vst [vmem:[#allocation237_spill] sm:$0xff] %v6724_v7  ;;  %8985 = vst [vmem:[#allocation238_spill] sm:$0xff] %v6727_v12  ;;  %v6738_v22 = vadd.f32 %v8988_v31, %v5722_v35  ;;  %v6742_v60 = vadd.f32 %v8990_v27, %v5724_v26  ;;  %v6745_v2 = vadd.f32 %v1732_v6, %v5839_v32 }
 0x2fb   : > { %8987 = vst [vmem:[#allocation75_spill] sm:$0xff] %v6733_v4  ;;  %v6748_v20 = vadd.f32 %v1734_v0, %v5828_v40  ;;  %v1998_v38 = vmax.f32 %v1997_v23, %v6724_v7  ;;  %v1990_v17 = vmax.f32 %v1989_v51, %v6727_v12  ;;  %v2005_v62 = vmax.f32 %v2004_v37, %v6733_v4  ;;  %v1549_v23 = vpop.f32.mrb[117].mxu0  ;;  %v1742_v7 = vpop.f32.mrb[117].mxu1  ;;  %v8998_v4 = vld [vmem:[#allocation81_spill] sm:$0xff] }
 0x2fc   : > { %8989 = vst [vmem:[#allocation84_spill] sm:$0xff] %v6738_v22  ;;  %8991 = vst [vmem:[#allocation86_spill] sm:$0xff] %v6742_v60  ;;  %v6755_v31 = vadd.f32 %v8994_v21, %v5778_v39  ;;  %v2021_v27 = vmax.f32 %v6717_v34, %v6721_v47  ;;  %v6760_v6 = vadd.f32 %v1736_v16, %v5839_v32  ;;  %v1744_v34 = vpop.f32.mrb[118].mxu1 }
 0x2fd   : > { %8992 = vst [vmem:[#allocation239_spill] sm:$0xff] %v6745_v2  ;;  %8993 = vst [vmem:[#allocation240_spill] sm:$0xff] %v6748_v20  ;;  %v6763_v0 = vadd.f32 %v1547_v8, %v5799_v50  ;;  %v1991_v51 = vmax.f32 %v1990_v17, %v6745_v2  ;;  %v1999_v37 = vmax.f32 %v1998_v38, %v6748_v20  ;;  %v1551_v8 = vpop.f32.mrb[118].mxu0  ;;  %v9006_v20 = vld [vmem:[#allocation94_spill] sm:$0xff] }
 0x2fe   : > { %8995 = vst [vmem:[#allocation79_spill] sm:$0xff] %v6755_v31  ;;  %8996 = vst [vmem:[#allocation241_spill] sm:$0xff] %v6760_v6  ;;  %v2014_v21 = vmax.f32 %v2013_v10, %v6755_v31  ;;  %v6770_v12 = vadd.f32 %v8998_v4, %v5747_v29  ;;  %v2030_v47 = vmax.f32 %v6738_v22, %v6742_v60  ;;  %v1553_v17 = vpop.f32.mrb[119].mxu0  ;;  %v1746_v4 = vpop.f32.mrb[119].mxu1 }
 0x2ff   : > { %8997 = vst [vmem:[#allocation242_spill] sm:$0xff] %v6763_v0  ;;  %v6775_v16 = vadd.f32 %v1549_v23, %v5810_v57  ;;  %v6779_v63 = vadd.f32 %v9001_v43, %v5747_v29  ;;  %v2006_v38 = vmax.f32 %v2005_v62, %v6763_v0  ;;  %v6783_v10 = vadd.f32 %v1551_v8, %v5799_v50  ;;  %v9004_v23 = vld [vmem:[#allocation92_spill] sm:$0xff] }
 0x300   : > { %8999 = vst [vmem:[#allocation81_spill] sm:$0xff] %v6770_v12  ;;  %1992 = vmax.xlane.f32.xlu0 %v1991_v51  ;;  %v2000_v31 = vmax.f32 %v1999_v37, %v6760_v6  ;;  %v2022_v60 = vmax.f32 %v2021_v27, %v6770_v12  ;;  %v6789_v22 = vadd.f32 %v9004_v23, %v5722_v35  ;;  %v9010_v27 = vld [vmem:[#allocation83_spill] sm:$0xff] }
 0x301   : > { %9000 = vst [vmem:[#allocation243_spill] sm:$0xff] %v6775_v16  ;;  %9002 = vst [vmem:[#allocation85_spill] sm:$0xff] %v6779_v63  ;;  %v6793_v43 = vadd.f32 %v9006_v20, %v5724_v26  ;;  %v6796_v62 = vadd.f32 %v1553_v17, %v5810_v57  ;;  %v6799_v8 = vadd.f32 %v1740_v28, %v5828_v40  ;;  %v9012_v20 = vld [vmem:[#allocation96_spill] sm:$0xff]  ;;  %v9014_v17 = vld [vmem:[#allocation99_spill] sm:$0xff] }
 0x302   : > { %9003 = vst [vmem:[#allocation244_spill] sm:$0xff] %v6783_v10  ;;  %9005 = vst [vmem:[#allocation92_spill] sm:$0xff] %v6789_v22  ;;  %v2007_v51 = vmax.f32 %v2006_v38, %v6775_v16  ;;  %v2015_v37 = vmax.f32 %v2014_v21, %v6783_v10  ;;  %2001 = vmax.xlane.f32.xlu1 %v2000_v31  ;;  %v6805_v12 = vadd.f32 %v9010_v27, %v5778_v39  ;;  %v9018_v27 = vld [vmem:[#allocation87_spill] sm:$0xff] }
 0x303   : > { %9007 = vst [vmem:[#allocation94_spill] sm:$0xff] %v6793_v43  ;;  %9008 = vst [vmem:[#allocation245_spill] sm:$0xff] %v6796_v62  ;;  %v2031_v23 = vmax.f32 %v2030_v47, %v6779_v63  ;;  %v6810_v0 = vadd.f32 %v9012_v20, %v5722_v35  ;;  %v6814_v6 = vadd.f32 %v9014_v17, %v5724_v26  ;;  %v1557_v20 = vpop.f32.mrb[120].mxu0  ;;  %v1750_v17 = vpop.f32.mrb[120].mxu1 }
 0x304   : > { %9009 = vst [vmem:[#allocation246_spill] sm:$0xff] %v6799_v8  ;;  %9011 = vst [vmem:[#allocation83_spill] sm:$0xff] %v6805_v12  ;;  %v6817_v28 = vadd.f32 %v1742_v7, %v5839_v32  ;;  %v6820_v21 = vadd.f32 %v1744_v34, %v5828_v40  ;;  %v2016_v31 = vmax.f32 %v2015_v37, %v6796_v62  ;;  %v1559_v37 = vpop.f32.mrb[121].mxu0  ;;  %v1752_v63 = vpop.f32.mrb[121].mxu1 }
 0x305   : > { %9013 = vst [vmem:[#allocation96_spill] sm:$0xff] %v6810_v0  ;;  %9015 = vst [vmem:[#allocation99_spill] sm:$0xff] %v6814_v6  ;;  %v2008_v38 = vmax.f32 %v2007_v51, %v6799_v8  ;;  %v2023_v47 = vmax.f32 %v2022_v60, %v6805_v12  ;;  %v6827_v35 = vadd.f32 %v9018_v27, %v5778_v39  ;;  %v9021_v27 = vld [vmem:[#allocation93_spill] sm:$0xff]  ;;  %v1754_v62 = vpop.f32.mrb[122].mxu1 }
 0x306   : > { %9016 = vst [vmem:[#allocation247_spill] sm:$0xff] %v6817_v28  ;;  %9017 = vst [vmem:[#allocation248_spill] sm:$0xff] %v6820_v21  ;;  %v2039_v26 = vmax.f32 %v6789_v22, %v6793_v43  ;;  %v6832_v7 = vadd.f32 %v1746_v4, %v5839_v32  ;;  %v6835_v34 = vadd.f32 %v1557_v20, %v5799_v50  ;;  %v1561_v4 = vpop.f32.mrb[122].mxu0 }
 0x307   : > { %9019 = vst [vmem:[#allocation87_spill] sm:$0xff] %v6827_v35  ;;  %v2009_v51 = vmax.f32 %v2008_v38, %v6817_v28  ;;  %v2017_v60 = vmax.f32 %v2016_v31, %v6820_v21  ;;  %v6841_v12 = vadd.f32 %v9021_v27, %v5747_v29  ;;  %v2048_v43 = vmax.f32 %v6810_v0, %v6814_v6  ;;  %v1563_v31 = vpop.f32.mrb[123].mxu0  ;;  %v1756_v21 = vpop.f32.mrb[123].mxu1  ;;  %v9024_v6 = vld [vmem:[#allocation97_spill] sm:$0xff] }
 0x308   : > { %9020 = vst [vmem:[#allocation249_spill] sm:$0xff] %v6835_v34  ;;  %v6846_v22 = vadd.f32 %v1559_v37, %v5810_v57  ;;  %v2032_v20 = vmax.f32 %v2031_v23, %v6827_v35  ;;  %v2024_v10 = vmax.f32 %v2023_v47, %v6835_v34  ;;  %v6851_v38 = vadd.f32 %v1561_v4, %v5799_v50 }
 0x309   : > { %9022 = vst [vmem:[#allocation93_spill] sm:$0xff] %v6841_v12  ;;  %2010 = vmax.xlane.f32.xlu0 %v2009_v51  ;;  %v2018_v27 = vmax.f32 %v2017_v60, %v6832_v7  ;;  %v2040_v28 = vmax.f32 %v2039_v26, %v6841_v12  ;;  %v6857_v37 = vadd.f32 %v9024_v6, %v5747_v29  ;;  %v9028_v51 = vld [vmem:[#allocation95_spill] sm:$0xff]  ;;  %v1760_v12 = vpop.f32.mrb[124].mxu1 }
 0x30a   : > { %9023 = vst [vmem:[#allocation250_spill] sm:$0xff] %v6851_v38  ;;  %v6860_v0 = vadd.f32 %v1563_v31, %v5810_v57  ;;  %v6863_v23 = vadd.f32 %v1750_v17, %v5828_v40  ;;  %v2025_v47 = vmax.f32 %v2024_v10, %v6846_v22  ;;  %v2033_v4 = vmax.f32 %v2032_v20, %v6851_v38  ;;  %v9032_v20 = vld [vmem:[#allocation100_spill] sm:$0xff] }
 0x30b   : > { %9025 = vst [vmem:[#allocation97_spill] sm:$0xff] %v6857_v37  ;;  %2019 = vmax.xlane.f32.xlu1 %v2018_v27  ;;  %v6869_v60 = vadd.f32 %v9028_v51, %v5778_v39  ;;  %v2049_v26 = vmax.f32 %v2048_v43, %v6857_v37  ;;  %v6873_v29 = vadd.f32 %v1752_v63, %v5839_v32  ;;  %v1567_v51 = vpop.f32.mrb[124].mxu0  ;;  %v1762_v37 = vpop.f32.mrb[125].mxu1 }
 0x30c   : > { %9026 = vst [vmem:[#allocation251_spill] sm:$0xff] %v6860_v0  ;;  %9027 = vst [vmem:[#allocation252_spill] sm:$0xff] %v6863_v23  ;;  %v6876_v6 = vadd.f32 %v1754_v62, %v5828_v40  ;;  %v2034_v17 = vmax.f32 %v2033_v4, %v6860_v0  ;;  %v2026_v31 = vmax.f32 %v2025_v47, %v6863_v23  ;;  %v1569_v62 = vpop.f32.mrb[125].mxu0 }
 0x30d   : > { %9029 = vst [vmem:[#allocation95_spill] sm:$0xff] %v6869_v60  ;;  %9030 = vst [vmem:[#allocation253_spill] sm:$0xff] %v6873_v29  ;;  %v2041_v10 = vmax.f32 %v2040_v28, %v6869_v60  ;;  %v6883_v27 = vadd.f32 %v9032_v20, %v5778_v39  ;;  %v6886_v43 = vadd.f32 %v1756_v21, %v5839_v32  ;;  %v1571_v60 = vpop.f32.mrb[126].mxu0  ;;  %v1764_v39 = vpop.f32.mrb[126].mxu1 }
 0x30e   : > { %9031 = vst [vmem:[#allocation254_spill] sm:$0xff] %v6876_v6  ;;  %v6889_v63 = vadd.f32 %v1567_v51, %v5799_v50  ;;  %v2027_v4 = vmax.f32 %v2026_v31, %v6873_v29  ;;  %v2035_v47 = vmax.f32 %v2034_v17, %v6876_v6  ;;  %v6894_v28 = vadd.f32 %v1569_v62, %v5810_v57  ;;  %v1573_v51 = vpop.f32.mrb[127].mxu0  ;;  %v1766_v38 = vpop.f32.mrb[127].mxu1 }
 0x30f   : > { %9033 = vst [vmem:[#allocation100_spill] sm:$0xff] %v6883_v27  ;;  %v2050_v20 = vmax.f32 %v2049_v26, %v6883_v27  ;;  %v6899_v21 = vadd.f32 %v1571_v60, %v5799_v50  ;;  %v6903_v31 = vadd.f32 %v1573_v51, %v5810_v57  ;;  %v6906_v17 = vadd.f32 %v1760_v12, %v5828_v40  ;;  %v9045_v51 = vld [vmem:[#allocation98_spill] sm:$0xff] }
 0x310   : > { %9034 = vst [vmem:[#allocation255_spill] sm:$0xff] %v6889_v63  ;;  %9035 = vst [vmem:[#allocation256_spill] sm:$0xff] %v6894_v28  ;;  %v2042_v0 = vmax.f32 %v2041_v10, %v6889_v63  ;;  %2028 = vmax.xlane.f32.xlu0 %v2027_v4  ;;  %v2036_v35 = vmax.f32 %v2035_v47, %v6886_v43  ;;  %v6911_v10 = vadd.f32 %v1762_v37, %v5839_v32 }
 0x311   : > { %9036 = vst [vmem:[#allocation257_spill] sm:$0xff] %v6899_v21  ;;  %9037 = vst [vmem:[#allocation258_spill] sm:$0xff] %v6903_v31  ;;  %v2051_v26 = vmax.f32 %v2050_v20, %v6899_v21  ;;  %v6914_v50 = vadd.f32 %v1764_v39, %v5828_v40  ;;  %v6919_v57 = vadd.f32 %v1766_v38, %v5839_v32  ;;  %v9043_v40 = vld [vmem:[#allocation88_spill] sm:$0xff]  ;;  %v9044_v39 = vld [vmem:[#allocation89_spill] sm:$0xff] }
 0x312   : > { %9038 = vst [vmem:[#allocation259_spill] sm:$0xff] %v6906_v17  ;;  %v2043_v62 = vmax.f32 %v2042_v0, %v6894_v28  ;;  %2037 = vmax.xlane.f32.xlu1 %v2036_v35  ;;  %9039 = vst [vmem:[#allocation260_spill] sm:$0xff] %v6911_v10 }
 0x313   : > { %9040 = vst [vmem:[#allocation261_spill] sm:$0xff] %v6914_v50  ;;  %v2052_v60 = vmax.f32 %v2051_v26, %v6903_v31  ;;  %9041 = vst [vmem:[#allocation262_spill] sm:$0xff] %v6919_v57 }
 0x314   : > { %v2044_v4 = vmax.f32 %v2043_v62, %v6906_v17  ;;  %v9047_v62 = vld [vmem:[#allocation106_spill] sm:$0xff] }
 0x315   : > { %v2053_v0 = vmax.f32 %v2052_v60, %v6914_v50 }
 0x316   : > { %v2045_v12 = vmax.f32 %v2044_v4, %v6911_v10 }
 0x317   : > { %v2054_v35 = vmax.f32 %v2053_v0, %v6919_v57 }
 0x318   : > { %2046 = vmax.xlane.f32.xlu0 %v2045_v12 }
 0x319   : > { %2055 = vmax.xlane.f32.xlu1 %v2054_v35 }
 0x31e   : > { %v6924_v37 = vpop.xlane.xlu0 %1776 }
 0x31f   : > { %9042 = vst [vmem:[#allocation263_spill] sm:$0xff] %v6924_v37  ;;  %v2057_v47 = vsub.f32 %v9043_v40, %v6924_v37  ;;  %v2058_v20 = vsub.f32 %v9044_v39, %v6924_v37  ;;  %v2059_v32 = vsub.f32 %v9045_v51, %v6924_v37  ;;  %v2060_v26 = vsub.f32 %v9047_v62, %v6924_v37  ;;  %v9048_v40 = vld [vmem:[#allocation90_spill] sm:$0xff]  ;;  %v9049_v51 = vld [vmem:[#allocation91_spill] sm:$0xff] }
 0x320   : > { %v6932_v38 = vpop.xlane.xlu1 %1785  ;;  %v2061_v60 = vsub.f32 %v5826_v36, %v6924_v37  ;;  %v2062_v0 = vsub.f32 %v5837_v41, %v6924_v37  ;;  %v2063_v62 = vsub.f32 %v5863_v30, %v6924_v37 }
 0x321   : > { %9046 = vst [vmem:[#allocation264_spill] sm:$0xff] %v6932_v38  ;;  %v2313_v4 = vmul.f32 1.442695, %v2057_v47  ;;  %v2315_v12 = vmul.f32 1.442695, %v2058_v20  ;;  %v2065_v39 = vsub.f32 %v9048_v40, %v6932_v38  ;;  %v2066_v57 = vsub.f32 %v9049_v51, %v6932_v38  ;;  %v9050_v20 = vld [vmem:[#allocation103_spill] sm:$0xff] }
 0x322   : > { %v2317_v35 = vmul.f32 1.442695, %v2059_v32  ;;  %v2319_v50 = vmul.f32 1.442695, %v2060_v26  ;;  %v2321_v31 = vmul.f32 1.442695, %v2061_v60  ;;  %v2067_v36 = vsub.f32 %v9050_v20, %v6932_v38 }
 0x323   : > { %4075 = vpow2.f32 %v2313_v4  ;;  %v2323_v47 = vmul.f32 1.442695, %v2062_v0  ;;  %v2064_v32 = vsub.f32 %v5881_v45, %v6924_v37  ;;  %v2329_v41 = vmul.f32 1.442695, %v2065_v39  ;;  %v9051_v0 = vld [vmem:[#allocation115_spill] sm:$0xff]  ;;  %v9052_v51 = vld [vmem:[#allocation101_spill] sm:$0xff] }
 0x324   : > { %4077 = vpow2.f32 %v2315_v12  ;;  %v2068_v4 = vsub.f32 %v5823_v33, %v6932_v38  ;;  %v2331_v26 = vmul.f32 1.442695, %v2066_v57  ;;  %v2325_v12 = vmul.f32 1.442695, %v2063_v62 }
 0x325   : > { %4079 = vpow2.f32 %v2317_v35  ;;  %v2069_v60 = vsub.f32 %v5848_v54, %v6932_v38  ;;  %v2070_v35 = vsub.f32 %v9051_v0, %v6932_v38  ;;  %v2333_v20 = vmul.f32 1.442695, %v2067_v36  ;;  %v9054_v36 = vld [vmem:[#allocation109_spill] sm:$0xff] }
 0x326   : > { %v6950_v40 = vpop.xlane.xlu0 %1794  ;;  %4081 = vpow2.f32 %v2319_v50  ;;  %v2327_v45 = vmul.f32 1.442695, %v2064_v32  ;;  %v9053_v50 = vld [vmem:[#allocation102_spill] sm:$0xff]  ;;  %v2335_v57 = vmul.f32 1.442695, %v2068_v4  ;;  %v2071_v62 = vsub.f32 %v5884_v48, %v6932_v38  ;;  %v9055_v4 = vld [vmem:[#allocation117_spill] sm:$0xff] }
 0x327   : > { %4083 = vpow2.f32 %v2321_v31  ;;  %v2073_v39 = vsub.f32 %v9052_v51, %v6950_v40  ;;  %v2074_v30 = vsub.f32 %v9053_v50, %v6950_v40  ;;  %v2339_v0 = vmul.f32 1.442695, %v2070_v35 }
 0x328   : > { %4085 = vpow2.f32 %v2323_v47  ;;  %v2337_v47 = vmul.f32 1.442695, %v2069_v60  ;;  %v2075_v33 = vsub.f32 %v9054_v36, %v6950_v40  ;;  %v2341_v60 = vmul.f32 1.442695, %v2071_v62  ;;  %v6970_v35 = vpop.xlane.xlu1 %1803 }
 0x329   : > { %4087 = vpow2.f32 %v2329_v41  ;;  %v2072_v41 = vsub.f32 %v5896_v18, %v6932_v38  ;;  %v2345_v50 = vmul.f32 1.442695, %v2073_v39  ;;  %v2347_v51 = vmul.f32 1.442695, %v2074_v30 }
 0x32a   : > { %4089 = vpow2.f32 %v2331_v26  ;;  %v2079_v30 = vsub.f32 %v5935_v5, %v6950_v40 }
 0x32b   : > { %4091 = vpow2.f32 %v2325_v12  ;;  %v2076_v12 = vsub.f32 %v9055_v4, %v6950_v40  ;;  %v2343_v39 = vmul.f32 1.442695, %v2072_v41 }
 0x32c   : > { %4093 = vpow2.f32 %v2333_v20  ;;  %v2357_v18 = vmul.f32 1.442695, %v2079_v30 }
 0x32d   : > { %v4076_v31 = vpop.eup %4075  ;;  %4095 = vpow2.f32 %v2327_v45  ;;  %v2349_v45 = vmul.f32 1.442695, %v2075_v33  ;;  %v2351_v62 = vmul.f32 1.442695, %v2076_v12 }
 0x32e   : > { %v4078_v54 = vpop.eup %4077  ;;  %4097 = vpow2.f32 %v2335_v57  ;;  %v2078_v57 = vsub.f32 %v5911_v24, %v6950_v40 }
 0x32f   : > { %v2825_v32 = vadd.f32 %v4078_v54, %v4076_v31  ;;  %v4080_v26 = vpop.eup %4079  ;;  %4099 = vpow2.f32 %v2337_v47  ;;  %v2077_v54 = vsub.f32 %v5899_v49, %v6950_v40  ;;  %v6988_v30 = vpop.xlane.xlu0 %1812 }
 0x330   : > { %v4082_v20 = vpop.eup %4081  ;;  %4101 = vpow2.f32 %v2339_v0  ;;  %v9056_v0 = vld [vmem:[#allocation104_spill] sm:$0xff]  ;;  %v2355_v12 = vmul.f32 1.442695, %v2078_v57 }
 0x331   : > { %v2826_v48 = vadd.f32 %v4080_v26, %v2825_v32  ;;  %v4084_v31 = vpop.eup %4083  ;;  %4103 = vpow2.f32 %v2345_v50  ;;  %v2081_v32 = vsub.f32 %v9056_v0, %v6970_v35  ;;  %v2353_v50 = vmul.f32 1.442695, %v2077_v54 }
 0x332   : > { %v4086_v4 = vpop.eup %4085  ;;  %4105 = vpow2.f32 %v2347_v51 }
 0x333   : > { %v2827_v36 = vadd.f32 %v4082_v20, %v2826_v48  ;;  %v4088_v47 = vpop.eup %4087  ;;  %4107 = vpow2.f32 %v2341_v60  ;;  %v9057_v48 = vld [vmem:[#allocation105_spill] sm:$0xff]  ;;  %v2080_v20 = vsub.f32 %v5953_v46, %v6950_v40 }
 0x334   : > { %v4090_v33 = vpop.eup %4089  ;;  %v2082_v41 = vsub.f32 %v9057_v48, %v6970_v35  ;;  %4109 = vpow2.f32 %v2349_v45  ;;  %v2361_v48 = vmul.f32 1.442695, %v2081_v32  ;;  %v9059_v45 = vld [vmem:[#allocation122_spill] sm:$0xff] }
 0x335   : > { %v2828_v26 = vadd.f32 %v4084_v31, %v2827_v36  ;;  %v4092_v24 = vpop.eup %4091  ;;  %4111 = vpow2.f32 %v2343_v39  ;;  %v2834_v51 = vadd.f32 %v4090_v33, %v4088_v47  ;;  %v9058_v36 = vld [vmem:[#allocation111_spill] sm:$0xff]  ;;  %v2084_v54 = vsub.f32 %v9059_v45, %v6970_v35 }
 0x336   : > { %v4094_v5 = vpop.eup %4093  ;;  %4113 = vpow2.f32 %v2351_v62  ;;  %v2083_v60 = vsub.f32 %v9058_v36, %v6970_v35  ;;  %v2363_v46 = vmul.f32 1.442695, %v2082_v41  ;;  %v2359_v57 = vmul.f32 1.442695, %v2080_v20 }
 0x337   : > { %v2829_v49 = vadd.f32 %v4086_v4, %v2828_v26  ;;  %v4096_v31 = vpop.eup %4095  ;;  %v2835_v38 = vadd.f32 %v4094_v5, %v2834_v51  ;;  %4115 = vpow2.f32 %v2353_v50  ;;  %v2086_v26 = vsub.f32 %v5932_v59, %v6970_v35 }
 0x338   : > { %v4098_v37 = vpop.eup %4097  ;;  %4117 = vpow2.f32 %v2355_v12  ;;  %v9061_v12 = vld [vmem:[#allocation114_spill] sm:$0xff] }
 0x339   : > { %v2830_v0 = vadd.f32 %v4092_v24, %v2829_v49  ;;  %v4100_v4 = vpop.eup %4099  ;;  %v2836_v47 = vadd.f32 %v4098_v37, %v2835_v38  ;;  %4119 = vpow2.f32 %v2357_v18  ;;  %v2085_v49 = vsub.f32 %v5919_v53, %v6970_v35  ;;  %v9060_v18 = vld [vmem:[#allocation113_spill] sm:$0xff] }
 0x33a   : > { %v4102_v62 = vpop.eup %4101  ;;  %v2365_v24 = vmul.f32 1.442695, %v2083_v60  ;;  %4121 = vpow2.f32 %v2361_v48  ;;  %v2087_v37 = vsub.f32 %v5956_v52, %v6970_v35  ;;  %v2367_v38 = vmul.f32 1.442695, %v2084_v54 }
 0x33b   : > { %v2831_v39 = vadd.f32 %v4096_v31, %v2830_v0  ;;  %v4104_v5 = vpop.eup %4103  ;;  %v2837_v32 = vadd.f32 %v4100_v4, %v2836_v47  ;;  %4123 = vpow2.f32 %v2363_v46  ;;  %v2089_v41 = vsub.f32 %v9060_v18, %v6988_v30 }
 0x33c   : > { %v4106_v33 = vpop.eup %4105  ;;  %4125 = vpow2.f32 %v2359_v57  ;;  %v2090_v60 = vsub.f32 %v9061_v12, %v6988_v30  ;;  %v2369_v31 = vmul.f32 1.442695, %v2085_v49  ;;  %v2088_v46 = vsub.f32 %v5968_v55, %v6970_v35 }
 0x33d   : > { %2832 = vadd.xlane.f32.xlu0 %v2831_v39  ;;  %v4108_v0 = vpop.eup %4107  ;;  %v2838_v20 = vadd.f32 %v4102_v62, %v2837_v32  ;;  %v2843_v50 = vadd.f32 %v4106_v33, %v4104_v5  ;;  %4127 = vpow2.f32 %v2365_v24  ;;  %v2371_v54 = vmul.f32 1.442695, %v2086_v26  ;;  %v9062_v62 = vld [vmem:[#allocation125_spill] sm:$0xff]  ;;  %v9063_v33 = vld [vmem:[#allocation131_spill] sm:$0xff]  ;;  %v7008_v26 = vpop.xlane.xlu1 %1821 }
 0x33e   : > { %v4110_v51 = vpop.eup %4109  ;;  %4129 = vpow2.f32 %v2367_v38  ;;  %v2373_v52 = vmul.f32 1.442695, %v2087_v37  ;;  %v2091_v57 = vsub.f32 %v9062_v62, %v6988_v30  ;;  %v2092_v12 = vsub.f32 %v9063_v33, %v6988_v30 }
 0x33f   : > { %v4112_v48 = vpop.eup %4111  ;;  %v2839_v4 = vadd.f32 %v4108_v0, %v2838_v20  ;;  %v2844_v39 = vadd.f32 %v4110_v51, %v2843_v50  ;;  %v2377_v24 = vmul.f32 1.442695, %v2089_v41  ;;  %4131 = vpow2.f32 %v2369_v31 }
 0x340   : > { %v4114_v47 = vpop.eup %4113  ;;  %v2093_v0 = vsub.f32 %v5971_v1, %v6988_v30  ;;  %v2379_v20 = vmul.f32 1.442695, %v2090_v60  ;;  %4133 = vpow2.f32 %v2371_v54  ;;  %v2375_v38 = vmul.f32 1.442695, %v2088_v46  ;;  %v9064_v54 = vld [vmem:[#allocation118_spill] sm:$0xff] }
 0x341   : > { %v2840_v5 = vadd.f32 %v4112_v48, %v2839_v4  ;;  %v2845_v32 = vadd.f32 %v4114_v47, %v2844_v39  ;;  %v4116_v49 = vpop.eup %4115  ;;  %v2094_v51 = vsub.f32 %v5983_v14, %v6988_v30  ;;  %4135 = vpow2.f32 %v2373_v52 }
 0x342   : > { %v4118_v50 = vpop.eup %4117  ;;  %v2095_v41 = vsub.f32 %v6007_v42, %v6988_v30  ;;  %v2096_v31 = vsub.f32 %v6025_v11, %v6988_v30  ;;  %v2381_v4 = vmul.f32 1.442695, %v2091_v57  ;;  %4137 = vpow2.f32 %v2377_v24 }
 0x343   : > { %2841 = vadd.xlane.f32.xlu1 %v2840_v5  ;;  %v2846_v37 = vadd.f32 %v4116_v49, %v2845_v32  ;;  %v4120_v48 = vpop.eup %4119  ;;  %v2383_v47 = vmul.f32 1.442695, %v2092_v12  ;;  %v2097_v46 = vsub.f32 %v9064_v54, %v7008_v26  ;;  %v9065_v32 = vld [vmem:[#allocation119_spill] sm:$0xff]  ;;  %4139 = vpow2.f32 %v2379_v20  ;;  %v9067_v54 = vld [vmem:[#allocation136_spill] sm:$0xff] }
 0x344   : > { %v4122_v60 = vpop.eup %4121  ;;  %v2098_v49 = vsub.f32 %v9065_v32, %v7008_v26  ;;  %v2385_v52 = vmul.f32 1.442695, %v2093_v0  ;;  %4141 = vpow2.f32 %v2375_v38  ;;  %v2387_v33 = vmul.f32 1.442695, %v2094_v51  ;;  %v9066_v12 = vld [vmem:[#allocation127_spill] sm:$0xff]  ;;  %v7026_v51 = vpop.xlane.xlu0 %1830 }
 0x345   : > { %v2847_v39 = vadd.f32 %v4118_v50, %v2846_v37  ;;  %v4124_v5 = vpop.eup %4123  ;;  %4143 = vpow2.f32 %v2381_v4  ;;  %v2389_v57 = vmul.f32 1.442695, %v2095_v41  ;;  %v2391_v50 = vmul.f32 1.442695, %v2096_v31 }
 0x346   : > { %v4126_v14 = vpop.eup %4125  ;;  %v2852_v42 = vadd.f32 %v4124_v5, %v4122_v60  ;;  %v2099_v24 = vsub.f32 %v9066_v12, %v7008_v26  ;;  %4145 = vpow2.f32 %v2383_v47  ;;  %v2100_v32 = vsub.f32 %v9067_v54, %v7008_v26 }
 0x347   : > { %v2848_v1 = vadd.f32 %v4120_v48, %v2847_v39  ;;  %v4128_v11 = vpop.eup %4127  ;;  %4147 = vpow2.f32 %v2385_v52  ;;  %v2101_v0 = vsub.f32 %v5991_v58, %v7008_v26  ;;  %v2393_v38 = vmul.f32 1.442695, %v2097_v46 }
 0x348   : > { %v2853_v62 = vadd.f32 %v4128_v11, %v2852_v42  ;;  %v4130_v20 = vpop.eup %4129  ;;  %4149 = vpow2.f32 %v2387_v33  ;;  %v2102_v41 = vsub.f32 %v6004_v44, %v7008_v26  ;;  %v2103_v42 = vsub.f32 %v6028_v56, %v7008_v26 }
 0x349   : > { %v2849_v37 = vadd.f32 %v4126_v14, %v2848_v1  ;;  %v2395_v1 = vmul.f32 1.442695, %v2098_v49  ;;  %v4132_v14 = vpop.eup %4131  ;;  %4151 = vpow2.f32 %v2389_v57  ;;  %v2104_v11 = vsub.f32 %v6040_v15, %v7008_v26  ;;  %v9069_v49 = vld [vmem:[#allocation129_spill] sm:$0xff] }
 0x34a   : > { %v2854_v48 = vadd.f32 %v4130_v20, %v2853_v62  ;;  %v2397_v31 = vmul.f32 1.442695, %v2099_v24  ;;  %v4134_v4 = vpop.eup %4133  ;;  %4153 = vpow2.f32 %v2391_v50  ;;  %v2399_v39 = vmul.f32 1.442695, %v2100_v32  ;;  %v9068_v62 = vld [vmem:[#allocation128_spill] sm:$0xff]  ;;  %v9070_v50 = vld [vmem:[#allocation138_spill] sm:$0xff] }
 0x34b   : > { %2850 = vadd.xlane.f32.xlu0 %v2849_v37  ;;  %v4136_v47 = vpop.eup %4135  ;;  %v2105_v33 = vsub.f32 %v9068_v62, %v7026_v51  ;;  %4155 = vpow2.f32 %v2393_v38  ;;  %v2401_v5 = vmul.f32 1.442695, %v2101_v0  ;;  %v2106_v52 = vsub.f32 %v9069_v49, %v7026_v51  ;;  %v9071_v0 = vld [vmem:[#allocation144_spill] sm:$0xff] }
 0x34c   : > { %v2855_v60 = vadd.f32 %v4132_v14, %v2854_v48  ;;  %v4138_v46 = vpop.eup %4137  ;;  %4157 = vpow2.f32 %v2395_v1  ;;  %v2403_v37 = vmul.f32 1.442695, %v2102_v41  ;;  %v2405_v24 = vmul.f32 1.442695, %v2103_v42 }
 0x34d   : > { %v4140_v20 = vpop.eup %4139  ;;  %4159 = vpow2.f32 %v2397_v31  ;;  %v2407_v15 = vmul.f32 1.442695, %v2104_v11  ;;  %v2107_v32 = vsub.f32 %v9070_v50, %v7026_v51  ;;  %v2108_v38 = vsub.f32 %v9071_v0, %v7026_v51  ;;  %v7046_v31 = vpop.xlane.xlu1 %1839 }
 0x34e   : > { %v2856_v57 = vadd.f32 %v4134_v4, %v2855_v60  ;;  %v4142_v48 = vpop.eup %4141  ;;  %v2861_v56 = vadd.f32 %v4140_v20, %v4138_v46  ;;  %4161 = vpow2.f32 %v2399_v39  ;;  %v2109_v1 = vsub.f32 %v6043_v13, %v7026_v51 }
 0x34f   : > { %v4144_v62 = vpop.eup %4143  ;;  %4163 = vpow2.f32 %v2401_v5  ;;  %v2110_v41 = vsub.f32 %v6055_v3, %v7026_v51  ;;  %v2409_v42 = vmul.f32 1.442695, %v2105_v33  ;;  %v2111_v46 = vsub.f32 %v6079_v19, %v7026_v51 }
 0x350   : > { %v2857_v14 = vadd.f32 %v4136_v47, %v2856_v57  ;;  %v4146_v11 = vpop.eup %4145  ;;  %v2862_v60 = vadd.f32 %v4144_v62, %v2861_v56  ;;  %4165 = vpow2.f32 %v2403_v37  ;;  %v2411_v47 = vmul.f32 1.442695, %v2106_v52  ;;  %v9073_v37 = vld [vmem:[#allocation133_spill] sm:$0xff] }
 0x351   : > { %v4148_v39 = vpop.eup %4147  ;;  %4167 = vpow2.f32 %v2405_v24  ;;  %v2413_v5 = vmul.f32 1.442695, %v2107_v32  ;;  %v2112_v33 = vsub.f32 %v6097_v25, %v7026_v51  ;;  %v2415_v3 = vmul.f32 1.442695, %v2108_v38 }
 0x352   : > { %v2858_v4 = vadd.f32 %v4142_v48, %v2857_v14  ;;  %v4150_v57 = vpop.eup %4149  ;;  %v2863_v20 = vadd.f32 %v4146_v11, %v2862_v60  ;;  %4169 = vpow2.f32 %v2407_v15  ;;  %v9072_v48 = vld [vmem:[#allocation132_spill] sm:$0xff]  ;;  %v2417_v62 = vmul.f32 1.442695, %v2109_v1 }
 0x353   : > { %v4152_v13 = vpop.eup %4151  ;;  %v2113_v56 = vsub.f32 %v9072_v48, %v7046_v31  ;;  %4171 = vpow2.f32 %v2409_v42  ;;  %v2114_v24 = vsub.f32 %v9073_v37, %v7046_v31  ;;  %v2419_v32 = vmul.f32 1.442695, %v2110_v41  ;;  %v9074_v11 = vld [vmem:[#allocation140_spill] sm:$0xff]  ;;  %v9075_v42 = vld [vmem:[#allocation149_spill] sm:$0xff] }
 0x354   : > { %2859 = vadd.xlane.f32.xlu1 %v2858_v4  ;;  %v4154_v52 = vpop.eup %4153  ;;  %v2864_v14 = vadd.f32 %v4148_v39, %v2863_v20  ;;  %4173 = vpow2.f32 %v2411_v47  ;;  %v2421_v15 = vmul.f32 1.442695, %v2111_v46  ;;  %v2115_v60 = vsub.f32 %v9074_v11, %v7046_v31 }
 0x355   : > { %v4156_v4 = vpop.eup %4155  ;;  %4175 = vpow2.f32 %v2413_v5  ;;  %v2423_v19 = vmul.f32 1.442695, %v2112_v33  ;;  %v2116_v1 = vsub.f32 %v9075_v42, %v7046_v31  ;;  %v2117_v47 = vsub.f32 %v6063_v9, %v7046_v31  ;;  %v7062_v5 = vpop.xlane.xlu0 %1848 }
 0x356   : > { %v4158_v38 = vpop.eup %4157  ;;  %v2865_v25 = vadd.f32 %v4150_v57, %v2864_v14  ;;  %4177 = vpow2.f32 %v2415_v3  ;;  %v2425_v41 = vmul.f32 1.442695, %v2113_v56  ;;  %9076 = vst [vmem:[#allocation111_spill] sm:$0xff] %v7062_v5  ;;  %v2118_v57 = vsub.f32 %v6076_v61, %v7046_v31  ;;  %v9077_v14 = vld [vmem:[#allocation164_spill] sm:$0xff]  ;;  %v9078_v56 = vld [vmem:[#allocation166_spill] sm:$0xff] }
 0x357   : > { %v4160_v48 = vpop.eup %4159  ;;  %v2870_v0 = vadd.f32 %v4158_v38, %v4156_v4  ;;  %4179 = vpow2.f32 %v2417_v62  ;;  %v2427_v3 = vmul.f32 1.442695, %v2114_v24  ;;  %v2119_v4 = vsub.f32 %v9077_v14, %v7046_v31 }
 0x358   : > { %v4162_v39 = vpop.eup %4161  ;;  %v2866_v46 = vadd.f32 %v4152_v13, %v2865_v25  ;;  %4181 = vpow2.f32 %v2419_v32  ;;  %v2429_v62 = vmul.f32 1.442695, %v2115_v60  ;;  %v2120_v9 = vsub.f32 %v9078_v56, %v7046_v31  ;;  %v9079_v25 = vld [vmem:[#allocation141_spill] sm:$0xff] }
 0x359   : > { %v4164_v20 = vpop.eup %4163  ;;  %v2871_v33 = vadd.f32 %v4160_v48, %v2870_v0  ;;  %4183 = vpow2.f32 %v2421_v15  ;;  %v2431_v11 = vmul.f32 1.442695, %v2116_v1  ;;  %v2121_v32 = vsub.f32 %v9079_v25, %v7062_v5  ;;  %v9080_v48 = vld [vmem:[#allocation142_spill] sm:$0xff]  ;;  %v9081_v1 = vld [vmem:[#allocation152_spill] sm:$0xff] }
 0x35a   : > { %v4166_v38 = vpop.eup %4165  ;;  %v2867_v42 = vadd.f32 %v4154_v52, %v2866_v46  ;;  %4185 = vpow2.f32 %v2423_v19  ;;  %v2433_v24 = vmul.f32 1.442695, %v2117_v47  ;;  %v2122_v15 = vsub.f32 %v9080_v48, %v7062_v5 }
 0x35b   : > { %v4168_v13 = vpop.eup %4167  ;;  %v2872_v61 = vadd.f32 %v4162_v39, %v2871_v33  ;;  %4187 = vpow2.f32 %v2425_v41  ;;  %v2435_v60 = vmul.f32 1.442695, %v2118_v57  ;;  %v2437_v46 = vmul.f32 1.442695, %v2119_v4  ;;  %v9082_v41 = vld [vmem:[#allocation160_spill] sm:$0xff]  ;;  %v9083_v39 = vld [vmem:[#allocation167_spill] sm:$0xff] }
 0x35c   : > { %v4170_v0 = vpop.eup %4169  ;;  %2868 = vadd.xlane.f32.xlu0 %v2867_v42  ;;  %4189 = vpow2.f32 %v2427_v3  ;;  %v2123_v56 = vsub.f32 %v9081_v1, %v7062_v5  ;;  %v2439_v25 = vmul.f32 1.442695, %v2120_v9  ;;  %v2124_v47 = vsub.f32 %v9082_v41, %v7062_v5  ;;  %v7080_v42 = vpop.xlane.xlu1 %1857  ;;  %v9085_v4 = vld [vmem:[#allocation169_spill] sm:$0xff]  ;;  %v9086_v9 = vld [vmem:[#allocation174_spill] sm:$0xff] }
 0x35d   : > { %v4172_v52 = vpop.eup %4171  ;;  %v2873_v19 = vadd.f32 %v4164_v20, %v2872_v61  ;;  %4191 = vpow2.f32 %v2429_v62  ;;  %v2125_v33 = vsub.f32 %v9083_v39, %v7062_v5  ;;  %9084 = vst [vmem:[#allocation122_spill] sm:$0xff] %v7080_v42  ;;  %v2441_v61 = vmul.f32 1.442695, %v2121_v32  ;;  %v9088_v32 = vld [vmem:[#allocation175_spill] sm:$0xff] }
 0x35e   : > { %v4174_v14 = vpop.eup %4173  ;;  %4193 = vpow2.f32 %v2431_v11  ;;  %v2126_v62 = vsub.f32 %v9085_v4, %v7062_v5  ;;  %v2127_v11 = vsub.f32 %v9086_v9, %v7062_v5  ;;  %v2443_v1 = vmul.f32 1.442695, %v2122_v15 }
 0x35f   : > { %v4176_v48 = vpop.eup %4175  ;;  %v2874_v57 = vadd.f32 %v4166_v38, %v2873_v19  ;;  %v2879_v3 = vadd.f32 %v4174_v14, %v4172_v52  ;;  %4195 = vpow2.f32 %v2433_v24  ;;  %v2445_v39 = vmul.f32 1.442695, %v2123_v56  ;;  %v9087_v38 = vld [vmem:[#allocation145_spill] sm:$0xff] }
 0x360   : > { %v4178_v20 = vpop.eup %4177  ;;  %4197 = vpow2.f32 %v2435_v60  ;;  %v2129_v14 = vsub.f32 %v9087_v38, %v7080_v42  ;;  %v2128_v24 = vsub.f32 %v9088_v32, %v7062_v5  ;;  %v2447_v60 = vmul.f32 1.442695, %v2124_v47 }
 0x361   : > { %v4180_v41 = vpop.eup %4179  ;;  %v2875_v37 = vadd.f32 %v4168_v13, %v2874_v57  ;;  %v2880_v50 = vadd.f32 %v4176_v48, %v2879_v3  ;;  %4199 = vpow2.f32 %v2437_v46  ;;  %v2449_v9 = vmul.f32 1.442695, %v2125_v33  ;;  %v9089_v13 = vld [vmem:[#allocation146_spill] sm:$0xff]  ;;  %v9092_v33 = vld [vmem:[#allocation171_spill] sm:$0xff] }
 0x362   : > { %v4182_v49 = vpop.eup %4181  ;;  %4201 = vpow2.f32 %v2439_v25  ;;  %v2130_v48 = vsub.f32 %v9089_v13, %v7080_v42  ;;  %v2451_v56 = vmul.f32 1.442695, %v2126_v62  ;;  %v2453_v25 = vmul.f32 1.442695, %v2127_v11  ;;  %v9090_v3 = vld [vmem:[#allocation154_spill] sm:$0xff] }
 0x363   : > { %v4184_v52 = vpop.eup %4183  ;;  %v2876_v19 = vadd.f32 %v4170_v0, %v2875_v37  ;;  %v2881_v4 = vadd.f32 %v4178_v20, %v2880_v50  ;;  %4203 = vpow2.f32 %v2441_v61  ;;  %v2131_v38 = vsub.f32 %v9090_v3, %v7080_v42  ;;  %v9091_v50 = vld [vmem:[#allocation165_spill] sm:$0xff] }
 0x364   : > { %v4186_v15 = vpop.eup %4185  ;;  %4205 = vpow2.f32 %v2443_v1  ;;  %v2455_v37 = vmul.f32 1.442695, %v2128_v24  ;;  %v2132_v0 = vsub.f32 %v9091_v50, %v7080_v42  ;;  %v2133_v61 = vsub.f32 %v9092_v33, %v7080_v42  ;;  %v7098_v1 = vpop.xlane.xlu0 %1866  ;;  %v9095_v24 = vld [vmem:[#allocation176_spill] sm:$0xff] }
 0x365   : > { %v4188_v46 = vpop.eup %4187  ;;  %2877 = vadd.xlane.f32.xlu1 %v2876_v19  ;;  %v2882_v57 = vadd.f32 %v4180_v41, %v2881_v4  ;;  %4207 = vpow2.f32 %v2445_v39  ;;  %9093 = vst [vmem:[#allocation113_spill] sm:$0xff] %v7098_v1  ;;  %v2457_v41 = vmul.f32 1.442695, %v2129_v14  ;;  %v9094_v4 = vld [vmem:[#allocation173_spill] sm:$0xff]  ;;  %v2459_v3 = vmul.f32 1.442695, %v2130_v48 }
 0x366   : > { %v4190_v47 = vpop.eup %4189  ;;  %4209 = vpow2.f32 %v2447_v60  ;;  %v2134_v11 = vsub.f32 %v9094_v4, %v7080_v42  ;;  %v2135_v60 = vsub.f32 %v9095_v24, %v7080_v42  ;;  %v2461_v33 = vmul.f32 1.442695, %v2131_v38 }
 0x367   : > { %v4192_v20 = vpop.eup %4191  ;;  %v2883_v62 = vadd.f32 %v4182_v49, %v2882_v57  ;;  %v2888_v19 = vadd.f32 %v4190_v47, %v4188_v46  ;;  %4211 = vpow2.f32 %v2449_v9  ;;  %v9096_v49 = vld [vmem:[#allocation156_spill] sm:$0xff]  ;;  %v9097_v9 = vld [vmem:[#allocation177_spill] sm:$0xff]  ;;  %v2465_v24 = vmul.f32 1.442695, %v2133_v61  ;;  %v9101_v61 = vld [vmem:[#allocation178_spill] sm:$0xff] }
 0x368   : > { %v4194_v39 = vpop.eup %4193  ;;  %4213 = vpow2.f32 %v2451_v56  ;;  %v2137_v46 = vsub.f32 %v9096_v49, %v7098_v1  ;;  %v2136_v14 = vsub.f32 %v9097_v9, %v7080_v42  ;;  %v2463_v56 = vmul.f32 1.442695, %v2132_v0 }
 0x369   : > { %v4196_v50 = vpop.eup %4195  ;;  %v2884_v13 = vadd.f32 %v4184_v52, %v2883_v62  ;;  %v2889_v32 = vadd.f32 %v4192_v20, %v2888_v19  ;;  %4215 = vpow2.f32 %v2453_v25  ;;  %v9098_v52 = vld [vmem:[#allocation157_spill] sm:$0xff]  ;;  %v2467_v38 = vmul.f32 1.442695, %v2134_v11  ;;  %v9099_v19 = vld [vmem:[#allocation168_spill] sm:$0xff] }
 0x36a   : > { %v4198_v5 = vpop.eup %4197  ;;  %4217 = vpow2.f32 %v2455_v37  ;;  %v2138_v20 = vsub.f32 %v9098_v52, %v7098_v1  ;;  %v2469_v37 = vmul.f32 1.442695, %v2135_v60  ;;  %v2139_v49 = vsub.f32 %v9099_v19, %v7098_v1 }
 0x36b   : > { %v4200_v57 = vpop.eup %4199  ;;  %v2885_v47 = vadd.f32 %v4186_v15, %v2884_v13  ;;  %v2890_v4 = vadd.f32 %v4194_v39, %v2889_v32  ;;  %4219 = vpow2.f32 %v2457_v41  ;;  %v2471_v15 = vmul.f32 1.442695, %v2136_v14  ;;  %v9100_v32 = vld [vmem:[#allocation15_spill] sm:$0xff]  ;;  %v9104_v14 = vld [vmem:[#allocation182_spill] sm:$0xff] }
 0x36c   : > { %v4202_v48 = vpop.eup %4201  ;;  %4221 = vpow2.f32 %v2459_v3  ;;  %v2140_v13 = vsub.f32 %v9100_v32, %v7098_v1  ;;  %v2141_v41 = vsub.f32 %v9101_v61, %v7098_v1  ;;  %v7116_v3 = vpop.xlane.xlu1 %1875  ;;  %v2475_v19 = vmul.f32 1.442695, %v2138_v20 }
 0x36d   : > { %v4204_v25 = vpop.eup %4203  ;;  %2886 = vadd.xlane.f32.xlu0 %v2885_v47  ;;  %v2891_v62 = vadd.f32 %v4196_v50, %v2890_v4  ;;  %4223 = vpow2.f32 %v2461_v33  ;;  %9102 = vst [vmem:[#allocation127_spill] sm:$0xff] %v7116_v3  ;;  %v2473_v50 = vmul.f32 1.442695, %v2137_v46  ;;  %v9103_v4 = vld [vmem:[#allocation179_spill] sm:$0xff]  ;;  %v2477_v61 = vmul.f32 1.442695, %v2139_v49 }
 0x36e   : > { %v4206_v0 = vpop.eup %4205  ;;  %4225 = vpow2.f32 %v2463_v56  ;;  %v2142_v60 = vsub.f32 %v9103_v4, %v7098_v1  ;;  %v2143_v56 = vsub.f32 %v9104_v14, %v7098_v1  ;;  %v2481_v14 = vmul.f32 1.442695, %v2141_v41  ;;  %v9110_v41 = vld [vmem:[#allocation180_spill] sm:$0xff] }
 0x36f   : > { %v4208_v39 = vpop.eup %4207  ;;  %v2892_v11 = vadd.f32 %v4198_v5, %v2891_v62  ;;  %v2897_v47 = vadd.f32 %v4206_v0, %v4204_v25  ;;  %4227 = vpow2.f32 %v2465_v24  ;;  %v9105_v5 = vld [vmem:[#allocation161_spill] sm:$0xff]  ;;  %v9106_v24 = vld [vmem:[#allocation183_spill] sm:$0xff] }
 0x370   : > { %v4210_v33 = vpop.eup %4209  ;;  %4229 = vpow2.f32 %v2467_v38  ;;  %v2145_v25 = vsub.f32 %v9105_v5, %v7116_v3  ;;  %v2144_v46 = vsub.f32 %v9106_v24, %v7098_v1  ;;  %v2479_v38 = vmul.f32 1.442695, %v2140_v13 }
 0x371   : > { %v4212_v32 = vpop.eup %4211  ;;  %v2893_v52 = vadd.f32 %v4200_v57, %v2892_v11  ;;  %v2898_v9 = vadd.f32 %v4208_v39, %v2897_v47  ;;  %4231 = vpow2.f32 %v2469_v37  ;;  %v9107_v57 = vld [vmem:[#allocation162_spill] sm:$0xff]  ;;  %v2483_v49 = vmul.f32 1.442695, %v2142_v60 }
 0x372   : > { %v4214_v42 = vpop.eup %4213  ;;  %4233 = vpow2.f32 %v2471_v15  ;;  %v2146_v39 = vsub.f32 %v9107_v57, %v7116_v3  ;;  %v2485_v15 = vmul.f32 1.442695, %v2143_v56  ;;  %v9108_v47 = vld [vmem:[#allocation170_spill] sm:$0xff] }
 0x373   : > { %v4216_v62 = vpop.eup %4215  ;;  %v2894_v0 = vadd.f32 %v4202_v48, %v2893_v52  ;;  %v2899_v4 = vadd.f32 %v4210_v33, %v2898_v9  ;;  %4235 = vpow2.f32 %v2473_v50  ;;  %v2147_v5 = vsub.f32 %v9108_v47, %v7116_v3  ;;  %v9109_v9 = vld [vmem:[#allocation16_spill] sm:$0xff] }
 0x374   : > { %v4218_v20 = vpop.eup %4217  ;;  %4237 = vpow2.f32 %v2475_v19  ;;  %v2487_v48 = vmul.f32 1.442695, %v2144_v46  ;;  %v2148_v52 = vsub.f32 %v9109_v9, %v7116_v3  ;;  %v2149_v50 = vsub.f32 %v9110_v41, %v7116_v3  ;;  %v7134_v19 = vpop.xlane.xlu0 %1884  ;;  %v9113_v46 = vld [vmem:[#allocation184_spill] sm:$0xff] }
 0x375   : > { %v4220_v37 = vpop.eup %4219  ;;  %2895 = vadd.xlane.f32.xlu1 %v2894_v0  ;;  %v2900_v11 = vadd.f32 %v4212_v32, %v2899_v4  ;;  %4239 = vpow2.f32 %v2477_v61  ;;  %9111 = vst [vmem:[#allocation136_spill] sm:$0xff] %v7134_v19  ;;  %v2489_v32 = vmul.f32 1.442695, %v2145_v25  ;;  %v9112_v4 = vld [vmem:[#allocation181_spill] sm:$0xff]  ;;  %v2491_v47 = vmul.f32 1.442695, %v2146_v39 }
 0x376   : > { %v4222_v13 = vpop.eup %4221  ;;  %4241 = vpow2.f32 %v2479_v38  ;;  %v2150_v56 = vsub.f32 %v9112_v4, %v7116_v3  ;;  %v2151_v38 = vsub.f32 %v9113_v46, %v7116_v3  ;;  %v2493_v41 = vmul.f32 1.442695, %v2147_v5 }
 0x377   : > { %v4224_v33 = vpop.eup %4223  ;;  %v2901_v60 = vadd.f32 %v4214_v42, %v2900_v11  ;;  %v2906_v0 = vadd.f32 %v4222_v13, %v4220_v37  ;;  %4243 = vpow2.f32 %v2481_v14  ;;  %v9114_v42 = vld [vmem:[#allocation172_spill] sm:$0xff]  ;;  %v9115_v14 = vld [vmem:[#allocation185_spill] sm:$0xff]  ;;  %v2497_v46 = vmul.f32 1.442695, %v2149_v50  ;;  %v9119_v50 = vld [vmem:[#allocation186_spill] sm:$0xff] }
 0x378   : > { %v4226_v61 = vpop.eup %4225  ;;  %4245 = vpow2.f32 %v2483_v49  ;;  %v2153_v37 = vsub.f32 %v9114_v42, %v7134_v19  ;;  %v2152_v25 = vsub.f32 %v9115_v14, %v7116_v3  ;;  %v2495_v49 = vmul.f32 1.442695, %v2148_v52 }
 0x379   : > { %v4228_v9 = vpop.eup %4227  ;;  %v2902_v57 = vadd.f32 %v4216_v62, %v2901_v60  ;;  %v2907_v24 = vadd.f32 %v4224_v33, %v2906_v0  ;;  %4247 = vpow2.f32 %v2485_v15  ;;  %v9116_v62 = vld [vmem:[#allocation18_spill] sm:$0xff]  ;;  %v2499_v5 = vmul.f32 1.442695, %v2150_v56  ;;  %v9117_v0 = vld [vmem:[#allocation17_spill] sm:$0xff] }
 0x37a   : > { %v4230_v1 = vpop.eup %4229  ;;  %4249 = vpow2.f32 %v2487_v48  ;;  %v2154_v33 = vsub.f32 %v9116_v62, %v7134_v19  ;;  %v2501_v48 = vmul.f32 1.442695, %v2151_v38  ;;  %v2155_v42 = vsub.f32 %v9117_v0, %v7134_v19 }
 0x37b   : > { %v4232_v11 = vpop.eup %4231  ;;  %v2903_v13 = vadd.f32 %v4218_v20, %v2902_v57  ;;  %v2908_v4 = vadd.f32 %v4226_v61, %v2907_v24  ;;  %4251 = vpow2.f32 %v2489_v32  ;;  %v2503_v20 = vmul.f32 1.442695, %v2152_v25  ;;  %v9118_v24 = vld [vmem:[#allocation19_spill] sm:$0xff]  ;;  %v9122_v25 = vld [vmem:[#allocation190_spill] sm:$0xff] }
 0x37c   : > { %v4234_v39 = vpop.eup %4233  ;;  %4253 = vpow2.f32 %v2491_v47  ;;  %v2156_v57 = vsub.f32 %v9118_v24, %v7134_v19  ;;  %v2157_v32 = vsub.f32 %v9119_v50, %v7134_v19  ;;  %v7152_v47 = vpop.xlane.xlu1 %1893  ;;  %v2507_v0 = vmul.f32 1.442695, %v2154_v33 }
 0x37d   : > { %v4236_v15 = vpop.eup %4235  ;;  %2904 = vadd.xlane.f32.xlu0 %v2903_v13  ;;  %v2909_v60 = vadd.f32 %v4228_v9, %v2908_v4  ;;  %4255 = vpow2.f32 %v2493_v41  ;;  %9120 = vst [vmem:[#allocation265_spill] sm:$0xff] %v7152_v47  ;;  %v2505_v9 = vmul.f32 1.442695, %v2153_v37  ;;  %v9121_v4 = vld [vmem:[#allocation187_spill] sm:$0xff]  ;;  %v2509_v50 = vmul.f32 1.442695, %v2155_v42 }
 0x37e   : > { %v4238_v52 = vpop.eup %4237  ;;  %4257 = vpow2.f32 %v2495_v49  ;;  %v2158_v38 = vsub.f32 %v9121_v4, %v7134_v19  ;;  %v2159_v49 = vsub.f32 %v9122_v25, %v7134_v19  ;;  %v2513_v25 = vmul.f32 1.442695, %v2157_v32  ;;  %v9128_v32 = vld [vmem:[#allocation188_spill] sm:$0xff] }
 0x37f   : > { %v4240_v61 = vpop.eup %4239  ;;  %v2910_v56 = vadd.f32 %v4230_v1, %v2909_v60  ;;  %v2915_v13 = vadd.f32 %v4238_v52, %v4236_v15  ;;  %4259 = vpow2.f32 %v2497_v46  ;;  %v9123_v1 = vld [vmem:[#allocation20_spill] sm:$0xff]  ;;  %v9124_v46 = vld [vmem:[#allocation191_spill] sm:$0xff] }
 0x380   : > { %v4242_v41 = vpop.eup %4241  ;;  %4261 = vpow2.f32 %v2499_v5  ;;  %v2161_v15 = vsub.f32 %v9123_v1, %v7152_v47  ;;  %v2160_v37 = vsub.f32 %v9124_v46, %v7134_v19  ;;  %v2511_v5 = vmul.f32 1.442695, %v2156_v57 }
 0x381   : > { %v4244_v24 = vpop.eup %4243  ;;  %v2911_v62 = vadd.f32 %v4232_v11, %v2910_v56  ;;  %v2916_v14 = vadd.f32 %v4240_v61, %v2915_v13  ;;  %4263 = vpow2.f32 %v2501_v48  ;;  %v9125_v11 = vld [vmem:[#allocation22_spill] sm:$0xff]  ;;  %v2515_v42 = vmul.f32 1.442695, %v2158_v38  ;;  %v9126_v13 = vld [vmem:[#allocation21_spill] sm:$0xff] }
 0x382   : > { %v4246_v3 = vpop.eup %4245  ;;  %4265 = vpow2.f32 %v2503_v20  ;;  %v2162_v61 = vsub.f32 %v9125_v11, %v7152_v47  ;;  %v2517_v20 = vmul.f32 1.442695, %v2159_v49  ;;  %v2163_v1 = vsub.f32 %v9126_v13, %v7152_v47 }
 0x383   : > { %v4248_v60 = vpop.eup %4247  ;;  %v2912_v52 = vadd.f32 %v4234_v39, %v2911_v62  ;;  %v2917_v4 = vadd.f32 %v4242_v41, %v2916_v14  ;;  %4267 = vpow2.f32 %v2505_v9  ;;  %v2519_v39 = vmul.f32 1.442695, %v2160_v37  ;;  %v9127_v14 = vld [vmem:[#allocation23_spill] sm:$0xff]  ;;  %v9131_v37 = vld [vmem:[#allocation192_spill] sm:$0xff] }
 0x384   : > { %v4250_v33 = vpop.eup %4249  ;;  %4269 = vpow2.f32 %v2507_v0  ;;  %v2164_v62 = vsub.f32 %v9127_v14, %v7152_v47  ;;  %v2165_v9 = vsub.f32 %v9128_v32, %v7152_v47  ;;  %v7170_v0 = vpop.xlane.xlu0 %1902  ;;  %v2523_v13 = vmul.f32 1.442695, %v2162_v61 }
 0x385   : > { %v4252_v48 = vpop.eup %4251  ;;  %2913 = vadd.xlane.f32.xlu1 %v2912_v52  ;;  %v2918_v56 = vadd.f32 %v4244_v24, %v2917_v4  ;;  %4271 = vpow2.f32 %v2509_v50  ;;  %9129 = vst [vmem:[#allocation266_spill] sm:$0xff] %v7170_v0  ;;  %v2521_v24 = vmul.f32 1.442695, %v2161_v15  ;;  %v9130_v4 = vld [vmem:[#allocation189_spill] sm:$0xff]  ;;  %v2525_v32 = vmul.f32 1.442695, %v2163_v1 }
 0x386   : > { %v4254_v57 = vpop.eup %4253  ;;  %4273 = vpow2.f32 %v2511_v5  ;;  %v2166_v49 = vsub.f32 %v9130_v4, %v7152_v47  ;;  %v2167_v5 = vsub.f32 %v9131_v37, %v7152_v47  ;;  %v2529_v37 = vmul.f32 1.442695, %v2165_v9  ;;  %v9137_v9 = vld [vmem:[#allocation194_spill] sm:$0xff] }
 0x387   : > { %v4256_v41 = vpop.eup %4255  ;;  %v2919_v38 = vadd.f32 %v4246_v3, %v2918_v56  ;;  %v2924_v52 = vadd.f32 %v4254_v57, %v4252_v48  ;;  %4275 = vpow2.f32 %v2513_v25  ;;  %v9132_v3 = vld [vmem:[#allocation24_spill] sm:$0xff]  ;;  %v9133_v25 = vld [vmem:[#allocation193_spill] sm:$0xff] }
 0x388   : > { %v4258_v50 = vpop.eup %4257  ;;  %4277 = vpow2.f32 %v2515_v42  ;;  %v2169_v48 = vsub.f32 %v9132_v3, %v7170_v0  ;;  %v2168_v15 = vsub.f32 %v9133_v25, %v7152_v47  ;;  %v2527_v42 = vmul.f32 1.442695, %v2164_v62 }
 0x389   : > { %v4260_v14 = vpop.eup %4259  ;;  %v2920_v11 = vadd.f32 %v4248_v60, %v2919_v38  ;;  %v2925_v46 = vadd.f32 %v4256_v41, %v2924_v52  ;;  %4279 = vpow2.f32 %v2517_v20  ;;  %v9134_v60 = vld [vmem:[#allocation26_spill] sm:$0xff]  ;;  %v2531_v1 = vmul.f32 1.442695, %v2166_v49  ;;  %v9135_v52 = vld [vmem:[#allocation25_spill] sm:$0xff] }
 0x38a   : > { %v4262_v19 = vpop.eup %4261  ;;  %4281 = vpow2.f32 %v2519_v39  ;;  %v2170_v41 = vsub.f32 %v9134_v60, %v7170_v0  ;;  %v2533_v39 = vmul.f32 1.442695, %v2167_v5  ;;  %v2171_v3 = vsub.f32 %v9135_v52, %v7170_v0 }
 0x38b   : > { %v4264_v56 = vpop.eup %4263  ;;  %v2921_v57 = vadd.f32 %v4250_v33, %v2920_v11  ;;  %v2926_v4 = vadd.f32 %v4258_v50, %v2925_v46  ;;  %4283 = vpow2.f32 %v2521_v24  ;;  %v2535_v33 = vmul.f32 1.442695, %v2168_v15  ;;  %v9136_v46 = vld [vmem:[#allocation27_spill] sm:$0xff]  ;;  %v9140_v15 = vld [vmem:[#allocation198_spill] sm:$0xff] }
 0x38c   : > { %v4266_v61 = vpop.eup %4265  ;;  %4285 = vpow2.f32 %v2523_v13  ;;  %v2172_v11 = vsub.f32 %v9136_v46, %v7170_v0  ;;  %v2173_v24 = vsub.f32 %v9137_v9, %v7170_v0  ;;  %v7188_v13 = vpop.xlane.xlu1 %1911  ;;  %v2539_v52 = vmul.f32 1.442695, %v2170_v41 }
 0x38d   : > { %v4268_v20 = vpop.eup %4267  ;;  %2922 = vadd.xlane.f32.xlu0 %v2921_v57  ;;  %v2927_v38 = vadd.f32 %v4260_v14, %v2926_v4  ;;  %4287 = vpow2.f32 %v2525_v32  ;;  %9138 = vst [vmem:[#allocation267_spill] sm:$0xff] %v7188_v13  ;;  %v2537_v14 = vmul.f32 1.442695, %v2169_v48  ;;  %v9139_v4 = vld [vmem:[#allocation195_spill] sm:$0xff]  ;;  %v2541_v9 = vmul.f32 1.442695, %v2171_v3 }
 0x38e   : > { %v4270_v62 = vpop.eup %4269  ;;  %4289 = vpow2.f32 %v2527_v42  ;;  %v2174_v5 = vsub.f32 %v9139_v4, %v7170_v0  ;;  %v2175_v42 = vsub.f32 %v9140_v15, %v7170_v0  ;;  %v2545_v15 = vmul.f32 1.442695, %v2173_v24  ;;  %v9146_v24 = vld [vmem:[#allocation196_spill] sm:$0xff] }
 0x38f   : > { %v4272_v50 = vpop.eup %4271  ;;  %v2928_v49 = vadd.f32 %v4262_v19, %v2927_v38  ;;  %v2933_v57 = vadd.f32 %v4270_v62, %v4268_v20  ;;  %4291 = vpow2.f32 %v2529_v37  ;;  %v9141_v19 = vld [vmem:[#allocation28_spill] sm:$0xff]  ;;  %v9142_v37 = vld [vmem:[#allocation199_spill] sm:$0xff] }
 0x390   : > { %v4274_v32 = vpop.eup %4273  ;;  %4293 = vpow2.f32 %v2531_v1  ;;  %v2177_v20 = vsub.f32 %v9141_v19, %v7188_v13  ;;  %v2176_v48 = vsub.f32 %v9142_v37, %v7170_v0  ;;  %v2543_v1 = vmul.f32 1.442695, %v2172_v11 }
 0x391   : > { %v4276_v46 = vpop.eup %4275  ;;  %v2929_v60 = vadd.f32 %v4264_v56, %v2928_v49  ;;  %v2934_v25 = vadd.f32 %v4272_v50, %v2933_v57  ;;  %4295 = vpow2.f32 %v2533_v39  ;;  %v9143_v56 = vld [vmem:[#allocation30_spill] sm:$0xff]  ;;  %v2547_v3 = vmul.f32 1.442695, %v2174_v5  ;;  %v9144_v57 = vld [vmem:[#allocation29_spill] sm:$0xff] }
 0x392   : > { %v4278_v47 = vpop.eup %4277  ;;  %4297 = vpow2.f32 %v2535_v33  ;;  %v2178_v50 = vsub.f32 %v9143_v56, %v7188_v13  ;;  %v2549_v33 = vmul.f32 1.442695, %v2175_v42  ;;  %v2179_v19 = vsub.f32 %v9144_v57, %v7188_v13 }
 0x393   : > { %v4280_v38 = vpop.eup %4279  ;;  %v2930_v62 = vadd.f32 %v4266_v61, %v2929_v60  ;;  %v2935_v4 = vadd.f32 %v4274_v32, %v2934_v25  ;;  %4299 = vpow2.f32 %v2537_v14  ;;  %v2551_v61 = vmul.f32 1.442695, %v2176_v48  ;;  %v9145_v25 = vld [vmem:[#allocation31_spill] sm:$0xff]  ;;  %v9149_v48 = vld [vmem:[#allocation200_spill] sm:$0xff] }
 0x394   : > { %v4282_v41 = vpop.eup %4281  ;;  %4301 = vpow2.f32 %v2539_v52  ;;  %v2180_v60 = vsub.f32 %v9145_v25, %v7188_v13  ;;  %v2181_v14 = vsub.f32 %v9146_v24, %v7188_v13  ;;  %v7206_v52 = vpop.xlane.xlu0 %1920  ;;  %v2555_v57 = vmul.f32 1.442695, %v2178_v50 }
 0x395   : > { %v4284_v39 = vpop.eup %4283  ;;  %2931 = vadd.xlane.f32.xlu1 %v2930_v62  ;;  %v2936_v49 = vadd.f32 %v4276_v46, %v2935_v4  ;;  %4303 = vpow2.f32 %v2541_v9  ;;  %9147 = vst [vmem:[#allocation268_spill] sm:$0xff] %v7206_v52  ;;  %v2553_v46 = vmul.f32 1.442695, %v2177_v20  ;;  %v9148_v4 = vld [vmem:[#allocation197_spill] sm:$0xff]  ;;  %v2557_v24 = vmul.f32 1.442695, %v2179_v19 }
 0x396   : > { %v4286_v11 = vpop.eup %4285  ;;  %4305 = vpow2.f32 %v2543_v1  ;;  %v2182_v42 = vsub.f32 %v9148_v4, %v7188_v13  ;;  %v2183_v1 = vsub.f32 %v9149_v48, %v7188_v13  ;;  %v2561_v48 = vmul.f32 1.442695, %v2181_v14  ;;  %v9155_v14 = vld [vmem:[#allocation202_spill] sm:$0xff] }
 0x397   : > { %v4288_v32 = vpop.eup %4287  ;;  %v2937_v5 = vadd.f32 %v4278_v47, %v2936_v49  ;;  %v2942_v62 = vadd.f32 %v4286_v11, %v4284_v39  ;;  %4307 = vpow2.f32 %v2545_v15  ;;  %v9150_v47 = vld [vmem:[#allocation32_spill] sm:$0xff]  ;;  %v9151_v15 = vld [vmem:[#allocation201_spill] sm:$0xff] }
 0x398   : > { %v4290_v9 = vpop.eup %4289  ;;  %4309 = vpow2.f32 %v2547_v3  ;;  %v2185_v39 = vsub.f32 %v9150_v47, %v7206_v52  ;;  %v2184_v20 = vsub.f32 %v9151_v15, %v7188_v13  ;;  %v2559_v3 = vmul.f32 1.442695, %v2180_v60 }
 0x399   : > { %v4292_v25 = vpop.eup %4291  ;;  %v2938_v56 = vadd.f32 %v4280_v38, %v2937_v5  ;;  %v2943_v37 = vadd.f32 %v4288_v32, %v2942_v62  ;;  %4311 = vpow2.f32 %v2549_v33  ;;  %v9152_v38 = vld [vmem:[#allocation34_spill] sm:$0xff]  ;;  %v2563_v19 = vmul.f32 1.442695, %v2182_v42  ;;  %v9153_v62 = vld [vmem:[#allocation33_spill] sm:$0xff] }
 0x39a   : > { %v4294_v0 = vpop.eup %4293  ;;  %4313 = vpow2.f32 %v2551_v61  ;;  %v2186_v32 = vsub.f32 %v9152_v38, %v7206_v52  ;;  %v2565_v61 = vmul.f32 1.442695, %v2183_v1  ;;  %v2187_v47 = vsub.f32 %v9153_v62, %v7206_v52 }
 0x39b   : > { %v4296_v49 = vpop.eup %4295  ;;  %v2939_v11 = vadd.f32 %v4282_v41, %v2938_v56  ;;  %v2944_v4 = vadd.f32 %v4290_v9, %v2943_v37  ;;  %4315 = vpow2.f32 %v2553_v46  ;;  %v2567_v41 = vmul.f32 1.442695, %v2184_v20  ;;  %v9154_v37 = vld [vmem:[#allocation35_spill] sm:$0xff]  ;;  %v9158_v20 = vld [vmem:[#allocation206_spill] sm:$0xff] }
 0x39c   : > { %v4298_v50 = vpop.eup %4297  ;;  %4317 = vpow2.f32 %v2555_v57  ;;  %v2188_v56 = vsub.f32 %v9154_v37, %v7206_v52  ;;  %v2189_v46 = vsub.f32 %v9155_v14, %v7206_v52  ;;  %v7224_v57 = vpop.xlane.xlu1 %1929  ;;  %v2571_v62 = vmul.f32 1.442695, %v2186_v32 }
 0x39d   : > { %v4300_v33 = vpop.eup %4299  ;;  %2940 = vadd.xlane.f32.xlu0 %v2939_v11  ;;  %v2945_v5 = vadd.f32 %v4292_v25, %v2944_v4  ;;  %4319 = vpow2.f32 %v2557_v24  ;;  %9156 = vst [vmem:[#allocation269_spill] sm:$0xff] %v7224_v57  ;;  %v2569_v25 = vmul.f32 1.442695, %v2185_v39  ;;  %v9157_v4 = vld [vmem:[#allocation203_spill] sm:$0xff]  ;;  %v2573_v14 = vmul.f32 1.442695, %v2187_v47 }
 0x39e   : > { %v4302_v60 = vpop.eup %4301  ;;  %4321 = vpow2.f32 %v2559_v3  ;;  %v2190_v1 = vsub.f32 %v9157_v4, %v7206_v52  ;;  %v2191_v3 = vsub.f32 %v9158_v20, %v7206_v52  ;;  %v2577_v20 = vmul.f32 1.442695, %v2189_v46  ;;  %v9164_v46 = vld [vmem:[#allocation204_spill] sm:$0xff] }
 0x39f   : > { %v4304_v9 = vpop.eup %4303  ;;  %v2946_v42 = vadd.f32 %v4294_v0, %v2945_v5  ;;  %v2951_v11 = vadd.f32 %v4302_v60, %v4300_v33  ;;  %4323 = vpow2.f32 %v2561_v48  ;;  %v9159_v0 = vld [vmem:[#allocation36_spill] sm:$0xff]  ;;  %v9160_v48 = vld [vmem:[#allocation207_spill] sm:$0xff] }
 0x3a0   : > { %v4306_v24 = vpop.eup %4305  ;;  %4325 = vpow2.f32 %v2563_v19  ;;  %v2193_v33 = vsub.f32 %v9159_v0, %v7224_v57  ;;  %v2192_v39 = vsub.f32 %v9160_v48, %v7206_v52  ;;  %v2575_v19 = vmul.f32 1.442695, %v2188_v56 }
 0x3a1   : > { %v4308_v37 = vpop.eup %4307  ;;  %v2947_v38 = vadd.f32 %v4296_v49, %v2946_v42  ;;  %v2952_v15 = vadd.f32 %v4304_v9, %v2951_v11  ;;  %4327 = vpow2.f32 %v2565_v61  ;;  %v9161_v49 = vld [vmem:[#allocation38_spill] sm:$0xff]  ;;  %v2579_v47 = vmul.f32 1.442695, %v2190_v1  ;;  %v9162_v11 = vld [vmem:[#allocation37_spill] sm:$0xff] }
 0x3a2   : > { %v4310_v13 = vpop.eup %4309  ;;  %4329 = vpow2.f32 %v2567_v41  ;;  %v2194_v9 = vsub.f32 %v9161_v49, %v7224_v57  ;;  %v2581_v41 = vmul.f32 1.442695, %v2191_v3  ;;  %v2195_v0 = vsub.f32 %v9162_v11, %v7224_v57 }
 0x3a3   : > { %v4312_v5 = vpop.eup %4311  ;;  %v2948_v60 = vadd.f32 %v4298_v50, %v2947_v38  ;;  %v2953_v4 = vadd.f32 %v4306_v24, %v2952_v15  ;;  %4331 = vpow2.f32 %v2569_v25  ;;  %v2583_v50 = vmul.f32 1.442695, %v2192_v39  ;;  %v9163_v15 = vld [vmem:[#allocation39_spill] sm:$0xff]  ;;  %v9167_v39 = vld [vmem:[#allocation208_spill] sm:$0xff] }
 0x3a4   : > { %v4314_v32 = vpop.eup %4313  ;;  %4333 = vpow2.f32 %v2571_v62  ;;  %v2196_v38 = vsub.f32 %v9163_v15, %v7224_v57  ;;  %v2197_v25 = vsub.f32 %v9164_v46, %v7224_v57  ;;  %v7242_v62 = vpop.xlane.xlu0 %1938  ;;  %v2587_v11 = vmul.f32 1.442695, %v2194_v9 }
 0x3a5   : > { %v4316_v61 = vpop.eup %4315  ;;  %2949 = vadd.xlane.f32.xlu1 %v2948_v60  ;;  %v2954_v42 = vadd.f32 %v4308_v37, %v2953_v4  ;;  %4335 = vpow2.f32 %v2573_v14  ;;  %9165 = vst [vmem:[#allocation270_spill] sm:$0xff] %v7242_v62  ;;  %v2585_v37 = vmul.f32 1.442695, %v2193_v33  ;;  %v9166_v4 = vld [vmem:[#allocation205_spill] sm:$0xff]  ;;  %v2589_v46 = vmul.f32 1.442695, %v2195_v0 }
 0x3a6   : > { %v4318_v56 = vpop.eup %4317  ;;  %4337 = vpow2.f32 %v2575_v19  ;;  %v2198_v3 = vsub.f32 %v9166_v4, %v7224_v57  ;;  %v2199_v19 = vsub.f32 %v9167_v39, %v7224_v57  ;;  %v2593_v39 = vmul.f32 1.442695, %v2197_v25  ;;  %v9173_v25 = vld [vmem:[#allocation210_spill] sm:$0xff] }
 0x3a7   : > { %v4320_v24 = vpop.eup %4319  ;;  %v2955_v1 = vadd.f32 %v4310_v13, %v2954_v42  ;;  %v2960_v60 = vadd.f32 %v4318_v56, %v4316_v61  ;;  %4339 = vpow2.f32 %v2577_v20  ;;  %v9168_v13 = vld [vmem:[#allocation40_spill] sm:$0xff]  ;;  %v9169_v20 = vld [vmem:[#allocation209_spill] sm:$0xff] }
 0x3a8   : > { %v4322_v14 = vpop.eup %4321  ;;  %4341 = vpow2.f32 %v2579_v47  ;;  %v2201_v61 = vsub.f32 %v9168_v13, %v7242_v62  ;;  %v2200_v33 = vsub.f32 %v9169_v20, %v7224_v57  ;;  %v2591_v47 = vmul.f32 1.442695, %v2196_v38 }
 0x3a9   : > { %v4324_v15 = vpop.eup %4323  ;;  %v2956_v49 = vadd.f32 %v4312_v5, %v2955_v1  ;;  %v2961_v48 = vadd.f32 %v4320_v24, %v2960_v60  ;;  %4343 = vpow2.f32 %v2581_v41  ;;  %v9170_v5 = vld [vmem:[#allocation42_spill] sm:$0xff]  ;;  %v2595_v0 = vmul.f32 1.442695, %v2198_v3  ;;  %v9171_v60 = vld [vmem:[#allocation41_spill] sm:$0xff] }
 0x3aa   : > { %v4326_v52 = vpop.eup %4325  ;;  %4345 = vpow2.f32 %v2583_v50  ;;  %v2202_v24 = vsub.f32 %v9170_v5, %v7242_v62  ;;  %v2597_v50 = vmul.f32 1.442695, %v2199_v19  ;;  %v2203_v13 = vsub.f32 %v9171_v60, %v7242_v62 }
 0x3ab   : > { %v4328_v42 = vpop.eup %4327  ;;  %v2957_v56 = vadd.f32 %v4314_v32, %v2956_v49  ;;  %v2962_v4 = vadd.f32 %v4322_v14, %v2961_v48  ;;  %4347 = vpow2.f32 %v2585_v37  ;;  %v2599_v32 = vmul.f32 1.442695, %v2200_v33  ;;  %v9172_v48 = vld [vmem:[#allocation43_spill] sm:$0xff]  ;;  %v9176_v33 = vld [vmem:[#allocation214_spill] sm:$0xff] }
 0x3ac   : > { %v4330_v9 = vpop.eup %4329  ;;  %4349 = vpow2.f32 %v2587_v11  ;;  %v2204_v49 = vsub.f32 %v9172_v48, %v7242_v62  ;;  %v2205_v37 = vsub.f32 %v9173_v25, %v7242_v62  ;;  %v7260_v11 = vpop.xlane.xlu1 %1947  ;;  %v2603_v60 = vmul.f32 1.442695, %v2202_v24 }
 0x3ad   : > { %v4332_v41 = vpop.eup %4331  ;;  %2958 = vadd.xlane.f32.xlu0 %v2957_v56  ;;  %v2963_v1 = vadd.f32 %v4324_v15, %v2962_v4  ;;  %4351 = vpow2.f32 %v2589_v46  ;;  %9174 = vst [vmem:[#allocation271_spill] sm:$0xff] %v7260_v11  ;;  %v2601_v15 = vmul.f32 1.442695, %v2201_v61  ;;  %v9175_v4 = vld [vmem:[#allocation211_spill] sm:$0xff]  ;;  %v2605_v25 = vmul.f32 1.442695, %v2203_v13 }
 0x3ae   : > { %v4334_v38 = vpop.eup %4333  ;;  %4353 = vpow2.f32 %v2591_v47  ;;  %v2206_v19 = vsub.f32 %v9175_v4, %v7242_v62  ;;  %v2207_v47 = vsub.f32 %v9176_v33, %v7242_v62  ;;  %v2609_v33 = vmul.f32 1.442695, %v2205_v37  ;;  %v9182_v37 = vld [vmem:[#allocation212_spill] sm:$0xff] }
 0x3af   : > { %v4336_v14 = vpop.eup %4335  ;;  %v2964_v3 = vadd.f32 %v4326_v52, %v2963_v1  ;;  %v2969_v56 = vadd.f32 %v4334_v38, %v4332_v41  ;;  %4355 = vpow2.f32 %v2593_v39  ;;  %v9177_v52 = vld [vmem:[#allocation44_spill] sm:$0xff]  ;;  %v9178_v39 = vld [vmem:[#allocation215_spill] sm:$0xff] }
 0x3b0   : > { %v4338_v46 = vpop.eup %4337  ;;  %4357 = vpow2.f32 %v2595_v0  ;;  %v2209_v41 = vsub.f32 %v9177_v52, %v7260_v11  ;;  %v2208_v61 = vsub.f32 %v9178_v39, %v7242_v62  ;;  %v2607_v0 = vmul.f32 1.442695, %v2204_v49 }
 0x3b1   : > { %v4340_v48 = vpop.eup %4339  ;;  %v2965_v5 = vadd.f32 %v4328_v42, %v2964_v3  ;;  %v2970_v20 = vadd.f32 %v4336_v14, %v2969_v56  ;;  %4359 = vpow2.f32 %v2597_v50  ;;  %v9179_v42 = vld [vmem:[#allocation46_spill] sm:$0xff]  ;;  %v2611_v13 = vmul.f32 1.442695, %v2206_v19  ;;  %v9180_v56 = vld [vmem:[#allocation45_spill] sm:$0xff] }
 0x3b2   : > { %v4342_v57 = vpop.eup %4341  ;;  %4361 = vpow2.f32 %v2599_v32  ;;  %v2210_v14 = vsub.f32 %v9179_v42, %v7260_v11  ;;  %v2613_v32 = vmul.f32 1.442695, %v2207_v47  ;;  %v2211_v52 = vsub.f32 %v9180_v56, %v7260_v11 }
 0x3b3   : > { %v4344_v1 = vpop.eup %4343  ;;  %v2966_v38 = vadd.f32 %v4330_v9, %v2965_v5  ;;  %v2971_v4 = vadd.f32 %v4338_v46, %v2970_v20  ;;  %4363 = vpow2.f32 %v2601_v15  ;;  %v2615_v9 = vmul.f32 1.442695, %v2208_v61  ;;  %v9181_v20 = vld [vmem:[#allocation47_spill] sm:$0xff]  ;;  %v9185_v61 = vld [vmem:[#allocation216_spill] sm:$0xff] }
 0x3b4   : > { %v4346_v24 = vpop.eup %4345  ;;  %4365 = vpow2.f32 %v2603_v60  ;;  %v2212_v5 = vsub.f32 %v9181_v20, %v7260_v11  ;;  %v2213_v15 = vsub.f32 %v9182_v37, %v7260_v11  ;;  %v7278_v60 = vpop.xlane.xlu0 %1956  ;;  %v2619_v56 = vmul.f32 1.442695, %v2210_v14 }
 0x3b5   : > { %v4348_v50 = vpop.eup %4347  ;;  %2967 = vadd.xlane.f32.xlu1 %v2966_v38  ;;  %v2972_v3 = vadd.f32 %v4340_v48, %v2971_v4  ;;  %4367 = vpow2.f32 %v2605_v25  ;;  %9183 = vst [vmem:[#allocation272_spill] sm:$0xff] %v7278_v60  ;;  %v2617_v48 = vmul.f32 1.442695, %v2209_v41  ;;  %v9184_v4 = vld [vmem:[#allocation213_spill] sm:$0xff]  ;;  %v2621_v37 = vmul.f32 1.442695, %v2211_v52 }
 0x3b6   : > { %v4350_v49 = vpop.eup %4349  ;;  %4369 = vpow2.f32 %v2607_v0  ;;  %v2214_v47 = vsub.f32 %v9184_v4, %v7260_v11  ;;  %v2215_v0 = vsub.f32 %v9185_v61, %v7260_v11  ;;  %v2625_v61 = vmul.f32 1.442695, %v2213_v15  ;;  %v9191_v15 = vld [vmem:[#allocation218_spill] sm:$0xff] }
 0x3b7   : > { %v4352_v46 = vpop.eup %4351  ;;  %v2973_v19 = vadd.f32 %v4342_v57, %v2972_v3  ;;  %v2978_v38 = vadd.f32 %v4350_v49, %v4348_v50  ;;  %4371 = vpow2.f32 %v2609_v33  ;;  %v9186_v57 = vld [vmem:[#allocation48_spill] sm:$0xff]  ;;  %v9187_v33 = vld [vmem:[#allocation217_spill] sm:$0xff] }
 0x3b8   : > { %v4354_v25 = vpop.eup %4353  ;;  %4373 = vpow2.f32 %v2611_v13  ;;  %v2217_v50 = vsub.f32 %v9186_v57, %v7278_v60  ;;  %v2216_v41 = vsub.f32 %v9187_v33, %v7260_v11  ;;  %v2623_v13 = vmul.f32 1.442695, %v2212_v5 }
 0x3b9   : > { %v4356_v20 = vpop.eup %4355  ;;  %v2974_v42 = vadd.f32 %v4344_v1, %v2973_v19  ;;  %v2979_v39 = vadd.f32 %v4352_v46, %v2978_v38  ;;  %4375 = vpow2.f32 %v2613_v32  ;;  %v9188_v1 = vld [vmem:[#allocation50_spill] sm:$0xff]  ;;  %v2627_v52 = vmul.f32 1.442695, %v2214_v47  ;;  %v9189_v38 = vld [vmem:[#allocation49_spill] sm:$0xff] }
 0x3ba   : > { %v4358_v62 = vpop.eup %4357  ;;  %4377 = vpow2.f32 %v2615_v9  ;;  %v2218_v46 = vsub.f32 %v9188_v1, %v7278_v60  ;;  %v2629_v9 = vmul.f32 1.442695, %v2215_v0  ;;  %v2219_v57 = vsub.f32 %v9189_v38, %v7278_v60 }
 0x3bb   : > { %v4360_v3 = vpop.eup %4359  ;;  %v2975_v49 = vadd.f32 %v4346_v24, %v2974_v42  ;;  %v2980_v4 = vadd.f32 %v4354_v25, %v2979_v39  ;;  %4379 = vpow2.f32 %v2617_v48  ;;  %v2631_v24 = vmul.f32 1.442695, %v2216_v41  ;;  %v9190_v39 = vld [vmem:[#allocation51_spill] sm:$0xff]  ;;  %v9194_v41 = vld [vmem:[#allocation222_spill] sm:$0xff] }
 0x3bc   : > { %v4362_v14 = vpop.eup %4361  ;;  %4381 = vpow2.f32 %v2619_v56  ;;  %v2220_v42 = vsub.f32 %v9190_v39, %v7278_v60  ;;  %v2221_v48 = vsub.f32 %v9191_v15, %v7278_v60  ;;  %v7296_v56 = vpop.xlane.xlu1 %1965  ;;  %v2635_v38 = vmul.f32 1.442695, %v2218_v46 }
 0x3bd   : > { %v4364_v32 = vpop.eup %4363  ;;  %2976 = vadd.xlane.f32.xlu0 %v2975_v49  ;;  %v2981_v19 = vadd.f32 %v4356_v20, %v2980_v4  ;;  %4383 = vpow2.f32 %v2621_v37  ;;  %9192 = vst [vmem:[#allocation273_spill] sm:$0xff] %v7296_v56  ;;  %v2633_v20 = vmul.f32 1.442695, %v2217_v50  ;;  %v9193_v4 = vld [vmem:[#allocation219_spill] sm:$0xff]  ;;  %v2637_v15 = vmul.f32 1.442695, %v2219_v57 }
 0x3be   : > { %v4366_v5 = vpop.eup %4365  ;;  %4385 = vpow2.f32 %v2623_v13  ;;  %v2222_v0 = vsub.f32 %v9193_v4, %v7278_v60  ;;  %v2223_v13 = vsub.f32 %v9194_v41, %v7278_v60  ;;  %v2641_v41 = vmul.f32 1.442695, %v2221_v48  ;;  %v9200_v48 = vld [vmem:[#allocation220_spill] sm:$0xff] }
 0x3bf   : > { %v4368_v25 = vpop.eup %4367  ;;  %v2982_v47 = vadd.f32 %v4358_v62, %v2981_v19  ;;  %v2987_v49 = vadd.f32 %v4366_v5, %v4364_v32  ;;  %4387 = vpow2.f32 %v2625_v61  ;;  %v9195_v62 = vld [vmem:[#allocation52_spill] sm:$0xff]  ;;  %v9196_v61 = vld [vmem:[#allocation223_spill] sm:$0xff] }
 0x3c0   : > { %v4370_v37 = vpop.eup %4369  ;;  %4389 = vpow2.f32 %v2627_v52  ;;  %v2225_v32 = vsub.f32 %v9195_v62, %v7296_v56  ;;  %v2224_v50 = vsub.f32 %v9196_v61, %v7278_v60  ;;  %v2639_v52 = vmul.f32 1.442695, %v2220_v42 }
 0x3c1   : > { %v4372_v39 = vpop.eup %4371  ;;  %v2983_v1 = vadd.f32 %v4360_v3, %v2982_v47  ;;  %v2988_v33 = vadd.f32 %v4368_v25, %v2987_v49  ;;  %4391 = vpow2.f32 %v2629_v9  ;;  %v9197_v3 = vld [vmem:[#allocation54_spill] sm:$0xff]  ;;  %v2643_v57 = vmul.f32 1.442695, %v2222_v0  ;;  %v9198_v49 = vld [vmem:[#allocation53_spill] sm:$0xff] }
 0x3c2   : > { %v4374_v11 = vpop.eup %4373  ;;  %4393 = vpow2.f32 %v2631_v24  ;;  %v2226_v25 = vsub.f32 %v9197_v3, %v7296_v56  ;;  %v2645_v24 = vmul.f32 1.442695, %v2223_v13  ;;  %v2227_v62 = vsub.f32 %v9198_v49, %v7296_v56 }
 0x3c3   : > { %v4376_v19 = vpop.eup %4375  ;;  %v2984_v5 = vadd.f32 %v4362_v14, %v2983_v1  ;;  %v2989_v4 = vadd.f32 %v4370_v37, %v2988_v33  ;;  %4395 = vpow2.f32 %v2633_v20  ;;  %v2647_v14 = vmul.f32 1.442695, %v2224_v50  ;;  %v9199_v33 = vld [vmem:[#allocation55_spill] sm:$0xff]  ;;  %v9203_v50 = vld [vmem:[#allocation224_spill] sm:$0xff] }
 0x3c4   : > { %v4378_v46 = vpop.eup %4377  ;;  %4397 = vpow2.f32 %v2635_v38  ;;  %v2228_v1 = vsub.f32 %v9199_v33, %v7296_v56  ;;  %v2229_v20 = vsub.f32 %v9200_v48, %v7296_v56  ;;  %v7314_v38 = vpop.xlane.xlu0 %1974  ;;  %v2651_v49 = vmul.f32 1.442695, %v2226_v25 }
 0x3c5   : > { %v4380_v9 = vpop.eup %4379  ;;  %2985 = vadd.xlane.f32.xlu1 %v2984_v5  ;;  %v2990_v47 = vadd.f32 %v4372_v39, %v2989_v4  ;;  %4399 = vpow2.f32 %v2637_v15  ;;  %9201 = vst [vmem:[#allocation274_spill] sm:$0xff] %v7314_v38  ;;  %v2649_v39 = vmul.f32 1.442695, %v2225_v32  ;;  %v9202_v4 = vld [vmem:[#allocation221_spill] sm:$0xff]  ;;  %v2653_v48 = vmul.f32 1.442695, %v2227_v62 }
 0x3c6   : > { %v4382_v42 = vpop.eup %4381  ;;  %4401 = vpow2.f32 %v2639_v52  ;;  %v2230_v13 = vsub.f32 %v9202_v4, %v7296_v56  ;;  %v2231_v52 = vsub.f32 %v9203_v50, %v7296_v56  ;;  %v2657_v50 = vmul.f32 1.442695, %v2229_v20  ;;  %v9209_v20 = vld [vmem:[#allocation226_spill] sm:$0xff] }
 0x3c7   : > { %v4384_v37 = vpop.eup %4383  ;;  %v2991_v0 = vadd.f32 %v4374_v11, %v2990_v47  ;;  %v2996_v5 = vadd.f32 %v4382_v42, %v4380_v9  ;;  %4403 = vpow2.f32 %v2641_v41  ;;  %v9204_v11 = vld [vmem:[#allocation56_spill] sm:$0xff]  ;;  %v9205_v41 = vld [vmem:[#allocation225_spill] sm:$0xff] }
 0x3c8   : > { %v4386_v15 = vpop.eup %4385  ;;  %4405 = vpow2.f32 %v2643_v57  ;;  %v2233_v9 = vsub.f32 %v9204_v11, %v7314_v38  ;;  %v2232_v32 = vsub.f32 %v9205_v41, %v7296_v56  ;;  %v2655_v57 = vmul.f32 1.442695, %v2228_v1 }
 0x3c9   : > { %v4388_v33 = vpop.eup %4387  ;;  %v2992_v3 = vadd.f32 %v4376_v19, %v2991_v0  ;;  %v2997_v61 = vadd.f32 %v4384_v37, %v2996_v5  ;;  %4407 = vpow2.f32 %v2645_v24  ;;  %v9206_v19 = vld [vmem:[#allocation58_spill] sm:$0xff]  ;;  %v2659_v62 = vmul.f32 1.442695, %v2230_v13  ;;  %v9207_v5 = vld [vmem:[#allocation57_spill] sm:$0xff] }
 0x3ca   : > { %v4390_v60 = vpop.eup %4389  ;;  %4409 = vpow2.f32 %v2647_v14  ;;  %v2234_v37 = vsub.f32 %v9206_v19, %v7314_v38  ;;  %v2661_v14 = vmul.f32 1.442695, %v2231_v52  ;;  %v2235_v11 = vsub.f32 %v9207_v5, %v7314_v38 }
 0x3cb   : > { %v4392_v47 = vpop.eup %4391  ;;  %v2993_v42 = vadd.f32 %v4378_v46, %v2992_v3  ;;  %v2998_v4 = vadd.f32 %v4386_v15, %v2997_v61  ;;  %4411 = vpow2.f32 %v2649_v39  ;;  %v2663_v46 = vmul.f32 1.442695, %v2232_v32  ;;  %v9208_v61 = vld [vmem:[#allocation59_spill] sm:$0xff]  ;;  %v9212_v32 = vld [vmem:[#allocation230_spill] sm:$0xff] }
 0x3cc   : > { %v4394_v25 = vpop.eup %4393  ;;  %4413 = vpow2.f32 %v2651_v49  ;;  %v2236_v3 = vsub.f32 %v9208_v61, %v7314_v38  ;;  %v2237_v39 = vsub.f32 %v9209_v20, %v7314_v38  ;;  %v7332_v49 = vpop.xlane.xlu1 %1983  ;;  %v2667_v5 = vmul.f32 1.442695, %v2234_v37 }
 0x3cd   : > { %v4396_v24 = vpop.eup %4395  ;;  %2994 = vadd.xlane.f32.xlu0 %v2993_v42  ;;  %v2999_v0 = vadd.f32 %v4388_v33, %v2998_v4  ;;  %4415 = vpow2.f32 %v2653_v48  ;;  %9210 = vst [vmem:[#allocation275_spill] sm:$0xff] %v7332_v49  ;;  %v2665_v33 = vmul.f32 1.442695, %v2233_v9  ;;  %v9211_v4 = vld [vmem:[#allocation227_spill] sm:$0xff]  ;;  %v2669_v20 = vmul.f32 1.442695, %v2235_v11 }
 0x3ce   : > { %v4398_v1 = vpop.eup %4397  ;;  %4417 = vpow2.f32 %v2655_v57  ;;  %v2238_v52 = vsub.f32 %v9211_v4, %v7314_v38  ;;  %v2239_v57 = vsub.f32 %v9212_v32, %v7314_v38  ;;  %v2673_v32 = vmul.f32 1.442695, %v2237_v39  ;;  %v9218_v39 = vld [vmem:[#allocation228_spill] sm:$0xff] }
 0x3cf   : > { %v4400_v15 = vpop.eup %4399  ;;  %v3000_v13 = vadd.f32 %v4390_v60, %v2999_v0  ;;  %v3005_v42 = vadd.f32 %v4398_v1, %v4396_v24  ;;  %4419 = vpow2.f32 %v2657_v50  ;;  %v9213_v60 = vld [vmem:[#allocation60_spill] sm:$0xff]  ;;  %v9214_v50 = vld [vmem:[#allocation231_spill] sm:$0xff] }
 0x3d0   : > { %v4402_v48 = vpop.eup %4401  ;;  %4421 = vpow2.f32 %v2659_v62  ;;  %v2241_v24 = vsub.f32 %v9213_v60, %v7332_v49  ;;  %v2240_v9 = vsub.f32 %v9214_v50, %v7314_v38  ;;  %v2671_v62 = vmul.f32 1.442695, %v2236_v3 }
 0x3d1   : > { %v4404_v61 = vpop.eup %4403  ;;  %v3001_v19 = vadd.f32 %v4392_v47, %v3000_v13  ;;  %v3006_v41 = vadd.f32 %v4400_v15, %v3005_v42  ;;  %4423 = vpow2.f32 %v2661_v14  ;;  %v9215_v47 = vld [vmem:[#allocation62_spill] sm:$0xff]  ;;  %v2675_v11 = vmul.f32 1.442695, %v2238_v52  ;;  %v9216_v42 = vld [vmem:[#allocation61_spill] sm:$0xff] }
 0x3d2   : > { %v4406_v56 = vpop.eup %4405  ;;  %4425 = vpow2.f32 %v2663_v46  ;;  %v2242_v15 = vsub.f32 %v9215_v47, %v7332_v49  ;;  %v2677_v46 = vmul.f32 1.442695, %v2239_v57  ;;  %v2243_v60 = vsub.f32 %v9216_v42, %v7332_v49 }
 0x3d3   : > { %v4408_v0 = vpop.eup %4407  ;;  %v3002_v1 = vadd.f32 %v4394_v25, %v3001_v19  ;;  %v3007_v4 = vadd.f32 %v4402_v48, %v3006_v41  ;;  %4427 = vpow2.f32 %v2665_v33  ;;  %v2679_v25 = vmul.f32 1.442695, %v2240_v9  ;;  %v9217_v41 = vld [vmem:[#allocation63_spill] sm:$0xff]  ;;  %v9220_v9 = vld [vmem:[#allocation232_spill] sm:$0xff] }
 0x3d4   : > { %v4410_v37 = vpop.eup %4409  ;;  %4429 = vpow2.f32 %v2667_v5  ;;  %v2244_v19 = vsub.f32 %v9217_v41, %v7332_v49  ;;  %v2245_v33 = vsub.f32 %v9218_v39, %v7332_v49  ;;  %v7350_v5 = vpop.xlane.xlu0 %1992  ;;  %v2683_v42 = vmul.f32 1.442695, %v2242_v15 }
 0x3d5   : > { %v4412_v14 = vpop.eup %4411  ;;  %3003 = vadd.xlane.f32.xlu1 %v3002_v1  ;;  %v3008_v13 = vadd.f32 %v4404_v61, %v3007_v4  ;;  %4431 = vpow2.f32 %v2669_v20  ;;  %v2681_v61 = vmul.f32 1.442695, %v2241_v24  ;;  %v9219_v4 = vld [vmem:[#allocation229_spill] sm:$0xff]  ;;  %v2685_v39 = vmul.f32 1.442695, %v2243_v60 }
 0x3d6   : > { %v4414_v3 = vpop.eup %4413  ;;  %4433 = vpow2.f32 %v2671_v62  ;;  %v2246_v57 = vsub.f32 %v9219_v4, %v7332_v49  ;;  %v2247_v62 = vsub.f32 %v9220_v9, %v7332_v49  ;;  %v2689_v9 = vmul.f32 1.442695, %v2245_v33  ;;  %v9226_v33 = vld [vmem:[#allocation234_spill] sm:$0xff] }
 0x3d7   : > { %v4416_v48 = vpop.eup %4415  ;;  %v3009_v52 = vadd.f32 %v4406_v56, %v3008_v13  ;;  %v3014_v1 = vadd.f32 %v4414_v3, %v4412_v14  ;;  %4435 = vpow2.f32 %v2673_v32  ;;  %v9221_v56 = vld [vmem:[#allocation64_spill] sm:$0xff]  ;;  %v9222_v32 = vld [vmem:[#allocation233_spill] sm:$0xff] }
 0x3d8   : > { %v4418_v20 = vpop.eup %4417  ;;  %4437 = vpow2.f32 %v2675_v11  ;;  %v2249_v14 = vsub.f32 %v9221_v56, %v7350_v5  ;;  %v2248_v24 = vsub.f32 %v9222_v32, %v7332_v49  ;;  %v2687_v11 = vmul.f32 1.442695, %v2244_v19 }
 0x3d9   : > { %v4420_v41 = vpop.eup %4419  ;;  %v3010_v47 = vadd.f32 %v4408_v0, %v3009_v52  ;;  %v3015_v50 = vadd.f32 %v4416_v48, %v3014_v1  ;;  %4439 = vpow2.f32 %v2677_v46  ;;  %v9223_v0 = vld [vmem:[#allocation66_spill] sm:$0xff]  ;;  %v2691_v60 = vmul.f32 1.442695, %v2246_v57  ;;  %v9224_v1 = vld [vmem:[#allocation65_spill] sm:$0xff] }
 0x3da   : > { %v4422_v38 = vpop.eup %4421  ;;  %4441 = vpow2.f32 %v2679_v25  ;;  %v2250_v48 = vsub.f32 %v9223_v0, %v7350_v5  ;;  %v2693_v25 = vmul.f32 1.442695, %v2247_v62  ;;  %v2251_v56 = vsub.f32 %v9224_v1, %v7350_v5 }
 0x3db   : > { %v4424_v13 = vpop.eup %4423  ;;  %v3011_v3 = vadd.f32 %v4410_v37, %v3010_v47  ;;  %v3016_v4 = vadd.f32 %v4418_v20, %v3015_v50  ;;  %4443 = vpow2.f32 %v2681_v61  ;;  %v2695_v37 = vmul.f32 1.442695, %v2248_v24  ;;  %v9225_v50 = vld [vmem:[#allocation67_spill] sm:$0xff]  ;;  %v9228_v24 = vld [vmem:[#allocation238_spill] sm:$0xff] }
 0x3dc   : > { %v4426_v15 = vpop.eup %4425  ;;  %4445 = vpow2.f32 %v2683_v42  ;;  %v2252_v47 = vsub.f32 %v9225_v50, %v7350_v5  ;;  %v2253_v61 = vsub.f32 %v9226_v33, %v7350_v5  ;;  %v7368_v42 = vpop.xlane.xlu1 %2001  ;;  %v2699_v1 = vmul.f32 1.442695, %v2250_v48 }
 0x3dd   : > { %v4428_v46 = vpop.eup %4427  ;;  %3012 = vadd.xlane.f32.xlu0 %v3011_v3  ;;  %v3017_v52 = vadd.f32 %v4420_v41, %v3016_v4  ;;  %4447 = vpow2.f32 %v2685_v39  ;;  %v2697_v41 = vmul.f32 1.442695, %v2249_v14  ;;  %v9227_v4 = vld [vmem:[#allocation235_spill] sm:$0xff]  ;;  %v2701_v33 = vmul.f32 1.442695, %v2251_v56 }
 0x3de   : > { %v4430_v19 = vpop.eup %4429  ;;  %4449 = vpow2.f32 %v2687_v11  ;;  %v2254_v62 = vsub.f32 %v9227_v4, %v7350_v5  ;;  %v2255_v11 = vsub.f32 %v9228_v24, %v7350_v5  ;;  %v2703_v14 = vmul.f32 1.442695, %v2252_v47 }
 0x3df   : > { %v4432_v20 = vpop.eup %4431  ;;  %v3018_v57 = vadd.f32 %v4422_v38, %v3017_v52  ;;  %v3023_v3 = vadd.f32 %v4430_v19, %v4428_v46  ;;  %4451 = vpow2.f32 %v2689_v9  ;;  %v9229_v38 = vld [vmem:[#allocation68_spill] sm:$0xff]  ;;  %v2256_v9 = vsub.f32 %v6745_v2, %v7350_v5 }
 0x3e0   : > { %v4434_v39 = vpop.eup %4433  ;;  %4453 = vpow2.f32 %v2691_v60  ;;  %v2257_v46 = vsub.f32 %v9229_v38, %v7368_v42  ;;  %v2705_v24 = vmul.f32 1.442695, %v2253_v61  ;;  %v2707_v56 = vmul.f32 1.442695, %v2254_v62  ;;  %v9233_v61 = vld [vmem:[#allocation236_spill] sm:$0xff] }
 0x3e1   : > { %v4436_v50 = vpop.eup %4435  ;;  %v3019_v0 = vadd.f32 %v4424_v13, %v3018_v57  ;;  %v3024_v32 = vadd.f32 %v4432_v20, %v3023_v3  ;;  %4455 = vpow2.f32 %v2693_v25  ;;  %v9230_v13 = vld [vmem:[#allocation70_spill] sm:$0xff]  ;;  %v9231_v3 = vld [vmem:[#allocation69_spill] sm:$0xff] }
 0x3e2   : > { %v4438_v49 = vpop.eup %4437  ;;  %4457 = vpow2.f32 %v2695_v37  ;;  %v2258_v20 = vsub.f32 %v9230_v13, %v7368_v42  ;;  %v2709_v37 = vmul.f32 1.442695, %v2255_v11  ;;  %v2259_v38 = vsub.f32 %v9231_v3, %v7368_v42  ;;  %v9235_v11 = vld [vmem:[#allocation237_spill] sm:$0xff] }
 0x3e3   : > { %v4440_v60 = vpop.eup %4439  ;;  %v3020_v52 = vadd.f32 %v4426_v15, %v3019_v0  ;;  %v3025_v19 = vadd.f32 %v4434_v39, %v3024_v32  ;;  %4459 = vpow2.f32 %v2697_v41  ;;  %v2711_v15 = vmul.f32 1.442695, %v2256_v9  ;;  %v9232_v32 = vld [vmem:[#allocation71_spill] sm:$0xff]  ;;  %v9236_v9 = vld [vmem:[#allocation240_spill] sm:$0xff] }
 0x3e4   : > { %v4442_v48 = vpop.eup %4441  ;;  %4461 = vpow2.f32 %v2699_v1  ;;  %v2260_v0 = vsub.f32 %v9232_v32, %v7368_v42  ;;  %v2261_v41 = vsub.f32 %v9233_v61, %v7368_v42  ;;  %v7386_v1 = vpop.xlane.xlu0 %2010  ;;  %v2715_v3 = vmul.f32 1.442695, %v2258_v20 }
 0x3e5   : > { %v4444_v25 = vpop.eup %4443  ;;  %3021 = vadd.xlane.f32.xlu1 %v3020_v52  ;;  %v3026_v57 = vadd.f32 %v4436_v50, %v3025_v19  ;;  %4463 = vpow2.f32 %v2701_v33  ;;  %9234 = vst [vmem:[#allocation276_spill] sm:$0xff] %v7386_v1  ;;  %v2713_v50 = vmul.f32 1.442695, %v2257_v46  ;;  %v2262_v19 = vsub.f32 %v9235_v11, %v7368_v42 }
 0x3e6   : > { %v4446_v47 = vpop.eup %4445  ;;  %4465 = vpow2.f32 %v2703_v14  ;;  %v2263_v14 = vsub.f32 %v9236_v9, %v7368_v42  ;;  %v2717_v61 = vmul.f32 1.442695, %v2259_v38  ;;  %v2721_v9 = vmul.f32 1.442695, %v2261_v41  ;;  %v9242_v41 = vld [vmem:[#allocation242_spill] sm:$0xff] }
 0x3e7   : > { %v4448_v39 = vpop.eup %4447  ;;  %v3027_v62 = vadd.f32 %v4438_v49, %v3026_v57  ;;  %v3032_v52 = vadd.f32 %v4446_v47, %v4444_v25  ;;  %4467 = vpow2.f32 %v2705_v24  ;;  %v9237_v49 = vld [vmem:[#allocation72_spill] sm:$0xff]  ;;  %v9238_v24 = vld [vmem:[#allocation241_spill] sm:$0xff]  ;;  %v2723_v38 = vmul.f32 1.442695, %v2262_v19 }
 0x3e8   : > { %v4450_v33 = vpop.eup %4449  ;;  %4469 = vpow2.f32 %v2707_v56  ;;  %v2265_v25 = vsub.f32 %v9237_v49, %v7386_v1  ;;  %v2264_v46 = vsub.f32 %v9238_v24, %v7368_v42  ;;  %v2719_v56 = vmul.f32 1.442695, %v2260_v0 }
 0x3e9   : > { %v4452_v32 = vpop.eup %4451  ;;  %v3028_v13 = vadd.f32 %v4440_v60, %v3027_v62  ;;  %v3033_v2 = vadd.f32 %v4448_v39, %v3032_v52  ;;  %4471 = vpow2.f32 %v2709_v37  ;;  %v9239_v60 = vld [vmem:[#allocation74_spill] sm:$0xff]  ;;  %v9240_v52 = vld [vmem:[#allocation73_spill] sm:$0xff] }
 0x3ea   : > { %v4454_v4 = vpop.eup %4453  ;;  %4473 = vpow2.f32 %v2711_v15  ;;  %v2266_v39 = vsub.f32 %v9239_v60, %v7386_v1  ;;  %v2725_v15 = vmul.f32 1.442695, %v2263_v14  ;;  %v2267_v49 = vsub.f32 %v9240_v52, %v7386_v1 }
 0x3eb   : > { %v4456_v57 = vpop.eup %4455  ;;  %v3029_v47 = vadd.f32 %v4442_v48, %v3028_v13  ;;  %v3034_v11 = vadd.f32 %v4450_v33, %v3033_v2  ;;  %4475 = vpow2.f32 %v2713_v50  ;;  %v2727_v48 = vmul.f32 1.442695, %v2264_v46  ;;  %v9241_v2 = vld [vmem:[#allocation75_spill] sm:$0xff] }
 0x3ec   : > { %v4458_v20 = vpop.eup %4457  ;;  %4477 = vpow2.f32 %v2715_v3  ;;  %v2268_v13 = vsub.f32 %v9241_v2, %v7386_v1  ;;  %v2269_v50 = vsub.f32 %v9242_v41, %v7386_v1  ;;  %v7404_v3 = vpop.xlane.xlu1 %2019  ;;  %v2271_v14 = vsub.f32 %v6799_v8, %v7386_v1 }
 0x3ed   : > { %v4460_v37 = vpop.eup %4459  ;;  %3030 = vadd.xlane.f32.xlu0 %v3029_v47  ;;  %v3035_v62 = vadd.f32 %v4452_v32, %v3034_v11  ;;  %4479 = vpow2.f32 %v2717_v61  ;;  %v2729_v32 = vmul.f32 1.442695, %v2265_v25  ;;  %v2270_v11 = vsub.f32 %v6775_v16, %v7386_v1 }
 0x3ee   : > { %v4462_v0 = vpop.eup %4461  ;;  %4481 = vpow2.f32 %v2719_v56  ;;  %v2731_v46 = vmul.f32 1.442695, %v2266_v39  ;;  %v2733_v41 = vmul.f32 1.442695, %v2267_v49  ;;  %v2737_v8 = vmul.f32 1.442695, %v2269_v50 }
 0x3ef   : > { %v4464_v33 = vpop.eup %4463  ;;  %v3036_v19 = vadd.f32 %v4454_v4, %v3035_v62  ;;  %v3041_v47 = vadd.f32 %v4462_v0, %v4460_v37  ;;  %4483 = vpow2.f32 %v2721_v9  ;;  %v9243_v4 = vld [vmem:[#allocation76_spill] sm:$0xff]  ;;  %v9244_v9 = vld [vmem:[#allocation247_spill] sm:$0xff]  ;;  %v2739_v49 = vmul.f32 1.442695, %v2270_v11 }
 0x3f0   : > { %v4466_v61 = vpop.eup %4465  ;;  %4485 = vpow2.f32 %v2723_v38  ;;  %v2273_v37 = vsub.f32 %v9243_v4, %v7404_v3  ;;  %v2272_v25 = vsub.f32 %v9244_v9, %v7386_v1  ;;  %v2735_v38 = vmul.f32 1.442695, %v2268_v13  ;;  %v9248_v50 = vld [vmem:[#allocation244_spill] sm:$0xff] }
 0x3f1   : > { %v4468_v56 = vpop.eup %4467  ;;  %v3037_v2 = vadd.f32 %v4456_v57, %v3036_v19  ;;  %v3042_v52 = vadd.f32 %v4464_v33, %v3041_v47  ;;  %4487 = vpow2.f32 %v2725_v15  ;;  %v9245_v57 = vld [vmem:[#allocation78_spill] sm:$0xff]  ;;  %v9246_v47 = vld [vmem:[#allocation77_spill] sm:$0xff] }
 0x3f2   : > { %v4470_v60 = vpop.eup %4469  ;;  %4489 = vpow2.f32 %v2727_v48  ;;  %v2274_v33 = vsub.f32 %v9245_v57, %v7404_v3  ;;  %v2741_v48 = vmul.f32 1.442695, %v2271_v14  ;;  %v2275_v4 = vsub.f32 %v9246_v47, %v7404_v3  ;;  %v9249_v14 = vld [vmem:[#allocation245_spill] sm:$0xff] }
 0x3f3   : > { %v4472_v62 = vpop.eup %4471  ;;  %v3038_v0 = vadd.f32 %v4458_v20, %v3037_v2  ;;  %v3043_v16 = vadd.f32 %v4466_v61, %v3042_v52  ;;  %4491 = vpow2.f32 %v2729_v32  ;;  %v2743_v20 = vmul.f32 1.442695, %v2272_v25  ;;  %v9247_v52 = vld [vmem:[#allocation79_spill] sm:$0xff]  ;;  %v9250_v25 = vld [vmem:[#allocation248_spill] sm:$0xff] }
 0x3f4   : > { %v4474_v39 = vpop.eup %4473  ;;  %4493 = vpow2.f32 %v2731_v46  ;;  %v2276_v2 = vsub.f32 %v9247_v52, %v7404_v3  ;;  %v2277_v32 = vsub.f32 %v9248_v50, %v7404_v3  ;;  %v7422_v46 = vpop.xlane.xlu0 %2028  ;;  %v2747_v47 = vmul.f32 1.442695, %v2274_v33 }
 0x3f5   : > { %v4476_v15 = vpop.eup %4475  ;;  %3039 = vadd.xlane.f32.xlu1 %v3038_v0  ;;  %v3044_v19 = vadd.f32 %v4468_v56, %v3043_v16  ;;  %4495 = vpow2.f32 %v2733_v41  ;;  %v2745_v16 = vmul.f32 1.442695, %v2273_v37  ;;  %v2278_v56 = vsub.f32 %v9249_v14, %v7404_v3 }
 0x3f6   : > { %v4478_v13 = vpop.eup %4477  ;;  %4497 = vpow2.f32 %v2735_v38  ;;  %v2279_v38 = vsub.f32 %v9250_v25, %v7404_v3  ;;  %v2749_v50 = vmul.f32 1.442695, %v2275_v4  ;;  %v2751_v37 = vmul.f32 1.442695, %v2276_v2 }
 0x3f7   : > { %v4480_v61 = vpop.eup %4479  ;;  %v3045_v11 = vadd.f32 %v4470_v60, %v3044_v19  ;;  %v3050_v0 = vadd.f32 %v4478_v13, %v4476_v15  ;;  %4499 = vpow2.f32 %v2737_v8  ;;  %v9251_v60 = vld [vmem:[#allocation80_spill] sm:$0xff]  ;;  %v2280_v8 = vsub.f32 %v6832_v7, %v7404_v3 }
 0x3f8   : > { %v4482_v41 = vpop.eup %4481  ;;  %4501 = vpow2.f32 %v2739_v49  ;;  %v2281_v15 = vsub.f32 %v9251_v60, %v7422_v46  ;;  %v2753_v25 = vmul.f32 1.442695, %v2277_v32  ;;  %v2755_v4 = vmul.f32 1.442695, %v2278_v56 }
 0x3f9   : > { %v4484_v52 = vpop.eup %4483  ;;  %v3046_v57 = vadd.f32 %v4472_v62, %v3045_v11  ;;  %v3051_v9 = vadd.f32 %v4480_v61, %v3050_v0  ;;  %4503 = vpow2.f32 %v2741_v48  ;;  %v9252_v62 = vld [vmem:[#allocation82_spill] sm:$0xff]  ;;  %v9253_v0 = vld [vmem:[#allocation81_spill] sm:$0xff]  ;;  %v2285_v32 = vsub.f32 %v6835_v34, %v7422_v46 }
 0x3fa   : > { %v4486_v1 = vpop.eup %4485  ;;  %4505 = vpow2.f32 %v2743_v20  ;;  %v2282_v61 = vsub.f32 %v9252_v62, %v7422_v46  ;;  %v2757_v20 = vmul.f32 1.442695, %v2279_v38  ;;  %v2283_v60 = vsub.f32 %v9253_v0, %v7422_v46 }
 0x3fb   : > { %v4488_v49 = vpop.eup %4487  ;;  %v3047_v19 = vadd.f32 %v4474_v39, %v3046_v57  ;;  %v3052_v13 = vadd.f32 %v4482_v41, %v3051_v9  ;;  %4507 = vpow2.f32 %v2745_v16  ;;  %v2759_v39 = vmul.f32 1.442695, %v2280_v8  ;;  %v9254_v9 = vld [vmem:[#allocation83_spill] sm:$0xff] }
 0x3fc   : > { %v4490_v33 = vpop.eup %4489  ;;  %4509 = vpow2.f32 %v2747_v47  ;;  %v2284_v57 = vsub.f32 %v9254_v9, %v7422_v46  ;;  %v7440_v47 = vpop.xlane.xlu1 %2037  ;;  %v2286_v38 = vsub.f32 %v6846_v22, %v7422_v46  ;;  %v2287_v8 = vsub.f32 %v6863_v23, %v7422_v46 }
 0x3fd   : > { %v4492_v48 = vpop.eup %4491  ;;  %3048 = vadd.xlane.f32.xlu0 %v3047_v19  ;;  %v3053_v11 = vadd.f32 %v4484_v52, %v3052_v13  ;;  %4511 = vpow2.f32 %v2749_v50  ;;  %v2761_v52 = vmul.f32 1.442695, %v2281_v15  ;;  %v2765_v34 = vmul.f32 1.442695, %v2283_v60 }
 0x3fe   : > { %v4494_v2 = vpop.eup %4493  ;;  %4513 = vpow2.f32 %v2751_v37  ;;  %v2763_v37 = vmul.f32 1.442695, %v2282_v61  ;;  %v2767_v15 = vmul.f32 1.442695, %v2284_v57  ;;  %v2769_v23 = vmul.f32 1.442695, %v2285_v32 }
 0x3ff   : > { %v4496_v16 = vpop.eup %4495  ;;  %v3054_v41 = vadd.f32 %v4486_v1, %v3053_v11  ;;  %v3059_v56 = vadd.f32 %v4494_v2, %v4492_v48  ;;  %4515 = vpow2.f32 %v2753_v25  ;;  %v9255_v1 = vld [vmem:[#allocation84_spill] sm:$0xff]  ;;  %v2288_v25 = vsub.f32 %v6873_v29, %v7422_v46 }
 0x400   : > { %v4498_v50 = vpop.eup %4497  ;;  %4517 = vpow2.f32 %v2755_v4  ;;  %v2289_v48 = vsub.f32 %v9255_v1, %v7440_v47  ;;  %v2771_v60 = vmul.f32 1.442695, %v2286_v38 }
 0x401   : > { %v4500_v19 = vpop.eup %4499  ;;  %v3055_v13 = vadd.f32 %v4488_v49, %v3054_v41  ;;  %v3060_v9 = vadd.f32 %v4496_v16, %v3059_v56  ;;  %4519 = vpow2.f32 %v2757_v20  ;;  %v9256_v49 = vld [vmem:[#allocation86_spill] sm:$0xff]  ;;  %v9257_v56 = vld [vmem:[#allocation85_spill] sm:$0xff] }
 0x402   : > { %v4502_v0 = vpop.eup %4501  ;;  %4521 = vpow2.f32 %v2759_v39  ;;  %v2290_v16 = vsub.f32 %v9256_v49, %v7440_v47  ;;  %v2773_v39 = vmul.f32 1.442695, %v2287_v8  ;;  %v2291_v1 = vsub.f32 %v9257_v56, %v7440_v47 }
 0x403   : > { %v4504_v4 = vpop.eup %4503  ;;  %v3056_v11 = vadd.f32 %v4490_v33, %v3055_v13  ;;  %v3061_v2 = vadd.f32 %v4498_v50, %v3060_v9  ;;  %4523 = vpow2.f32 %v2761_v52  ;;  %v2775_v33 = vmul.f32 1.442695, %v2288_v25  ;;  %v9258_v9 = vld [vmem:[#allocation87_spill] sm:$0xff]  ;;  %v9259_v52 = vld [vmem:[#allocation250_spill] sm:$0xff] }
 0x404   : > { %v4506_v61 = vpop.eup %4505  ;;  %4525 = vpow2.f32 %v2763_v37  ;;  %v2292_v32 = vsub.f32 %v9258_v9, %v7440_v47  ;;  %v2293_v50 = vsub.f32 %v9259_v52, %v7440_v47  ;;  %v7458_v37 = vpop.xlane.xlu0 %2046  ;;  %v2295_v25 = vsub.f32 %v6876_v6, %v7440_v47 }
 0x405   : > { %v4508_v20 = vpop.eup %4507  ;;  %3057 = vadd.xlane.f32.xlu1 %v3056_v11  ;;  %v3062_v41 = vadd.f32 %v4500_v19, %v3061_v2  ;;  %4527 = vpow2.f32 %v2765_v34  ;;  %v2777_v34 = vmul.f32 1.442695, %v2289_v48  ;;  %v9260_v19 = vld [vmem:[#allocation251_spill] sm:$0xff]  ;;  %v2781_v52 = vmul.f32 1.442695, %v2291_v1 }
 0x406   : > { %v4510_v57 = vpop.eup %4509  ;;  %4529 = vpow2.f32 %v2767_v15  ;;  %v2294_v2 = vsub.f32 %v9260_v19, %v7440_v47  ;;  %v2779_v15 = vmul.f32 1.442695, %v2290_v16  ;;  %v2783_v48 = vmul.f32 1.442695, %v2292_v32 }
 0x407   : > { %v4512_v13 = vpop.eup %4511  ;;  %v3063_v38 = vadd.f32 %v4502_v0, %v3062_v41  ;;  %v3068_v11 = vadd.f32 %v4510_v57, %v4508_v20  ;;  %4531 = vpow2.f32 %v2769_v23  ;;  %v9261_v0 = vld [vmem:[#allocation92_spill] sm:$0xff]  ;;  %v2296_v23 = vsub.f32 %v6886_v43, %v7440_v47 }
 0x408   : > { %v4514_v8 = vpop.eup %4513  ;;  %4533 = vpow2.f32 %v2771_v60  ;;  %v2297_v20 = vsub.f32 %v9261_v0, %v7458_v37  ;;  %v2785_v6 = vmul.f32 1.442695, %v2293_v50  ;;  %v2787_v1 = vmul.f32 1.442695, %v2294_v2 }
 0x409   : > { %v4516_v9 = vpop.eup %4515  ;;  %v3064_v56 = vadd.f32 %v4504_v4, %v3063_v38  ;;  %v3069_v49 = vadd.f32 %v4512_v13, %v3068_v11  ;;  %4535 = vpow2.f32 %v2773_v39  ;;  %v9262_v4 = vld [vmem:[#allocation94_spill] sm:$0xff]  ;;  %v9263_v11 = vld [vmem:[#allocation93_spill] sm:$0xff]  ;;  %v2301_v50 = vsub.f32 %v6889_v63, %v7458_v37 }
 0x40a   : > { %v4518_v29 = vpop.eup %4517  ;;  %4537 = vpow2.f32 %v2775_v33  ;;  %v2298_v13 = vsub.f32 %v9262_v4, %v7458_v37  ;;  %v2789_v33 = vmul.f32 1.442695, %v2295_v25  ;;  %v2299_v0 = vsub.f32 %v9263_v11, %v7458_v37 }
 0x40b   : > { %v4520_v60 = vpop.eup %4519  ;;  %v3065_v41 = vadd.f32 %v4506_v61, %v3064_v56  ;;  %v3070_v57 = vadd.f32 %v4514_v8, %v3069_v49  ;;  %4539 = vpow2.f32 %v2777_v34  ;;  %v2791_v61 = vmul.f32 1.442695, %v2296_v23  ;;  %v9264_v49 = vld [vmem:[#allocation95_spill] sm:$0xff]  ;;  %v7476_v8 = vpop.xlane.xlu1 %2055 }
 0x40c   : > { %v4522_v16 = vpop.eup %4521  ;;  %4541 = vpow2.f32 %v2779_v15  ;;  %v2300_v56 = vsub.f32 %v9264_v49, %v7458_v37  ;;  %v2302_v25 = vsub.f32 %v6894_v28, %v7458_v37  ;;  %v2303_v23 = vsub.f32 %v6906_v17, %v7458_v37 }
 0x40d   : > { %v4524_v39 = vpop.eup %4523  ;;  %3066 = vadd.xlane.f32.xlu0 %v3065_v41  ;;  %v3071_v38 = vadd.f32 %v4516_v9, %v3070_v57  ;;  %4543 = vpow2.f32 %v2781_v52  ;;  %v2793_v9 = vmul.f32 1.442695, %v2297_v20  ;;  %v2797_v63 = vmul.f32 1.442695, %v2299_v0 }
 0x40e   : > { %v4526_v32 = vpop.eup %4525  ;;  %4545 = vpow2.f32 %v2783_v48  ;;  %v2795_v48 = vmul.f32 1.442695, %v2298_v13  ;;  %v2799_v20 = vmul.f32 1.442695, %v2300_v56  ;;  %v2801_v17 = vmul.f32 1.442695, %v2301_v50  ;;  %v2833_v56 = vpop.xlane.xlu0 %2832 }
 0x40f   : > { %v4528_v34 = vpop.eup %4527  ;;  %v3072_v2 = vadd.f32 %v4518_v29, %v3071_v38  ;;  %v3077_v15 = vadd.f32 %v4526_v32, %v4524_v39  ;;  %4547 = vpow2.f32 %v2785_v6  ;;  %v9265_v29 = vld [vmem:[#allocation96_spill] sm:$0xff]  ;;  %v2304_v6 = vsub.f32 %v6911_v10, %v7458_v37 }
 0x410   : > { %v4530_v52 = vpop.eup %4529  ;;  %4549 = vpow2.f32 %v2787_v1  ;;  %v2305_v39 = vsub.f32 %v9265_v29, %v7476_v8  ;;  %v2803_v0 = vmul.f32 1.442695, %v2302_v25  ;;  %v2309_v50 = vsub.f32 %v6899_v21, %v7476_v8 }
 0x411   : > { %v4532_v41 = vpop.eup %4531  ;;  %v3073_v57 = vadd.f32 %v4520_v60, %v3072_v2  ;;  %v3078_v49 = vadd.f32 %v4528_v34, %v3077_v15  ;;  %4551 = vpow2.f32 %v2789_v33  ;;  %v9266_v60 = vld [vmem:[#allocation99_spill] sm:$0xff]  ;;  %v9267_v15 = vld [vmem:[#allocation97_spill] sm:$0xff] }
 0x412   : > { %v4534_v11 = vpop.eup %4533  ;;  %4553 = vpow2.f32 %v2791_v61  ;;  %v2306_v34 = vsub.f32 %v9266_v60, %v7476_v8  ;;  %v2805_v61 = vmul.f32 1.442695, %v2303_v23  ;;  %v2307_v29 = vsub.f32 %v9267_v15, %v7476_v8  ;;  %v9268_v23 = vld [vmem:[#allocation258_spill] sm:$0xff]  ;;  %v2851_v60 = vpop.xlane.xlu0 %2850 }
 0x413   : > { %v4536_v1 = vpop.eup %4535  ;;  %v3074_v38 = vadd.f32 %v4522_v16, %v3073_v57  ;;  %v3079_v32 = vadd.f32 %v4530_v52, %v3078_v49  ;;  %4555 = vpow2.f32 %v2793_v9  ;;  %v2807_v16 = vmul.f32 1.442695, %v2304_v6  ;;  %v9269_v57 = vld [vmem:[#allocation261_spill] sm:$0xff] }
 0x414   : > { %v4538_v13 = vpop.eup %4537  ;;  %4557 = vpow2.f32 %v2795_v48  ;;  %v2308_v49 = vsub.f32 %v6883_v27, %v7476_v8  ;;  %v2809_v48 = vmul.f32 1.442695, %v2305_v39  ;;  %v2811_v6 = vmul.f32 1.442695, %v2306_v34 }
 0x415   : > { %v4540_v33 = vpop.eup %4539  ;;  %3075 = vadd.xlane.f32.xlu1 %v3074_v38  ;;  %v3080_v2 = vadd.f32 %v4532_v41, %v3079_v32  ;;  %4559 = vpow2.f32 %v2797_v63  ;;  %v2310_v41 = vsub.f32 %v9268_v23, %v7476_v8  ;;  %v2842_v38 = vpop.xlane.xlu1 %2841  ;;  %v2813_v21 = vmul.f32 1.442695, %v2307_v29 }
 0x416   : > { %v4542_v10 = vpop.eup %4541  ;;  %4561 = vpow2.f32 %v2799_v20  ;;  %v2311_v20 = vsub.f32 %v9269_v57, %v7476_v8  ;;  %v2815_v39 = vmul.f32 1.442695, %v2308_v49  ;;  %v2817_v23 = vmul.f32 1.442695, %v2309_v50 }
 0x417   : > { %v4544_v9 = vpop.eup %4543  ;;  %v3081_v52 = vadd.f32 %v4534_v11, %v3080_v2  ;;  %v3086_v25 = vadd.f32 %v4542_v10, %v4540_v33  ;;  %4563 = vpow2.f32 %v2801_v17  ;;  %v9270_v17 = vld [vmem:[#allocation262_spill] sm:$0xff]  ;;  %v2819_v34 = vmul.f32 1.442695, %v2310_v41 }
 0x418   : > { %v4546_v63 = vpop.eup %4545  ;;  %4565 = vpow2.f32 %v2803_v0  ;;  %v2312_v10 = vsub.f32 %v9270_v17, %v7476_v8  ;;  %v2821_v29 = vmul.f32 1.442695, %v2311_v20 }
 0x419   : > { %v4548_v32 = vpop.eup %4547  ;;  %v3082_v27 = vadd.f32 %v4536_v1, %v3081_v52  ;;  %v3087_v15 = vadd.f32 %v4544_v9, %v3086_v25  ;;  %4567 = vpow2.f32 %v2805_v61  ;;  %v2860_v28 = vpop.xlane.xlu1 %2859 }
 0x41a   : > { %v4550_v11 = vpop.eup %4549  ;;  %4569 = vpow2.f32 %v2807_v16  ;;  %v2869_v9 = vpop.xlane.xlu0 %2868  ;;  %v2823_v52 = vmul.f32 1.442695, %v2312_v10 }
 0x41b   : > { %v4552_v0 = vpop.eup %4551  ;;  %v3083_v33 = vadd.f32 %v4538_v13, %v3082_v27  ;;  %v3088_v2 = vadd.f32 %v4546_v63, %v3087_v15  ;;  %4571 = vpow2.f32 %v2809_v48 }
 0x41c   : > { %v4554_v57 = vpop.eup %4553  ;;  %4573 = vpow2.f32 %v2811_v6 }
 0x41d   : > { %v4556_v1 = vpop.eup %4555  ;;  %3084 = vadd.xlane.f32.xlu0 %v3083_v33  ;;  %v3089_v61 = vadd.f32 %v4548_v32, %v3088_v2  ;;  %4575 = vpow2.f32 %v2813_v21  ;;  %v2878_v13 = vpop.xlane.xlu1 %2877 }
 0x41e   : > { %v4558_v16 = vpop.eup %4557  ;;  %4577 = vpow2.f32 %v2815_v39  ;;  %v2887_v63 = vpop.xlane.xlu0 %2886 }
 0x41f   : > { %v4560_v25 = vpop.eup %4559  ;;  %v3090_v49 = vadd.f32 %v4550_v11, %v3089_v61  ;;  %v3095_v17 = vadd.f32 %v4558_v16, %v4556_v1  ;;  %4579 = vpow2.f32 %v2817_v23 }
 0x420   : > { %v4562_v27 = vpop.eup %4561  ;;  %4581 = vpow2.f32 %v2819_v34 }
 0x421   : > { %v4564_v15 = vpop.eup %4563  ;;  %v3091_v50 = vadd.f32 %v4552_v0, %v3090_v49  ;;  %v3096_v48 = vadd.f32 %v4560_v25, %v3095_v17  ;;  %4583 = vpow2.f32 %v2821_v29  ;;  %v2896_v10 = vpop.xlane.xlu1 %2895 }
 0x422   : > { %v4566_v41 = vpop.eup %4565  ;;  %4585 = vpow2.f32 %v2823_v52  ;;  %v2905_v39 = vpop.xlane.xlu0 %2904 }
 0x423   : > { %v4568_v21 = vpop.eup %4567  ;;  %v3092_v20 = vadd.f32 %v4554_v57, %v3091_v50  ;;  %v3097_v6 = vadd.f32 %v4562_v27, %v3096_v48  ;;  %4587 = vlog2.f32 %v2833_v56 }
 0x424   : > { %v4570_v32 = vpop.eup %4569  ;;  %4589 = vlog2.f32 %v2842_v38 }
 0x425   : > { %v4572_v11 = vpop.eup %4571  ;;  %3093 = vadd.xlane.f32.xlu1 %v3092_v20  ;;  %v3098_v23 = vadd.f32 %v4564_v15, %v3097_v6  ;;  %4591 = vlog2.f32 %v2851_v60  ;;  %v2914_v1 = vpop.xlane.xlu1 %2913 }
 0x426   : > { %v4574_v33 = vpop.eup %4573  ;;  %4593 = vlog2.f32 %v2860_v28  ;;  %v2923_v38 = vpop.xlane.xlu0 %2922 }
 0x427   : > { %v4576_v0 = vpop.eup %4575  ;;  %v3099_v17 = vadd.f32 %v4566_v41, %v3098_v23  ;;  %v3104_v2 = vadd.f32 %v4574_v33, %v4572_v11  ;;  %4595 = vlog2.f32 %v2869_v9 }
 0x428   : > { %v4578_v34 = vpop.eup %4577  ;;  %4597 = vlog2.f32 %v2878_v13 }
 0x429   : > { %v4580_v57 = vpop.eup %4579  ;;  %v3100_v61 = vadd.f32 %v4568_v21, %v3099_v17  ;;  %v3105_v56 = vadd.f32 %v4576_v0, %v3104_v2  ;;  %4599 = vlog2.f32 %v2887_v63  ;;  %v2932_v28 = vpop.xlane.xlu1 %2931  ;;  %v9271_v21 = vld [vmem:[#allocation263_spill] sm:$0xff]  ;;  %v9273_v0 = vld [vmem:[#allocation88_spill] sm:$0xff]  ;;  %v9274_v2 = vld [vmem:[#allocation89_spill] sm:$0xff] }
 0x42a   : > { %v4582_v29 = vpop.eup %4581  ;;  %4601 = vlog2.f32 %v2896_v10  ;;  %v2941_v27 = vpop.xlane.xlu0 %2940  ;;  %v9272_v10 = vld [vmem:[#allocation264_spill] sm:$0xff] }
 0x42b   : > { %v4584_v16 = vpop.eup %4583  ;;  %v3101_v60 = vadd.f32 %v4570_v32, %v3100_v61  ;;  %v3106_v52 = vadd.f32 %v4578_v34, %v3105_v56  ;;  %4603 = vlog2.f32 %v2905_v39  ;;  %v9276_v61 = vld [vmem:[#allocation106_spill] sm:$0xff] }
 0x42c   : > { %v4586_v25 = vpop.eup %4585  ;;  %4605 = vlog2.f32 %v2914_v1  ;;  %v9275_v1 = vld [vmem:[#allocation98_spill] sm:$0xff] }
 0x42d   : > { %v4588_v49 = vpop.eup %4587  ;;  %3102 = vadd.xlane.f32.xlu0 %v3101_v60  ;;  %v3107_v9 = vadd.f32 %v4580_v57, %v3106_v52  ;;  %4607 = vlog2.f32 %v2923_v38  ;;  %v9277_v60 = vld [vmem:[#allocation108_spill] sm:$0xff] }
 0x42e   : > { %v4590_v13 = vpop.eup %4589  ;;  %v3114_v15 = vmul.f32 0.6931472, %v4588_v49  ;;  %4609 = vlog2.f32 %v2932_v28  ;;  %v9278_v28 = vld [vmem:[#allocation110_spill] sm:$0xff] }
 0x42f   : > { %v4592_v50 = vpop.eup %4591  ;;  %v3108_v48 = vadd.f32 %v4582_v29, %v3107_v9  ;;  %v3116_v63 = vmul.f32 0.6931472, %v4590_v13  ;;  %4611 = vlog2.f32 %v2941_v27  ;;  %v9280_v13 = vld [vmem:[#allocation120_spill] sm:$0xff] }
 0x430   : > { %v4594_v41 = vpop.eup %4593  ;;  %v3177_v20 = vadd.f32 %v3114_v15, %v9271_v21  ;;  %v3118_v23 = vmul.f32 0.6931472, %v4592_v50 }
 0x431   : > { %v4596_v6 = vpop.eup %4595  ;;  %v3109_v32 = vadd.f32 %v4584_v16, %v3108_v48  ;;  %v3178_v11 = vadd.f32 %v3116_v63, %v9272_v10  ;;  %v3120_v39 = vmul.f32 0.6931472, %v4594_v41  ;;  %v9279_v16 = vld [vmem:[#allocation116_spill] sm:$0xff]  ;;  %v9282_v48 = vld [vmem:[#allocation91_spill] sm:$0xff] }
 0x432   : > { %v4598_v33 = vpop.eup %4597  ;;  %v3209_v17 = vsub.f32 %v9273_v0, %v3177_v20  ;;  %v3210_v34 = vsub.f32 %v9274_v2, %v3177_v20  ;;  %v3211_v57 = vsub.f32 %v9275_v1, %v3177_v20  ;;  %v3212_v56 = vsub.f32 %v9276_v61, %v3177_v20  ;;  %v9283_v41 = vld [vmem:[#allocation103_spill] sm:$0xff]  ;;  %v9285_v0 = vld [vmem:[#allocation112_spill] sm:$0xff]  ;;  %v9287_v1 = vld [vmem:[#allocation121_spill] sm:$0xff] }
 0x433   : > { %v4600_v38 = vpop.eup %4599  ;;  %v3110_v29 = vadd.f32 %v4586_v25, %v3109_v32  ;;  %v3213_v52 = vsub.f32 %v9277_v60, %v3177_v20  ;;  %v3214_v49 = vsub.f32 %v9278_v28, %v3177_v20  ;;  %v3215_v9 = vsub.f32 %v9279_v16, %v3177_v20  ;;  %v9281_v25 = vld [vmem:[#allocation90_spill] sm:$0xff]  ;;  %v9284_v32 = vld [vmem:[#allocation107_spill] sm:$0xff] }
 0x434   : > { %v4602_v27 = vpop.eup %4601  ;;  %v3216_v15 = vsub.f32 %v9280_v13, %v3177_v20  ;;  %3465 = vst [vmem:[%s7511_s23] sm:$0xff] %v3209_v17  ;;  %3466 = vst [vmem:[%s7511_s23 + $0x8] sm:$0xff] %v3210_v34  ;;  %v3217_v50 = vsub.f32 %v9281_v25, %v3178_v11  ;;  %v3218_v63 = vsub.f32 %v9282_v48, %v3178_v11  ;;  %v2950_v20 = vpop.xlane.xlu1 %2949  ;;  %v9286_v2 = vld [vmem:[#allocation115_spill] sm:$0xff]  ;;  %v3122_v28 = vmul.f32 0.6931472, %v4596_v6  ;;  %v9291_v6 = vld [vmem:[#allocation109_spill] sm:$0xff] }
 0x435   : > { %3467 = vst [vmem:[%s7511_s23 + $0x10] sm:$0xff] %v3211_v57  ;;  %3468 = vst [vmem:[%s7511_s23 + $0x18] sm:$0xff] %v3212_v56  ;;  %v3219_v21 = vsub.f32 %v9283_v41, %v3178_v11  ;;  %3111 = vadd.xlane.f32.xlu1 %v3110_v29  ;;  %v3220_v10 = vsub.f32 %v9284_v32, %v3178_v11  ;;  %v3221_v17 = vsub.f32 %v9285_v0, %v3178_v11  ;;  %v4604_v61 = vpop.eup %4603  ;;  %v9288_v56 = vld [vmem:[#allocation123_spill] sm:$0xff]  ;;  %v9292_v25 = vld [vmem:[#allocation117_spill] sm:$0xff] }
 0x436   : > { %3469 = vst [vmem:[%s7511_s23 + $0x20] sm:$0xff] %v3213_v52  ;;  %3470 = vst [vmem:[%s7511_s23 + $0x28] sm:$0xff] %v3214_v49  ;;  %v3222_v34 = vsub.f32 %v9286_v2, %v3178_v11  ;;  %v3223_v57 = vsub.f32 %v9287_v1, %v3178_v11  ;;  %v3224_v60 = vsub.f32 %v9288_v56, %v3178_v11  ;;  %v4606_v49 = vpop.eup %4605  ;;  %v3124_v16 = vmul.f32 0.6931472, %v4598_v33  ;;  %v9293_v33 = vld [vmem:[#allocation124_spill] sm:$0xff]  ;;  %v9295_v41 = vld [vmem:[#allocation130_spill] sm:$0xff] }
 0x437   : > { %3471 = vst [vmem:[%s7511_s23 + $0x30] sm:$0xff] %v3215_v9  ;;  %3472 = vst [vmem:[%s7511_s23 + $0x38] sm:$0xff] %v3216_v15  ;;  %v3179_v29 = vadd.f32 %v3118_v23, %v6950_v40  ;;  %v3180_v52 = vadd.f32 %v3120_v39, %v6970_v35  ;;  %v3126_v9 = vmul.f32 0.6931472, %v4600_v38  ;;  %v3128_v13 = vmul.f32 0.6931472, %v4602_v27  ;;  %v4608_v11 = vpop.eup %4607 }
 0x438   : > { %3473 = vst [vmem:[%s7511_s23 + $0x40] sm:$0xff] %v3217_v50  ;;  %3474 = vst [vmem:[%s7511_s23 + $0x48] sm:$0xff] %v3218_v63  ;;  %4613 = vlog2.f32 %v2950_v20  ;;  %v9289_v15 = vld [vmem:[#allocation101_spill] sm:$0xff]  ;;  %v9290_v23 = vld [vmem:[#allocation102_spill] sm:$0xff]  ;;  %v7543_v48 = vpop.eup %4609 }
 0x439   : > { %3475 = vst [vmem:[%s7511_s23 + $0x50] sm:$0xff] %v3219_v21  ;;  %3476 = vst [vmem:[%s7511_s23 + $0x58] sm:$0xff] %v3220_v10  ;;  %v3225_v40 = vsub.f32 %v9289_v15, %v3179_v29  ;;  %v3226_v35 = vsub.f32 %v9290_v23, %v3179_v29  ;;  %v3227_v39 = vsub.f32 %v9291_v6, %v3179_v29  ;;  %v9294_v27 = vld [vmem:[#allocation126_spill] sm:$0xff]  ;;  %v7549_v10 = vpop.eup %4611  ;;  %v9297_v0 = vld [vmem:[#allocation104_spill] sm:$0xff] }
 0x43a   : > { %3477 = vst [vmem:[%s7511_s23 + $0x60] sm:$0xff] %v3221_v17  ;;  %3478 = vst [vmem:[%s7511_s23 + $0x68] sm:$0xff] %v3222_v34  ;;  %v3228_v50 = vsub.f32 %v9292_v25, %v3179_v29  ;;  %v3229_v38 = vsub.f32 %v9293_v33, %v3179_v29  ;;  %v3230_v63 = vsub.f32 %v9294_v27, %v3179_v29  ;;  %v9296_v20 = vld [vmem:[#allocation134_spill] sm:$0xff]  ;;  %v9298_v2 = vld [vmem:[#allocation105_spill] sm:$0xff]  ;;  %v2959_v56 = vpop.xlane.xlu0 %2958 }
 0x43b   : > { %3479 = vst [vmem:[%s7511_s23 + $0x70] sm:$0xff] %v3223_v57  ;;  %3480 = vst [vmem:[%s7511_s23 + $0x78] sm:$0xff] %v3224_v60  ;;  %v3231_v21 = vsub.f32 %v9295_v41, %v3179_v29  ;;  %v3232_v32 = vsub.f32 %v9296_v20, %v3179_v29  ;;  %v3233_v17 = vsub.f32 %v9297_v0, %v3180_v52  ;;  %v9299_v15 = vld [vmem:[#allocation135_spill] sm:$0xff]  ;;  %4615 = vlog2.f32 %v2959_v56  ;;  %v9309_v0 = vld [vmem:[#allocation148_spill] sm:$0xff] }
 0x43c   : > { %3481 = vst [vmem:[%s7511_s23 + $0x80] sm:$0xff] %v3225_v40  ;;  %3482 = vst [vmem:[%s7511_s23 + $0x88] sm:$0xff] %v3226_v35  ;;  %v3234_v34 = vsub.f32 %v9298_v2, %v3180_v52  ;;  %v3235_v1 = vsub.f32 %v9058_v36, %v3180_v52  ;;  %v3236_v57 = vsub.f32 %v9059_v45, %v3180_v52  ;;  %v9306_v25 = vld [vmem:[#allocation147_spill] sm:$0xff]  ;;  %v9310_v2 = vld [vmem:[#allocation150_spill] sm:$0xff] }
 0x43d   : > { %3483 = vst [vmem:[%s7511_s23 + $0x90] sm:$0xff] %v3227_v39  ;;  %3484 = vst [vmem:[%s7511_s23 + $0x98] sm:$0xff] %v3228_v50  ;;  %v3237_v60 = vsub.f32 %v5919_v53, %v3180_v52  ;;  %v3238_v29 = vsub.f32 %v5932_v59, %v3180_v52  ;;  %v3239_v40 = vsub.f32 %v9299_v15, %v3180_v52  ;;  %v7583_v53 = vmul.f32 0.6931472, %v4604_v61  ;;  %v9304_v61 = vld [vmem:[#allocation139_spill] sm:$0xff]  ;;  %v9314_v56 = vld [vmem:[#allocation144_spill] sm:$0xff] }
 0x43e   : > { %3485 = vst [vmem:[%s7511_s23 + $0xa0] sm:$0xff] %v3229_v38  ;;  %3486 = vst [vmem:[%s7511_s23 + $0xa8] sm:$0xff] %v3230_v63  ;;  %v3240_v23 = vsub.f32 %v5968_v55, %v3180_v52  ;;  %v3181_v36 = vadd.f32 %v3122_v28, %v6988_v30  ;;  %v3182_v45 = vadd.f32 %v3124_v16, %v7008_v26  ;;  %v7585_v59 = vmul.f32 0.6931472, %v4606_v49  ;;  %v9300_v26 = vld [vmem:[#allocation114_spill] sm:$0xff]  ;;  %v9302_v28 = vld [vmem:[#allocation131_spill] sm:$0xff] }
 0x43f   : > { %3487 = vst [vmem:[%s7511_s23 + $0xb0] sm:$0xff] %v3231_v21  ;;  %3488 = vst [vmem:[%s7511_s23 + $0xb8] sm:$0xff] %v3232_v32  ;;  %v7574_v35 = vadd.f32 %v3126_v9, %v7026_v51  ;;  %v7577_v6 = vadd.f32 %v3128_v13, %v7046_v31  ;;  %v7587_v55 = vmul.f32 0.6931472, %v4608_v11  ;;  %v9301_v31 = vld [vmem:[#allocation125_spill] sm:$0xff]  ;;  %v9305_v39 = vld [vmem:[#allocation143_spill] sm:$0xff] }
 0x440   : > { %3489 = vst [vmem:[%s7511_s23 + $0xc0] sm:$0xff] %v3233_v17  ;;  %3490 = vst [vmem:[%s7511_s23 + $0xc8] sm:$0xff] %v3234_v34  ;;  %v3241_v30 = vsub.f32 %v9060_v18, %v3181_v36  ;;  %v3242_v51 = vsub.f32 %v9300_v26, %v3181_v36  ;;  %v3243_v52 = vsub.f32 %v9301_v31, %v3181_v36  ;;  %v9303_v9 = vld [vmem:[#allocation137_spill] sm:$0xff]  ;;  %v9307_v18 = vld [vmem:[#allocation118_spill] sm:$0xff] }
 0x441   : > { %3491 = vst [vmem:[%s7511_s23 + $0xd0] sm:$0xff] %v3235_v1  ;;  %3492 = vst [vmem:[%s7511_s23 + $0xd8] sm:$0xff] %v3236_v57  ;;  %v3244_v16 = vsub.f32 %v9302_v28, %v3181_v36  ;;  %v3245_v13 = vsub.f32 %v9303_v9, %v3181_v36  ;;  %v3246_v49 = vsub.f32 %v9304_v61, %v3181_v36  ;;  %v9308_v38 = vld [vmem:[#allocation119_spill] sm:$0xff]  ;;  %v9312_v1 = vld [vmem:[#allocation129_spill] sm:$0xff] }
 0x442   : > { %3493 = vst [vmem:[%s7511_s23 + $0xe0] sm:$0xff] %v3237_v60  ;;  %3494 = vst [vmem:[%s7511_s23 + $0xe8] sm:$0xff] %v3238_v29  ;;  %v3247_v11 = vsub.f32 %v9305_v39, %v3181_v36  ;;  %v3248_v50 = vsub.f32 %v9306_v25, %v3181_v36  ;;  %v3249_v33 = vsub.f32 %v9307_v18, %v3182_v45  ;;  %v4614_v21 = vpop.eup %4613  ;;  %v9315_v29 = vld [vmem:[#allocation151_spill] sm:$0xff]  ;;  %v2968_v61 = vpop.xlane.xlu1 %2967 }
 0x443   : > { %3495 = vst [vmem:[%s7511_s23 + $0xf0] sm:$0xff] %v3239_v40  ;;  %3496 = vst [vmem:[%s7511_s23 + $0xf8] sm:$0xff] %v3240_v23  ;;  %v3250_v27 = vsub.f32 %v9308_v38, %v3182_v45  ;;  %v3251_v63 = vsub.f32 %v9066_v12, %v3182_v45  ;;  %v3252_v41 = vsub.f32 %v9067_v54, %v3182_v45  ;;  %v9311_v54 = vld [vmem:[#allocation128_spill] sm:$0xff]  ;;  %v9316_v40 = vld [vmem:[#allocation153_spill] sm:$0xff]  ;;  %4617 = vlog2.f32 %v2968_v61 }
 0x444   : > { %3497 = vst [vmem:[%s7511_s23 + $0x100] sm:$0xff] %v3241_v30  ;;  %3498 = vst [vmem:[%s7511_s23 + $0x108] sm:$0xff] %v3242_v51  ;;  %v3253_v20 = vsub.f32 %v5991_v58, %v3182_v45  ;;  %v3254_v32 = vsub.f32 %v6004_v44, %v3182_v45  ;;  %v3255_v17 = vsub.f32 %v9309_v0, %v3182_v45  ;;  %v9313_v44 = vld [vmem:[#allocation138_spill] sm:$0xff]  ;;  %v9317_v36 = vld [vmem:[#allocation159_spill] sm:$0xff] }
 0x445   : > { %3499 = vst [vmem:[%s7511_s23 + $0x110] sm:$0xff] %v3243_v52  ;;  %3500 = vst [vmem:[%s7511_s23 + $0x118] sm:$0xff] %v3244_v16  ;;  %v3256_v34 = vsub.f32 %v9310_v2, %v3182_v45  ;;  %v3257_v12 = vsub.f32 %v9311_v54, %v7574_v35  ;;  %v3258_v58 = vsub.f32 %v9312_v1, %v7574_v35  ;;  %v9318_v30 = vld [vmem:[#allocation163_spill] sm:$0xff]  ;;  %v9319_v51 = vld [vmem:[#allocation132_spill] sm:$0xff]  ;;  %v3138_v2 = vmul.f32 0.6931472, %v7549_v10 }
 0x446   : > { %3501 = vst [vmem:[%s7511_s23 + $0x120] sm:$0xff] %v3245_v13  ;;  %3502 = vst [vmem:[%s7511_s23 + $0x128] sm:$0xff] %v3246_v49  ;;  %v3259_v57 = vsub.f32 %v9313_v44, %v7574_v35  ;;  %v3260_v60 = vsub.f32 %v9314_v56, %v7574_v35  ;;  %v3261_v15 = vsub.f32 %v9315_v29, %v7574_v35  ;;  %v9320_v52 = vld [vmem:[#allocation133_spill] sm:$0xff]  ;;  %v9321_v16 = vld [vmem:[#allocation140_spill] sm:$0xff] }
 0x447   : > { %3503 = vst [vmem:[%s7511_s23 + $0x130] sm:$0xff] %v3247_v11  ;;  %3504 = vst [vmem:[%s7511_s23 + $0x138] sm:$0xff] %v3248_v50  ;;  %v3262_v23 = vsub.f32 %v9316_v40, %v7574_v35  ;;  %v3263_v45 = vsub.f32 %v9317_v36, %v7574_v35  ;;  %v3264_v26 = vsub.f32 %v9318_v30, %v7574_v35  ;;  %v9322_v13 = vld [vmem:[#allocation149_spill] sm:$0xff]  ;;  %v9323_v49 = vld [vmem:[#allocation155_spill] sm:$0xff] }
 0x448   : > { %3505 = vst [vmem:[%s7511_s23 + $0x140] sm:$0xff] %v3249_v33  ;;  %3506 = vst [vmem:[%s7511_s23 + $0x148] sm:$0xff] %v3250_v27  ;;  %v3265_v31 = vsub.f32 %v9319_v51, %v7577_v6  ;;  %v3266_v28 = vsub.f32 %v9320_v52, %v7577_v6  ;;  %v3267_v9 = vsub.f32 %v9321_v16, %v7577_v6  ;;  %v9324_v11 = vld [vmem:[#allocation158_spill] sm:$0xff]  ;;  %v9325_v50 = vld [vmem:[#allocation164_spill] sm:$0xff] }
 0x449   : > { %3507 = vst [vmem:[%s7511_s23 + $0x150] sm:$0xff] %v3251_v63  ;;  %3508 = vst [vmem:[%s7511_s23 + $0x158] sm:$0xff] %v3252_v41  ;;  %v3268_v35 = vsub.f32 %v9322_v13, %v7577_v6  ;;  %v3269_v39 = vsub.f32 %v9323_v49, %v7577_v6  ;;  %v3270_v25 = vsub.f32 %v9324_v11, %v7577_v6  ;;  %v9326_v33 = vld [vmem:[#allocation166_spill] sm:$0xff]  ;;  %v9327_v27 = vld [vmem:[#allocation111_spill] sm:$0xff] }
 0x44a   : > { %3509 = vst [vmem:[%s7511_s23 + $0x160] sm:$0xff] %v3253_v20  ;;  %3510 = vst [vmem:[%s7511_s23 + $0x168] sm:$0xff] %v3254_v32  ;;  %v3271_v18 = vsub.f32 %v9325_v50, %v7577_v6  ;;  %v3272_v38 = vsub.f32 %v9326_v33, %v7577_v6  ;;  %v3185_v63 = vadd.f32 %v7583_v53, %v9327_v27  ;;  %v9328_v41 = vld [vmem:[#allocation122_spill] sm:$0xff]  ;;  %v9329_v32 = vld [vmem:[#allocation113_spill] sm:$0xff]  ;;  %v3136_v6 = vmul.f32 0.6931472, %v7543_v48 }
 0x44b   : > { %3511 = vst [vmem:[%s7511_s23 + $0x170] sm:$0xff] %v3255_v17  ;;  %3512 = vst [vmem:[%s7511_s23 + $0x178] sm:$0xff] %v3256_v34  ;;  %v3186_v20 = vadd.f32 %v7585_v59, %v9328_v41  ;;  %v3187_v0 = vadd.f32 %v7587_v55, %v9329_v32  ;;  %v4616_v17 = vpop.eup %4615  ;;  %v3140_v53 = vmul.f32 0.6931472, %v4614_v21  ;;  %v9330_v34 = vld [vmem:[#allocation141_spill] sm:$0xff]  ;;  %v9331_v54 = vld [vmem:[#allocation142_spill] sm:$0xff] }
 0x44c   : > { %3513 = vst [vmem:[%s7511_s23 + $0x180] sm:$0xff] %v3257_v12  ;;  %3514 = vst [vmem:[%s7511_s23 + $0x188] sm:$0xff] %v3258_v58  ;;  %v3273_v59 = vsub.f32 %v9330_v34, %v3185_v63  ;;  %v3274_v55 = vsub.f32 %v9331_v54, %v3185_v63  ;;  %v9332_v12 = vld [vmem:[#allocation152_spill] sm:$0xff]  ;;  %v9336_v29 = vld [vmem:[#allocation174_spill] sm:$0xff] }
 0x44d   : > { %3515 = vst [vmem:[%s7511_s23 + $0x190] sm:$0xff] %v3259_v57  ;;  %3516 = vst [vmem:[%s7511_s23 + $0x198] sm:$0xff] %v3260_v60  ;;  %v3275_v1 = vsub.f32 %v9332_v12, %v3185_v63  ;;  %v9333_v58 = vld [vmem:[#allocation160_spill] sm:$0xff]  ;;  %v9334_v57 = vld [vmem:[#allocation167_spill] sm:$0xff]  ;;  %v3279_v10 = vsub.f32 %v9336_v29, %v3185_v63 }
 0x44e   : > { %3517 = vst [vmem:[%s7511_s23 + $0x1a0] sm:$0xff] %v3261_v15  ;;  %3518 = vst [vmem:[%s7511_s23 + $0x1a8] sm:$0xff] %v3262_v23  ;;  %v3276_v44 = vsub.f32 %v9333_v58, %v3185_v63  ;;  %v3277_v56 = vsub.f32 %v9334_v57, %v3185_v63  ;;  %v9335_v60 = vld [vmem:[#allocation169_spill] sm:$0xff]  ;;  %v9337_v21 = vld [vmem:[#allocation175_spill] sm:$0xff] }
 0x44f   : > { %3519 = vst [vmem:[%s7511_s23 + $0x1b0] sm:$0xff] %v3263_v45  ;;  %3520 = vst [vmem:[%s7511_s23 + $0x1b8] sm:$0xff] %v3264_v26  ;;  %v3278_v48 = vsub.f32 %v9335_v60, %v3185_v63  ;;  %v3280_v15 = vsub.f32 %v9337_v21, %v3185_v63  ;;  %v9338_v40 = vld [vmem:[#allocation145_spill] sm:$0xff]  ;;  %v9339_v36 = vld [vmem:[#allocation146_spill] sm:$0xff]  ;;  %v2977_v63 = vpop.xlane.xlu0 %2976 }
 0x450   : > { %3521 = vst [vmem:[%s7511_s23 + $0x1c0] sm:$0xff] %v3265_v31  ;;  %3522 = vst [vmem:[%s7511_s23 + $0x1c8] sm:$0xff] %v3266_v28  ;;  %v3281_v23 = vsub.f32 %v9338_v40, %v3186_v20  ;;  %v3282_v45 = vsub.f32 %v9339_v36, %v3186_v20  ;;  %v9340_v30 = vld [vmem:[#allocation154_spill] sm:$0xff]  ;;  %v9341_v51 = vld [vmem:[#allocation165_spill] sm:$0xff]  ;;  %4619 = vlog2.f32 %v2977_v63 }
 0x451   : > { %3523 = vst [vmem:[%s7511_s23 + $0x1d0] sm:$0xff] %v3267_v9  ;;  %3524 = vst [vmem:[%s7511_s23 + $0x1d8] sm:$0xff] %v3268_v35  ;;  %v3283_v26 = vsub.f32 %v9340_v30, %v3186_v20  ;;  %v3284_v31 = vsub.f32 %v9341_v51, %v3186_v20  ;;  %v9342_v52 = vld [vmem:[#allocation171_spill] sm:$0xff]  ;;  %v9343_v16 = vld [vmem:[#allocation173_spill] sm:$0xff] }
 0x452   : > { %3525 = vst [vmem:[%s7511_s23 + $0x1e0] sm:$0xff] %v3269_v39  ;;  %3526 = vst [vmem:[%s7511_s23 + $0x1e8] sm:$0xff] %v3270_v25  ;;  %v3285_v28 = vsub.f32 %v9342_v52, %v3186_v20  ;;  %v3286_v9 = vsub.f32 %v9343_v16, %v3186_v20  ;;  %v9344_v13 = vld [vmem:[#allocation176_spill] sm:$0xff]  ;;  %v9345_v61 = vld [vmem:[#allocation177_spill] sm:$0xff]  ;;  %v2986_v63 = vpop.xlane.xlu1 %2985 }
 0x453   : > { %3527 = vst [vmem:[%s7511_s23 + $0x1f0] sm:$0xff] %v3271_v18  ;;  %3528 = vst [vmem:[%s7511_s23 + $0x1f8] sm:$0xff] %v3272_v38  ;;  %v3287_v35 = vsub.f32 %v9344_v13, %v3186_v20  ;;  %v3288_v49 = vsub.f32 %v9345_v61, %v3186_v20  ;;  %v9346_v39 = vld [vmem:[#allocation156_spill] sm:$0xff]  ;;  %v9347_v25 = vld [vmem:[#allocation157_spill] sm:$0xff]  ;;  %4621 = vlog2.f32 %v2986_v63 }
 0x454   : > { %3529 = vst [vmem:[%s7511_s23 + $0x200] sm:$0xff] %v3273_v59  ;;  %3530 = vst [vmem:[%s7511_s23 + $0x208] sm:$0xff] %v3274_v55  ;;  %v3289_v11 = vsub.f32 %v9346_v39, %v3187_v0  ;;  %v3290_v50 = vsub.f32 %v9347_v25, %v3187_v0  ;;  %v9348_v18 = vld [vmem:[#allocation168_spill] sm:$0xff]  ;;  %v9349_v38 = vld [vmem:[#allocation15_spill] sm:$0xff] }
 0x455   : > { %3531 = vst [vmem:[%s7511_s23 + $0x210] sm:$0xff] %v3275_v1  ;;  %3532 = vst [vmem:[%s7511_s23 + $0x218] sm:$0xff] %v3276_v44  ;;  %v3291_v33 = vsub.f32 %v9348_v18, %v3187_v0  ;;  %v3292_v27 = vsub.f32 %v9349_v38, %v3187_v0  ;;  %v9350_v41 = vld [vmem:[#allocation178_spill] sm:$0xff]  ;;  %v9351_v32 = vld [vmem:[#allocation179_spill] sm:$0xff] }
 0x456   : > { %3533 = vst [vmem:[%s7511_s23 + $0x220] sm:$0xff] %v3277_v56  ;;  %3534 = vst [vmem:[%s7511_s23 + $0x228] sm:$0xff] %v3278_v48  ;;  %v3293_v20 = vsub.f32 %v9350_v41, %v3187_v0  ;;  %v3294_v34 = vsub.f32 %v9351_v32, %v3187_v0  ;;  %v9352_v59 = vld [vmem:[#allocation182_spill] sm:$0xff]  ;;  %v9353_v55 = vld [vmem:[#allocation183_spill] sm:$0xff]  ;;  %v3142_v48 = vmul.f32 0.6931472, %v4616_v17 }
 0x457   : > { %3535 = vst [vmem:[%s7511_s23 + $0x230] sm:$0xff] %v3279_v10  ;;  %3536 = vst [vmem:[%s7511_s23 + $0x238] sm:$0xff] %v3280_v15  ;;  %v3295_v54 = vsub.f32 %v9352_v59, %v3187_v0  ;;  %v3296_v12 = vsub.f32 %v9353_v55, %v3187_v0  ;;  %v9354_v1 = vld [vmem:[#allocation127_spill] sm:$0xff]  ;;  %v9355_v44 = vld [vmem:[#allocation136_spill] sm:$0xff] }
 0x458   : > { %3537 = vst [vmem:[%s7511_s23 + $0x240] sm:$0xff] %v3281_v23  ;;  %3538 = vst [vmem:[%s7511_s23 + $0x248] sm:$0xff] %v3282_v45  ;;  %v3188_v58 = vadd.f32 %v3136_v6, %v9354_v1  ;;  %v3189_v57 = vadd.f32 %v3138_v2, %v9355_v44  ;;  %v9356_v56 = vld [vmem:[#allocation265_spill] sm:$0xff]  ;;  %v9358_v10 = vld [vmem:[#allocation162_spill] sm:$0xff]  ;;  %v4618_v23 = vpop.eup %4617 }
 0x459   : > { %3539 = vst [vmem:[%s7511_s23 + $0x250] sm:$0xff] %v3283_v26  ;;  %3540 = vst [vmem:[%s7511_s23 + $0x258] sm:$0xff] %v3284_v31  ;;  %v3190_v60 = vadd.f32 %v3140_v53, %v9356_v56  ;;  %v9357_v0 = vld [vmem:[#allocation161_spill] sm:$0xff]  ;;  %v9359_v15 = vld [vmem:[#allocation170_spill] sm:$0xff] }
 0x45a   : > { %3541 = vst [vmem:[%s7511_s23 + $0x260] sm:$0xff] %v3285_v28  ;;  %3542 = vst [vmem:[%s7511_s23 + $0x268] sm:$0xff] %v3286_v9  ;;  %v3297_v29 = vsub.f32 %v9357_v0, %v3188_v58  ;;  %v3298_v21 = vsub.f32 %v9358_v10, %v3188_v58  ;;  %v3299_v6 = vsub.f32 %v9359_v15, %v3188_v58  ;;  %v9360_v2 = vld [vmem:[#allocation16_spill] sm:$0xff]  ;;  %v9362_v30 = vld [vmem:[#allocation181_spill] sm:$0xff] }
 0x45b   : > { %3543 = vst [vmem:[%s7511_s23 + $0x270] sm:$0xff] %v3287_v35  ;;  %3544 = vst [vmem:[%s7511_s23 + $0x278] sm:$0xff] %v3288_v49  ;;  %v3300_v40 = vsub.f32 %v9360_v2, %v3188_v58  ;;  %v9361_v36 = vld [vmem:[#allocation180_spill] sm:$0xff]  ;;  %v3302_v26 = vsub.f32 %v9362_v30, %v3188_v58  ;;  %v9364_v51 = vld [vmem:[#allocation185_spill] sm:$0xff] }
 0x45c   : > { %3545 = vst [vmem:[%s7511_s23 + $0x280] sm:$0xff] %v3289_v11  ;;  %3546 = vst [vmem:[%s7511_s23 + $0x288] sm:$0xff] %v3290_v50  ;;  %v3301_v45 = vsub.f32 %v9361_v36, %v3188_v58  ;;  %v9363_v53 = vld [vmem:[#allocation184_spill] sm:$0xff]  ;;  %v3304_v31 = vsub.f32 %v9364_v51, %v3188_v58  ;;  %v9366_v16 = vld [vmem:[#allocation18_spill] sm:$0xff] }
 0x45d   : > { %3547 = vst [vmem:[%s7511_s23 + $0x290] sm:$0xff] %v3291_v33  ;;  %3548 = vst [vmem:[%s7511_s23 + $0x298] sm:$0xff] %v3292_v27  ;;  %v3303_v17 = vsub.f32 %v9363_v53, %v3188_v58  ;;  %v9365_v52 = vld [vmem:[#allocation172_spill] sm:$0xff]  ;;  %v3306_v9 = vsub.f32 %v9366_v16, %v3189_v57  ;;  %v9367_v13 = vld [vmem:[#allocation17_spill] sm:$0xff] }
 0x45e   : > { %3549 = vst [vmem:[%s7511_s23 + $0x2a0] sm:$0xff] %v3293_v20  ;;  %3550 = vst [vmem:[%s7511_s23 + $0x2a8] sm:$0xff] %v3294_v34  ;;  %v3305_v28 = vsub.f32 %v9365_v52, %v3189_v57  ;;  %v3307_v35 = vsub.f32 %v9367_v13, %v3189_v57  ;;  %v9368_v61 = vld [vmem:[#allocation19_spill] sm:$0xff]  ;;  %v9369_v39 = vld [vmem:[#allocation186_spill] sm:$0xff] }
 0x45f   : > { %3551 = vst [vmem:[%s7511_s23 + $0x2b0] sm:$0xff] %v3295_v54  ;;  %3552 = vst [vmem:[%s7511_s23 + $0x2b8] sm:$0xff] %v3296_v12  ;;  %v3308_v49 = vsub.f32 %v9368_v61, %v3189_v57  ;;  %v3309_v11 = vsub.f32 %v9369_v39, %v3189_v57  ;;  %v9370_v25 = vld [vmem:[#allocation187_spill] sm:$0xff]  ;;  %v9371_v18 = vld [vmem:[#allocation190_spill] sm:$0xff] }
 0x460   : > { %3553 = vst [vmem:[%s7511_s23 + $0x2c0] sm:$0xff] %v3297_v29  ;;  %3554 = vst [vmem:[%s7511_s23 + $0x2c8] sm:$0xff] %v3298_v21  ;;  %v3310_v50 = vsub.f32 %v9370_v25, %v3189_v57  ;;  %v3311_v33 = vsub.f32 %v9371_v18, %v3189_v57  ;;  %v9372_v38 = vld [vmem:[#allocation191_spill] sm:$0xff]  ;;  %v9373_v41 = vld [vmem:[#allocation20_spill] sm:$0xff] }
 0x461   : > { %3555 = vst [vmem:[%s7511_s23 + $0x2d0] sm:$0xff] %v3299_v6  ;;  %3556 = vst [vmem:[%s7511_s23 + $0x2d8] sm:$0xff] %v3300_v40  ;;  %v3312_v27 = vsub.f32 %v9372_v38, %v3189_v57  ;;  %v3313_v20 = vsub.f32 %v9373_v41, %v3190_v60  ;;  %v9374_v32 = vld [vmem:[#allocation22_spill] sm:$0xff]  ;;  %v9375_v59 = vld [vmem:[#allocation21_spill] sm:$0xff]  ;;  %v3144_v6 = vmul.f32 0.6931472, %v4618_v23  ;;  %v4620_v23 = vpop.eup %4619 }
 0x462   : > { %3557 = vst [vmem:[%s7511_s23 + $0x2e0] sm:$0xff] %v3301_v45  ;;  %3558 = vst [vmem:[%s7511_s23 + $0x2e8] sm:$0xff] %v3302_v26  ;;  %v3314_v34 = vsub.f32 %v9374_v32, %v3190_v60  ;;  %v3315_v54 = vsub.f32 %v9375_v59, %v3190_v60  ;;  %v9376_v55 = vld [vmem:[#allocation23_spill] sm:$0xff]  ;;  %v9377_v1 = vld [vmem:[#allocation188_spill] sm:$0xff]  ;;  %v3146_v61 = vmul.f32 0.6931472, %v4620_v23  ;;  %v3004_v23 = vpop.xlane.xlu1 %3003 }
 0x463   : > { %3559 = vst [vmem:[%s7511_s23 + $0x2f0] sm:$0xff] %v3303_v17  ;;  %3560 = vst [vmem:[%s7511_s23 + $0x2f8] sm:$0xff] %v3304_v31  ;;  %v3316_v12 = vsub.f32 %v9376_v55, %v3190_v60  ;;  %v3317_v58 = vsub.f32 %v9377_v1, %v3190_v60  ;;  %v9378_v44 = vld [vmem:[#allocation189_spill] sm:$0xff]  ;;  %v9379_v56 = vld [vmem:[#allocation192_spill] sm:$0xff] }
 0x464   : > { %3561 = vst [vmem:[%s7511_s23 + $0x300] sm:$0xff] %v3305_v28  ;;  %3562 = vst [vmem:[%s7511_s23 + $0x308] sm:$0xff] %v3306_v9  ;;  %v3318_v57 = vsub.f32 %v9378_v44, %v3190_v60  ;;  %v3319_v0 = vsub.f32 %v9379_v56, %v3190_v60  ;;  %v9380_v29 = vld [vmem:[#allocation193_spill] sm:$0xff]  ;;  %v9381_v21 = vld [vmem:[#allocation266_spill] sm:$0xff] }
 0x465   : > { %3563 = vst [vmem:[%s7511_s23 + $0x310] sm:$0xff] %v3307_v35  ;;  %3564 = vst [vmem:[%s7511_s23 + $0x318] sm:$0xff] %v3308_v49  ;;  %v3320_v10 = vsub.f32 %v9380_v29, %v3190_v60  ;;  %v3191_v15 = vadd.f32 %v3142_v48, %v9381_v21  ;;  %v9382_v2 = vld [vmem:[#allocation24_spill] sm:$0xff]  ;;  %v9383_v36 = vld [vmem:[#allocation26_spill] sm:$0xff]  ;;  %v2995_v49 = vpop.xlane.xlu0 %2994 }
 0x466   : > { %3565 = vst [vmem:[%s7511_s23 + $0x320] sm:$0xff] %v3309_v11  ;;  %3566 = vst [vmem:[%s7511_s23 + $0x328] sm:$0xff] %v3310_v50  ;;  %v9384_v45 = vld [vmem:[#allocation25_spill] sm:$0xff]  ;;  %v9385_v26 = vld [vmem:[#allocation27_spill] sm:$0xff]  ;;  %4623 = vlog2.f32 %v2995_v49 }
 0x467   : > { %3567 = vst [vmem:[%s7511_s23 + $0x330] sm:$0xff] %v3311_v33  ;;  %3568 = vst [vmem:[%s7511_s23 + $0x338] sm:$0xff] %v3312_v27  ;;  %v3321_v40 = vsub.f32 %v9382_v2, %v3191_v15  ;;  %v3322_v60 = vsub.f32 %v9383_v36, %v3191_v15  ;;  %v3323_v30 = vsub.f32 %v9384_v45, %v3191_v15  ;;  %v9386_v53 = vld [vmem:[#allocation194_spill] sm:$0xff]  ;;  %v9387_v51 = vld [vmem:[#allocation195_spill] sm:$0xff]  ;;  %4625 = vlog2.f32 %v3004_v23 }
 0x468   : > { %3569 = vst [vmem:[%s7511_s23 + $0x340] sm:$0xff] %v3313_v20  ;;  %3570 = vst [vmem:[%s7511_s23 + $0x348] sm:$0xff] %v3314_v34  ;;  %v3324_v48 = vsub.f32 %v9385_v26, %v3191_v15  ;;  %v3325_v17 = vsub.f32 %v9386_v53, %v3191_v15  ;;  %v3326_v31 = vsub.f32 %v9387_v51, %v3191_v15  ;;  %v9388_v52 = vld [vmem:[#allocation198_spill] sm:$0xff]  ;;  %v9389_v16 = vld [vmem:[#allocation199_spill] sm:$0xff] }
 0x469   : > { %3571 = vst [vmem:[%s7511_s23 + $0x350] sm:$0xff] %v3315_v54  ;;  %3572 = vst [vmem:[%s7511_s23 + $0x358] sm:$0xff] %v3316_v12  ;;  %v3327_v28 = vsub.f32 %v9388_v52, %v3191_v15  ;;  %v3328_v9 = vsub.f32 %v9389_v16, %v3191_v15  ;;  %v9390_v13 = vld [vmem:[#allocation267_spill] sm:$0xff]  ;;  %v9391_v39 = vld [vmem:[#allocation28_spill] sm:$0xff] }
 0x46a   : > { %3573 = vst [vmem:[%s7511_s23 + $0x360] sm:$0xff] %v3317_v58  ;;  %3574 = vst [vmem:[%s7511_s23 + $0x368] sm:$0xff] %v3318_v57  ;;  %v3192_v35 = vadd.f32 %v3144_v6, %v9390_v13  ;;  %v9392_v25 = vld [vmem:[#allocation30_spill] sm:$0xff]  ;;  %v9393_v18 = vld [vmem:[#allocation29_spill] sm:$0xff]  ;;  %v4622_v58 = vpop.eup %4621 }
 0x46b   : > { %3575 = vst [vmem:[%s7511_s23 + $0x370] sm:$0xff] %v3319_v0  ;;  %3576 = vst [vmem:[%s7511_s23 + $0x378] sm:$0xff] %v3320_v10  ;;  %v9394_v38 = vld [vmem:[#allocation31_spill] sm:$0xff]  ;;  %v9395_v63 = vld [vmem:[#allocation196_spill] sm:$0xff] }
 0x46c   : > { %3577 = vst [vmem:[%s7511_s23 + $0x380] sm:$0xff] %v3321_v40  ;;  %3578 = vst [vmem:[%s7511_s23 + $0x388] sm:$0xff] %v3322_v60  ;;  %v3329_v11 = vsub.f32 %v9391_v39, %v3192_v35  ;;  %v3330_v50 = vsub.f32 %v9392_v25, %v3192_v35  ;;  %v3331_v33 = vsub.f32 %v9393_v18, %v3192_v35  ;;  %v9396_v20 = vld [vmem:[#allocation197_spill] sm:$0xff]  ;;  %v9397_v34 = vld [vmem:[#allocation200_spill] sm:$0xff] }
 0x46d   : > { %3579 = vst [vmem:[%s7511_s23 + $0x390] sm:$0xff] %v3323_v30  ;;  %3580 = vst [vmem:[%s7511_s23 + $0x398] sm:$0xff] %v3324_v48  ;;  %v3332_v27 = vsub.f32 %v9394_v38, %v3192_v35  ;;  %v3333_v41 = vsub.f32 %v9395_v63, %v3192_v35  ;;  %v3334_v32 = vsub.f32 %v9396_v20, %v3192_v35  ;;  %v9398_v54 = vld [vmem:[#allocation201_spill] sm:$0xff]  ;;  %v9399_v12 = vld [vmem:[#allocation268_spill] sm:$0xff]  ;;  %v3148_v48 = vmul.f32 0.6931472, %v4622_v58  ;;  %v3013_v20 = vpop.xlane.xlu0 %3012 }
 0x46e   : > { %3581 = vst [vmem:[%s7511_s23 + $0x3a0] sm:$0xff] %v3325_v17  ;;  %3582 = vst [vmem:[%s7511_s23 + $0x3a8] sm:$0xff] %v3326_v31  ;;  %v3335_v59 = vsub.f32 %v9397_v34, %v3192_v35  ;;  %v3336_v55 = vsub.f32 %v9398_v54, %v3192_v35  ;;  %v3193_v1 = vadd.f32 %v3146_v61, %v9399_v12  ;;  %v9400_v44 = vld [vmem:[#allocation32_spill] sm:$0xff]  ;;  %v9401_v56 = vld [vmem:[#allocation34_spill] sm:$0xff]  ;;  %4627 = vlog2.f32 %v3013_v20 }
 0x46f   : > { %3583 = vst [vmem:[%s7511_s23 + $0x3b0] sm:$0xff] %v3327_v28  ;;  %3584 = vst [vmem:[%s7511_s23 + $0x3b8] sm:$0xff] %v3328_v9  ;;  %v9402_v29 = vld [vmem:[#allocation33_spill] sm:$0xff]  ;;  %v9403_v21 = vld [vmem:[#allocation35_spill] sm:$0xff] }
 0x470   : > { %3585 = vst [vmem:[%s7511_s23 + $0x3c0] sm:$0xff] %v3329_v11  ;;  %3586 = vst [vmem:[%s7511_s23 + $0x3c8] sm:$0xff] %v3330_v50  ;;  %v3337_v57 = vsub.f32 %v9400_v44, %v3193_v1  ;;  %v3338_v0 = vsub.f32 %v9401_v56, %v3193_v1  ;;  %v3339_v10 = vsub.f32 %v9402_v29, %v3193_v1  ;;  %v9404_v6 = vld [vmem:[#allocation202_spill] sm:$0xff]  ;;  %v9405_v40 = vld [vmem:[#allocation203_spill] sm:$0xff]  ;;  %v4624_v51 = vpop.eup %4623 }
 0x471   : > { %3587 = vst [vmem:[%s7511_s23 + $0x3d0] sm:$0xff] %v3331_v33  ;;  %3588 = vst [vmem:[%s7511_s23 + $0x3d8] sm:$0xff] %v3332_v27  ;;  %v3340_v15 = vsub.f32 %v9403_v21, %v3193_v1  ;;  %v3341_v2 = vsub.f32 %v9404_v6, %v3193_v1  ;;  %v3342_v36 = vsub.f32 %v9405_v40, %v3193_v1  ;;  %v9406_v60 = vld [vmem:[#allocation206_spill] sm:$0xff]  ;;  %v9407_v30 = vld [vmem:[#allocation207_spill] sm:$0xff]  ;;  %v3150_v27 = vmul.f32 0.6931472, %v4624_v51  ;;  %v4626_v44 = vpop.eup %4625 }
 0x472   : > { %3589 = vst [vmem:[%s7511_s23 + $0x3e0] sm:$0xff] %v3333_v41  ;;  %3590 = vst [vmem:[%s7511_s23 + $0x3e8] sm:$0xff] %v3334_v32  ;;  %v3343_v45 = vsub.f32 %v9406_v60, %v3193_v1  ;;  %v3344_v26 = vsub.f32 %v9407_v30, %v3193_v1  ;;  %v9408_v53 = vld [vmem:[#allocation269_spill] sm:$0xff]  ;;  %v9409_v31 = vld [vmem:[#allocation36_spill] sm:$0xff]  ;;  %v3022_v51 = vpop.xlane.xlu1 %3021 }
 0x473   : > { %3591 = vst [vmem:[%s7511_s23 + $0x3f0] sm:$0xff] %v3335_v59  ;;  %3592 = vst [vmem:[%s7511_s23 + $0x3f8] sm:$0xff] %v3336_v55  ;;  %v3194_v17 = vadd.f32 %v3148_v48, %v9408_v53  ;;  %v9410_v28 = vld [vmem:[#allocation38_spill] sm:$0xff]  ;;  %v9411_v9 = vld [vmem:[#allocation37_spill] sm:$0xff]  ;;  %4629 = vlog2.f32 %v3022_v51 }
 0x474   : > { %3593 = vst [vmem:[%s7511_s23 + $0x400] sm:$0xff] %v3337_v57  ;;  %3594 = vst [vmem:[%s7511_s23 + $0x408] sm:$0xff] %v3338_v0  ;;  %v9412_v35 = vld [vmem:[#allocation39_spill] sm:$0xff]  ;;  %v9413_v49 = vld [vmem:[#allocation204_spill] sm:$0xff] }
 0x475   : > { %3595 = vst [vmem:[%s7511_s23 + $0x410] sm:$0xff] %v3339_v10  ;;  %3596 = vst [vmem:[%s7511_s23 + $0x418] sm:$0xff] %v3340_v15  ;;  %v3345_v52 = vsub.f32 %v9409_v31, %v3194_v17  ;;  %v3346_v16 = vsub.f32 %v9410_v28, %v3194_v17  ;;  %v3347_v13 = vsub.f32 %v9411_v9, %v3194_v17  ;;  %v9414_v11 = vld [vmem:[#allocation205_spill] sm:$0xff]  ;;  %v9415_v50 = vld [vmem:[#allocation208_spill] sm:$0xff] }
 0x476   : > { %3597 = vst [vmem:[%s7511_s23 + $0x420] sm:$0xff] %v3341_v2  ;;  %3598 = vst [vmem:[%s7511_s23 + $0x428] sm:$0xff] %v3342_v36  ;;  %v3348_v61 = vsub.f32 %v9412_v35, %v3194_v17  ;;  %v3349_v39 = vsub.f32 %v9413_v49, %v3194_v17  ;;  %v3350_v25 = vsub.f32 %v9414_v11, %v3194_v17  ;;  %v9416_v33 = vld [vmem:[#allocation209_spill] sm:$0xff]  ;;  %v9417_v63 = vld [vmem:[#allocation270_spill] sm:$0xff]  ;;  %v3152_v2 = vmul.f32 0.6931472, %v4626_v44 }
 0x477   : > { %3599 = vst [vmem:[%s7511_s23 + $0x430] sm:$0xff] %v3343_v45  ;;  %3600 = vst [vmem:[%s7511_s23 + $0x438] sm:$0xff] %v3344_v26  ;;  %v3351_v18 = vsub.f32 %v9415_v50, %v3194_v17  ;;  %v3352_v38 = vsub.f32 %v9416_v33, %v3194_v17  ;;  %v3195_v41 = vadd.f32 %v3150_v27, %v9417_v63  ;;  %v9418_v32 = vld [vmem:[#allocation40_spill] sm:$0xff]  ;;  %v9419_v59 = vld [vmem:[#allocation42_spill] sm:$0xff] }
 0x478   : > { %3601 = vst [vmem:[%s7511_s23 + $0x440] sm:$0xff] %v3345_v52  ;;  %3602 = vst [vmem:[%s7511_s23 + $0x448] sm:$0xff] %v3346_v16  ;;  %v9420_v55 = vld [vmem:[#allocation41_spill] sm:$0xff]  ;;  %v9421_v1 = vld [vmem:[#allocation43_spill] sm:$0xff]  ;;  %v4628_v49 = vpop.eup %4627 }
 0x479   : > { %3603 = vst [vmem:[%s7511_s23 + $0x450] sm:$0xff] %v3347_v13  ;;  %3604 = vst [vmem:[%s7511_s23 + $0x458] sm:$0xff] %v3348_v61  ;;  %v3353_v34 = vsub.f32 %v9418_v32, %v3195_v41  ;;  %v3354_v54 = vsub.f32 %v9419_v59, %v3195_v41  ;;  %v3355_v12 = vsub.f32 %v9420_v55, %v3195_v41  ;;  %v9422_v57 = vld [vmem:[#allocation210_spill] sm:$0xff]  ;;  %v9423_v0 = vld [vmem:[#allocation211_spill] sm:$0xff] }
 0x47a   : > { %3605 = vst [vmem:[%s7511_s23 + $0x460] sm:$0xff] %v3349_v39  ;;  %3606 = vst [vmem:[%s7511_s23 + $0x468] sm:$0xff] %v3350_v25  ;;  %v3356_v58 = vsub.f32 %v9421_v1, %v3195_v41  ;;  %v3357_v56 = vsub.f32 %v9422_v57, %v3195_v41  ;;  %v3358_v29 = vsub.f32 %v9423_v0, %v3195_v41  ;;  %v9424_v10 = vld [vmem:[#allocation214_spill] sm:$0xff]  ;;  %v9425_v15 = vld [vmem:[#allocation215_spill] sm:$0xff]  ;;  %v3154_v39 = vmul.f32 0.6931472, %v4628_v49  ;;  %v3031_v32 = vpop.xlane.xlu0 %3030 }
 0x47b   : > { %3607 = vst [vmem:[%s7511_s23 + $0x470] sm:$0xff] %v3351_v18  ;;  %3608 = vst [vmem:[%s7511_s23 + $0x478] sm:$0xff] %v3352_v38  ;;  %v3359_v21 = vsub.f32 %v9424_v10, %v3195_v41  ;;  %v3360_v6 = vsub.f32 %v9425_v15, %v3195_v41  ;;  %v9426_v40 = vld [vmem:[#allocation271_spill] sm:$0xff]  ;;  %v9427_v60 = vld [vmem:[#allocation44_spill] sm:$0xff]  ;;  %4631 = vlog2.f32 %v3031_v32 }
 0x47c   : > { %3609 = vst [vmem:[%s7511_s23 + $0x480] sm:$0xff] %v3353_v34  ;;  %3610 = vst [vmem:[%s7511_s23 + $0x488] sm:$0xff] %v3354_v54  ;;  %v3196_v36 = vadd.f32 %v3152_v2, %v9426_v40  ;;  %v9428_v30 = vld [vmem:[#allocation46_spill] sm:$0xff]  ;;  %v9429_v48 = vld [vmem:[#allocation45_spill] sm:$0xff] }
 0x47d   : > { %3611 = vst [vmem:[%s7511_s23 + $0x490] sm:$0xff] %v3355_v12  ;;  %3612 = vst [vmem:[%s7511_s23 + $0x498] sm:$0xff] %v3356_v58  ;;  %v9430_v53 = vld [vmem:[#allocation47_spill] sm:$0xff]  ;;  %v9431_v31 = vld [vmem:[#allocation212_spill] sm:$0xff]  ;;  %v4630_v57 = vpop.eup %4629 }
 0x47e   : > { %3613 = vst [vmem:[%s7511_s23 + $0x4a0] sm:$0xff] %v3357_v56  ;;  %3614 = vst [vmem:[%s7511_s23 + $0x4a8] sm:$0xff] %v3358_v29  ;;  %v3361_v45 = vsub.f32 %v9427_v60, %v3196_v36  ;;  %v3362_v26 = vsub.f32 %v9428_v30, %v3196_v36  ;;  %v3363_v23 = vsub.f32 %v9429_v48, %v3196_v36  ;;  %v9432_v28 = vld [vmem:[#allocation213_spill] sm:$0xff]  ;;  %v9433_v9 = vld [vmem:[#allocation216_spill] sm:$0xff]  ;;  %v3156_v56 = vmul.f32 0.6931472, %v4630_v57 }
 0x47f   : > { %3615 = vst [vmem:[%s7511_s23 + $0x4b0] sm:$0xff] %v3359_v21  ;;  %3616 = vst [vmem:[%s7511_s23 + $0x4b8] sm:$0xff] %v3360_v6  ;;  %v3364_v17 = vsub.f32 %v9430_v53, %v3196_v36  ;;  %v3365_v52 = vsub.f32 %v9431_v31, %v3196_v36  ;;  %v3366_v16 = vsub.f32 %v9432_v28, %v3196_v36  ;;  %v9434_v35 = vld [vmem:[#allocation217_spill] sm:$0xff]  ;;  %v9435_v11 = vld [vmem:[#allocation272_spill] sm:$0xff] }
 0x480   : > { %v3367_v13 = vsub.f32 %v9433_v9, %v3196_v36  ;;  %v3368_v61 = vsub.f32 %v9434_v35, %v3196_v36  ;;  %3617 = vst [vmem:[%s7511_s23 + $0x4c0] sm:$0xff] %v3361_v45  ;;  %3618 = vst [vmem:[%s7511_s23 + $0x4c8] sm:$0xff] %v3362_v26  ;;  %v3197_v25 = vadd.f32 %v3154_v39, %v9435_v11  ;;  %v9436_v50 = vld [vmem:[#allocation48_spill] sm:$0xff]  ;;  %v9437_v33 = vld [vmem:[#allocation50_spill] sm:$0xff] }
 0x481   : > { %3619 = vst [vmem:[%s7511_s23 + $0x4d0] sm:$0xff] %v3363_v23  ;;  %3620 = vst [vmem:[%s7511_s23 + $0x4d8] sm:$0xff] %v3364_v17  ;;  %v9438_v27 = vld [vmem:[#allocation49_spill] sm:$0xff]  ;;  %v9439_v41 = vld [vmem:[#allocation51_spill] sm:$0xff] }
 0x482   : > { %3621 = vst [vmem:[%s7511_s23 + $0x4e0] sm:$0xff] %v3365_v52  ;;  %3622 = vst [vmem:[%s7511_s23 + $0x4e8] sm:$0xff] %v3366_v16  ;;  %v3369_v18 = vsub.f32 %v9436_v50, %v3197_v25  ;;  %v3370_v38 = vsub.f32 %v9437_v33, %v3197_v25  ;;  %v3371_v63 = vsub.f32 %v9438_v27, %v3197_v25  ;;  %v9440_v34 = vld [vmem:[#allocation218_spill] sm:$0xff]  ;;  %v9441_v54 = vld [vmem:[#allocation219_spill] sm:$0xff]  ;;  %v3040_v10 = vpop.xlane.xlu1 %3039 }
 0x483   : > { %3623 = vst [vmem:[%s7511_s23 + $0x4f0] sm:$0xff] %v3367_v13  ;;  %3624 = vst [vmem:[%s7511_s23 + $0x4f8] sm:$0xff] %v3368_v61  ;;  %v3372_v20 = vsub.f32 %v9439_v41, %v3197_v25  ;;  %v3373_v59 = vsub.f32 %v9440_v34, %v3197_v25  ;;  %v3374_v55 = vsub.f32 %v9441_v54, %v3197_v25  ;;  %v9442_v12 = vld [vmem:[#allocation222_spill] sm:$0xff]  ;;  %v9443_v58 = vld [vmem:[#allocation223_spill] sm:$0xff]  ;;  %4633 = vlog2.f32 %v3040_v10 }
 0x484   : > { %v3375_v1 = vsub.f32 %v9442_v12, %v3197_v25  ;;  %v3376_v44 = vsub.f32 %v9443_v58, %v3197_v25  ;;  %3625 = vst [vmem:[%s7511_s23 + $0x500] sm:$0xff] %v3369_v18  ;;  %3626 = vst [vmem:[%s7511_s23 + $0x508] sm:$0xff] %v3370_v38  ;;  %v9444_v0 = vld [vmem:[#allocation273_spill] sm:$0xff]  ;;  %v9445_v21 = vld [vmem:[#allocation52_spill] sm:$0xff] }
 0x485   : > { %3627 = vst [vmem:[%s7511_s23 + $0x510] sm:$0xff] %v3371_v63  ;;  %3628 = vst [vmem:[%s7511_s23 + $0x518] sm:$0xff] %v3372_v20  ;;  %v3198_v29 = vadd.f32 %v3156_v56, %v9444_v0  ;;  %v9446_v6 = vld [vmem:[#allocation54_spill] sm:$0xff]  ;;  %v9447_v40 = vld [vmem:[#allocation53_spill] sm:$0xff]  ;;  %v4632_v52 = vpop.eup %4631 }
 0x486   : > { %3629 = vst [vmem:[%s7511_s23 + $0x520] sm:$0xff] %v3373_v59  ;;  %3630 = vst [vmem:[%s7511_s23 + $0x528] sm:$0xff] %v3374_v55  ;;  %v9448_v60 = vld [vmem:[#allocation55_spill] sm:$0xff]  ;;  %v9449_v30 = vld [vmem:[#allocation220_spill] sm:$0xff]  ;;  %v3158_v28 = vmul.f32 0.6931472, %v4632_v52 }
 0x487   : > { %3631 = vst [vmem:[%s7511_s23 + $0x530] sm:$0xff] %v3375_v1  ;;  %3632 = vst [vmem:[%s7511_s23 + $0x538] sm:$0xff] %v3376_v44  ;;  %v3377_v15 = vsub.f32 %v9445_v21, %v3198_v29  ;;  %v3378_v2 = vsub.f32 %v9446_v6, %v3198_v29  ;;  %v3379_v36 = vsub.f32 %v9447_v40, %v3198_v29  ;;  %v9450_v48 = vld [vmem:[#allocation221_spill] sm:$0xff]  ;;  %v9451_v53 = vld [vmem:[#allocation224_spill] sm:$0xff] }
 0x488   : > { %v3380_v45 = vsub.f32 %v9448_v60, %v3198_v29  ;;  %v3381_v26 = vsub.f32 %v9449_v30, %v3198_v29  ;;  %v3382_v23 = vsub.f32 %v9450_v48, %v3198_v29  ;;  %v3383_v17 = vsub.f32 %v9451_v53, %v3198_v29  ;;  %v9452_v51 = vld [vmem:[#allocation225_spill] sm:$0xff]  ;;  %v9453_v16 = vld [vmem:[#allocation274_spill] sm:$0xff]  ;;  %v9454_v35 = vld [vmem:[#allocation56_spill] sm:$0xff] }
 0x489   : > { %v3384_v31 = vsub.f32 %v9452_v51, %v3198_v29  ;;  %3633 = vst [vmem:[%s7511_s23 + $0x540] sm:$0xff] %v3377_v15  ;;  %3634 = vst [vmem:[%s7511_s23 + $0x548] sm:$0xff] %v3378_v2  ;;  %v3199_v9 = vadd.f32 %v3158_v28, %v9453_v16  ;;  %v9455_v49 = vld [vmem:[#allocation58_spill] sm:$0xff]  ;;  %v9456_v11 = vld [vmem:[#allocation57_spill] sm:$0xff] }
 0x48a   : > { %3635 = vst [vmem:[%s7511_s23 + $0x550] sm:$0xff] %v3379_v36  ;;  %3636 = vst [vmem:[%s7511_s23 + $0x558] sm:$0xff] %v3380_v45  ;;  %v3049_v13 = vpop.xlane.xlu0 %3048  ;;  %v9457_v50 = vld [vmem:[#allocation59_spill] sm:$0xff]  ;;  %v9458_v33 = vld [vmem:[#allocation226_spill] sm:$0xff] }
 0x48b   : > { %3637 = vst [vmem:[%s7511_s23 + $0x560] sm:$0xff] %v3381_v26  ;;  %3638 = vst [vmem:[%s7511_s23 + $0x568] sm:$0xff] %v3382_v23  ;;  %v3385_v61 = vsub.f32 %v9454_v35, %v3199_v9  ;;  %v3386_v39 = vsub.f32 %v9455_v49, %v3199_v9  ;;  %v3387_v25 = vsub.f32 %v9456_v11, %v3199_v9  ;;  %v9459_v27 = vld [vmem:[#allocation227_spill] sm:$0xff]  ;;  %v9460_v41 = vld [vmem:[#allocation230_spill] sm:$0xff]  ;;  %4635 = vlog2.f32 %v3049_v13 }
 0x48c   : > { %3639 = vst [vmem:[%s7511_s23 + $0x570] sm:$0xff] %v3383_v17  ;;  %3640 = vst [vmem:[%s7511_s23 + $0x578] sm:$0xff] %v3384_v31  ;;  %v3388_v18 = vsub.f32 %v9457_v50, %v3199_v9  ;;  %v3389_v38 = vsub.f32 %v9458_v33, %v3199_v9  ;;  %v3390_v63 = vsub.f32 %v9459_v27, %v3199_v9  ;;  %v9461_v32 = vld [vmem:[#allocation231_spill] sm:$0xff]  ;;  %v9463_v58 = vld [vmem:[#allocation60_spill] sm:$0xff] }
 0x48d   : > { %v3391_v20 = vsub.f32 %v9460_v41, %v3199_v9  ;;  %v3392_v34 = vsub.f32 %v9461_v32, %v3199_v9  ;;  %3641 = vst [vmem:[%s7511_s23 + $0x580] sm:$0xff] %v3385_v61  ;;  %3642 = vst [vmem:[%s7511_s23 + $0x588] sm:$0xff] %v3386_v39  ;;  %v4634_v59 = vpop.eup %4633  ;;  %v9462_v55 = vld [vmem:[#allocation275_spill] sm:$0xff]  ;;  %v9464_v57 = vld [vmem:[#allocation62_spill] sm:$0xff] }
 0x48e   : > { %3643 = vst [vmem:[%s7511_s23 + $0x590] sm:$0xff] %v3387_v25  ;;  %3644 = vst [vmem:[%s7511_s23 + $0x598] sm:$0xff] %v3388_v18  ;;  %v3160_v54 = vmul.f32 0.6931472, %v4634_v59  ;;  %v9465_v0 = vld [vmem:[#allocation61_spill] sm:$0xff]  ;;  %v9466_v10 = vld [vmem:[#allocation63_spill] sm:$0xff] }
 0x48f   : > { %3645 = vst [vmem:[%s7511_s23 + $0x5a0] sm:$0xff] %v3389_v38  ;;  %3646 = vst [vmem:[%s7511_s23 + $0x5a8] sm:$0xff] %v3390_v63  ;;  %v9467_v15 = vld [vmem:[#allocation228_spill] sm:$0xff]  ;;  %v9468_v2 = vld [vmem:[#allocation229_spill] sm:$0xff] }
 0x490   : > { %3647 = vst [vmem:[%s7511_s23 + $0x5b0] sm:$0xff] %v3391_v20  ;;  %3648 = vst [vmem:[%s7511_s23 + $0x5b8] sm:$0xff] %v3392_v34  ;;  %v3200_v12 = vadd.f32 %v3160_v54, %v9462_v55  ;;  %v9469_v36 = vld [vmem:[#allocation232_spill] sm:$0xff]  ;;  %v9470_v45 = vld [vmem:[#allocation233_spill] sm:$0xff] }
 0x491   : > { %v9471_v17 = vld [vmem:[#allocation64_spill] sm:$0xff]  ;;  %v9472_v31 = vld [vmem:[#allocation66_spill] sm:$0xff]  ;;  %v9473_v28 = vld [vmem:[#allocation65_spill] sm:$0xff] }
 0x492   : > { %v3058_v1 = vpop.xlane.xlu1 %3057  ;;  %v3393_v44 = vsub.f32 %v9463_v58, %v3200_v12  ;;  %v3394_v56 = vsub.f32 %v9464_v57, %v3200_v12  ;;  %v3395_v29 = vsub.f32 %v9465_v0, %v3200_v12  ;;  %v3396_v21 = vsub.f32 %v9466_v10, %v3200_v12  ;;  %v9474_v9 = vld [vmem:[#allocation67_spill] sm:$0xff]  ;;  %v9475_v61 = vld [vmem:[#allocation234_spill] sm:$0xff]  ;;  %v9479_v27 = vld [vmem:[#allocation68_spill] sm:$0xff] }
 0x493   : > { %4637 = vlog2.f32 %v3058_v1  ;;  %v3397_v6 = vsub.f32 %v9467_v15, %v3200_v12  ;;  %v3398_v40 = vsub.f32 %v9468_v2, %v3200_v12  ;;  %v3399_v60 = vsub.f32 %v9469_v36, %v3200_v12  ;;  %v9476_v39 = vld [vmem:[#allocation235_spill] sm:$0xff]  ;;  %v9480_v41 = vld [vmem:[#allocation70_spill] sm:$0xff]  ;;  %v9481_v32 = vld [vmem:[#allocation69_spill] sm:$0xff] }
 0x494   : > { %v3400_v30 = vsub.f32 %v9470_v45, %v3200_v12  ;;  %3649 = vst [vmem:[%s7511_s23 + $0x5c0] sm:$0xff] %v3393_v44  ;;  %3650 = vst [vmem:[%s7511_s23 + $0x5c8] sm:$0xff] %v3394_v56  ;;  %v9478_v50 = vld [vmem:[#allocation239_spill] sm:$0xff]  ;;  %v9483_v12 = vld [vmem:[#allocation236_spill] sm:$0xff] }
 0x495   : > { %3651 = vst [vmem:[%s7511_s23 + $0x5d0] sm:$0xff] %v3395_v29  ;;  %3652 = vst [vmem:[%s7511_s23 + $0x5d8] sm:$0xff] %v3396_v21  ;;  %v4636_v26 = vpop.eup %4635  ;;  %v9482_v59 = vld [vmem:[#allocation71_spill] sm:$0xff]  ;;  %v9484_v58 = vld [vmem:[#allocation237_spill] sm:$0xff] }
 0x496   : > { %3653 = vst [vmem:[%s7511_s23 + $0x5e0] sm:$0xff] %v3397_v6  ;;  %3654 = vst [vmem:[%s7511_s23 + $0x5e8] sm:$0xff] %v3398_v40  ;;  %v3162_v48 = vmul.f32 0.6931472, %v4636_v26  ;;  %v9485_v57 = vld [vmem:[#allocation240_spill] sm:$0xff]  ;;  %v9488_v6 = vld [vmem:[#allocation74_spill] sm:$0xff] }
 0x497   : > { %3655 = vst [vmem:[%s7511_s23 + $0x5f0] sm:$0xff] %v3399_v60  ;;  %3656 = vst [vmem:[%s7511_s23 + $0x5f8] sm:$0xff] %v3400_v30  ;;  %v9486_v10 = vld [vmem:[#allocation276_spill] sm:$0xff]  ;;  %v9489_v40 = vld [vmem:[#allocation73_spill] sm:$0xff] }
 0x498   : > { %v3201_v23 = vadd.f32 %v3162_v48, %v7350_v5  ;;  %v9477_v5 = vld [vmem:[#allocation238_spill] sm:$0xff]  ;;  %v9487_v15 = vld [vmem:[#allocation72_spill] sm:$0xff]  ;;  %v9490_v60 = vld [vmem:[#allocation75_spill] sm:$0xff] }
 0x499   : > { %v9491_v26 = vld [vmem:[#allocation242_spill] sm:$0xff] }
 0x49a   : > { %v3067_v53 = vpop.xlane.xlu0 %3066  ;;  %v3401_v51 = vsub.f32 %v9471_v17, %v3201_v23  ;;  %v3402_v52 = vsub.f32 %v9472_v31, %v3201_v23  ;;  %v3403_v16 = vsub.f32 %v9473_v28, %v3201_v23  ;;  %v3404_v13 = vsub.f32 %v9474_v9, %v3201_v23  ;;  %v9493_v17 = vld [vmem:[#allocation246_spill] sm:$0xff]  ;;  %v9494_v31 = vld [vmem:[#allocation247_spill] sm:$0xff] }
 0x49b   : > { %4639 = vlog2.f32 %v3067_v53  ;;  %v3405_v49 = vsub.f32 %v9475_v61, %v3201_v23  ;;  %v3406_v11 = vsub.f32 %v9476_v39, %v3201_v23  ;;  %v3407_v25 = vsub.f32 %v9477_v5, %v3201_v23 }
 0x49c   : > { %v3408_v18 = vsub.f32 %v9478_v50, %v3201_v23  ;;  %3657 = vst [vmem:[%s7511_s23 + $0x600] sm:$0xff] %v3401_v51  ;;  %3658 = vst [vmem:[%s7511_s23 + $0x608] sm:$0xff] %v3402_v52  ;;  %v9492_v23 = vld [vmem:[#allocation243_spill] sm:$0xff] }
 0x49d   : > { %v4638_v35 = vpop.eup %4637  ;;  %3659 = vst [vmem:[%s7511_s23 + $0x610] sm:$0xff] %v3403_v16  ;;  %3660 = vst [vmem:[%s7511_s23 + $0x618] sm:$0xff] %v3404_v13 }
 0x49e   : > { %v3164_v33 = vmul.f32 0.6931472, %v4638_v35  ;;  %3661 = vst [vmem:[%s7511_s23 + $0x620] sm:$0xff] %v3405_v49  ;;  %3662 = vst [vmem:[%s7511_s23 + $0x628] sm:$0xff] %v3406_v11  ;;  %v9495_v35 = vld [vmem:[#allocation76_spill] sm:$0xff]  ;;  %v9496_v49 = vld [vmem:[#allocation78_spill] sm:$0xff] }
 0x49f   : > { %3663 = vst [vmem:[%s7511_s23 + $0x630] sm:$0xff] %v3407_v25  ;;  %3664 = vst [vmem:[%s7511_s23 + $0x638] sm:$0xff] %v3408_v18  ;;  %v9497_v11 = vld [vmem:[#allocation77_spill] sm:$0xff]  ;;  %v9498_v25 = vld [vmem:[#allocation79_spill] sm:$0xff] }
 0x4a0   : > { %v3202_v38 = vadd.f32 %v3164_v33, %v7368_v42  ;;  %v9499_v18 = vld [vmem:[#allocation244_spill] sm:$0xff] }
 0x4a2   : > { %v3409_v63 = vsub.f32 %v9479_v27, %v3202_v38  ;;  %v3410_v20 = vsub.f32 %v9480_v41, %v3202_v38  ;;  %v3411_v34 = vsub.f32 %v9481_v32, %v3202_v38  ;;  %v3412_v54 = vsub.f32 %v9482_v59, %v3202_v38  ;;  %v3076_v55 = vpop.xlane.xlu1 %3075  ;;  %v9500_v27 = vld [vmem:[#allocation248_spill] sm:$0xff] }
 0x4a3   : > { %v3413_v1 = vsub.f32 %v9483_v12, %v3202_v38  ;;  %v3414_v44 = vsub.f32 %v9484_v58, %v3202_v38  ;;  %v3415_v56 = vsub.f32 %v9485_v57, %v3202_v38  ;;  %v3416_v42 = vsub.f32 %v9238_v24, %v3202_v38  ;;  %v9501_v32 = vld [vmem:[#allocation80_spill] sm:$0xff]  ;;  %v9503_v12 = vld [vmem:[#allocation83_spill] sm:$0xff]  ;;  %v9504_v58 = vld [vmem:[#allocation249_spill] sm:$0xff] }
 0x4a4   : > { %3665 = vst [vmem:[%s7511_s23 + $0x640] sm:$0xff] %v3409_v63  ;;  %3666 = vst [vmem:[%s7511_s23 + $0x648] sm:$0xff] %v3410_v20  ;;  %4641 = vlog2.f32 %v3076_v55 }
 0x4a5   : > { %3667 = vst [vmem:[%s7511_s23 + $0x650] sm:$0xff] %v3411_v34  ;;  %3668 = vst [vmem:[%s7511_s23 + $0x658] sm:$0xff] %v3412_v54  ;;  %v4640_v0 = vpop.eup %4639  ;;  %v9502_v54 = vld [vmem:[#allocation81_spill] sm:$0xff] }
 0x4a6   : > { %3669 = vst [vmem:[%s7511_s23 + $0x660] sm:$0xff] %v3413_v1  ;;  %3670 = vst [vmem:[%s7511_s23 + $0x668] sm:$0xff] %v3414_v44  ;;  %v3166_v29 = vmul.f32 0.6931472, %v4640_v0  ;;  %v9506_v0 = vld [vmem:[#allocation253_spill] sm:$0xff] }
 0x4a7   : > { %3671 = vst [vmem:[%s7511_s23 + $0x670] sm:$0xff] %v3415_v56  ;;  %3672 = vst [vmem:[%s7511_s23 + $0x678] sm:$0xff] %v3416_v42  ;;  %v9505_v56 = vld [vmem:[#allocation252_spill] sm:$0xff] }
 0x4a8   : > { %v3203_v21 = vadd.f32 %v3166_v29, %v9486_v10 }
 0x4aa   : > { %v3417_v24 = vsub.f32 %v9487_v15, %v3203_v21  ;;  %v3418_v2 = vsub.f32 %v9488_v6, %v3203_v21  ;;  %v3419_v36 = vsub.f32 %v9489_v40, %v3203_v21  ;;  %v3420_v45 = vsub.f32 %v9490_v60, %v3203_v21  ;;  %v3085_v30 = vpop.xlane.xlu0 %3084 }
 0x4ab   : > { %v3421_v48 = vsub.f32 %v9491_v26, %v3203_v21  ;;  %v3422_v53 = vsub.f32 %v9492_v23, %v3203_v21  ;;  %v3423_v51 = vsub.f32 %v9493_v17, %v3203_v21  ;;  %v3424_v52 = vsub.f32 %v9494_v31, %v3203_v21  ;;  %v9507_v21 = vld [vmem:[#allocation84_spill] sm:$0xff] }
 0x4ac   : > { %3673 = vst [vmem:[%s7511_s23 + $0x680] sm:$0xff] %v3417_v24  ;;  %3674 = vst [vmem:[%s7511_s23 + $0x688] sm:$0xff] %v3418_v2  ;;  %4643 = vlog2.f32 %v3085_v30  ;;  %v9508_v24 = vld [vmem:[#allocation86_spill] sm:$0xff]  ;;  %v9509_v2 = vld [vmem:[#allocation85_spill] sm:$0xff] }
 0x4ad   : > { %3675 = vst [vmem:[%s7511_s23 + $0x690] sm:$0xff] %v3419_v36  ;;  %3676 = vst [vmem:[%s7511_s23 + $0x698] sm:$0xff] %v3420_v45  ;;  %v9510_v36 = vld [vmem:[#allocation87_spill] sm:$0xff]  ;;  %v9511_v45 = vld [vmem:[#allocation250_spill] sm:$0xff] }
 0x4ae   : > { %3677 = vst [vmem:[%s7511_s23 + $0x6a0] sm:$0xff] %v3421_v48  ;;  %3678 = vst [vmem:[%s7511_s23 + $0x6a8] sm:$0xff] %v3422_v53  ;;  %v4642_v28 = vpop.eup %4641  ;;  %v9512_v48 = vld [vmem:[#allocation254_spill] sm:$0xff] }
 0x4af   : > { %3679 = vst [vmem:[%s7511_s23 + $0x6b0] sm:$0xff] %v3423_v51  ;;  %3680 = vst [vmem:[%s7511_s23 + $0x6b8] sm:$0xff] %v3424_v52  ;;  %v3168_v16 = vmul.f32 0.6931472, %v4642_v28  ;;  %v9513_v51 = vld [vmem:[#allocation92_spill] sm:$0xff]  ;;  %v9514_v52 = vld [vmem:[#allocation93_spill] sm:$0xff] }
 0x4b1   : > { %v3204_v9 = vadd.f32 %v3168_v16, %v7404_v3  ;;  %v9515_v16 = vld [vmem:[#allocation95_spill] sm:$0xff] }
 0x4b2   : > { %v3094_v13 = vpop.xlane.xlu1 %3093 }
 0x4b3   : > { %v3425_v61 = vsub.f32 %v9495_v35, %v3204_v9  ;;  %v3426_v39 = vsub.f32 %v9496_v49, %v3204_v9  ;;  %v3427_v5 = vsub.f32 %v9497_v11, %v3204_v9  ;;  %v3428_v50 = vsub.f32 %v9498_v25, %v3204_v9  ;;  %v9516_v35 = vld [vmem:[#allocation255_spill] sm:$0xff]  ;;  %v9517_v49 = vld [vmem:[#allocation256_spill] sm:$0xff] }
 0x4b4   : > { %v3429_v33 = vsub.f32 %v9499_v18, %v3204_v9  ;;  %v3430_v38 = vsub.f32 %v9249_v14, %v3204_v9  ;;  %v3431_v63 = vsub.f32 %v9500_v27, %v3204_v9  ;;  %v3432_v3 = vsub.f32 %v6832_v7, %v3204_v9  ;;  %v9518_v11 = vld [vmem:[#allocation259_spill] sm:$0xff]  ;;  %v9520_v18 = vld [vmem:[#allocation96_spill] sm:$0xff] }
 0x4b5   : > { %3681 = vst [vmem:[%s7511_s23 + $0x6c0] sm:$0xff] %v3425_v61  ;;  %3682 = vst [vmem:[%s7511_s23 + $0x6c8] sm:$0xff] %v3426_v39  ;;  %4645 = vlog2.f32 %v3094_v13 }
 0x4b6   : > { %3683 = vst [vmem:[%s7511_s23 + $0x6d0] sm:$0xff] %v3427_v5  ;;  %3684 = vst [vmem:[%s7511_s23 + $0x6d8] sm:$0xff] %v3428_v50  ;;  %v4644_v41 = vpop.eup %4643  ;;  %v9519_v5 = vld [vmem:[#allocation260_spill] sm:$0xff] }
 0x4b7   : > { %3685 = vst [vmem:[%s7511_s23 + $0x6e0] sm:$0xff] %v3429_v33  ;;  %3686 = vst [vmem:[%s7511_s23 + $0x6e8] sm:$0xff] %v3430_v38  ;;  %v3170_v20 = vmul.f32 0.6931472, %v4644_v41  ;;  %v9521_v38 = vld [vmem:[#allocation99_spill] sm:$0xff]  ;;  %v9523_v41 = vld [vmem:[#allocation100_spill] sm:$0xff] }
 0x4b8   : > { %3687 = vst [vmem:[%s7511_s23 + $0x6f0] sm:$0xff] %v3431_v63  ;;  %3688 = vst [vmem:[%s7511_s23 + $0x6f8] sm:$0xff] %v3432_v3  ;;  %v9522_v63 = vld [vmem:[#allocation97_spill] sm:$0xff] }
 0x4b9   : > { %v3205_v14 = vadd.f32 %v3170_v20, %v7422_v46 }
 0x4ba   : > { %v3103_v7 = vpop.xlane.xlu0 %3102 }
 0x4bb   : > { %v3433_v34 = vsub.f32 %v9501_v32, %v3205_v14  ;;  %v3434_v59 = vsub.f32 %v9252_v62, %v3205_v14  ;;  %v3435_v55 = vsub.f32 %v9502_v54, %v3205_v14  ;;  %v3436_v1 = vsub.f32 %v9503_v12, %v3205_v14  ;;  %v9527_v54 = vld [vmem:[#allocation262_spill] sm:$0xff] }
 0x4bc   : > { %v3437_v44 = vsub.f32 %v9504_v58, %v3205_v14  ;;  %v3438_v57 = vsub.f32 %v6846_v22, %v3205_v14  ;;  %v3439_v42 = vsub.f32 %v9505_v56, %v3205_v14  ;;  %v3440_v46 = vsub.f32 %v9506_v0, %v3205_v14 }
 0x4bd   : > { %3689 = vst [vmem:[%s7511_s23 + $0x700] sm:$0xff] %v3433_v34  ;;  %3690 = vst [vmem:[%s7511_s23 + $0x708] sm:$0xff] %v3434_v59  ;;  %4647 = vlog2.f32 %v3103_v7  ;;  %v9525_v7 = vld [vmem:[#allocation258_spill] sm:$0xff]  ;;  %v9526_v34 = vld [vmem:[#allocation261_spill] sm:$0xff] }
 0x4be   : > { %3691 = vst [vmem:[%s7511_s23 + $0x710] sm:$0xff] %v3435_v55  ;;  %3692 = vst [vmem:[%s7511_s23 + $0x718] sm:$0xff] %v3436_v1 }
 0x4bf   : > { %3693 = vst [vmem:[%s7511_s23 + $0x720] sm:$0xff] %v3437_v44  ;;  %3694 = vst [vmem:[%s7511_s23 + $0x728] sm:$0xff] %v3438_v57  ;;  %v4646_v62 = vpop.eup %4645 }
 0x4c0   : > { %3695 = vst [vmem:[%s7511_s23 + $0x730] sm:$0xff] %v3439_v42  ;;  %3696 = vst [vmem:[%s7511_s23 + $0x738] sm:$0xff] %v3440_v46  ;;  %v3172_v29 = vmul.f32 0.6931472, %v4646_v62 }
 0x4c2   : > { %v3206_v22 = vadd.f32 %v3172_v29, %v7440_v47  ;;  %v3112_v10 = vpop.xlane.xlu1 %3111 }
 0x4c3   : > { %4649 = vlog2.f32 %v3112_v10 }
 0x4c4   : > { %v3441_v15 = vsub.f32 %v9507_v21, %v3206_v22  ;;  %v3442_v6 = vsub.f32 %v9508_v24, %v3206_v22  ;;  %v3443_v40 = vsub.f32 %v9509_v2, %v3206_v22  ;;  %v3444_v60 = vsub.f32 %v9510_v36, %v3206_v22 }
 0x4c5   : > { %v3445_v30 = vsub.f32 %v9511_v45, %v3206_v22  ;;  %v3446_v26 = vsub.f32 %v9260_v19, %v3206_v22  ;;  %v3447_v47 = vsub.f32 %v9512_v48, %v3206_v22  ;;  %v3448_v23 = vsub.f32 %v6886_v43, %v3206_v22 }
 0x4c6   : > { %3697 = vst [vmem:[%s7511_s23 + $0x740] sm:$0xff] %v3441_v15  ;;  %3698 = vst [vmem:[%s7511_s23 + $0x748] sm:$0xff] %v3442_v6 }
 0x4c7   : > { %3699 = vst [vmem:[%s7511_s23 + $0x750] sm:$0xff] %v3443_v40  ;;  %3700 = vst [vmem:[%s7511_s23 + $0x758] sm:$0xff] %v3444_v60  ;;  %v4648_v53 = vpop.eup %4647 }
 0x4c8   : > { %3701 = vst [vmem:[%s7511_s23 + $0x760] sm:$0xff] %v3445_v30  ;;  %3702 = vst [vmem:[%s7511_s23 + $0x768] sm:$0xff] %v3446_v26  ;;  %v3174_v17 = vmul.f32 0.6931472, %v4648_v53 }
 0x4c9   : > { %3703 = vst [vmem:[%s7511_s23 + $0x770] sm:$0xff] %v3447_v47  ;;  %3704 = vst [vmem:[%s7511_s23 + $0x778] sm:$0xff] %v3448_v23 }
 0x4ca   : > { %v3207_v19 = vadd.f32 %v3174_v17, %v7458_v37 }
 0x4cc   : > { %v3449_v43 = vsub.f32 %v9513_v51, %v3207_v19  ;;  %v3450_v31 = vsub.f32 %v9262_v4, %v3207_v19  ;;  %v3451_v28 = vsub.f32 %v9514_v52, %v3207_v19  ;;  %v3452_v9 = vsub.f32 %v9515_v16, %v3207_v19 }
 0x4cd   : > { %v4650_v13 = vpop.eup %4649  ;;  %v3453_v61 = vsub.f32 %v9516_v35, %v3207_v19  ;;  %v3454_v39 = vsub.f32 %v9517_v49, %v3207_v19  ;;  %v3455_v37 = vsub.f32 %v9518_v11, %v3207_v19  ;;  %v3456_v25 = vsub.f32 %v9519_v5, %v3207_v19 }
 0x4ce   : > { %3705 = vst [vmem:[%s7511_s23 + $0x780] sm:$0xff] %v3449_v43  ;;  %3706 = vst [vmem:[%s7511_s23 + $0x788] sm:$0xff] %v3450_v31  ;;  %v3176_v4 = vmul.f32 0.6931472, %v4650_v13 }
 0x4cf   : > { %3707 = vst [vmem:[%s7511_s23 + $0x790] sm:$0xff] %v3451_v28  ;;  %3708 = vst [vmem:[%s7511_s23 + $0x798] sm:$0xff] %v3452_v9 }
 0x4d0   : > { %3709 = vst [vmem:[%s7511_s23 + $0x7a0] sm:$0xff] %v3453_v61  ;;  %3710 = vst [vmem:[%s7511_s23 + $0x7a8] sm:$0xff] %v3454_v39  ;;  %v3208_v50 = vadd.f32 %v3176_v4, %v7476_v8  ;;  %v9524_v8 = vld [vmem:[#allocation257_spill] sm:$0xff] }
 0x4d1   : > { %3711 = vst [vmem:[%s7511_s23 + $0x7b0] sm:$0xff] %v3455_v37  ;;  %3712 = vst [vmem:[%s7511_s23 + $0x7b8] sm:$0xff] %v3456_v25 }
 0x4d2   : > { %v3457_v33 = vsub.f32 %v9520_v18, %v3208_v50  ;;  %v3458_v27 = vsub.f32 %v9521_v38, %v3208_v50  ;;  %v3459_v3 = vsub.f32 %v9522_v63, %v3208_v50  ;;  %v3460_v20 = vsub.f32 %v9523_v41, %v3208_v50 }
 0x4d3   : > { %v3461_v14 = vsub.f32 %v9524_v8, %v3208_v50  ;;  %v3462_v32 = vsub.f32 %v9525_v7, %v3208_v50  ;;  %v3463_v59 = vsub.f32 %v9526_v34, %v3208_v50  ;;  %v3464_v55 = vsub.f32 %v9527_v54, %v3208_v50 }
 0x4d4   : > { %3713 = vst [vmem:[%s7511_s23 + $0x7c0] sm:$0xff] %v3457_v33  ;;  %3714 = vst [vmem:[%s7511_s23 + $0x7c8] sm:$0xff] %v3458_v27 }
 0x4d5   : > { %3715 = vst [vmem:[%s7511_s23 + $0x7d0] sm:$0xff] %v3459_v3  ;;  %3716 = vst [vmem:[%s7511_s23 + $0x7d8] sm:$0xff] %v3460_v20 }
 0x4d6   : > { %3717 = vst [vmem:[%s7511_s23 + $0x7e0] sm:$0xff] %v3461_v14  ;;  %3718 = vst [vmem:[%s7511_s23 + $0x7e8] sm:$0xff] %v3462_v32 }
 0x4d7   : > { %3719 = vst [vmem:[%s7511_s23 + $0x7f0] sm:$0xff] %v3463_v59  ;;  %3720 = vst [vmem:[%s7511_s23 + $0x7f8] sm:$0xff] %v3464_v55 }
 0x4d8   : > { %4778 = shalt.err (!%p4775_p13)
}
 0x4d9   : > { %s4779_s29 = scalar_lea.hbm %s8075_s19, 32768  ;;  %s4783_s25 = scalar_lea.hbm %s8137_s4, 65536 }
 0x4da   : > { %p4780_p0 = scmp.ne.s32.totalorder %s8075_s19, %s4779_s29  ;;  %p4784_p9 = scmp.lt.u32.totalorder %s8075_s19, %s8137_s4 }
 0x4db   : > { %p4785_p12 = scmp.lt.u32.totalorder %s4783_s25, %s4779_s29  ;;  %p4787_p1 = scmp.lt.u32.totalorder %s4779_s29, %s8075_s19 }
 0x4dc   : > { %p4781_p5 = pnand %p4780_p0, %p5016_p6 }
 0x4dd   : > { %p4786_p2 = por %p4785_p12, %p4784_p9 }
 0x4de   : > { %p4782_p11 = pneg %p4781_p5 }
 0x4df   : > { %p4788_p4 = por %p4787_p1, %p4786_p2 }
 0x4e1   : > { %p4789_p8 = pnand %p4788_p4, %p4782_p11 }
 0x4e3   : > { %4792 = shalt.err (!%p4789_p8)
}
 0x4e4   : > { %s4851_s23 = smov 1024   ;;  %s4852_s26 = smov 64  }
 0x4e5   : > { %3941 = dma.vmem_to_hbm [thread:$0]  (%p5016_p6), %s8077_s5, 32768, %s8075_s19, %s3722_s14, %s4851_s23, %s4851_s23, %s4852_s26  }
 0x4e6 PF: > { %s3751_s6 = sand.u32 1, %s4827_s15   ;;  %p9528_p3 = scmp.ne.s32.totalorder %s8619_s22, 0 }
 0x4e7   : > { %p9529_p7 = scmp.ge.s32.totalorder %s4839_s18, 2  ;;  %s3752_s7 = scalar_lea.sflag [#allocation4], %s3751_s6 }
 0x4e9   : > { %p3958_p10 = pnand %p9529_p7, %p9528_p3 }
 0x4eb   : > { %4822 = dma.done.wait (!%p3958_p10), %s3752_s7, 32768  }
 0x4ec   : > { %4824 = vsyncadd (!%p3958_p10), %s3752_s7, 4294934528  ;;  %p19_p13 = scmp.ge.s32.totalorder %s5002_s10, 4   ;;  %s9530_s15 = smov %s4831_s16 }
 0x4ed   : > { %s9531_s16 = smov %s4835_s17  ;;  %s9532_s17 = smov %s5012_s11 }
 0x4ee   : > { %s9533_s18 = smov %s5002_s10  ;;  %21 = sbr.rel (!%p19_p13) target bundleno = 7 (0x7), region = 93 }
 0x4f5   :  { %3757 = vsyncpa [#allocation3], 1 }
 0x4f6   :  { %3759 = vsyncpa [#allocation3 + $0x1], 1 }
 0x4f7   :  { %3760 = vsyncpa [#allocation6], 1 }
 0x4f8   :  { %3761 = vsyncpa [#allocation9], 1 }
 0x4f9   :  { %3762 = vsyncpa [#allocation4], 1 }
 0x4fa   :  { %3764 = vsyncpa [#allocation4 + $0x1], 1 }

</bundles_post_ra>
